<compile_context>
chip_gen: v5e
topology: v5e:2x2
jax: 0.10.0
libtpu: 0.0.40
codegen_flags: <defaults>
</compile_context>

<pallas_src>
import jax
import jax.numpy as jnp
from jax.experimental import pallas as pl
from jax.experimental.pallas import tpu as pltpu

# small shapes consistent with the module (hidden must be divisible by 32)
LATENT = 64          # latent_dim
TIME_DIM = 128       # time-embedding width (fixed at 128 in the module)
HIDDEN = 256         # hidden_dim (divisible by 32)
GROUPS = 32          # nn.GroupNorm(32, hidden_dim)
TIMESTEPS = 16       # timesteps
BATCH = 512          # enough rows to fill MXU tiles and exercise the grid
TM = 256             # rows per grid step: grid=(2,) -> 1 step/TC on v7x, 2 steps on v5e/v6e
EPS = 1e-5           # PyTorch GroupNorm default eps


def _silu(x):
    return x * jax.nn.sigmoid(x)


def diffusion_mlp_kernel(z_ref, t_ref, ttab_ref,
                         w1z_ref, b1_ref,
                         w2_ref, b2_ref,
                         beta_ref,
                         w3_ref, b3_ref,
                         gmean_ref, gmt_ref,
                         out_ref):
    f32 = jnp.float32
    bf16 = jnp.bfloat16
    tm = z_ref.shape[0]

    # ---- time branch: t takes only TIMESTEPS discrete values -> one-hot @ table ----
    t_idx = jnp.clip(t_ref[...], 0, TIMESTEPS - 1)                    # (TM, 1) int32
    ids = jax.lax.broadcasted_iota(jnp.int32, (tm, TIMESTEPS), 1)
    one_hot = (t_idx == ids).astype(f32)                              # (TM, T)

    # ---- noise_predictor[0]: Linear(LATENT+128 -> HIDDEN) on cat([z, te], 1) -------
    #      split matmul; the time contribution is the precomputed f32 lookup table
    h = (jnp.dot(z_ref[...].astype(bf16), w1z_ref[...], preferred_element_type=f32)
         + jnp.dot(one_hot, ttab_ref[...], preferred_element_type=f32)
         + b1_ref[...])
    h = _silu(h)

    # ---- Linear(HIDDEN -> HIDDEN) ---------------------------------------------------
    h2 = jnp.dot(h.astype(bf16), w2_ref[...],
                 preferred_element_type=f32) + b2_ref[...]

    # ---- GroupNorm(32, HIDDEN), f32 stats, no concats (RHS stays resident) ----------
    # gmean_ref is the one-hot (HIDDEN, GROUPS) group map pre-scaled by 1/(HIDDEN//GROUPS)
    mean = jnp.dot(h2, gmean_ref[...], preferred_element_type=f32)        # (TM, G)
    ex2 = jnp.dot(h2 * h2, gmean_ref[...], preferred_element_type=f32)    # (TM, G)
    var = jnp.maximum(ex2 - mean * mean, 0.0)     # clamp one-pass variance
    inv = jax.lax.rsqrt(var + EPS)
    # gmt_ref = gmat.T * gamma  ->  scale/shift already carry the affine weight
    scale = jnp.dot(inv, gmt_ref[...], preferred_element_type=f32)        # (TM, H)
    shift = jnp.dot(mean * inv, gmt_ref[...], preferred_element_type=f32)  # (TM, H)
    hn = _silu(h2 * scale - shift + beta_ref[...])

    # ---- Linear(HIDDEN -> LATENT), stored directly at native width (no padding) -----
    out_ref[...] = (jnp.dot(hn.astype(bf16), w3_ref[...],
                            preferred_element_type=f32) + b3_ref[...])


def cosine_beta_schedule(timesteps, s=0.008):
    # unused by forward(), kept for fidelity with the module's __init__
    x = jnp.linspace(0.0, timesteps, timesteps + 1)
    ac = jnp.cos((x / timesteps + s) / (1 + s) * jnp.pi * 0.5) ** 2
    ac = ac / ac[0]
    betas = 1.0 - ac[1:] / ac[:-1]
    return jnp.clip(betas, 1e-4, 0.9999)


def init_params(key):
    ks = jax.random.split(key, 8)
    f32 = jnp.float32

    def dense(k, fan_in, fan_out):
        scale = 1.0 / jnp.sqrt(fan_in)
        return jax.random.uniform(k, (fan_in, fan_out), f32, -scale, scale)

    w1 = dense(ks[2], LATENT + TIME_DIM, HIDDEN)
    return {
        "embed": jax.random.normal(ks[0], (TIMESTEPS, TIME_DIM), f32),
        "wte": dense(ks[1], TIME_DIM, TIME_DIM),
        "bte": jnp.zeros((1, TIME_DIM), f32),
        "w1z": w1[:LATENT, :],
        "w1t": w1[LATENT:, :],
        "b1": jnp.zeros((1, HIDDEN), f32),
        "w2": dense(ks[3], HIDDEN, HIDDEN),
        "b2": jnp.zeros((1, HIDDEN), f32),
        "gamma": jnp.ones((1, HIDDEN), f32),   # GroupNorm weight init
        "beta": jnp.zeros((1, HIDDEN), f32),   # GroupNorm bias init
        "w3": dense(ks[4], HIDDEN, LATENT),
        "b3": jnp.zeros((1, LATENT), f32),
        "betas": cosine_beta_schedule(TIMESTEPS),
    }


def prepare_kernel_params(p):
    """Derived / folded kernel operands.

    * ttab: the entire time branch (Embedding -> Linear -> SiLU -> @ w1t) folded
      into a (TIMESTEPS, HIDDEN) f32 table — t only takes 16 values.
    * gmean: one-hot group map pre-scaled so x @ gmean gives per-group means.
    * gmt: group-map transpose with gamma folded in (affine weight for free).
    * bf16 copies of the remaining weight matrices (halved DMA, native MXU dtype);
      biases and GN-derived matrices stay f32.
    """
    bf16 = jnp.bfloat16
    f32 = jnp.float32
    te = _silu(p["embed"] @ p["wte"] + p["bte"])                      # (T, 128), f32
    ttab = te @ p["w1t"]                                              # (T, HIDDEN), f32
    gmat = (jnp.arange(HIDDEN)[:, None] // (HIDDEN // GROUPS)
            == jnp.arange(GROUPS)[None, :]).astype(f32)               # (H, G)
    return {
        "ttab": ttab,
        "w1z": p["w1z"].astype(bf16), "b1": p["b1"],
        "w2": p["w2"].astype(bf16), "b2": p["b2"],
        "beta": p["beta"],
        "w3": p["w3"].astype(bf16), "b3": p["b3"],
        "gmean": gmat / float(HIDDEN // GROUPS),   # x @ gmean -> per-group means
        "gmt": gmat.T * p["gamma"],                # (G, H), gamma folded in
    }


@jax.jit
def latent_diffusion_forward(kp, z, t):
    b = z.shape[0]
    assert b % TM == 0, "batch must be a multiple of the row tile"
    t2 = t.reshape(b, 1).astype(jnp.int32)

    rows = lambda i: (i, 0)      # batch-tiled operands
    const = lambda i: (0, 0)     # VMEM-resident weights (same block every step)

    in_specs = [
        pl.BlockSpec((TM, LATENT), rows),             # z
        pl.BlockSpec((TM, 1), rows),                  # t indices
        pl.BlockSpec((TIMESTEPS, HIDDEN), const),     # folded time table (f32)
        pl.BlockSpec((LATENT, HIDDEN), const),        # w1[:LATENT] (bf16)
        pl.BlockSpec((1, HIDDEN), const),             # b1
        pl.BlockSpec((HIDDEN, HIDDEN), const),        # w2 (bf16)
        pl.BlockSpec((1, HIDDEN), const),             # b2
        pl.BlockSpec((1, HIDDEN), const),             # GN beta
        pl.BlockSpec((HIDDEN, LATENT), const),        # w3 (bf16)
        pl.BlockSpec((1, LATENT), const),             # b3
        pl.BlockSpec((HIDDEN, GROUPS), const),        # scaled group map (f32)
        pl.BlockSpec((GROUPS, HIDDEN), const),        # group map^T * gamma (f32)
    ]

    # Advisory cost for XLA scheduling around the custom call.
    flops_per_row = 2 * (LATENT * HIDDEN + TIMESTEPS * HIDDEN + HIDDEN * HIDDEN
                         + 2 * HIDDEN * GROUPS + 2 * GROUPS * HIDDEN + HIDDEN * LATENT)
    weight_bytes = sum(int(v.size) * v.dtype.itemsize for v in kp.values())
    cost = pl.CostEstimate(
        flops=b * flops_per_row,
        transcendentals=b * (2 * HIDDEN + GROUPS),
        bytes_accessed=(z.size * z.dtype.itemsize + t2.size * t2.dtype.itemsize
                        + b * LATENT * 4 + weight_bytes),
    )

    return pl.pallas_call(
        diffusion_mlp_kernel,
        out_shape=jax.ShapeDtypeStruct((b, LATENT), jnp.float32),
        grid=(b // TM,),
        in_specs=in_specs,
        out_specs=pl.BlockSpec((TM, LATENT), rows),
        compiler_params=pltpu.CompilerParams(
            # batch tiles are independent -> shard across v7x's two TensorCores
            dimension_semantics=("parallel",),
        ),
        cost_estimate=cost,
        # NOTE: per-step VMEM is < 2 MiB; re-budget vmem_limit_bytes only if
        # HIDDEN/TM are scaled up substantially on v7x (64 MiB VMEM).
    )(z, t2, kp["ttab"], kp["w1z"], kp["b1"], kp["w2"], kp["b2"],
      kp["beta"], kp["w3"], kp["b3"], kp["gmean"], kp["gmt"])


def reference_forward(params, z, t):
    # pure-JAX f32 reference mirroring the PyTorch module semantics
    emb = params["embed"][t]
    te = _silu(emb @ params["wte"] + params["bte"])
    x = jnp.concatenate([z, te], axis=1)
    w1 = jnp.concatenate([params["w1z"], params["w1t"]], axis=0)
    h = _silu(x @ w1 + params["b1"])
    h2 = h @ params["w2"] + params["b2"]
    g = h2.reshape(h2.shape[0], GROUPS, HIDDEN // GROUPS)
    mean = g.mean(axis=2, keepdims=True)
    var = ((g - mean) ** 2).mean(axis=2, keepdims=True)
    gn = ((g - mean) / jnp.sqrt(var + EPS)).reshape(h2.shape)
    gn = gn * params["gamma"] + params["beta"]
    return _silu(gn) @ params["w3"] + params["b3"]


if __name__ == "__main__":
    key = jax.random.PRNGKey(0)
    kpk, kz, kt = jax.random.split(key, 3)
    params = init_params(kpk)
    kparams = prepare_kernel_params(params)

    z = jax.random.normal(kz, (BATCH, LATENT), jnp.float32)
    t = jax.random.randint(kt, (BATCH,), 0, TIMESTEPS, jnp.int32)

    out = latent_diffusion_forward(kparams, z, t)
    out = jax.block_until_ready(out)

    ref = reference_forward(params, z, t)
    assert out.shape == (BATCH, LATENT)
    # bf16 matmul operands (f32 accumulation) vs f32 reference -> loose tolerance
    rel = float(jnp.linalg.norm(out - ref) / (jnp.linalg.norm(ref) + 1e-12))
    max_abs = float(jnp.max(jnp.abs(out - ref)))
    assert rel < 2e-2 and max_abs < 1e-1, (rel, max_abs)
    print("KERNEL_OK")
</pallas_src>

<mosaic_0001>
module attributes {stable_mosaic.version = 11 : i64} {
  func.func @diffusion_mlp_kernel(%arg0: i32, %arg1: memref<256x64xf32, #tpu.memory_space<vmem>>, %arg2: memref<256x1xi32, #tpu.memory_space<vmem>>, %arg3: memref<16x256xf32, #tpu.memory_space<vmem>>, %arg4: memref<64x256xbf16, #tpu.memory_space<vmem>>, %arg5: memref<1x256xf32, #tpu.memory_space<vmem>>, %arg6: memref<256x256xbf16, #tpu.memory_space<vmem>>, %arg7: memref<1x256xf32, #tpu.memory_space<vmem>>, %arg8: memref<1x256xf32, #tpu.memory_space<vmem>>, %arg9: memref<256x64xbf16, #tpu.memory_space<vmem>>, %arg10: memref<1x64xf32, #tpu.memory_space<vmem>>, %arg11: memref<256x32xf32, #tpu.memory_space<vmem>>, %arg12: memref<32x256xf32, #tpu.memory_space<vmem>>, %arg13: memref<256x64xf32, #tpu.memory_space<vmem>>) attributes {dimension_semantics = [#tpu.dimension_semantics<parallel>], iteration_bounds = array<i64: 2>, scalar_prefetch = 0 : i64, scratch_operands = 0 : i64, tpu.core_type = #tpu.core_type<tc>, window_params = [{transform_indices = @transform_0, window_bounds = array<i64: 256, 64>}, {transform_indices = @transform_1, window_bounds = array<i64: 256, 1>}, {pipeline_mode = #tpu.pipeline_mode<synchronous>, transform_indices = @transform_2, window_bounds = array<i64: 16, 256>}, {pipeline_mode = #tpu.pipeline_mode<synchronous>, transform_indices = @transform_3, window_bounds = array<i64: 64, 256>}, {pipeline_mode = #tpu.pipeline_mode<synchronous>, transform_indices = @transform_4, window_bounds = array<i64: 1, 256>}, {pipeline_mode = #tpu.pipeline_mode<synchronous>, transform_indices = @transform_5, window_bounds = array<i64: 256, 256>}, {pipeline_mode = #tpu.pipeline_mode<synchronous>, transform_indices = @transform_6, window_bounds = array<i64: 1, 256>}, {pipeline_mode = #tpu.pipeline_mode<synchronous>, transform_indices = @transform_7, window_bounds = array<i64: 1, 256>}, {pipeline_mode = #tpu.pipeline_mode<synchronous>, transform_indices = @transform_8, window_bounds = array<i64: 256, 64>}, {pipeline_mode = #tpu.pipeline_mode<synchronous>, transform_indices = @transform_9, window_bounds = array<i64: 1, 64>}, {pipeline_mode = #tpu.pipeline_mode<synchronous>, transform_indices = @transform_10, window_bounds = array<i64: 256, 32>}, {pipeline_mode = #tpu.pipeline_mode<synchronous>, transform_indices = @transform_11, window_bounds = array<i64: 32, 256>}, {transform_indices = @transform_12, window_bounds = array<i64: 256, 64>}]} {
    %c0 = arith.constant 0 : index
    %c0_0 = arith.constant 0 : index
    %0 = vector.load %arg2[%c0, %c0_0] : memref<256x1xi32, #tpu.memory_space<vmem>>, vector<256x1xi32>
    %c0_i32 = arith.constant 0 : i32
    %c15_i32 = arith.constant 15 : i32
    %1 = vector.broadcast %c0_i32 : i32 to vector<256x1xi32>
    %2 = arith.maxsi %1, %0 : vector<256x1xi32>
    %3 = vector.broadcast %c15_i32 : i32 to vector<256x1xi32>
    %4 = arith.minsi %3, %2 : vector<256x1xi32>
    %5 = tpu.iota {dimensions = array<i32: 1>} : vector<256x16xi32>
    %6 = vector.broadcast %4 : vector<256x1xi32> to vector<256x16xi32>
    %7 = arith.cmpi eq, %6, %5 : vector<256x16xi32>
    %8 = arith.extui %7 : vector<256x16xi1> to vector<256x16xi32>
    %9 = arith.sitofp %8 : vector<256x16xi32> to vector<256x16xf32>
    %c0_1 = arith.constant 0 : index
    %c0_2 = arith.constant 0 : index
    %10 = vector.load %arg1[%c0_1, %c0_2] : memref<256x64xf32, #tpu.memory_space<vmem>>, vector<256x64xf32>
    %11 = arith.truncf %10 : vector<256x64xf32> to vector<256x64xbf16>
    %c0_3 = arith.constant 0 : index
    %c0_4 = arith.constant 0 : index
    %12 = vector.load %arg4[%c0_3, %c0_4] : memref<64x256xbf16, #tpu.memory_space<vmem>>, vector<64x256xbf16>
    %cst = arith.constant dense<0.000000e+00> : vector<256x256xf32>
    %13 = tpu.matmul %11, %12, %cst {dimension_numbers = #tpu.dot_dimension_numbers<[1], [0], [0], [1], [0, 0, 1, 1], [], []>} : vector<256x64xbf16>, vector<64x256xbf16>, vector<256x256xf32> -> vector<256x256xf32>
    %c0_5 = arith.constant 0 : index
    %c0_6 = arith.constant 0 : index
    %14 = vector.load %arg3[%c0_5, %c0_6] : memref<16x256xf32, #tpu.memory_space<vmem>>, vector<16x256xf32>
    %cst_7 = arith.constant dense<0.000000e+00> : vector<256x256xf32>
    %15 = tpu.matmul %9, %14, %cst_7 {dimension_numbers = #tpu.dot_dimension_numbers<[1], [0], [0], [1], [0, 0, 1, 1], [], []>} : vector<256x16xf32>, vector<16x256xf32>, vector<256x256xf32> -> vector<256x256xf32>
    %16 = arith.addf %13, %15 : vector<256x256xf32>
    %c0_8 = arith.constant 0 : index
    %c0_9 = arith.constant 0 : index
    %17 = vector.load %arg5[%c0_8, %c0_9] : memref<1x256xf32, #tpu.memory_space<vmem>>, vector<1x256xf32>
    %18 = vector.broadcast %17 : vector<1x256xf32> to vector<256x256xf32>
    %19 = arith.addf %16, %18 : vector<256x256xf32>
    %20 = arith.negf %19 : vector<256x256xf32>
    %21 = math.exp %20 : vector<256x256xf32>
    %cst_10 = arith.constant 1.000000e+00 : f32
    %22 = vector.broadcast %cst_10 : f32 to vector<256x256xf32>
    %23 = arith.addf %22, %21 : vector<256x256xf32>
    %24 = arith.divf %22, %23 : vector<256x256xf32>
    %25 = arith.mulf %19, %24 : vector<256x256xf32>
    %26 = arith.truncf %25 : vector<256x256xf32> to vector<256x256xbf16>
    %c0_11 = arith.constant 0 : index
    %c0_12 = arith.constant 0 : index
    %27 = vector.load %arg6[%c0_11, %c0_12] : memref<256x256xbf16, #tpu.memory_space<vmem>>, vector<256x256xbf16>
    %cst_13 = arith.constant dense<0.000000e+00> : vector<256x256xf32>
    %28 = tpu.matmul %26, %27, %cst_13 {dimension_numbers = #tpu.dot_dimension_numbers<[1], [0], [0], [1], [0, 0, 1, 1], [], []>} : vector<256x256xbf16>, vector<256x256xbf16>, vector<256x256xf32> -> vector<256x256xf32>
    %c0_14 = arith.constant 0 : index
    %c0_15 = arith.constant 0 : index
    %29 = vector.load %arg7[%c0_14, %c0_15] : memref<1x256xf32, #tpu.memory_space<vmem>>, vector<1x256xf32>
    %30 = vector.broadcast %29 : vector<1x256xf32> to vector<256x256xf32>
    %31 = arith.addf %28, %30 : vector<256x256xf32>
    %c0_16 = arith.constant 0 : index
    %c0_17 = arith.constant 0 : index
    %32 = vector.load %arg11[%c0_16, %c0_17] : memref<256x32xf32, #tpu.memory_space<vmem>>, vector<256x32xf32>
    %cst_18 = arith.constant dense<0.000000e+00> : vector<256x32xf32>
    %33 = tpu.matmul %31, %32, %cst_18 {dimension_numbers = #tpu.dot_dimension_numbers<[1], [0], [0], [1], [0, 0, 1, 1], [], []>} : vector<256x256xf32>, vector<256x32xf32>, vector<256x32xf32> -> vector<256x32xf32>
    %34 = arith.mulf %31, %31 : vector<256x256xf32>
    %c0_19 = arith.constant 0 : index
    %c0_20 = arith.constant 0 : index
    %35 = vector.load %arg11[%c0_19, %c0_20] : memref<256x32xf32, #tpu.memory_space<vmem>>, vector<256x32xf32>
    %cst_21 = arith.constant dense<0.000000e+00> : vector<256x32xf32>
    %36 = tpu.matmul %34, %35, %cst_21 {dimension_numbers = #tpu.dot_dimension_numbers<[1], [0], [0], [1], [0, 0, 1, 1], [], []>} : vector<256x256xf32>, vector<256x32xf32>, vector<256x32xf32> -> vector<256x32xf32>
    %37 = arith.mulf %33, %33 : vector<256x32xf32>
    %38 = arith.subf %36, %37 : vector<256x32xf32>
    %cst_22 = arith.constant 0.000000e+00 : f32
    %39 = vector.broadcast %cst_22 : f32 to vector<256x32xf32>
    %40 = arith.maximumf %38, %39 : vector<256x32xf32>
    %cst_23 = arith.constant 9.99999974E-6 : f32
    %41 = vector.broadcast %cst_23 : f32 to vector<256x32xf32>
    %42 = arith.addf %40, %41 : vector<256x32xf32>
    %43 = math.rsqrt %42 : vector<256x32xf32>
    %c0_24 = arith.constant 0 : index
    %c0_25 = arith.constant 0 : index
    %44 = vector.load %arg12[%c0_24, %c0_25] : memref<32x256xf32, #tpu.memory_space<vmem>>, vector<32x256xf32>
    %cst_26 = arith.constant dense<0.000000e+00> : vector<256x256xf32>
    %45 = tpu.matmul %43, %44, %cst_26 {dimension_numbers = #tpu.dot_dimension_numbers<[1], [0], [0], [1], [0, 0, 1, 1], [], []>} : vector<256x32xf32>, vector<32x256xf32>, vector<256x256xf32> -> vector<256x256xf32>
    %46 = arith.mulf %33, %43 : vector<256x32xf32>
    %c0_27 = arith.constant 0 : index
    %c0_28 = arith.constant 0 : index
    %47 = vector.load %arg12[%c0_27, %c0_28] : memref<32x256xf32, #tpu.memory_space<vmem>>, vector<32x256xf32>
    %cst_29 = arith.constant dense<0.000000e+00> : vector<256x256xf32>
    %48 = tpu.matmul %46, %47, %cst_29 {dimension_numbers = #tpu.dot_dimension_numbers<[1], [0], [0], [1], [0, 0, 1, 1], [], []>} : vector<256x32xf32>, vector<32x256xf32>, vector<256x256xf32> -> vector<256x256xf32>
    %49 = arith.mulf %31, %45 : vector<256x256xf32>
    %50 = arith.subf %49, %48 : vector<256x256xf32>
    %c0_30 = arith.constant 0 : index
    %c0_31 = arith.constant 0 : index
    %51 = vector.load %arg8[%c0_30, %c0_31] : memref<1x256xf32, #tpu.memory_space<vmem>>, vector<1x256xf32>
    %52 = vector.broadcast %51 : vector<1x256xf32> to vector<256x256xf32>
    %53 = arith.addf %50, %52 : vector<256x256xf32>
    %54 = arith.negf %53 : vector<256x256xf32>
    %55 = math.exp %54 : vector<256x256xf32>
    %cst_32 = arith.constant 1.000000e+00 : f32
    %56 = vector.broadcast %cst_32 : f32 to vector<256x256xf32>
    %57 = arith.addf %56, %55 : vector<256x256xf32>
    %58 = arith.divf %56, %57 : vector<256x256xf32>
    %59 = arith.mulf %53, %58 : vector<256x256xf32>
    %60 = arith.truncf %59 : vector<256x256xf32> to vector<256x256xbf16>
    %c0_33 = arith.constant 0 : index
    %c0_34 = arith.constant 0 : index
    %61 = vector.load %arg9[%c0_33, %c0_34] : memref<256x64xbf16, #tpu.memory_space<vmem>>, vector<256x64xbf16>
    %cst_35 = arith.constant dense<0.000000e+00> : vector<256x64xf32>
    %62 = tpu.matmul %60, %61, %cst_35 {dimension_numbers = #tpu.dot_dimension_numbers<[1], [0], [0], [1], [0, 0, 1, 1], [], []>} : vector<256x256xbf16>, vector<256x64xbf16>, vector<256x64xf32> -> vector<256x64xf32>
    %c0_36 = arith.constant 0 : index
    %c0_37 = arith.constant 0 : index
    %63 = vector.load %arg10[%c0_36, %c0_37] : memref<1x64xf32, #tpu.memory_space<vmem>>, vector<1x64xf32>
    %64 = vector.broadcast %63 : vector<1x64xf32> to vector<256x64xf32>
    %65 = arith.addf %62, %64 : vector<256x64xf32>
    %c0_38 = arith.constant 0 : index
    %c0_39 = arith.constant 0 : index
    %66 = vector.load %arg13[%c0_38, %c0_39] : memref<256x64xf32, #tpu.memory_space<vmem>>, vector<256x64xf32>
    tpu.vector_store %arg13[%c0_38, %c0_39], %65 {strides = array<i32>} : memref<256x64xf32, #tpu.memory_space<vmem>>, vector<256x64xf32>,
    return
  }
  func.func @transform_0(%arg0: i32) -> (i32, i32) {
    %c0_i32 = arith.constant 0 : i32
    %c0_i32_0 = arith.constant 0 : i32
    return %arg0, %c0_i32 : i32, i32
  }
  func.func @transform_1(%arg0: i32) -> (i32, i32) {
    %c0_i32 = arith.constant 0 : i32
    %c0_i32_0 = arith.constant 0 : i32
    return %arg0, %c0_i32 : i32, i32
  }
  func.func @transform_2(%arg0: i32) -> (i32, i32) {
    %c0_i32 = arith.constant 0 : i32
    %c0_i32_0 = arith.constant 0 : i32
    %c0_i32_1 = arith.constant 0 : i32
    return %c0_i32, %c0_i32_0 : i32, i32
  }
  func.func @transform_3(%arg0: i32) -> (i32, i32) {
    %c0_i32 = arith.constant 0 : i32
    %c0_i32_0 = arith.constant 0 : i32
    %c0_i32_1 = arith.constant 0 : i32
    return %c0_i32, %c0_i32_0 : i32, i32
  }
  func.func @transform_4(%arg0: i32) -> (i32, i32) {
    %c0_i32 = arith.constant 0 : i32
    %c0_i32_0 = arith.constant 0 : i32
    %c0_i32_1 = arith.constant 0 : i32
    return %c0_i32, %c0_i32_0 : i32, i32
  }
  func.func @transform_5(%arg0: i32) -> (i32, i32) {
    %c0_i32 = arith.constant 0 : i32
    %c0_i32_0 = arith.constant 0 : i32
    %c0_i32_1 = arith.constant 0 : i32
    return %c0_i32, %c0_i32_0 : i32, i32
  }
  func.func @transform_6(%arg0: i32) -> (i32, i32) {
    %c0_i32 = arith.constant 0 : i32
    %c0_i32_0 = arith.constant 0 : i32
    %c0_i32_1 = arith.constant 0 : i32
    return %c0_i32, %c0_i32_0 : i32, i32
  }
  func.func @transform_7(%arg0: i32) -> (i32, i32) {
    %c0_i32 = arith.constant 0 : i32
    %c0_i32_0 = arith.constant 0 : i32
    %c0_i32_1 = arith.constant 0 : i32
    return %c0_i32, %c0_i32_0 : i32, i32
  }
  func.func @transform_8(%arg0: i32) -> (i32, i32) {
    %c0_i32 = arith.constant 0 : i32
    %c0_i32_0 = arith.constant 0 : i32
    %c0_i32_1 = arith.constant 0 : i32
    return %c0_i32, %c0_i32_0 : i32, i32
  }
  func.func @transform_9(%arg0: i32) -> (i32, i32) {
    %c0_i32 = arith.constant 0 : i32
    %c0_i32_0 = arith.constant 0 : i32
    %c0_i32_1 = arith.constant 0 : i32
    return %c0_i32, %c0_i32_0 : i32, i32
  }
  func.func @transform_10(%arg0: i32) -> (i32, i32) {
    %c0_i32 = arith.constant 0 : i32
    %c0_i32_0 = arith.constant 0 : i32
    %c0_i32_1 = arith.constant 0 : i32
    return %c0_i32, %c0_i32_0 : i32, i32
  }
  func.func @transform_11(%arg0: i32) -> (i32, i32) {
    %c0_i32 = arith.constant 0 : i32
    %c0_i32_0 = arith.constant 0 : i32
    %c0_i32_1 = arith.constant 0 : i32
    return %c0_i32, %c0_i32_0 : i32, i32
  }
  func.func @transform_12(%arg0: i32) -> (i32, i32) {
    %c0_i32 = arith.constant 0 : i32
    %c0_i32_0 = arith.constant 0 : i32
    return %arg0, %c0_i32 : i32, i32
  }
}

</mosaic_0001>

<bundles_post_ra>
// kernel: latent_diffusion_forward.1
= control target key start
LH: loop header
LB: loop body
LE: loop exit
PB: predicated region body
PF: predicated region fallthrough
CT: control target
= control target key end

     0   :  { %s8333_s21 = smov 0   ;;  %s15292_s0 = inlined_call_operand.vmem [shape: f32[512,64], index: 0, kind: input, shape index: {}]   ;;  %s15293_s1 = inlined_call_operand.vmem [shape: s32[512,1], index: 1, kind: input, shape index: {}]   ;;  %s15294_s2 = inlined_call_operand.vmem [shape: f32[16,256], index: 2, kind: input, shape index: {}]   ;;  %s15295_s3 = inlined_call_operand.vmem [shape: bf16[64,256], index: 3, kind: input, shape index: {}]   ;;  %s15296_s4 = inlined_call_operand.vmem [shape: f32[1,256], index: 4, kind: input, shape index: {}]   ;;  %s15297_s5 = inlined_call_operand.vmem [shape: bf16[256,256], index: 5, kind: input, shape index: {}]   ;;  %s15298_s6 = inlined_call_operand.vmem [shape: f32[1,256], index: 6, kind: input, shape index: {}]   ;;  %s15299_s7 = inlined_call_operand.vmem [shape: f32[1,256], index: 7, kind: input, shape index: {}]   ;;  %s15300_s8 = inlined_call_operand.vmem [shape: bf16[256,64], index: 8, kind: input, shape index: {}]   ;;  %s15301_s9 = inlined_call_operand.vmem [shape: f32[1,64], index: 9, kind: input, shape index: {}]   ;;  %s15302_s10 = inlined_call_operand.vmem [shape: f32[256,32], index: 10, kind: input, shape index: {}]   ;;  %s15303_s11 = inlined_call_operand.vmem [shape: f32[32,256], index: 11, kind: input, shape index: {}]   ;;  %s15304_s12 = inlined_call_operand.vmem [shape: f32[512,64], index: 12, kind: output, shape index: {}]  }
   0x1 LB: > { %s6981_s22 = sadd.s32 4294967295, %s8264_s21   ;;  %p6985_p0 = scmp.ge.s32.totalorder %s8264_s21, 1  ;;  %s8264_s21 = sphi %s8333_s21, %s22_s21  }
   0x2   : > { %p374_p1 = scmp.lt.s32.totalorder %s8264_s21, 3 }
   0x4   : > { %p375_p2 = pnand %p6985_p0, %p374_p1 }
   0x6   : > { %378 = sbr.rel (%p375_p2) target bundleno = 1815 (0x717), region = 68 }
   0xb   : > { %s6986_s23 = sshll.u32 %s6981_s22, 5  ;;  %v8266_v0 = vmov 0  }
   0xc   : > { %7678 = vset.pattern.permute.xlu2 %v8266_v0  ;;  %7677 = vset.pattern.permute.xlu1 %v8266_v0  ;;  %p422_p3 = scmp.lt.s32.totalorder %s6986_s23, 63 }
   0xd   : > { %7676 = vset.pattern.permute.xlu0 %v8266_v0 }
   0xe   : > { %s15929_s23 = smov (!%p422_p3, %s6986_s23), 63 }
   0xf   : > { %s8341_s24 = sshll.u32 %s15929_s23, 3 }
  0x10   : > { %s8347_s27 = scalar_lea.vmem %s15293_s1, %s8341_s24  ;;  %s8584_s30 = scalar_lea.vmem %s15292_s0, %s8341_s24 }
  0x11   : > { %v460_v1 = vld [vmem:[%s8347_s27 + $0xa0] sm:$0xff]  ;;  %v458_v2 = vld [vmem:[%s8347_s27 + $0x90] sm:$0xff]  ;;  %v461_v4 = vld [vmem:[%s8347_s27 + $0xa8] sm:$0xff]  ;;  %s14917_s28 = scalar_lea.vmem %s15304_s12, %s8341_s24 }
  0x12   : > { %v456_v3 = vld [vmem:[%s8347_s27 + $0x80] sm:$0xff]  ;;  %vm512_vm0 = vcmp.gt.s32.totalorder %v460_v1, 0  ;;  %vm508_vm1 = vcmp.gt.s32.totalorder %v458_v2, 0  ;;  %vm514_vm3 = vcmp.gt.s32.totalorder %v461_v4, 0  ;;  %v459_v8 = vld [vmem:[%s8347_s27 + $0x98] sm:$0xff]  ;;  %v457_v9 = vld [vmem:[%s8347_s27 + $0x88] sm:$0xff] }
  0x13   : > { %vm504_vm2 = vcmp.gt.s32.totalorder %v456_v3, 0  ;;  %v513_v5 = vsel %vm512_vm0, %v460_v1, 0  ;;  %v509_v6 = vsel %vm508_vm1, %v458_v2, 0  ;;  %v515_v13 = vsel %vm514_vm3, %v461_v4, 0  ;;  %v464_v16 = vld [vmem:[%s8347_s27 + $0xc0] sm:$0xff]  ;;  %v463_v17 = vld [vmem:[%s8347_s27 + $0xb8] sm:$0xff] }
  0x14   : > { %v505_v7 = vsel %vm504_vm2, %v456_v3, 0  ;;  %vm576_vm4 = vcmp.lt.s32.totalorder %v513_v5, 15  ;;  %vm572_vm5 = vcmp.lt.s32.totalorder %v509_v6, 15  ;;  %vm510_vm7 = vcmp.gt.s32.totalorder %v459_v8, 0  ;;  %v462_v18 = vld [vmem:[%s8347_s27 + $0xb0] sm:$0xff]  ;;  %v467_v25 = vld [vmem:[%s8347_s27 + $0xd8] sm:$0xff] }
  0x15   : > { %vm568_vm6 = vcmp.lt.s32.totalorder %v505_v7, 15  ;;  %v577_v10 = vsel %vm576_vm4, %v513_v5, 15  ;;  %v573_v11 = vsel %vm572_vm5, %v509_v6, 15  ;;  %vm506_vm8 = vcmp.gt.s32.totalorder %v457_v9, 0  ;;  %v466_v26 = vld [vmem:[%s8347_s27 + $0xd0] sm:$0xff]  ;;  %v465_v27 = vld [vmem:[%s8347_s27 + $0xc8] sm:$0xff] }
  0x16   : > { %v569_v12 = vsel %vm568_vm6, %v505_v7, 15  ;;  %663 = vperm.xlu2 %7678, %v577_v10   ;;  %657 = vperm.xlu1 %7677, %v573_v11   ;;  %v511_v14 = vsel %vm510_vm7, %v459_v8, 0  ;;  %v507_v15 = vsel %vm506_vm8, %v457_v9, 0  ;;  %vm578_vm9 = vcmp.lt.s32.totalorder %v515_v13, 15  ;;  %v470_v34 = vld [vmem:[%s8347_s27 + $0xf0] sm:$0xff]  ;;  %v469_v35 = vld [vmem:[%s8347_s27 + $0xe8] sm:$0xff] }
  0x17   : > { %651 = vperm.xlu0 %7676, %v569_v12   ;;  %vm574_vm10 = vcmp.lt.s32.totalorder %v511_v14, 15  ;;  %vm570_vm11 = vcmp.lt.s32.totalorder %v507_v15, 15  ;;  %vm520_vm12 = vcmp.gt.s32.totalorder %v464_v16, 0  ;;  %vm518_vm13 = vcmp.gt.s32.totalorder %v463_v17, 0  ;;  %v468_v36 = vld [vmem:[%s8347_s27 + $0xe0] sm:$0xff]  ;;  %v441_v43 = vld [vmem:[%s8347_s27 + $0x8] sm:$0xff] }
  0x18   : > { %v579_v19 = vsel %vm578_vm9, %v515_v13, 15  ;;  %v575_v20 = vsel %vm574_vm10, %v511_v14, 15  ;;  %vm516_vm14 = vcmp.gt.s32.totalorder %v462_v18, 0  ;;  %v571_v21 = vsel %vm570_vm11, %v507_v15, 15  ;;  %v440_v44 = vld [vmem:[%s8347_s27] sm:$0xff]  ;;  %v471_v45 = vld [vmem:[%s8347_s27 + $0xf8] sm:$0xff] }
  0x19   : > { %v521_v22 = vsel %vm520_vm12, %v464_v16, 0  ;;  %v519_v23 = vsel %vm518_vm13, %v463_v17, 0  ;;  %v517_v24 = vsel %vm516_vm14, %v462_v18, 0  ;;  %vm526_vm2 = vcmp.gt.s32.totalorder %v467_v25, 0  ;;  %v444_v52 = vld [vmem:[%s8347_s27 + $0x20] sm:$0xff]  ;;  %v443_v53 = vld [vmem:[%s8347_s27 + $0x18] sm:$0xff] }
  0x1a   : > { %vm584_vm15 = vcmp.lt.s32.totalorder %v521_v22, 15  ;;  %vm582_vm0 = vcmp.lt.s32.totalorder %v519_v23, 15  ;;  %vm580_vm1 = vcmp.lt.s32.totalorder %v517_v24, 15  ;;  %vm524_vm3 = vcmp.gt.s32.totalorder %v466_v26, 0  ;;  %v442_v54 = vld [vmem:[%s8347_s27 + $0x10] sm:$0xff]  ;;  %v447_v61 = vld [vmem:[%s8347_s27 + $0x38] sm:$0xff] }
  0x1b   : > { %v585_v28 = vsel %vm584_vm15, %v521_v22, 15  ;;  %v583_v29 = vsel %vm582_vm0, %v519_v23, 15  ;;  %vm522_vm4 = vcmp.gt.s32.totalorder %v465_v27, 0  ;;  %v581_v30 = vsel %vm580_vm1, %v517_v24, 15  ;;  %v446_v62 = vld [vmem:[%s8347_s27 + $0x30] sm:$0xff]  ;;  %v445_v63 = vld [vmem:[%s8347_s27 + $0x28] sm:$0xff] }
  0x1c   : > { %v527_v31 = vsel %vm526_vm2, %v467_v25, 0  ;;  %v525_v32 = vsel %vm524_vm3, %v466_v26, 0  ;;  %v523_v33 = vsel %vm522_vm4, %v465_v27, 0  ;;  %vm532_vm8 = vcmp.gt.s32.totalorder %v470_v34, 0  ;;  %v450_v6 = vld [vmem:[%s8347_s27 + $0x50] sm:$0xff]  ;;  %v449_v7 = vld [vmem:[%s8347_s27 + $0x48] sm:$0xff] }
  0x1d   : > { %vm590_vm5 = vcmp.lt.s32.totalorder %v527_v31, 15  ;;  %vm588_vm6 = vcmp.lt.s32.totalorder %v525_v32, 15  ;;  %vm586_vm7 = vcmp.lt.s32.totalorder %v523_v33, 15  ;;  %vm530_vm9 = vcmp.gt.s32.totalorder %v469_v35, 0  ;;  %v448_v8 = vld [vmem:[%s8347_s27 + $0x40] sm:$0xff]  ;;  %v453_v15 = vld [vmem:[%s8347_s27 + $0x68] sm:$0xff] }
  0x1e   : > { %666 = vperm.xlu2 %7678, %v579_v19   ;;  %660 = vperm.xlu1 %7677, %v575_v20   ;;  %v591_v37 = vsel %vm590_vm5, %v527_v31, 15  ;;  %v589_v38 = vsel %vm588_vm6, %v525_v32, 15  ;;  %vm528_vm10 = vcmp.gt.s32.totalorder %v468_v36, 0  ;;  %v587_v39 = vsel %vm586_vm7, %v523_v33, 15  ;;  %v452_v16 = vld [vmem:[%s8347_s27 + $0x60] sm:$0xff]  ;;  %v451_v17 = vld [vmem:[%s8347_s27 + $0x58] sm:$0xff] }
  0x1f   : > { %654 = vperm.xlu0 %7676, %v571_v21   ;;  %v533_v40 = vsel %vm532_vm8, %v470_v34, 0  ;;  %v531_v41 = vsel %vm530_vm9, %v469_v35, 0  ;;  %v529_v42 = vsel %vm528_vm10, %v468_v36, 0  ;;  %vm474_vm14 = vcmp.gt.s32.totalorder %v441_v43, 0  ;;  %v455_v24 = vld [vmem:[%s8347_s27 + $0x78] sm:$0xff]  ;;  %v454_v25 = vld [vmem:[%s8347_s27 + $0x70] sm:$0xff] }
  0x20   : > { %vm596_vm11 = vcmp.lt.s32.totalorder %v533_v40, 15  ;;  %vm594_vm12 = vcmp.lt.s32.totalorder %v531_v41, 15  ;;  %vm592_vm13 = vcmp.lt.s32.totalorder %v529_v42, 15  ;;  %vm472_vm15 = vcmp.gt.s32.totalorder %v440_v44, 0  ;;  %v853_v31 = vld [vmem:[%s15294_s2 + $0x18] sm:$0xff]  ;;  %v851_v34 = vld [vmem:[%s15294_s2 + $0x8] sm:$0xff] }
  0x21   : > { %v597_v46 = vsel %vm596_vm11, %v533_v40, 15  ;;  %v595_v47 = vsel %vm594_vm12, %v531_v41, 15  ;;  %vm534_vm0 = vcmp.gt.s32.totalorder %v471_v45, 0  ;;  %v593_v48 = vsel %vm592_vm13, %v529_v42, 15  ;;  %7660 = vmatpush.msra.mxu3 %v853_v31  ;;  %1078 = vmatpush.msra.mxu1 %v853_v31  ;;  %v7608_v35 = vld [vmem:[%s15295_s3 + $0x34] sm:$0xf] }
  0x22   : > { %v475_v49 = vsel %vm474_vm14, %v441_v43, 0  ;;  %v473_v50 = vsel %vm472_vm15, %v440_v44, 0  ;;  %v535_v51 = vsel %vm534_vm0, %v471_v45, 0  ;;  %vm480_vm4 = vcmp.gt.s32.totalorder %v444_v52, 0  ;;  %v7116_v36 = vld [vmem:[%s15295_s3 + $0x38] sm:$0xf0] }
  0x23   : > { %vm538_vm1 = vcmp.lt.s32.totalorder %v475_v49, 15  ;;  %vm536_vm2 = vcmp.lt.s32.totalorder %v473_v50, 15  ;;  %vm598_vm3 = vcmp.lt.s32.totalorder %v535_v51, 15  ;;  %vm478_vm5 = vcmp.gt.s32.totalorder %v443_v53, 0  ;;  %7661 = vmatpush.msra.mxu3 %v851_v34  ;;  %1079 = vmatpush.msra.mxu1 %v851_v34  ;;  %v7114_v40 = vld [vmem:[%s15295_s3 + $0x30] sm:$0xf] }
  0x24   : > { %v539_v55 = vsel %vm538_vm1, %v475_v49, 15  ;;  %v537_v56 = vsel %vm536_vm2, %v473_v50, 15  ;;  %vm476_vm6 = vcmp.gt.s32.totalorder %v442_v54, 0  ;;  %v599_v57 = vsel %vm598_vm3, %v535_v51, 15  ;;  %v7609_v41 = vld [vmem:[%s15295_s3 + $0x34] sm:$0xf0] }
  0x25   : > { %v481_v58 = vsel %vm480_vm4, %v444_v52, 0  ;;  %v479_v59 = vsel %vm478_vm5, %v443_v53, 0  ;;  %v477_v60 = vsel %vm476_vm6, %v442_v54, 0  ;;  %vm486_vm10 = vcmp.gt.s32.totalorder %v447_v61, 0  ;;  %v7606_v50 = vld [vmem:[%s15295_s3 + $0x24] sm:$0xf] }
  0x26   : > { %675 = vperm.xlu2 %7678, %v585_v28   ;;  %672 = vperm.xlu1 %7677, %v583_v29   ;;  %vm544_vm7 = vcmp.lt.s32.totalorder %v481_v58, 15  ;;  %vm542_vm8 = vcmp.lt.s32.totalorder %v479_v59, 15  ;;  %vm540_vm9 = vcmp.lt.s32.totalorder %v477_v60, 15  ;;  %vm484_vm11 = vcmp.gt.s32.totalorder %v446_v62, 0  ;;  %v7108_v51 = vld [vmem:[%s15295_s3 + $0x28] sm:$0xf0] }
  0x27   : > { %669 = vperm.xlu0 %7676, %v581_v30   ;;  %v545_v0 = vsel %vm544_vm7, %v481_v58, 15  ;;  %v543_v1 = vsel %vm542_vm8, %v479_v59, 15  ;;  %vm482_vm12 = vcmp.gt.s32.totalorder %v445_v63, 0  ;;  %v541_v2 = vsel %vm540_vm9, %v477_v60, 15  ;;  %v7607_v58 = vld [vmem:[%s15295_s3 + $0x24] sm:$0xf0] }
  0x28   : > { %v487_v3 = vsel %vm486_vm10, %v447_v61, 0  ;;  %v485_v4 = vsel %vm484_vm11, %v446_v62, 0  ;;  %v483_v5 = vsel %vm482_vm12, %v445_v63, 0  ;;  %vm492_vm0 = vcmp.gt.s32.totalorder %v450_v6, 0  ;;  %v7603_v31 = vld [vmem:[%s15295_s3 + $0x4] sm:$0xf0] }
  0x29   : > { %vm550_vm13 = vcmp.lt.s32.totalorder %v487_v3, 15  ;;  %vm548_vm14 = vcmp.lt.s32.totalorder %v485_v4, 15  ;;  %vm546_vm15 = vcmp.lt.s32.totalorder %v483_v5, 15  ;;  %vm490_vm1 = vcmp.gt.s32.totalorder %v449_v7, 0 }
  0x2a   : > { %v551_v9 = vsel %vm550_vm13, %v487_v3, 15  ;;  %v549_v10 = vsel %vm548_vm14, %v485_v4, 15  ;;  %vm488_vm2 = vcmp.gt.s32.totalorder %v448_v8, 0  ;;  %v547_v11 = vsel %vm546_vm15, %v483_v5, 15 }
  0x2b   : > { %v493_v12 = vsel %vm492_vm0, %v450_v6, 0  ;;  %v491_v13 = vsel %vm490_vm1, %v449_v7, 0  ;;  %v489_v14 = vsel %vm488_vm2, %v448_v8, 0  ;;  %vm498_vm6 = vcmp.gt.s32.totalorder %v453_v15, 0  ;;  %v7604_v8 = vld [vmem:[%s15295_s3 + $0x14] sm:$0xf] }
  0x2c   : > { %vm556_vm3 = vcmp.lt.s32.totalorder %v493_v12, 15  ;;  %vm554_vm4 = vcmp.lt.s32.totalorder %v491_v13, 15  ;;  %vm552_vm5 = vcmp.lt.s32.totalorder %v489_v14, 15  ;;  %vm496_vm7 = vcmp.gt.s32.totalorder %v452_v16, 0 }
  0x2d   : > { %v557_v18 = vsel %vm556_vm3, %v493_v12, 15  ;;  %v555_v19 = vsel %vm554_vm4, %v491_v13, 15  ;;  %vm494_vm8 = vcmp.gt.s32.totalorder %v451_v17, 0  ;;  %v553_v20 = vsel %vm552_vm5, %v489_v14, 15  ;;  %v7605_v12 = vld [vmem:[%s15295_s3 + $0x14] sm:$0xf0] }
  0x2e   : > { %684 = vperm.xlu2 %7678, %v591_v37   ;;  %681 = vperm.xlu1 %7677, %v589_v38   ;;  %v499_v21 = vsel %vm498_vm6, %v453_v15, 0  ;;  %v497_v22 = vsel %vm496_vm7, %v452_v16, 0  ;;  %v495_v23 = vsel %vm494_vm8, %v451_v17, 0  ;;  %vm502_vm12 = vcmp.gt.s32.totalorder %v455_v24, 0  ;;  %v852_v37 = vld [vmem:[%s15294_s2 + $0x10] sm:$0xff] }
  0x2f   : > { %678 = vperm.xlu0 %7676, %v587_v39   ;;  %vm562_vm9 = vcmp.lt.s32.totalorder %v499_v21, 15  ;;  %vm560_vm10 = vcmp.lt.s32.totalorder %v497_v22, 15  ;;  %vm558_vm11 = vcmp.lt.s32.totalorder %v495_v23, 15  ;;  %vm500_vm13 = vcmp.gt.s32.totalorder %v454_v25, 0  ;;  %7658 = vmatpush.msra.mxu2 %v852_v37  ;;  %v850_v39 = vld [vmem:[%s15294_s2] sm:$0xff] }
  0x30   : > { %v563_v26 = vsel %vm562_vm9, %v499_v21, 15  ;;  %v561_v27 = vsel %vm560_vm10, %v497_v22, 15  ;;  %v559_v28 = vsel %vm558_vm11, %v495_v23, 15  ;;  %v503_v29 = vsel %vm502_vm12, %v455_v24, 0  ;;  %965 = vmatpush.msra.mxu0 %v852_v37 }
  0x31   : > { %v501_v30 = vsel %vm500_vm13, %v454_v25, 0  ;;  %vm566_vm14 = vcmp.lt.s32.totalorder %v503_v29, 15  ;;  %v7119_v38 = vor.u32 %v7608_v35, %v7116_v36  ;;  %7659 = vmatpush.msra.mxu2 %v850_v39  ;;  %v7115_v42 = vor.u32 %v7609_v41, %v7114_v40 }
  0x32   : > { %vm564_vm15 = vcmp.lt.s32.totalorder %v501_v30, 15  ;;  %v567_v32 = vsel %vm566_vm14, %v503_v29, 15  ;;  %966 = vmatpush.msra.mxu0 %v850_v39  ;;  %v600_v43 = vlaneseq  ;;  %vm854_vm0 = vcmask 130048   ;;  %v7090_v29 = vld [vmem:[%s15295_s3] sm:$0xf] }
  0x33   : > { %v565_v33 = vsel %vm564_vm15, %v501_v30, 15  ;;  %1359 = vmatpush.bf16.msrb.mxu3 %v7119_v38  ;;  %1270 = vmatpush.bf16.msrb.mxu2 %v7115_v42  ;;  %v7111_v52 = vor.u32 %v7606_v50, %v7108_v51  ;;  %v7276_v50 = vld [vmem:[%s15297_s5 + $0x78] sm:$0xf0]  ;;  %v7640_v51 = vld [vmem:[%s15297_s5 + $0xf4] sm:$0xf] }
  0x34   : > { %v8405_v45 = vand.u32 127, %v600_v43 }
  0x36   : > { %693 = vperm.xlu2 %7678, %v597_v46   ;;  %690 = vperm.xlu1 %7677, %v595_v47  }
  0x37   : > { %687 = vperm.xlu0 %7676, %v593_v48   ;;  %v8267_v48 = vmov 0.0   ;;  %1360 = vmatpush.bf16.msrb.mxu3 %v7111_v52 }
  0x3e   : > { %606 = vperm.xlu2 %7678, %v539_v55   ;;  %603 = vperm.xlu1 %7677, %v537_v56  }
  0x3f   : > { %696 = vperm.xlu0 %7676, %v599_v57   ;;  %v7106_v57 = vld [vmem:[%s15295_s3 + $0x20] sm:$0xf] }
  0x40   : > { %v7107_v59 = vor.u32 %v7607_v58, %v7106_v57 }
  0x42   : > { %1271 = vmatpush.bf16.msrb.mxu2 %v7107_v59 }
  0x46   : > { %615 = vperm.xlu2 %7678, %v545_v0   ;;  %612 = vperm.xlu1 %7677, %v543_v1  }
  0x47   : > { %609 = vperm.xlu0 %7676, %v541_v2  }
  0x4e   : > { %624 = vperm.xlu2 %7678, %v551_v9   ;;  %621 = vperm.xlu1 %7677, %v549_v10   ;;  %v7100_v9 = vld [vmem:[%s15295_s3 + $0x18] sm:$0xf0]  ;;  %v7098_v10 = vld [vmem:[%s15295_s3 + $0x10] sm:$0xf] }
  0x4f   : > { %618 = vperm.xlu0 %7676, %v547_v11   ;;  %v7103_v11 = vor.u32 %v7604_v8, %v7100_v9  ;;  %v7099_v13 = vor.u32 %v7605_v12, %v7098_v10  ;;  %v7332_v9 = vld [vmem:[%s15297_s5 + $0xe8] sm:$0xf0] }
  0x51   : > { %1361 = vmatpush.bf16.msrb.mxu3 %v7103_v11  ;;  %1272 = vmatpush.bf16.msrb.mxu2 %v7099_v13 }
  0x56   : > { %633 = vperm.xlu2 %7678, %v557_v18   ;;  %630 = vperm.xlu1 %7677, %v555_v19  }
  0x57   : > { %627 = vperm.xlu0 %7676, %v553_v20  }
  0x5e   : > { %642 = vperm.xlu2 %7678, %v563_v26   ;;  %639 = vperm.xlu1 %7677, %v561_v27   ;;  %v7602_v27 = vld [vmem:[%s15295_s3 + $0x4] sm:$0xf] }
  0x5f   : > { %636 = vperm.xlu0 %7676, %v559_v28   ;;  %v7092_v28 = vld [vmem:[%s15295_s3 + $0x8] sm:$0xf0] }
  0x60   : > { %v7095_v30 = vor.u32 %v7602_v27, %v7092_v28 }
  0x62   : > { %1362 = vmatpush.bf16.msrb.mxu3 %v7095_v30 }
  0x66   : > { %648 = vperm.xlu1 %7677, %v567_v32  }
  0x67   : > { %645 = vperm.xlu0 %7676, %v565_v33   ;;  %v7091_v33 = vor.u32 %v7603_v31, %v7090_v29  ;;  %v7260_v31 = vld [vmem:[%s15297_s5 + $0x58] sm:$0xf0] }
  0x69   : > { %1273 = vmatpush.bf16.msrb.mxu2 %v7091_v33  ;;  %v7324_v33 = vld [vmem:[%s15297_s5 + $0xd8] sm:$0xf0] }
  0x70   : > { %v664_v44 = vpop.permute.xlu2 %663 }
  0x71   : > { %vm718_vm5 = vcmp.eq.s32.totalorder %v664_v44, %v8405_v45 }
  0x72   : > { %v7012_v5 = vsel %vm718_vm5, 1.0, %v8267_v48 }
  0x78   : > { %v667_v53 = vpop.permute.xlu2 %666 }
  0x79   : > { %vm719_vm6 = vcmp.eq.s32.totalorder %v667_v53, %v8405_v45  ;;  %v7340_v53 = vld [vmem:[%s15297_s5 + $0xf8] sm:$0xf0] }
  0x7a   : > { %v7013_v17 = vsel %vm719_vm6, 1.0, %v8267_v48 }
  0x80   : > { %v676_v60 = vpop.permute.xlu2 %675 }
  0x81   : > { %vm722_vm13 = vcmp.eq.s32.totalorder %v676_v60, %v8405_v45 }
  0x82   : > { %v7016_v26 = vsel %vm722_vm13, 1.0, %v8267_v48 }
  0x88   : > { %v658_v46 = vpop.permute.xlu1 %657  ;;  %v8438_v2 = vpop.permute.xlu2 %684 }
  0x89   : > { %v652_v47 = vpop.permute.xlu0 %651  ;;  %vm716_vm3 = vcmp.eq.s32.totalorder %v658_v46, %v8405_v45 }
  0x8a   : > { %vm714_vm1 = vcmp.eq.s32.totalorder %v652_v47, %v8405_v45  ;;  %v7010_v62 = vsel %vm716_vm3, 1.0, %v8267_v48  ;;  %v7624_v47 = vld [vmem:[%s15297_s5 + $0x74] sm:$0xf] }
  0x8b   : > { %v8409_v49 = vsel %vm714_vm1, 1.0, %v8267_v48  ;;  %v7279_v52 = vor.u32 %v7624_v47, %v7276_v50 }
  0x8c   : > { %7072 = vmatmul.msk.f32.vlgmr.msra.gmra.mxu3 %vm854_vm0, %v8409_v49 }
  0x90   : > { %v661_v54 = vpop.permute.xlu1 %660  ;;  %v8449_v7 = vpop.permute.xlu2 %693 }
  0x91   : > { %v655_v55 = vpop.permute.xlu0 %654  ;;  %vm717_vm4 = vcmp.eq.s32.totalorder %v661_v54, %v8405_v45  ;;  %v7343_v54 = vor.u32 %v7640_v51, %v7340_v53  ;;  %v7618_v51 = vld [vmem:[%s15297_s5 + $0x44] sm:$0xf] }
  0x92   : > { %vm715_vm2 = vcmp.eq.s32.totalorder %v655_v55, %v8405_v45  ;;  %v7011_v3 = vsel %vm717_vm4, 1.0, %v8267_v48  ;;  %vm725_vm4 = vcmp.eq.s32.totalorder %v8438_v2, %v8405_v45  ;;  %v7634_v53 = vld [vmem:[%s15297_s5 + $0xc4] sm:$0xf] }
  0x93   : > { %v7009_v56 = vsel %vm715_vm2, 1.0, %v8267_v48  ;;  %v7019_v41 = vsel %vm725_vm4, 1.0, %v8267_v48  ;;  %3291 = vmatpush.bf16.msra.mxu3 %v7343_v54 }
  0x94   : > { %7041 = vmatmul.msk.f32.vlgmr.msra.gmra.mxu2 %vm854_vm0, %v7009_v56  ;;  %7073 = vmatmul.msk.f32.gmra.mxu3 %vm854_vm0, %v7009_v56 }
  0x95   : > { %3202 = vmatpush.bf16.msra.mxu2 %v7279_v52  ;;  %v7252_v52 = vld [vmem:[%s15297_s5 + $0x48] sm:$0xf0] }
  0x96   : > { %v7255_v54 = vor.u32 %v7618_v51, %v7252_v52  ;;  %v811_v51 = vld [vmem:[%s8584_s30 + $0x88] sm:$0xff] }
  0x98   : > { %v673_v61 = vpop.permute.xlu1 %672  ;;  %v607_v18 = vpop.permute.xlu2 %606 }
  0x99   : > { %v670_v63 = vpop.permute.xlu0 %669  ;;  %vm699_vm8 = vcmp.eq.s32.totalorder %v607_v18, %v8405_v45  ;;  %vm721_vm11 = vcmp.eq.s32.totalorder %v673_v61, %v8405_v45 }
  0x9a   : > { %vm720_vm9 = vcmp.eq.s32.totalorder %v670_v63, %v8405_v45  ;;  %v6993_v19 = vsel %vm699_vm8, 1.0, %v8267_v48  ;;  %v7015_v23 = vsel %vm721_vm11, 1.0, %v8267_v48 }
  0x9b   : > { %v7014_v20 = vsel %vm720_vm9, 1.0, %v8267_v48 }
  0x9c   : > { %7042 = vmatmul.msk.f32.gmra.mxu2 %vm854_vm0, %v7010_v62  ;;  %7074 = vmatmul.msk.f32.gmra.mxu3 %vm854_vm0, %v7010_v62 }
  0xa0   : > { %v8434_v0 = vpop.permute.xlu1 %681  ;;  %v616_v32 = vpop.permute.xlu2 %615 }
  0xa1   : > { %v8436_v1 = vpop.permute.xlu0 %678  ;;  %vm702_vm14 = vcmp.eq.s32.totalorder %v616_v32, %v8405_v45  ;;  %vm724_vm2 = vcmp.eq.s32.totalorder %v8434_v0, %v8405_v45  ;;  %v794_v0 = vld [vmem:[%s8584_s30] sm:$0xff] }
  0xa2   : > { %vm723_vm15 = vcmp.eq.s32.totalorder %v8436_v1, %v8405_v45  ;;  %v6996_v34 = vsel %vm702_vm14, 1.0, %v8267_v48  ;;  %v7018_v38 = vsel %vm724_vm2, 1.0, %v8267_v48  ;;  %v795_v1 = vld [vmem:[%s8584_s30 + $0x8] sm:$0xff]  ;;  %vm1217_vm14 = vcmask 523264  }
  0xa3   : > { %v7017_v35 = vsel %vm723_vm15, 1.0, %v8267_v48  ;;  %v826_v2 = vpack.c.bf16 %v795_v1, %v794_v0 }
  0xa4   : > { %7043 = vmatmul.msk.f32.gmra.mxu2 %vm854_vm0, %v7011_v3  ;;  %7075 = vmatmul.msk.f32.gmra.mxu3 %vm854_vm0, %v7011_v3 }
  0xa8   : > { %v8444_v4 = vpop.permute.xlu1 %690  ;;  %v625_v42 = vpop.permute.xlu2 %624 }
  0xa9   : > { %v8447_v6 = vpop.permute.xlu0 %687  ;;  %vm705_vm5 = vcmp.eq.s32.totalorder %v625_v42, %v8405_v45  ;;  %vm727_vm8 = vcmp.eq.s32.totalorder %v8444_v4, %v8405_v45 }
  0xaa   : > { %vm726_vm6 = vcmp.eq.s32.totalorder %v8447_v6, %v8405_v45  ;;  %v6999_v43 = vsel %vm705_vm5, 1.0, %v8267_v48  ;;  %v7021_v56 = vsel %vm727_vm8, 1.0, %v8267_v48  ;;  %v7268_v6 = vld [vmem:[%s15297_s5 + $0x68] sm:$0xf0] }
  0xab   : > { %v7020_v44 = vsel %vm726_vm6, 1.0, %v8267_v48 }
  0xac   : > { %7044 = vmatmul.msk.f32.gmra.mxu2 %vm854_vm0, %v7012_v5  ;;  %7076 = vmatmul.msk.f32.gmra.mxu3 %vm854_vm0, %v7012_v5  ;;  %v7622_v5 = vld [vmem:[%s15297_s5 + $0x64] sm:$0xf] }
  0xad   : > { %v7271_v8 = vor.u32 %v7622_v5, %v7268_v6  ;;  %v7274_v6 = vld [vmem:[%s15297_s5 + $0x70] sm:$0xf] }
  0xaf   : > { %3203 = vmatpush.bf16.msra.mxu2 %v7271_v8 }
  0xb0   : > { %v604_v14 = vpop.permute.xlu1 %603  ;;  %v634_v60 = vpop.permute.xlu2 %633 }
  0xb1   : > { %vm698_vm7 = vcmp.eq.s32.totalorder %v604_v14, %v8405_v45  ;;  %v8467_v15 = vpop.permute.xlu0 %696  ;;  %vm708_vm11 = vcmp.eq.s32.totalorder %v634_v60, %v8405_v45  ;;  %v796_v14 = vld [vmem:[%s8584_s30 + $0x10] sm:$0xff]  ;;  %v805_v60 = vld [vmem:[%s8584_s30 + $0x58] sm:$0xff] }
  0xb2   : > { %v6992_v16 = vsel %vm698_vm7, 1.0, %v8267_v48  ;;  %v7002_v61 = vsel %vm708_vm11, 1.0, %v8267_v48 }
  0xb3   : > { %7024 = vmatmul.msk.f32.vlgmr.msra.gmra.mxu0 %vm854_vm0, %v6992_v16  ;;  %7056 = vmatmul.msk.f32.vlgmr.msra.gmra.mxu1 %vm854_vm0, %v6992_v16 }
  0xb4   : > { %7045 = vmatmul.msk.f32.gmra.mxu2 %vm854_vm0, %v7013_v17  ;;  %7077 = vmatmul.msk.f32.gmra.mxu3 %vm854_vm0, %v7013_v17 }
  0xb8   : > { %v613_v24 = vpop.permute.xlu1 %612  ;;  %v643_v13 = vpop.permute.xlu2 %642 }
  0xb9   : > { %v610_v21 = vpop.permute.xlu0 %609  ;;  %vm701_vm12 = vcmp.eq.s32.totalorder %v613_v24, %v8405_v45 }
  0xba   : > { %vm700_vm10 = vcmp.eq.s32.totalorder %v610_v21, %v8405_v45  ;;  %v6995_v25 = vsel %vm701_vm12, 1.0, %v8267_v48  ;;  %vm729_vm12 = vcmp.eq.s32.totalorder %v8467_v15, %v8405_v45  ;;  %v797_v15 = vld [vmem:[%s8584_s30 + $0x18] sm:$0xff] }
  0xbb   : > { %7025 = vmatmul.msk.f32.gmra.mxu0 %vm854_vm0, %v6993_v19  ;;  %7057 = vmatmul.msk.f32.gmra.mxu1 %vm854_vm0, %v6993_v19  ;;  %v6994_v22 = vsel %vm700_vm10, 1.0, %v8267_v48  ;;  %vm728_vm10 = vcmp.eq.s32.totalorder %v8449_v7, %v8405_v45  ;;  %v7023_v62 = vsel %vm729_vm12, 1.0, %v8267_v48  ;;  %v7638_v7 = vld [vmem:[%s15297_s5 + $0xe4] sm:$0xf]  ;;  %v827_v18 = vpack.c.bf16 %v797_v15, %v796_v14  ;;  %v7308_v15 = vld [vmem:[%s15297_s5 + $0xb8] sm:$0xf0] }
  0xbc   : > { %7046 = vmatmul.msk.f32.gmra.mxu2 %vm854_vm0, %v7014_v20  ;;  %7078 = vmatmul.msk.f32.gmra.mxu3 %vm854_vm0, %v7014_v20  ;;  %v7022_v59 = vsel %vm728_vm10, 1.0, %v8267_v48  ;;  %v7335_v10 = vor.u32 %v7638_v7, %v7332_v9  ;;  %v7625_v7 = vld [vmem:[%s15297_s5 + $0x74] sm:$0xf0] }
  0xbd   : > { %v7275_v9 = vor.u32 %v7625_v7, %v7274_v6  ;;  %v7637_v6 = vld [vmem:[%s15297_s5 + $0xd4] sm:$0xf0] }
  0xbe   : > { %3292 = vmatpush.bf16.msra.mxu3 %v7335_v10  ;;  %v7616_v10 = vld [vmem:[%s15297_s5 + $0x34] sm:$0xf] }
  0xbf   : > { %3024 = vmatpush.bf16.msrb.mxu0 %v7275_v9  ;;  %v7250_v9 = vld [vmem:[%s15297_s5 + $0x40] sm:$0xf] }
  0xc0   : > { %v622_v39 = vpop.permute.xlu1 %621 }
  0xc1   : > { %v619_v36 = vpop.permute.xlu0 %618  ;;  %vm704_vm3 = vcmp.eq.s32.totalorder %v622_v39, %v8405_v45 }
  0xc2   : > { %vm703_vm1 = vcmp.eq.s32.totalorder %v619_v36, %v8405_v45  ;;  %v6998_v40 = vsel %vm704_vm3, 1.0, %v8267_v48 }
  0xc3   : > { %7026 = vmatmul.msk.f32.gmra.mxu0 %vm854_vm0, %v6994_v22  ;;  %7058 = vmatmul.msk.f32.gmra.mxu1 %vm854_vm0, %v6994_v22  ;;  %v6997_v37 = vsel %vm703_vm1, 1.0, %v8267_v48  ;;  %vm711_vm1 = vcmp.eq.s32.totalorder %v643_v13, %v8405_v45  ;;  %v7632_v13 = vld [vmem:[%s15297_s5 + $0xb4] sm:$0xf] }
  0xc4   : > { %7047 = vmatmul.msk.f32.gmra.mxu2 %vm854_vm0, %v7015_v23  ;;  %7079 = vmatmul.msk.f32.gmra.mxu3 %vm854_vm0, %v7015_v23  ;;  %v7005_v19 = vsel %vm711_vm1, 1.0, %v8267_v48 }
  0xc8   : > { %v631_v57 = vpop.permute.xlu1 %630 }
  0xc9   : > { %v628_v46 = vpop.permute.xlu0 %627  ;;  %vm707_vm9 = vcmp.eq.s32.totalorder %v631_v57, %v8405_v45 }
  0xca   : > { %vm706_vm7 = vcmp.eq.s32.totalorder %v628_v46, %v8405_v45  ;;  %v7001_v58 = vsel %vm707_vm9, 1.0, %v8267_v48  ;;  %v803_v46 = vld [vmem:[%s8584_s30 + $0x48] sm:$0xff] }
  0xcb   : > { %7027 = vmatmul.msk.f32.gmra.mxu0 %vm854_vm0, %v6995_v25  ;;  %7059 = vmatmul.msk.f32.gmra.mxu1 %vm854_vm0, %v6995_v25  ;;  %v7000_v55 = vsel %vm706_vm7, 1.0, %v8267_v48  ;;  %v798_v25 = vld [vmem:[%s8584_s30 + $0x20] sm:$0xff] }
  0xcc   : > { %7048 = vmatmul.msk.f32.gmra.mxu2 %vm854_vm0, %v7016_v26  ;;  %7080 = vmatmul.msk.f32.gmra.mxu3 %vm854_vm0, %v7016_v26  ;;  %v799_v26 = vld [vmem:[%s8584_s30 + $0x28] sm:$0xff] }
  0xcd   : > { %v828_v29 = vpack.c.bf16 %v799_v26, %v798_v25 }
  0xd0   : > { %v640_v4 = vpop.permute.xlu1 %639 }
  0xd1   : > { %v637_v63 = vpop.permute.xlu0 %636  ;;  %vm710_vm15 = vcmp.eq.s32.totalorder %v640_v4, %v8405_v45 }
  0xd2   : > { %vm709_vm13 = vcmp.eq.s32.totalorder %v637_v63, %v8405_v45  ;;  %v7004_v12 = vsel %vm710_vm15, 1.0, %v8267_v48 }
  0xd3   : > { %7028 = vmatmul.msk.f32.gmra.mxu0 %vm854_vm0, %v6996_v34  ;;  %7060 = vmatmul.msk.f32.gmra.mxu1 %vm854_vm0, %v6996_v34  ;;  %v7003_v3 = vsel %vm709_vm13, 1.0, %v8267_v48 }
  0xd4   : > { %7049 = vmatmul.msk.f32.gmra.mxu2 %vm854_vm0, %v7017_v35  ;;  %7081 = vmatmul.msk.f32.gmra.mxu3 %vm854_vm0, %v7017_v35 }
  0xd8   : > { %v649_v24 = vpop.permute.xlu1 %648 }
  0xd9   : > { %v646_v20 = vpop.permute.xlu0 %645  ;;  %vm713_vm3 = vcmp.eq.s32.totalorder %v649_v24, %v8405_v45  ;;  %v809_v24 = vld [vmem:[%s8584_s30 + $0x78] sm:$0xff] }
  0xda   : > { %vm712_vm2 = vcmp.eq.s32.totalorder %v646_v20, %v8405_v45  ;;  %v7007_v30 = vsel %vm713_vm3, 1.0, %v8267_v48  ;;  %v7620_v45 = vld [vmem:[%s15297_s5 + $0x54] sm:$0xf] }
  0xdb   : > { %7029 = vmatmul.msk.f32.gmra.mxu0 %vm854_vm0, %v6997_v37  ;;  %7061 = vmatmul.msk.f32.gmra.mxu1 %vm854_vm0, %v6997_v37  ;;  %v7006_v23 = vsel %vm712_vm2, 1.0, %v8267_v48  ;;  %v7636_v48 = vld [vmem:[%s15297_s5 + $0xd4] sm:$0xf]  ;;  %v7263_v32 = vor.u32 %v7620_v45, %v7260_v31  ;;  %v7641_v45 = vld [vmem:[%s15297_s5 + $0xf4] sm:$0xf0] }
  0xdc   : > { %7050 = vmatmul.msk.f32.gmra.mxu2 %vm854_vm0, %v7018_v38  ;;  %7082 = vmatmul.msk.f32.gmra.mxu3 %vm854_vm0, %v7018_v38  ;;  %v7327_v34 = vor.u32 %v7636_v48, %v7324_v33  ;;  %v800_v37 = vld [vmem:[%s8584_s30 + $0x30] sm:$0xff]  ;;  %v801_v38 = vld [vmem:[%s8584_s30 + $0x38] sm:$0xff] }
  0xdd   : > { %3204 = vmatpush.bf16.msra.mxu2 %v7263_v32 }
  0xde   : > { %3293 = vmatpush.bf16.msra.mxu3 %v7327_v34 }
  0xe1   : > { %3205 = vmatpush.bf16.msra.mxu2 %v7255_v54 }
  0xe3   : > { %7030 = vmatmul.msk.f32.gmra.mxu0 %vm854_vm0, %v6998_v40  ;;  %7062 = vmatmul.msk.f32.gmra.mxu1 %vm854_vm0, %v6998_v40 }
  0xe4   : > { %7051 = vmatmul.msk.f32.gmra.mxu2 %vm854_vm0, %v7019_v41  ;;  %7083 = vmatmul.msk.f32.gmra.mxu3 %vm854_vm0, %v7019_v41  ;;  %v829_v41 = vpack.c.bf16 %v801_v38, %v800_v37  ;;  %v7266_v37 = vld [vmem:[%s15297_s5 + $0x60] sm:$0xf]  ;;  %v7623_v38 = vld [vmem:[%s15297_s5 + $0x64] sm:$0xf0] }
  0xeb   : > { %7031 = vmatmul.msk.f32.gmra.mxu0 %vm854_vm0, %v6999_v43  ;;  %7063 = vmatmul.msk.f32.gmra.mxu1 %vm854_vm0, %v6999_v43 }
  0xec   : > { %7052 = vmatmul.msk.f32.gmra.mxu2 %vm854_vm0, %v7020_v44  ;;  %7084 = vmatmul.msk.f32.gmra.mxu3 %vm854_vm0, %v7020_v44  ;;  %v802_v44 = vld [vmem:[%s8584_s30 + $0x40] sm:$0xff] }
  0xed   : > { %v830_v50 = vpack.c.bf16 %v803_v46, %v802_v44  ;;  %v7330_v44 = vld [vmem:[%s15297_s5 + $0xe0] sm:$0xf]  ;;  %v7639_v46 = vld [vmem:[%s15297_s5 + $0xe4] sm:$0xf0] }
  0xee   : > { %v7331_v52 = vor.u32 %v7639_v46, %v7330_v44  ;;  %v7633_v46 = vld [vmem:[%s15297_s5 + $0xb4] sm:$0xf0] }
  0xf3   : > { %7032 = vmatmul.msk.f32.gmra.mxu0 %vm854_vm0, %v7000_v55  ;;  %7064 = vmatmul.msk.f32.gmra.mxu1 %vm854_vm0, %v7000_v55  ;;  %v7316_v55 = vld [vmem:[%s15297_s5 + $0xc8] sm:$0xf0] }
  0xf4   : > { %7053 = vmatmul.msk.f32.gmra.mxu2 %vm854_vm0, %v7021_v56  ;;  %7085 = vmatmul.msk.f32.gmra.mxu3 %vm854_vm0, %v7021_v56  ;;  %v7319_v56 = vor.u32 %v7634_v53, %v7316_v55 }
  0xf6   : > { %3294 = vmatpush.bf16.msra.mxu3 %v7319_v56 }
  0xfb   : > { %7033 = vmatmul.msk.f32.gmra.mxu0 %vm854_vm0, %v7001_v58  ;;  %7065 = vmatmul.msk.f32.gmra.mxu1 %vm854_vm0, %v7001_v58 }
  0xfc   : > { %7054 = vmatmul.msk.f32.gmra.mxu2 %vm854_vm0, %v7022_v59  ;;  %7086 = vmatmul.msk.f32.gmra.mxu3 %vm854_vm0, %v7022_v59  ;;  %v804_v59 = vld [vmem:[%s8584_s30 + $0x50] sm:$0xff] }
  0xfd   : > { %v831_v63 = vpack.c.bf16 %v805_v60, %v804_v59  ;;  %v7258_v60 = vld [vmem:[%s15297_s5 + $0x50] sm:$0xf] }
 0x103   : > { %7034 = vmatmul.msk.f32.gmra.mxu0 %vm854_vm0, %v7002_v61  ;;  %7066 = vmatmul.msk.f32.gmra.mxu1 %vm854_vm0, %v7002_v61 }
 0x104   : > { %7055 = vmatmul.msk.f32.gmra.mxu2 %vm854_vm0, %v7023_v62  ;;  %7087 = vmatmul.msk.f32.gmra.mxu3 %vm854_vm0, %v7023_v62 }
 0x10b   : > { %7035 = vmatmul.msk.f32.gmra.mxu0 %vm854_vm0, %v7003_v3  ;;  %7067 = vmatmul.msk.f32.gmra.mxu1 %vm854_vm0, %v7003_v3  ;;  %v807_v3 = vld [vmem:[%s8584_s30 + $0x68] sm:$0xff] }
 0x10c   : > { %7120 = vmatmul.msk.bf16.vlgmr.msrb.gmra.mxu2 %vm1217_vm14, %v826_v2  ;;  %7136 = vmatmul.msk.bf16.vlgmr.msrb.gmra.mxu3 %vm1217_vm14, %v826_v2  ;;  %v806_v2 = vld [vmem:[%s8584_s30 + $0x60] sm:$0xff] }
 0x10d   : > { %v832_v8 = vpack.c.bf16 %v807_v3, %v806_v2  ;;  %v7322_v2 = vld [vmem:[%s15297_s5 + $0xd0] sm:$0xf] }
 0x10e   : > { %v7323_v7 = vor.u32 %v7637_v6, %v7322_v2  ;;  %v7234_v2 = vld [vmem:[%s15297_s5 + $0x20] sm:$0xf] }
 0x10f   : > { %v8613_v11 = vpop.f32.mrf.mxu3  ;;  %v7298_v6 = vld [vmem:[%s15297_s5 + $0xa0] sm:$0xf] }
 0x113   : > { %7036 = vmatmul.msk.f32.gmra.mxu0 %vm854_vm0, %v7004_v12  ;;  %7068 = vmatmul.msk.f32.gmra.mxu1 %vm854_vm0, %v7004_v12  ;;  %v7244_v12 = vld [vmem:[%s15297_s5 + $0x38] sm:$0xf0] }
 0x114   : > { %v7247_v14 = vor.u32 %v7616_v10, %v7244_v12  ;;  %v7619_v10 = vld [vmem:[%s15297_s5 + $0x44] sm:$0xf0]  ;;  %v7314_v12 = vld [vmem:[%s15297_s5 + $0xc0] sm:$0xf] }
 0x116   : > { %3206 = vmatpush.bf16.msra.mxu2 %v7247_v14  ;;  %v7635_v14 = vld [vmem:[%s15297_s5 + $0xc4] sm:$0xf0] }
 0x117   : > { %v8621_v16 = vpop.f32.mrf.mxu2  ;;  %v8623_v17 = vpop.f32.mrf.mxu3 }
 0x11b   : > { %7037 = vmatmul.msk.f32.gmra.mxu0 %vm854_vm0, %v7005_v19  ;;  %7069 = vmatmul.msk.f32.gmra.mxu1 %vm854_vm0, %v7005_v19 }
 0x11c   : > { %7121 = vmatmul.msk.bf16.gmra.mxu2 %vm1217_vm14, %v827_v18  ;;  %7137 = vmatmul.msk.bf16.gmra.mxu3 %vm1217_vm14, %v827_v18  ;;  %v7311_v18 = vor.u32 %v7632_v13, %v7308_v15  ;;  %v7251_v13 = vor.u32 %v7619_v10, %v7250_v9 }
 0x11e   : > { %3295 = vmatpush.bf16.msra.mxu3 %v7311_v18 }
 0x11f   : > { %v8631_v21 = vpop.f32.mrf.mxu2  ;;  %v8633_v22 = vpop.f32.mrf.mxu3 }
 0x120   : > { %15389 = vst [vmem:[#allocation2_spill] sm:$0xff] %v8633_v22 }
 0x123   : > { %7038 = vmatmul.msk.f32.gmra.mxu0 %vm854_vm0, %v7006_v23  ;;  %7070 = vmatmul.msk.f32.gmra.mxu1 %vm854_vm0, %v7006_v23  ;;  %v808_v23 = vld [vmem:[%s8584_s30 + $0x70] sm:$0xff] }
 0x127   : > { %v8641_v27 = vpop.f32.mrf.mxu2  ;;  %v8643_v28 = vpop.f32.mrf.mxu3 }
 0x128   : > { %15390 = vst [vmem:[#allocation3_spill] sm:$0xff] %v8641_v27 }
 0x129   : > { %15391 = vst [vmem:[#allocation4_spill] sm:$0xff] %v8643_v28 }
 0x12b   : > { %7039 = vmatmul.msk.f32.gmra.mxu0 %vm854_vm0, %v7007_v30  ;;  %7071 = vmatmul.msk.f32.gmra.mxu1 %vm854_vm0, %v7007_v30  ;;  %v7338_v30 = vld [vmem:[%s15297_s5 + $0xf0] sm:$0xf] }
 0x12c   : > { %7122 = vmatmul.msk.bf16.gmra.mxu2 %vm1217_vm14, %v828_v29  ;;  %7138 = vmatmul.msk.bf16.gmra.mxu3 %vm1217_vm14, %v828_v29  ;;  %v833_v29 = vpack.c.bf16 %v809_v24, %v808_v23  ;;  %v7339_v48 = vor.u32 %v7641_v45, %v7338_v30  ;;  %v7315_v23 = vor.u32 %v7635_v14, %v7314_v12 }
 0x12e   : > { %3113 = vmatpush.bf16.msrb.mxu1 %v7339_v48 }
 0x12f   : > { %v8662_v35 = vpop.f32.mrf.mxu2  ;;  %v8664_v36 = vpop.f32.mrf.mxu3 }
 0x130   : > { %15392 = vst [vmem:[#allocation5_spill] sm:$0xff] %v8662_v35  ;;  %v968_v31 = vpop.f32.mrf.mxu0  ;;  %v1081_v32 = vpop.f32.mrf.mxu1 }
 0x131   : > { %15393 = vst [vmem:[#allocation6_spill] sm:$0xff] %v8664_v36 }
 0x132   : > { %3114 = vmatpush.bf16.msrb.mxu1 %v7331_v52  ;;  %v812_v52 = vld [vmem:[%s8584_s30 + $0x90] sm:$0xff] }
 0x133   : > { %7040 = vmatmul.msk.f32.gmra.mxu0 %vm854_vm0, %v8409_v49 }
 0x136   : > { %3115 = vmatpush.bf16.msrb.mxu1 %v7323_v7  ;;  %v7631_v7 = vld [vmem:[%s15297_s5 + $0xa4] sm:$0xf0] }
 0x137   : > { %v8670_v39 = vpop.f32.mrf.mxu2  ;;  %v8672_v40 = vpop.f32.mrf.mxu3  ;;  %v7299_v9 = vor.u32 %v7631_v7, %v7298_v6 }
 0x138   : > { %15394 = vst [vmem:[#allocation7_spill] sm:$0xff] %v8670_v39  ;;  %v971_v53 = vpop.f32.mrf.mxu0  ;;  %v1084_v56 = vpop.f32.mrf.mxu1 }
 0x139   : > { %15395 = vst [vmem:[#allocation8_spill] sm:$0xff] %v8672_v40 }
 0x13a   : > { %3116 = vmatpush.bf16.msrb.mxu1 %v7315_v23 }
 0x13c   : > { %7123 = vmatmul.msk.bf16.gmra.mxu2 %vm1217_vm14, %v829_v41  ;;  %7139 = vmatmul.msk.bf16.gmra.mxu3 %vm1217_vm14, %v829_v41  ;;  %v7267_v41 = vor.u32 %v7623_v38, %v7266_v37  ;;  %v7242_v37 = vld [vmem:[%s15297_s5 + $0x30] sm:$0xf]  ;;  %v7617_v38 = vld [vmem:[%s15297_s5 + $0x34] sm:$0xf0] }
 0x13d   : > { %v7243_v44 = vor.u32 %v7617_v38, %v7242_v37 }
 0x13e   : > { %3025 = vmatpush.bf16.msrb.mxu0 %v7267_v41  ;;  %v7306_v41 = vld [vmem:[%s15297_s5 + $0xb0] sm:$0xf] }
 0x13f   : > { %v8676_v42 = vpop.f32.mrf.mxu2  ;;  %v8678_v43 = vpop.f32.mrf.mxu3 }
 0x140   : > { %15396 = vst [vmem:[#allocation9_spill] sm:$0xff] %v8676_v42  ;;  %v8815_v30 = vpop.f32.mrf.mxu0 }
 0x141   : > { %15397 = vst [vmem:[#allocation10_spill] sm:$0xff] %v8678_v43 }
 0x147   : > { %v8682_v47 = vpop.f32.mrf.mxu2  ;;  %v8684_v49 = vpop.f32.mrf.mxu3 }
 0x148   : > { %15398 = vst [vmem:[#allocation11_spill] sm:$0xff] %v8682_v47 }
 0x149   : > { %15399 = vst [vmem:[#allocation12_spill] sm:$0xff] %v8684_v49 }
 0x14c   : > { %7124 = vmatmul.msk.bf16.gmra.mxu2 %vm1217_vm14, %v830_v50  ;;  %7140 = vmatmul.msk.bf16.gmra.mxu3 %vm1217_vm14, %v830_v50  ;;  %v810_v50 = vld [vmem:[%s8584_s30 + $0x80] sm:$0xff] }
 0x14d   : > { %v834_v59 = vpack.c.bf16 %v811_v51, %v810_v50  ;;  %v7307_v51 = vor.u32 %v7633_v46, %v7306_v41 }
 0x14f   : > { %v8700_v57 = vpop.f32.mrf.mxu2  ;;  %v8702_v58 = vpop.f32.mrf.mxu3  ;;  %3117 = vmatpush.bf16.msrb.mxu1 %v7307_v51 }
 0x150   : > { %15400 = vst [vmem:[#allocation13_spill] sm:$0xff] %v8700_v57 }
 0x151   : > { %15401 = vst [vmem:[#allocation14_spill] sm:$0xff] %v8702_v58 }
 0x153   : > { %3118 = vmatpush.bf16.msrb.mxu1 %v7299_v9  ;;  %v7630_v9 = vld [vmem:[%s15297_s5 + $0xa4] sm:$0xf] }
 0x157   : > { %v8706_v61 = vpop.f32.mrf.mxu2  ;;  %v8708_v62 = vpop.f32.mrf.mxu3 }
 0x158   : > { %15402 = vst [vmem:[#allocation15_spill] sm:$0xff] %v8706_v61 }
 0x159   : > { %15403 = vst [vmem:[#allocation16_spill] sm:$0xff] %v8708_v62 }
 0x15c   : > { %7125 = vmatmul.msk.bf16.gmra.mxu2 %vm1217_vm14, %v831_v63  ;;  %7141 = vmatmul.msk.bf16.gmra.mxu3 %vm1217_vm14, %v831_v63  ;;  %v7621_v63 = vld [vmem:[%s15297_s5 + $0x54] sm:$0xf0] }
 0x15d   : > { %v7259_v3 = vor.u32 %v7621_v63, %v7258_v60 }
 0x15f   : > { %v8712_v0 = vpop.f32.mrf.mxu2  ;;  %v8714_v1 = vpop.f32.mrf.mxu3  ;;  %3026 = vmatpush.bf16.msrb.mxu0 %v7259_v3  ;;  %v7615_v3 = vld [vmem:[%s15297_s5 + $0x24] sm:$0xf0] }
 0x160   : > { %15404 = vst [vmem:[#allocation17_spill] sm:$0xff] %v8712_v0 }
 0x161   : > { %15405 = vst [vmem:[#allocation18_spill] sm:$0xff] %v8714_v1 }
 0x163   : > { %3027 = vmatpush.bf16.msrb.mxu0 %v7251_v13 }
 0x167   : > { %v8718_v4 = vpop.f32.mrf.mxu2  ;;  %v8720_v5 = vpop.f32.mrf.mxu3  ;;  %3028 = vmatpush.bf16.msrb.mxu0 %v7243_v44 }
 0x168   : > { %15406 = vst [vmem:[#allocation19_spill] sm:$0xff] %v8718_v4 }
 0x169   : > { %15407 = vst [vmem:[#allocation20_spill] sm:$0xff] %v8720_v5 }
 0x16c   : > { %7126 = vmatmul.msk.bf16.gmra.mxu2 %vm1217_vm14, %v832_v8  ;;  %7142 = vmatmul.msk.bf16.gmra.mxu3 %vm1217_vm14, %v832_v8  ;;  %v1444_v8 = vld [vmem:[%s15296_s4] sm:$0x3] }
 0x16d   : > { %v8811_v15 = vperm.slane %v1444_v8, 0  ;;  %v8813_v18 = vperm.slane %v1444_v8, 1  ;;  %v7235_v8 = vor.u32 %v7615_v3, %v7234_v2  ;;  %v7236_v2 = vld [vmem:[%s15297_s5 + $0x28] sm:$0xf0] }
 0x16f   : > { %v8742_v19 = vpop.f32.mrf.mxu2  ;;  %v8744_v20 = vpop.f32.mrf.mxu3  ;;  %3029 = vmatpush.bf16.msrb.mxu0 %v7235_v8 }
 0x170   : > { %15408 = vst [vmem:[#allocation21_spill] sm:$0xff] %v8742_v19 }
 0x171   : > { %15409 = vst [vmem:[#allocation22_spill] sm:$0xff] %v8744_v20 }
 0x177   : > { %v8748_v25 = vpop.f32.mrf.mxu2  ;;  %v8750_v26 = vpop.f32.mrf.mxu3 }
 0x178   : > { %15410 = vst [vmem:[#allocation23_spill] sm:$0xff] %v8748_v25 }
 0x179   : > { %15411 = vst [vmem:[#allocation24_spill] sm:$0xff] %v8750_v26 }
 0x17c   : > { %7127 = vmatmul.msk.bf16.gmra.mxu2 %vm1217_vm14, %v833_v29  ;;  %7143 = vmatmul.msk.bf16.gmra.mxu3 %vm1217_vm14, %v833_v29 }
 0x17f   : > { %v8760_v33 = vpop.f32.mrf.mxu2  ;;  %v8762_v34 = vpop.f32.mrf.mxu3 }
 0x180   : > { %15412 = vst [vmem:[#allocation25_spill] sm:$0xff] %v8760_v33 }
 0x181   : > { %15413 = vst [vmem:[#allocation26_spill] sm:$0xff] %v8762_v34  ;;  %v817_v34 = vld [vmem:[%s8584_s30 + $0xb8] sm:$0xff] }
 0x187   : > { %v8778_v54 = vpop.f32.mrf.mxu2  ;;  %v8780_v55 = vpop.f32.mrf.mxu3 }
 0x188   : > { %15414 = vst [vmem:[#allocation27_spill] sm:$0xff] %v8778_v54 }
 0x189   : > { %15415 = vst [vmem:[#allocation28_spill] sm:$0xff] %v8780_v55 }
 0x18c   : > { %7128 = vmatmul.msk.bf16.gmra.mxu2 %vm1217_vm14, %v834_v59  ;;  %7144 = vmatmul.msk.bf16.gmra.mxu3 %vm1217_vm14, %v834_v59  ;;  %v813_v59 = vld [vmem:[%s8584_s30 + $0x98] sm:$0xff] }
 0x18d   : > { %v835_v23 = vpack.c.bf16 %v813_v59, %v812_v52  ;;  %v7614_v52 = vld [vmem:[%s15297_s5 + $0x24] sm:$0xf] }
 0x18e   : > { %v7239_v6 = vor.u32 %v7614_v52, %v7236_v2 }
 0x18f   : > { %v1275_v24 = vpop.f32.mrf.mxu2  ;;  %v1364_v29 = vpop.f32.mrf.mxu3 }
 0x190   : > { %v1276_v45 = vadd.f32 %v1275_v24, %v968_v31  ;;  %v1365_v48 = vadd.f32 %v1364_v29, %v1081_v32  ;;  %v1087_v31 = vpop.f32.mrf.mxu1  ;;  %v7226_v24 = vld [vmem:[%s15297_s5 + $0x10] sm:$0xf]  ;;  %v7613_v29 = vld [vmem:[%s15297_s5 + $0x14] sm:$0xf0]  ;;  %3207 = vmatpush.bf16.msra.mxu2 %v7239_v6 }
 0x192   : > { %v8830_v32 = vadd.f32 %v8811_v15, %v1276_v45  ;;  %v8833_v50 = vadd.f32 %v8813_v18, %v1365_v48  ;;  %v7290_v45 = vld [vmem:[%s15297_s5 + $0x90] sm:$0xf]  ;;  %v7227_v48 = vor.u32 %v7613_v29, %v7226_v24  ;;  %v7627_v24 = vld [vmem:[%s15297_s5 + $0x84] sm:$0xf0] }
 0x194   : > { %v7152_v60 = vmul.f32 -1.442695, %v8830_v32  ;;  %v7153_v63 = vmul.f32 -1.442695, %v8833_v50  ;;  %3030 = vmatpush.bf16.msrb.mxu0 %v7227_v48 }
 0x196   : > { %7680 = vpow2.f32 %v7152_v60 }
 0x197   : > { %7682 = vpow2.f32 %v7153_v63  ;;  %v1277_v10 = vpop.f32.mrf.mxu2  ;;  %v1366_v12 = vpop.f32.mrf.mxu3 }
 0x198   : > { %v1278_v13 = vadd.f32 %v1277_v10, %v971_v53  ;;  %v1367_v14 = vadd.f32 %v1366_v12, %v1084_v56  ;;  %v7629_v53 = vld [vmem:[%s15297_s5 + $0x94] sm:$0xf0]  ;;  %v8863_v56 = vpop.f32.mrf.mxu0  ;;  %v1090_v46 = vpop.f32.mrf.mxu1  ;;  %v7300_v10 = vld [vmem:[%s15297_s5 + $0xa8] sm:$0xf0]  ;;  %v7218_v12 = vld [vmem:[%s15297_s5] sm:$0xf] }
 0x199   : > { %v7291_v41 = vor.u32 %v7629_v53, %v7290_v45  ;;  %v7303_v45 = vor.u32 %v7630_v9, %v7300_v10  ;;  %v814_v53 = vld [vmem:[%s8584_s30 + $0xa0] sm:$0xff] }
 0x19a   : > { %v8866_v37 = vadd.f32 %v8811_v15, %v1278_v13  ;;  %v8869_v38 = vadd.f32 %v8813_v18, %v1367_v14  ;;  %v7611_v13 = vld [vmem:[%s15297_s5 + $0x4] sm:$0xf0]  ;;  %v7282_v14 = vld [vmem:[%s15297_s5 + $0x80] sm:$0xf] }
 0x19b   : > { %3119 = vmatpush.bf16.msrb.mxu1 %v7291_v41  ;;  %v815_v41 = vld [vmem:[%s8584_s30 + $0xa8] sm:$0xff]  ;;  %3296 = vmatpush.bf16.msra.mxu3 %v7303_v45 }
 0x19c   : > { %v7681_v44 = vpop.eup %7680  ;;  %v7154_v51 = vmul.f32 -1.442695, %v8866_v37  ;;  %7129 = vmatmul.msk.bf16.gmra.mxu2 %vm1217_vm14, %v835_v23  ;;  %7145 = vmatmul.msk.bf16.gmra.mxu3 %vm1217_vm14, %v835_v23  ;;  %v7155_v63 = vmul.f32 -1.442695, %v8869_v38  ;;  %v836_v9 = vpack.c.bf16 %v815_v41, %v814_v53 }
 0x19d   : > { %v7683_v59 = vpop.eup %7682  ;;  %v8877_v60 = vadd.f32 1.0, %v7681_v44  ;;  %v7219_v44 = vor.u32 %v7611_v13, %v7218_v12 }
 0x19e   : > { %v8883_v3 = vadd.f32 1.0, %v7683_v59  ;;  %7684 = vpow2.f32 %v7154_v51  ;;  %v7283_v51 = vor.u32 %v7627_v24, %v7282_v14 }
 0x19f   : > { %7686 = vrcp.f32 %v8877_v60  ;;  %v1280_v7 = vpop.f32.mrf.mxu2  ;;  %v1369_v8 = vpop.f32.mrf.mxu3  ;;  %3031 = vmatpush.bf16.msrb.mxu0 %v7219_v44  ;;  %v1779_v12 = vand.u32 2147483647, %v8877_v60  ;;  %v1781_v13 = vand.u32 2147483648, %v8877_v60  ;;  %vm1775_vm0 = vweird.f32 %v8877_v60 }
 0x1a0   : > { %7688 = vrcp.f32 %v8883_v3  ;;  %v1281_v23 = vadd.f32 %v1280_v7, %v8815_v30  ;;  %v1370_v29 = vadd.f32 %v1369_v8, %v1087_v31  ;;  %v8911_v59 = vpop.f32.mrf.mxu0  ;;  %3120 = vmatpush.bf16.msrb.mxu1 %v7283_v51  ;;  %v8923_v7 = vpop.f32.mrf.mxu1  ;;  %v1796_v45 = vand.u32 2147483648, %v8883_v3 }
 0x1a1   : > { %7690 = vpow2.f32 %v7155_v63  ;;  %v1794_v54 = vand.u32 2147483647, %v8883_v3  ;;  %vm8956_vm5 = vcmp.eq.f32.partialorder %v1779_v12, 8.507059e+37  ;;  %vm1790_vm6 = vweird.f32 %v8883_v3 }
 0x1a2   : > { %v8907_v48 = vadd.f32 %v8811_v15, %v1281_v23  ;;  %v8914_v63 = vadd.f32 %v8813_v18, %v1370_v29 }
 0x1a3   : > { %vm8962_vm8 = vcmp.eq.f32.partialorder %v1794_v54, 8.507059e+37 }
 0x1a4   : > { %v7685_v52 = vpop.eup %7684  ;;  %v7156_v31 = vmul.f32 -1.442695, %v8907_v48  ;;  %v7157_v53 = vmul.f32 -1.442695, %v8914_v63 }
 0x1a5   : > { %v8916_v30 = vpop.eup %7686  ;;  %v8918_v2 = vadd.f32 1.0, %v7685_v52 }
 0x1a6   : > { %v8921_v6 = vpop.eup %7688  ;;  %v1771_v8 = vmul.f32 %v8916_v30, %v8877_v60  ;;  %vm1776_vm4 = vweird.f32 %v8916_v30 }
 0x1a7   : > { %v7691_v10 = vpop.eup %7690  ;;  %v1786_v14 = vmul.f32 %v8921_v6, %v8883_v3  ;;  %7692 = vrcp.f32 %v8918_v2  ;;  %v1282_v23 = vpop.f32.mrf.mxu2  ;;  %vm1791_vm7 = vweird.f32 %v8921_v6  ;;  %vm8974_vm9 = vmor %vm1775_vm0, %vm1776_vm4  ;;  %vm1805_vm10 = vweird.f32 %v8918_v2 }
 0x1a8   : > { %v1371_v24 = vpop.f32.mrf.mxu3  ;;  %v1772_v29 = vsub.f32 1.0, %v1771_v8  ;;  %v8933_v44 = vadd.f32 1.0, %v7691_v10  ;;  %7694 = vpow2.f32 %v7156_v31  ;;  %v1283_v51 = vadd.f32 %v1282_v23, %v8863_v56  ;;  %v816_v31 = vld [vmem:[%s8584_s30 + $0xb0] sm:$0xff]  ;;  %v1096_v20 = vpop.f32.mrf.mxu1  ;;  %vm9001_vm13 = vmor %vm1790_vm6, %vm1791_vm7 }
 0x1a9   : > { %v1787_v41 = vsub.f32 1.0, %v1786_v14  ;;  %v1372_v52 = vadd.f32 %v1371_v24, %v1090_v46  ;;  %v1809_v10 = vand.u32 2147483647, %v8918_v2  ;;  %v1811_v14 = vand.u32 2147483648, %v8918_v2 }
 0x1aa   : > { %v1773_v55 = vmul.f32 %v8916_v30, %v1772_v29  ;;  %7696 = vrcp.f32 %v8933_v44  ;;  %v8949_v46 = vadd.f32 %v8811_v15, %v1283_v51  ;;  %v8968_v33 = vpack.c.bf16 %v817_v34, %v816_v31 }
 0x1ab   : > { %v1788_v8 = vmul.f32 %v8921_v6, %v1787_v41  ;;  %7698 = vpow2.f32 %v7157_v53  ;;  %v8952_v23 = vadd.f32 %v8813_v18, %v1372_v52  ;;  %v1782_v41 = vor.u32 1.1754944e-38, %v1781_v13  ;;  %v983_v53 = vpop.f32.mrf.mxu0 }
 0x1ac   : > { %v1774_v56 = vadd.f32 %v8916_v30, %v1773_v55  ;;  %7130 = vmatmul.msk.bf16.gmra.mxu2 %vm1217_vm14, %v836_v9  ;;  %7146 = vmatmul.msk.bf16.gmra.mxu3 %vm1217_vm14, %v836_v9  ;;  %v1797_v55 = vor.u32 1.1754944e-38, %v1796_v45  ;;  %v7158_v9 = vmul.f32 -1.442695, %v8949_v46  ;;  %vm8979_vm11 = vcmp.eq.f32.partialorder %v1809_v10, 8.507059e+37 }
 0x1ad   : > { %v7693_v24 = vpop.eup %7692  ;;  %v1812_v45 = vor.u32 1.1754944e-38, %v1811_v14  ;;  %v7159_v26 = vmul.f32 -1.442695, %v8952_v23  ;;  %v1789_v19 = vadd.f32 %v8921_v6, %v1788_v8  ;;  %v1824_v1 = vand.u32 2147483647, %v8933_v44 }
 0x1ae   : > { %v1801_v52 = vmul.f32 %v7693_v24, %v8918_v2  ;;  %v7695_v12 = vpop.eup %7694  ;;  %v1778_v60 = vsel %vm8974_vm9, %v8916_v30, %v1774_v56  ;;  %v1826_v14 = vand.u32 2147483648, %v8933_v44  ;;  %7700 = vpow2.f32 %v7158_v9 }
 0x1af   : > { %v1285_v34 = vpop.f32.mrf.mxu2  ;;  %v8988_v4 = vadd.f32 1.0, %v7695_v12  ;;  %vm1806_vm12 = vweird.f32 %v7693_v24  ;;  %v1783_v30 = vsel %vm8956_vm5, %v1782_v41, %v1778_v60  ;;  %vm1820_vm1 = vweird.f32 %v8933_v44 }
 0x1b0   : > { %v1374_v31 = vpop.f32.mrf.mxu3  ;;  %v7697_v25 = vpop.eup %7696  ;;  %v1802_v5 = vsub.f32 1.0, %v1801_v52  ;;  %v1286_v13 = vadd.f32 %v1285_v34, %v8911_v59  ;;  %vm1807_vm15 = vmor %vm1805_vm10, %vm1806_vm12  ;;  %vm9017_vm3 = vcmp.eq.f32.partialorder %v1824_v1, 8.507059e+37  ;;  %v1827_v9 = vor.u32 1.1754944e-38, %v1826_v14 }
 0x1b1   : > { %v1816_v10 = vmul.f32 %v7697_v25, %v8933_v44  ;;  %v7699_v0 = vpop.eup %7698  ;;  %7702 = vrcp.f32 %v8988_v4  ;;  %v1375_v41 = vadd.f32 %v1374_v31, %v8923_v7  ;;  %vm1821_vm2 = vweird.f32 %v7697_v25 }
 0x1b2   : > { %v1803_v62 = vmul.f32 %v7693_v24, %v1802_v5  ;;  %v9005_v52 = vadd.f32 1.0, %v7699_v0  ;;  %7704 = vpow2.f32 %v7159_v26  ;;  %v1793_v5 = vsel %vm9001_vm13, %v8921_v6, %v1789_v19  ;;  %vm1822_vm0 = vmor %vm1820_vm1, %vm1821_vm2 }
 0x1b3   : > { %v1817_v56 = vsub.f32 1.0, %v1816_v10  ;;  %v9011_v29 = vadd.f32 %v8811_v15, %v1286_v13  ;;  %v2730_v6 = vmul.f32 %v1783_v30, %v8830_v32  ;;  %v1798_v2 = vsel %vm8962_vm8, %v1797_v55, %v1793_v5 }
 0x1b4   : > { %v1804_v59 = vadd.f32 %v7693_v24, %v1803_v62  ;;  %7706 = vrcp.f32 %v9005_v52  ;;  %v7701_v19 = vpop.eup %7700  ;;  %v9037_v32 = vadd.f32 %v8813_v18, %v1375_v41  ;;  %v819_v41 = vld [vmem:[%s8584_s30 + $0xc8] sm:$0xff]  ;;  %vm1835_vm5 = vweird.f32 %v8988_v4 }
 0x1b5   : > { %v1818_v3 = vmul.f32 %v7697_v25, %v1817_v56  ;;  %v7160_v62 = vmul.f32 -1.442695, %v9011_v29  ;;  %v9034_v10 = vadd.f32 1.0, %v7701_v19  ;;  %vm1850_vm6 = vweird.f32 %v9005_v52 }
 0x1b6   : > { %v1808_v26 = vsel %vm1807_vm15, %v7693_v24, %v1804_v59  ;;  %v986_v24 = vpop.f32.mrf.mxu0  ;;  %v818_v59 = vld [vmem:[%s8584_s30 + $0xc0] sm:$0xff] }
 0x1b7   : > { %v1813_v7 = vsel %vm8979_vm11, %v1812_v45, %v1808_v26  ;;  %v1819_v12 = vadd.f32 %v7697_v25, %v1818_v3  ;;  %v1287_v1 = vpop.f32.mrf.mxu2  ;;  %v9028_v31 = vpop.eup %7702  ;;  %7708 = vpow2.f32 %v7160_v62  ;;  %v1841_v26 = vand.u32 2147483648, %v8988_v4 }
 0x1b8   : > { %v1376_v34 = vpop.f32.mrf.mxu3  ;;  %v2732_v60 = vmul.f32 %v1813_v7, %v8866_v37  ;;  %v1288_v55 = vadd.f32 %v1287_v1, %v983_v53  ;;  %v7705_v51 = vpop.eup %7704  ;;  %v1831_v14 = vmul.f32 %v9028_v31, %v8988_v4  ;;  %7710 = vrcp.f32 %v9034_v10 }
 0x1b9   : > { %v1823_v54 = vsel %vm1822_vm0, %v7697_v25, %v1819_v12  ;;  %v1377_v45 = vadd.f32 %v1376_v34, %v1096_v20  ;;  %v9041_v37 = vpop.f32.mrf.mxu1  ;;  %v9046_v13 = vadd.f32 1.0, %v7705_v51  ;;  %v2731_v25 = vmul.f32 %v1798_v2, %v8833_v50 }
 0x1ba   : > { %v1828_v44 = vsel %vm9017_vm3, %v1827_v9, %v1823_v54  ;;  %v9049_v53 = vadd.f32 %v8811_v15, %v1288_v55  ;;  %v9053_v30 = vpack.c.bf16 %v2732_v60, %v2730_v6  ;;  %v1832_v8 = vsub.f32 1.0, %v1831_v14  ;;  %v9055_v56 = vpop.eup %7706 }
 0x1bb   : > { %v2733_v20 = vmul.f32 %v1828_v44, %v8869_v38  ;;  %7712 = vrcp.f32 %v9046_v13  ;;  %v1839_v50 = vand.u32 2147483647, %v8988_v4  ;;  %v9067_v38 = vadd.f32 %v8813_v18, %v1377_v45 }
 0x1bc   : > { %v7162_v5 = vmul.f32 -1.442695, %v9049_v53  ;;  %7131 = vmatmul.msk.bf16.gmra.mxu2 %vm1217_vm14, %v8968_v33  ;;  %7147 = vmatmul.msk.bf16.gmra.mxu3 %vm1217_vm14, %v8968_v33  ;;  %v1833_v0 = vmul.f32 %v9028_v31, %v1832_v8  ;;  %v7161_v9 = vmul.f32 -1.442695, %v9037_v32  ;;  %v9078_v6 = vpack.c.bf16 %v819_v41, %v818_v59 }
 0x1bd   : > { %3032 = vmatmul.bf16.vlgmr.msrb.gmra.mxu0 %v9053_v30  ;;  %v9070_v3 = vpack.c.bf16 %v2733_v20, %v2731_v25  ;;  %v7709_v62 = vpop.eup %7708  ;;  %vm1836_vm4 = vweird.f32 %v9028_v31  ;;  %v1846_v7 = vmul.f32 %v9055_v56, %v9005_v52  ;;  %v7163_v34 = vmul.f32 -1.442695, %v9067_v38 }
 0x1be   : > { %v1834_v2 = vadd.f32 %v9028_v31, %v1833_v0  ;;  %v7711_v12 = vpop.eup %7710  ;;  %7714 = vpow2.f32 %v7162_v5  ;;  %vm9087_vm7 = vcmp.eq.f32.partialorder %v1839_v50, 8.507059e+37  ;;  %v1842_v55 = vor.u32 1.1754944e-38, %v1841_v26  ;;  %v989_v45 = vpop.f32.mrf.mxu0  ;;  %vm9099_vm8 = vmor %vm1835_vm5, %vm1836_vm4 }
 0x1bf   : > { %3121 = vmatmul.bf16.vlgmr.msrb.gmra.mxu1 %v9070_v3  ;;  %v1290_v33 = vpop.f32.mrf.mxu2  ;;  %v1861_v51 = vmul.f32 %v7711_v12, %v9034_v10  ;;  %7716 = vpow2.f32 %v7161_v9  ;;  %v1871_v44 = vand.u32 2147483648, %v9034_v10  ;;  %v9105_v25 = vadd.f32 1.0, %v7709_v62 }
 0x1c0   : > { %v9076_v19 = vpop.f32.mrf.mxu3  ;;  %v1291_v1 = vadd.f32 %v1290_v33, %v986_v24  ;;  %v1869_v24 = vand.u32 2147483647, %v9034_v10  ;;  %v1838_v20 = vsel %vm9099_vm8, %v9028_v31, %v1834_v2  ;;  %v1847_v5 = vsub.f32 1.0, %v1846_v7 }
 0x1c1   : > { %v9092_v54 = vpop.eup %7712  ;;  %v1862_v8 = vsub.f32 1.0, %v1861_v51  ;;  %v9110_v59 = vpop.f32.mrf.mxu1  ;;  %vm1865_vm9 = vweird.f32 %v9034_v10  ;;  %vm1851_vm10 = vweird.f32 %v9055_v56  ;;  %7718 = vpow2.f32 %v7163_v34  ;;  %v7612_v10 = vld [vmem:[%s15297_s5 + $0x14] sm:$0xf] }
 0x1c2   : > { %v9095_v14 = vadd.f32 %v8811_v15, %v1291_v1  ;;  %v1876_v50 = vmul.f32 %v9092_v54, %v9046_v13  ;;  %vm1866_vm11 = vweird.f32 %v7711_v12  ;;  %v1848_v26 = vmul.f32 %v9055_v56, %v1847_v5  ;;  %vm9141_vm15 = vmor %vm1850_vm6, %vm1851_vm10 }
 0x1c3   : > { %v1863_v0 = vmul.f32 %v7711_v12, %v1862_v8  ;;  %v1843_v31 = vsel %vm9087_vm7, %v1842_v55, %v1838_v20  ;;  %vm9120_vm12 = vcmp.eq.f32.partialorder %v1869_v24, 8.507059e+37  ;;  %v1872_v34 = vor.u32 1.1754944e-38, %v1871_v44  ;;  %vm1867_vm13 = vmor %vm1865_vm9, %vm1866_vm11 }
 0x1c4   : > { %v7164_v41 = vmul.f32 -1.442695, %v9095_v14  ;;  %v7715_v9 = vpop.eup %7714  ;;  %v1877_v33 = vsub.f32 1.0, %v1876_v50  ;;  %v1849_v51 = vadd.f32 %v9055_v56, %v1848_v26  ;;  %v1854_v60 = vand.u32 2147483647, %v9005_v52 }
 0x1c5   : > { %v1864_v1 = vadd.f32 %v7711_v12, %v1863_v0  ;;  %v9126_v4 = vpop.eup %7716  ;;  %v1856_v55 = vand.u32 2147483648, %v9005_v52  ;;  %v9134_v20 = vadd.f32 1.0, %v7715_v9  ;;  %v2734_v44 = vmul.f32 %v1843_v31, %v8907_v48  ;;  %v7628_v50 = vld [vmem:[%s15297_s5 + $0x94] sm:$0xf] }
 0x1c6   : > { %7720 = vpow2.f32 %v7164_v41  ;;  %v1878_v24 = vmul.f32 %v9092_v54, %v1877_v33  ;;  %vm1881_vm1 = vweird.f32 %v9092_v54  ;;  %v1853_v41 = vsel %vm9141_vm15, %v9055_v56, %v1849_v51  ;;  %v7292_v33 = vld [vmem:[%s15297_s5 + $0x98] sm:$0xf0] }
 0x1c7   : > { %7722 = vrcp.f32 %v9105_v25  ;;  %v1292_v2 = vpop.f32.mrf.mxu2  ;;  %v1868_v5 = vsel %vm1867_vm13, %v7711_v12, %v1864_v1  ;;  %v7228_v12 = vld [vmem:[%s15297_s5 + $0x18] sm:$0xf0]  ;;  %vm1880_vm2 = vweird.f32 %v9046_v13  ;;  %v7719_v0 = vpop.eup %7718  ;;  %v1884_v31 = vand.u32 2147483647, %v9046_v13 }
 0x1c8   : > { %v1381_v7 = vpop.f32.mrf.mxu3  ;;  %v1293_v8 = vadd.f32 %v1292_v2, %v989_v45  ;;  %v1873_v52 = vsel %vm9120_vm12, %v1872_v34, %v1868_v5  ;;  %v1879_v9 = vadd.f32 %v9092_v54, %v1878_v24  ;;  %v1886_v62 = vand.u32 2147483648, %v9046_v13  ;;  %v992_v2 = vpop.f32.mrf.mxu0  ;;  %vm9180_vm0 = vmor %vm1880_vm2, %vm1881_vm1  ;;  %v820_v34 = vld [vmem:[%s8584_s30 + $0xd0] sm:$0xff] }
 0x1c9   : > { %v2736_v26 = vmul.f32 %v1873_v52, %v8949_v46  ;;  %vm1855_vm3 = vcmp.eq.f32.partialorder %v1854_v60, 8.507059e+37  ;;  %v1857_v46 = vor.u32 1.1754944e-38, %v1856_v55  ;;  %v7231_v51 = vor.u32 %v7612_v10, %v7228_v12  ;;  %v1105_v60 = vpop.f32.mrf.mxu1 }
 0x1ca   : > { %v9153_v48 = vadd.f32 %v8811_v15, %v1293_v8  ;;  %7724 = vrcp.f32 %v9134_v20  ;;  %v1887_v55 = vor.u32 1.1754944e-38, %v1886_v62  ;;  %v7295_v45 = vor.u32 %v7628_v50, %v7292_v33 }
 0x1cb   : > { %v9189_v5 = vpack.c.bf16 %v2736_v26, %v2734_v44  ;;  %v1858_v13 = vsel %vm1855_vm3, %v1857_v46, %v1853_v41  ;;  %3208 = vmatpush.bf16.msra.mxu2 %v7231_v51  ;;  %v1380_v10 = vadd.f32 %v9076_v19, %v9041_v37  ;;  %v1382_v12 = vadd.f32 %v1381_v7, %v9110_v59  ;;  %v821_v51 = vld [vmem:[%s8584_s30 + $0xd8] sm:$0xff] }
 0x1cc   : > { %v7721_v56 = vpop.eup %7720  ;;  %v7166_v1 = vmul.f32 -1.442695, %v9153_v48  ;;  %7132 = vmatmul.msk.bf16.gmra.mxu2 %vm1217_vm14, %v9078_v6  ;;  %7148 = vmatmul.msk.bf16.gmra.mxu3 %vm1217_vm14, %v9078_v6  ;;  %v1883_v6 = vsel %vm9180_vm0, %v9092_v54, %v1879_v9  ;;  %vm1885_vm4 = vcmp.eq.f32.partialorder %v1884_v31, 8.507059e+37  ;;  %v2735_v41 = vmul.f32 %v1858_v13, %v8914_v63 }
 0x1cd   : > { %v9184_v8 = vpop.eup %7722  ;;  %v9187_v24 = vadd.f32 1.0, %v7721_v56  ;;  %3037 = vmatmul.bf16.gmra.mxu0 %v9189_v5  ;;  %v1888_v26 = vsel %vm1885_vm4, %v1887_v55, %v1883_v6  ;;  %3297 = vmatpush.bf16.msra.mxu3 %v7295_v45  ;;  %v9209_v7 = vadd.f32 %v8813_v18, %v1380_v10  ;;  %v9212_v31 = vadd.f32 %v8813_v18, %v1382_v12 }
 0x1ce   : > { %7726 = vpow2.f32 %v7166_v1  ;;  %v2737_v9 = vmul.f32 %v1888_v26, %v8952_v23  ;;  %v1891_v37 = vmul.f32 %v9184_v8, %v9105_v25  ;;  %v9220_v33 = vadd.f32 1.0, %v9126_v4 }
 0x1cf   : > { %7728 = vrcp.f32 %v9187_v24  ;;  %v1295_v44 = vpop.f32.mrf.mxu2  ;;  %v9231_v13 = vadd.f32 1.0, %v7719_v0  ;;  %v7165_v4 = vmul.f32 -1.442695, %v9209_v7  ;;  %v7167_v55 = vmul.f32 -1.442695, %v9212_v31 }
 0x1d0   : > { %v1384_v52 = vpop.f32.mrf.mxu3  ;;  %v1296_v54 = vadd.f32 %v1295_v44, %v992_v2  ;;  %v9206_v59 = vpop.eup %7724  ;;  %v9214_v63 = vpack.c.bf16 %v2737_v9, %v2735_v41  ;;  %v1892_v6 = vsub.f32 1.0, %v1891_v37  ;;  %v839_v0 = vpack.c.bf16 %v821_v51, %v820_v34 }
 0x1d1   : > { %v1385_v50 = vadd.f32 %v1384_v52, %v1105_v60  ;;  %v995_v60 = vpop.f32.mrf.mxu0  ;;  %v1921_v12 = vmul.f32 %v9206_v59, %v9134_v20  ;;  %v1108_v44 = vpop.f32.mrf.mxu1  ;;  %vm1896_vm5 = vweird.f32 %v9184_v8  ;;  %vm1895_vm6 = vweird.f32 %v9105_v25 }
 0x1d2   : > { %v9204_v19 = vadd.f32 %v8811_v15, %v1296_v54  ;;  %3126 = vmatmul.bf16.gmra.mxu1 %v9214_v63  ;;  %v1893_v41 = vmul.f32 %v9184_v8, %v1892_v6  ;;  %vm1926_vm7 = vweird.f32 %v9206_v59  ;;  %vm9277_vm8 = vmor %vm1895_vm6, %vm1896_vm5  ;;  %vm1925_vm9 = vweird.f32 %v9134_v20 }
 0x1d3   : > { %v9217_v23 = vadd.f32 %v8813_v18, %v1385_v50  ;;  %v1922_v37 = vsub.f32 1.0, %v1921_v12  ;;  %vm1955_vm10 = vweird.f32 %v9187_v24  ;;  %vm9292_vm11 = vmor %vm1925_vm9, %vm1926_vm7  ;;  %v1961_v49 = vand.u32 2147483648, %v9187_v24 }
 0x1d4   : > { %v7727_v62 = vpop.eup %7726  ;;  %v7168_v56 = vmul.f32 -1.442695, %v9204_v19  ;;  %vm1910_vm7 = vweird.f32 %v9220_v33  ;;  %v1946_v42 = vand.u32 2147483648, %v9231_v13 }
 0x1d5   : > { %v9223_v2 = vpop.eup %7728  ;;  %v9225_v1 = vadd.f32 1.0, %v7727_v62  ;;  %v7169_v46 = vmul.f32 -1.442695, %v9217_v23 }
 0x1d6   : > { %7730 = vpow2.f32 %v7168_v56  ;;  %v1951_v52 = vmul.f32 %v9223_v2, %v9187_v24  ;;  %vm1956_vm13 = vweird.f32 %v9223_v2 }
 0x1d7   : > { %7732 = vrcp.f32 %v9225_v1  ;;  %v1297_v45 = vpop.f32.mrf.mxu2  ;;  %vm9318_vm1 = vmor %vm1955_vm10, %vm1956_vm13  ;;  %vm1985_vm3 = vweird.f32 %v9225_v1 }
 0x1d8   : > { %v1386_v10 = vpop.f32.mrf.mxu3  ;;  %7734 = vpow2.f32 %v7169_v46  ;;  %v1298_v26 = vadd.f32 %v1297_v45, %v995_v60  ;;  %v1952_v56 = vsub.f32 1.0, %v1951_v52  ;;  %v1894_v60 = vadd.f32 %v9184_v8, %v1893_v41 }
 0x1d9   : > { %7736 = vrcp.f32 %v9220_v33  ;;  %v1387_v54 = vadd.f32 %v1386_v10, %v1108_v44  ;;  %v1901_v10 = vand.u32 2147483648, %v9105_v25  ;;  %v1899_v44 = vand.u32 2147483647, %v9105_v25  ;;  %v9304_v57 = vpop.f32.mrf.mxu0 }
 0x1da   : > { %7738 = vrcp.f32 %v9231_v13  ;;  %v9244_v9 = vadd.f32 %v8811_v15, %v1298_v26  ;;  %v1931_v52 = vand.u32 2147483648, %v9134_v20 }
 0x1db   : > { %7740 = vpow2.f32 %v7165_v4  ;;  %v9247_v50 = vadd.f32 %v8813_v18, %v1387_v54  ;;  %v1923_v4 = vmul.f32 %v9206_v59, %v1922_v37  ;;  %vm1900_vm12 = vcmp.eq.f32.partialorder %v1899_v44, 8.507059e+37 }
 0x1dc   : > { %v7731_v62 = vpop.eup %7730  ;;  %7742 = vpow2.f32 %v7167_v55  ;;  %v7170_v46 = vmul.f32 -1.442695, %v9244_v9  ;;  %7133 = vmatmul.msk.bf16.gmra.mxu2 %vm1217_vm14, %v839_v0  ;;  %7149 = vmatmul.msk.bf16.gmra.mxu3 %vm1217_vm14, %v839_v0  ;;  %v1953_v0 = vmul.f32 %v9223_v2, %v1952_v56 }
 0x1dd   : > { %v9253_v34 = vpop.eup %7732  ;;  %v9255_v51 = vadd.f32 1.0, %v7731_v62  ;;  %v7171_v6 = vmul.f32 -1.442695, %v9247_v50  ;;  %v1929_v62 = vand.u32 2147483647, %v9134_v20  ;;  %v1924_v61 = vadd.f32 %v9206_v59, %v1923_v4 }
 0x1de   : > { %v7735_v45 = vpop.eup %7734  ;;  %v1981_v55 = vmul.f32 %v9253_v34, %v9225_v1  ;;  %7744 = vpow2.f32 %v7170_v46  ;;  %v1898_v46 = vsel %vm9277_vm8, %v9184_v8, %v1894_v60  ;;  %v1932_v60 = vor.u32 1.1754944e-38, %v1931_v52 }
 0x1df   : > { %v9264_v12 = vpop.eup %7736  ;;  %7746 = vrcp.f32 %v9255_v51  ;;  %v9273_v41 = vadd.f32 1.0, %v7735_v45  ;;  %v1959_v45 = vand.u32 2147483647, %v9187_v24  ;;  %v1928_v20 = vsel %vm9292_vm11, %v9206_v59, %v1924_v61 }
 0x1e0   : > { %v9270_v26 = vpop.eup %7738  ;;  %v1982_v54 = vsub.f32 1.0, %v1981_v55  ;;  %7748 = vpow2.f32 %v7171_v6  ;;  %v1902_v55 = vor.u32 1.1754944e-38, %v1901_v10  ;;  %v1954_v37 = vadd.f32 %v9223_v2, %v1953_v0 }
 0x1e1   : > { %v7741_v25 = vpop.eup %7740  ;;  %7750 = vrcp.f32 %v9273_v41  ;;  %vm1930_vm15 = vcmp.eq.f32.partialorder %v1929_v62, 8.507059e+37  ;;  %v1989_v61 = vand.u32 2147483647, %v9225_v1  ;;  %v1991_v59 = vand.u32 2147483648, %v9225_v1 }
 0x1e2   : > { %v7743_v56 = vpop.eup %7742  ;;  %v1983_v8 = vmul.f32 %v9253_v34, %v1982_v54  ;;  %v1903_v10 = vsel %vm1900_vm12, %v1902_v55, %v1898_v46  ;;  %v9307_v54 = vadd.f32 1.0, %v7741_v25  ;;  %v1933_v6 = vsel %vm1930_vm15, %v1932_v60, %v1928_v20 }
 0x1e3   : > { %v2740_v0 = vmul.f32 %v1933_v6, %v9049_v53  ;;  %vm1986_vm2 = vweird.f32 %v9253_v34  ;;  %v2738_v55 = vmul.f32 %v1903_v10, %v9011_v29  ;;  %v1906_v20 = vmul.f32 %v9264_v12, %v9220_v33 }
 0x1e4   : > { %v7745_v4 = vpop.eup %7744  ;;  %v1984_v25 = vadd.f32 %v9253_v34, %v1983_v8  ;;  %v1958_v53 = vsel %vm9318_vm1, %v9223_v2, %v1954_v37  ;;  %v9332_v24 = vadd.f32 1.0, %v7743_v56  ;;  %v9337_v8 = vpop.f32.mrf.mxu1  ;;  %v1962_v6 = vor.u32 1.1754944e-38, %v1961_v49  ;;  %vm9344_vm4 = vmor %vm1985_vm3, %vm1986_vm2 }
 0x1e5   : > { %v9302_v58 = vpop.eup %7746  ;;  %v9309_v44 = vadd.f32 1.0, %v7745_v4  ;;  %v9342_v10 = vpack.c.bf16 %v2740_v0, %v2738_v55  ;;  %vm1960_vm0 = vcmp.eq.f32.partialorder %v1959_v45, 8.507059e+37  ;;  %v1907_v1 = vsub.f32 1.0, %v1906_v20  ;;  %v1300_v37 = vpop.f32.mrf.mxu2 }
 0x1e6   : > { %v2011_v52 = vmul.f32 %v9302_v58, %v9255_v51  ;;  %v7749_v62 = vpop.eup %7748  ;;  %v1963_v56 = vsel %vm1960_vm0, %v1962_v6, %v1958_v53  ;;  %v1988_v49 = vsel %vm9344_vm4, %v9253_v34, %v1984_v25  ;;  %vm1990_vm5 = vcmp.eq.f32.partialorder %v1989_v61, 8.507059e+37  ;;  %v1389_v6 = vpop.f32.mrf.mxu3 }
 0x1e7   : > { %v9327_v60 = vpop.eup %7750  ;;  %7752 = vrcp.f32 %v9309_v44  ;;  %v9335_v4 = vadd.f32 1.0, %v7749_v62  ;;  %15444 = vst [vmem:[#allocation29_spill] sm:$0xff] %v9342_v10  ;;  %3042 = vmatmul.bf16.gmra.mxu0 %v9342_v10  ;;  %v1992_v45 = vor.u32 1.1754944e-38, %v1991_v59  ;;  %v2021_v0 = vand.u32 2147483648, %v9255_v51  ;;  %v1001_v20 = vpop.f32.mrf.mxu0 }
 0x1e8   : > { %v2026_v29 = vmul.f32 %v9327_v60, %v9273_v41  ;;  %v2012_v2 = vsub.f32 1.0, %v2011_v52  ;;  %v2036_v55 = vand.u32 2147483648, %v9273_v41  ;;  %v1908_v53 = vmul.f32 %v9264_v12, %v1907_v1 }
 0x1e9   : > { %7754 = vrcp.f32 %v9335_v4  ;;  %v9362_v34 = vmul.f32 %v1963_v56, %v9095_v14  ;;  %v1993_v25 = vsel %vm1990_vm5, %v1992_v45, %v1988_v49  ;;  %v2051_v59 = vand.u32 2147483648, %v9309_v44 }
 0x1ea   : > { %7756 = vrcp.f32 %v9307_v54  ;;  %v2027_v62 = vsub.f32 1.0, %v2026_v29  ;;  %v2013_v61 = vmul.f32 %v9302_v58, %v2012_v2  ;;  %v1909_v47 = vadd.f32 %v9264_v12, %v1908_v53 }
 0x1eb   : > { %7758 = vrcp.f32 %v9332_v24  ;;  %vm1911_vm6 = vweird.f32 %v9264_v12  ;;  %v1914_v29 = vand.u32 2147483647, %v9220_v33  ;;  %v1916_v1 = vand.u32 2147483648, %v9220_v33 }
 0x1ec   : > { %v9372_v43 = vor.u32 1.1754944e-38, %v2021_v0  ;;  %v2034_v14 = vand.u32 2147483647, %v9273_v41  ;;  %v1936_v2 = vmul.f32 %v9270_v26, %v9231_v13  ;;  %v2028_v49 = vmul.f32 %v9327_v60, %v2027_v62  ;;  %vm9397_vm9 = vmor %vm1910_vm7, %vm1911_vm6  ;;  %v1114_v36 = vpop.f32.mrf.mxu1 }
 0x1ed   : > { %v9359_v46 = vpop.eup %7752  ;;  %v9381_v45 = vor.u32 1.1754944e-38, %v2036_v55  ;;  %v2744_v40 = vmul.f32 %v1993_v25, %v9153_v48  ;;  %v9390_v33 = vadd.f32 %v9302_v58, %v2013_v61  ;;  %vm2016_vm8 = vweird.f32 %v9302_v58 }
 0x1ee   : > { %v2041_v53 = vmul.f32 %v9359_v46, %v9309_v44  ;;  %v9393_v39 = vor.u32 1.1754944e-38, %v2051_v59  ;;  %v1937_v55 = vsub.f32 1.0, %v1936_v2  ;;  %vm2031_vm10 = vweird.f32 %v9327_v60 }
 0x1ef   : > { %v9370_v52 = vpop.eup %7754  ;;  %v1913_v25 = vsel %vm9397_vm9, %v9264_v12, %v1909_v47  ;;  %vm1915_vm11 = vcmp.eq.f32.partialorder %v1914_v29, 8.507059e+37  ;;  %v1917_v61 = vor.u32 1.1754944e-38, %v1916_v1  ;;  %vm2015_vm12 = vweird.f32 %v9255_v51  ;;  %v1302_v12 = vpop.f32.mrf.mxu2 }
 0x1f0   : > { %v9378_v56 = vpop.eup %7756  ;;  %v2056_v48 = vmul.f32 %v9370_v52, %v9335_v4  ;;  %v1938_v59 = vmul.f32 %v9270_v26, %v1937_v55  ;;  %vm1941_vm13 = vweird.f32 %v9270_v26  ;;  %v1944_v2 = vand.u32 2147483647, %v9231_v13  ;;  %v1391_v29 = vpop.f32.mrf.mxu3  ;;  %vm9467_vm4 = vmor %vm2015_vm12, %vm2016_vm8 }
 0x1f1   : > { %v9386_v0 = vpop.eup %7758  ;;  %v9413_v35 = vadd.f32 %v9327_v60, %v2028_v49  ;;  %v2042_v28 = vsub.f32 1.0, %v2041_v53  ;;  %v1301_v27 = vadd.f32 %v1300_v37, %v9304_v57  ;;  %v1390_v47 = vadd.f32 %v1389_v6, %v9337_v8  ;;  %v822_v53 = vld [vmem:[%s8584_s30 + $0xe0] sm:$0xff] }
 0x1f2   : > { %v1918_v1 = vsel %vm1915_vm11, %v1917_v61, %v1913_v25  ;;  %v1939_v62 = vadd.f32 %v9270_v26, %v1938_v59  ;;  %vm1940_vm15 = vweird.f32 %v9231_v13  ;;  %v1303_v55 = vadd.f32 %v1302_v12, %v1001_v20  ;;  %v823_v25 = vld [vmem:[%s8584_s30 + $0xe8] sm:$0xff]  ;;  %v9431_v13 = vpop.f32.mrf.mxu0 }
 0x1f3   : > { %v2057_v22 = vsub.f32 1.0, %v2056_v48  ;;  %vm1942_vm1 = vmor %vm1940_vm15, %vm1941_vm13  ;;  %v1947_v10 = vor.u32 1.1754944e-38, %v1946_v42  ;;  %v9420_v49 = vadd.f32 %v8811_v15, %v1301_v27  ;;  %v9423_v57 = vadd.f32 %v8813_v18, %v1390_v47 }
 0x1f4   : > { %v1943_v8 = vsel %vm1942_vm1, %v9270_v26, %v1939_v62  ;;  %vm1945_vm2 = vcmp.eq.f32.partialorder %v1944_v2, 8.507059e+37  ;;  %v9427_v37 = vadd.f32 %v8811_v15, %v1303_v55  ;;  %v1392_v6 = vadd.f32 %v1391_v29, %v1114_v36 }
 0x1f5   : > { %v15449_v20 = vand.u32 2147483647, %v9255_v51  ;;  %vm9439_vm0 = vcmp.eq.f32.partialorder %v2034_v14, 8.507059e+37  ;;  %v2043_v26 = vmul.f32 %v9359_v46, %v2042_v28  ;;  %v1948_v48 = vsel %vm1945_vm2, %v1947_v10, %v1943_v8  ;;  %v7220_v51 = vld [vmem:[%s15297_s5 + $0x8] sm:$0xf0] }
 0x1f6   : > { %v7172_v61 = vmul.f32 -1.442695, %v9420_v49  ;;  %v7173_v36 = vmul.f32 -1.442695, %v9423_v57  ;;  %v2739_v59 = vmul.f32 %v1918_v1, %v9037_v32  ;;  %v2741_v2 = vmul.f32 %v1948_v48, %v9067_v38  ;;  %v9461_v38 = vpop.f32.mrf.mxu1  ;;  %v7284_v48 = vld [vmem:[%s15297_s5 + $0x88] sm:$0xf0] }
 0x1f7   : > { %vm9435_vm3 = vcmp.eq.f32.partialorder %v15449_v20, 8.507059e+37  ;;  %v7174_v47 = vmul.f32 -1.442695, %v9427_v37  ;;  %v9450_v12 = vadd.f32 %v8813_v18, %v1392_v6  ;;  %v2058_v14 = vmul.f32 %v9370_v52, %v2057_v22  ;;  %v1305_v1 = vpop.f32.mrf.mxu2  ;;  %v7626_v20 = vld [vmem:[%s15297_s5 + $0x84] sm:$0xf] }
 0x1f8   : > { %7760 = vpow2.f32 %v7172_v61  ;;  %v840_v29 = vpack.c.bf16 %v823_v25, %v822_v53  ;;  %v9454_v28 = vpack.c.bf16 %v2744_v40, %v9362_v34  ;;  %v9456_v10 = vpack.c.bf16 %v2741_v2, %v2739_v59  ;;  %v7610_v34 = vld [vmem:[%s15297_s5 + $0x4] sm:$0xf]  ;;  %v1394_v61 = vpop.f32.mrf.mxu3 }
 0x1f9   : > { %7762 = vpow2.f32 %v7173_v36  ;;  %v7175_v62 = vmul.f32 -1.442695, %v9450_v12  ;;  %v1966_v32 = vmul.f32 %v9378_v56, %v9307_v54  ;;  %vm2030_vm5 = vweird.f32 %v9273_v41 }
 0x1fa   : > { %vm2045_vm6 = vweird.f32 %v9309_v44  ;;  %v2064_v40 = vand.u32 2147483647, %v9335_v4  ;;  %7764 = vpow2.f32 %v7174_v47  ;;  %7134 = vmatmul.msk.bf16.gmra.mxu2 %vm1217_vm14, %v840_v29  ;;  %7150 = vmatmul.msk.bf16.gmra.mxu3 %vm1217_vm14, %v840_v29  ;;  %vm9484_vm7 = vmor %vm2030_vm5, %vm2031_vm10  ;;  %v15458_v55 = vand.u32 2147483647, %v9309_v44 }
 0x1fb   : > { %v2066_v6 = vand.u32 2147483648, %v9335_v4  ;;  %3131 = vmatmul.bf16.gmra.mxu1 %v9456_v10  ;;  %7766 = vpow2.f32 %v7175_v62  ;;  %3047 = vmatmul.bf16.gmra.mxu0 %v9454_v28  ;;  %v1967_v53 = vsub.f32 1.0, %v1966_v32  ;;  %v1996_v25 = vmul.f32 %v9386_v0, %v9332_v24 }
 0x1fc   : > { %vm9490_vm8 = vcmp.eq.f32.partialorder %v15458_v55, 8.507059e+37  ;;  %v2018_v36 = vsel %vm9467_vm4, %v9302_v58, %v9390_v33  ;;  %v2033_v59 = vsel %vm9484_vm7, %v9327_v60, %v9413_v35  ;;  %vm2046_vm9 = vweird.f32 %v9359_v46 }
 0x1fd   : > { %vm2061_vm10 = vweird.f32 %v9370_v52  ;;  %v2044_v2 = vadd.f32 %v9359_v46, %v2043_v26  ;;  %v2059_v47 = vadd.f32 %v9370_v52, %v2058_v14  ;;  %v1968_v29 = vmul.f32 %v9378_v56, %v1967_v53  ;;  %vm9531_vm13 = vmor %vm2045_vm6, %vm2046_vm9 }
 0x1fe   : > { %v1997_v62 = vsub.f32 1.0, %v1996_v25  ;;  %v7761_v32 = vpop.eup %7760  ;;  %vm2060_vm11 = vweird.f32 %v9335_v4  ;;  %vm9519_vm12 = vcmp.eq.f32.partialorder %v2064_v40, 8.507059e+37  ;;  %v7223_v33 = vor.u32 %v7610_v34, %v7220_v51  ;;  %v1007_v51 = vpop.f32.mrf.mxu0 }
 0x1ff   : > { %v7287_v35 = vor.u32 %v7626_v20, %v7284_v48  ;;  %v7763_v60 = vpop.eup %7762  ;;  %v2023_v22 = vsel %vm9435_vm3, %v9372_v43, %v2018_v36  ;;  %v2038_v26 = vsel %vm9439_vm0, %v9381_v45, %v2033_v59  ;;  %v2067_v4 = vor.u32 1.1754944e-38, %v2066_v6  ;;  %vm9539_vm15 = vmor %vm2060_vm11, %vm2061_vm10  ;;  %v1307_v36 = vpop.f32.mrf.mxu2 }
 0x200   : > { %v9535_v40 = vadd.f32 1.0, %v7761_v32  ;;  %v7765_v34 = vpop.eup %7764  ;;  %v9543_v43 = vadd.f32 1.0, %v7763_v60  ;;  %v1969_v45 = vadd.f32 %v9378_v56, %v1968_v29  ;;  %vm1971_vm1 = vweird.f32 %v9378_v56  ;;  %3209 = vmatpush.bf16.msra.mxu2 %v7223_v33  ;;  %v1396_v59 = vpop.f32.mrf.mxu3 }
 0x201   : > { %v1998_v44 = vmul.f32 %v9386_v0, %v1997_v62  ;;  %3298 = vmatpush.bf16.msra.mxu3 %v7287_v35  ;;  %v7767_v27 = vpop.eup %7766  ;;  %v2048_v41 = vsel %vm9531_vm13, %v9359_v46, %v2044_v2  ;;  %v2063_v55 = vsel %vm9539_vm15, %v9370_v52, %v2059_v47  ;;  %v1976_v6 = vand.u32 2147483648, %v9307_v54  ;;  %v1120_v2 = vpop.f32.mrf.mxu1 }
 0x202   : > { %7768 = vrcp.f32 %v9535_v40  ;;  %vm1970_vm2 = vweird.f32 %v9307_v54  ;;  %v1974_v53 = vand.u32 2147483647, %v9307_v54  ;;  %v1306_v25 = vadd.f32 %v1305_v1, %v9431_v13 }
 0x203   : > { %7770 = vrcp.f32 %v9543_v43  ;;  %v9560_v20 = vadd.f32 1.0, %v7765_v34  ;;  %v9562_v48 = vadd.f32 1.0, %v7767_v27  ;;  %vm9566_vm3 = vmor %vm1970_vm2, %vm1971_vm1  ;;  %vm2001_vm0 = vweird.f32 %v9386_v0  ;;  %v825_v34 = vld [vmem:[%s8584_s30 + $0xf8] sm:$0xff] }
 0x204   : > { %v2006_v46 = vand.u32 2147483648, %v9332_v24  ;;  %v2053_v54 = vsel %vm9490_vm8, %v9393_v39, %v2048_v41  ;;  %v1973_v13 = vsel %vm9566_vm3, %v9378_v56, %v1969_v45  ;;  %v1999_v1 = vadd.f32 %v9386_v0, %v1998_v44 }
 0x205   : > { %v2004_v47 = vand.u32 2147483647, %v9332_v24  ;;  %v2068_v29 = vsel %vm9519_vm12, %v2067_v4, %v2063_v55  ;;  %7772 = vrcp.f32 %v9560_v20  ;;  %v1977_v62 = vor.u32 1.1754944e-38, %v1976_v6 }
 0x206   : > { %vm2000_vm4 = vweird.f32 %v9332_v24  ;;  %7774 = vrcp.f32 %v9562_v48  ;;  %vm1975_vm5 = vcmp.eq.f32.partialorder %v1974_v53, 8.507059e+37  ;;  %v9592_v56 = vadd.f32 %v8811_v15, %v1306_v25  ;;  %v1010_v45 = vpop.f32.mrf.mxu0 }
 0x207   : > { %vm9587_vm6 = vmor %vm2000_vm4, %vm2001_vm0  ;;  %v1395_v8 = vadd.f32 %v1394_v61, %v9461_v38  ;;  %v2746_v24 = vmul.f32 %v2023_v22, %v9204_v19  ;;  %v1978_v58 = vsel %vm1975_vm5, %v1977_v62, %v1973_v13  ;;  %v2007_v35 = vor.u32 1.1754944e-38, %v2006_v46  ;;  %v824_v61 = vld [vmem:[%s8584_s30 + $0xf0] sm:$0xff] }
 0x208   : > { %v9595_v32 = vpop.eup %7768  ;;  %v2003_v33 = vsel %vm9587_vm6, %v9386_v0, %v1999_v1  ;;  %v9604_v14 = vmul.f32 %v2038_v26, %v9217_v23  ;;  %v2748_v4 = vmul.f32 %v2053_v54, %v9244_v9  ;;  %vm2005_vm7 = vcmp.eq.f32.partialorder %v2004_v47, 8.507059e+37  ;;  %v1399_v53 = vpop.f32.mrf.mxu3 }
 0x209   : > { %v9601_v60 = vpop.eup %7770  ;;  %v2071_v38 = vmul.f32 %v9595_v32, %v9535_v40  ;;  %v9612_v19 = vmul.f32 %v2068_v29, %v9247_v50  ;;  %v2079_v22 = vand.u32 2147483647, %v9535_v40  ;;  %v2008_v0 = vsel %vm2005_vm7, %v2007_v35, %v2003_v33 }
 0x20a   : > { %v2743_v42 = vmul.f32 %v1978_v58, %v9209_v7  ;;  %v2745_v23 = vmul.f32 %v2008_v0, %v9212_v31  ;;  %v7176_v9 = vmul.f32 -1.442695, %v9592_v56  ;;  %v9619_v26 = vadd.f32 %v8813_v18, %v1395_v8  ;;  %v1310_v7 = vpop.f32.mrf.mxu2 }
 0x20b   : > { %v2072_v44 = vsub.f32 1.0, %v2071_v38  ;;  %v9621_v27 = vpop.eup %7772  ;;  %vm2075_vm8 = vweird.f32 %v9535_v40  ;;  %v2086_v50 = vmul.f32 %v9601_v60, %v9543_v43  ;;  %v1308_v41 = vadd.f32 %v1307_v36, %v1007_v51  ;;  %v1123_v36 = vpop.f32.mrf.mxu1 }
 0x20c   : > { %v1397_v55 = vadd.f32 %v1396_v59, %v1120_v2  ;;  %v841_v6 = vpack.c.bf16 %v825_v34, %v824_v61  ;;  %v9626_v25 = vpop.eup %7774  ;;  %v2081_v31 = vand.u32 2147483648, %v9535_v40  ;;  %v2094_v52 = vand.u32 2147483647, %v9543_v43 }
 0x20d   : > { %v2101_v46 = vmul.f32 %v9621_v27, %v9560_v20  ;;  %v9632_v54 = vpack.c.bf16 %v2745_v23, %v2743_v42  ;;  %v2073_v13 = vmul.f32 %v9595_v32, %v2072_v44  ;;  %v2096_v1 = vand.u32 2147483648, %v9543_v43 }
 0x20e   : > { %v2116_v51 = vmul.f32 %v9626_v25, %v9562_v48  ;;  %7776 = vpow2.f32 %v7176_v9  ;;  %7135 = vmatmul.msk.bf16.gmra.mxu2 %vm1217_vm14, %v841_v6  ;;  %7151 = vmatmul.msk.bf16.gmra.mxu3 %vm1217_vm14, %v841_v6  ;;  %v2111_v2 = vand.u32 2147483648, %v9560_v20  ;;  %v7177_v47 = vmul.f32 -1.442695, %v9619_v26 }
 0x20f   : > { %v2102_v59 = vsub.f32 1.0, %v2101_v46  ;;  %3136 = vmatmul.bf16.gmra.mxu1 %v9632_v54  ;;  %v9644_v29 = vadd.f32 %v8811_v15, %v1308_v41  ;;  %v2087_v62 = vsub.f32 1.0, %v2086_v50  ;;  %vm2106_vm9 = vweird.f32 %v9621_v27  ;;  %v1013_v46 = vpop.f32.mrf.mxu0 }
 0x210   : > { %v9648_v39 = vadd.f32 %v8813_v18, %v1397_v55  ;;  %v9650_v8 = vpack.c.bf16 %v2748_v4, %v2746_v24  ;;  %v2117_v33 = vsub.f32 1.0, %v2116_v51  ;;  %7778 = vpow2.f32 %v7177_v47  ;;  %v1401_v50 = vpop.f32.mrf.mxu3 }
 0x211   : > { %v2103_v58 = vmul.f32 %v9621_v27, %v2102_v59  ;;  %v7178_v35 = vmul.f32 -1.442695, %v9644_v29  ;;  %v2074_v38 = vadd.f32 %v9595_v32, %v2073_v13  ;;  %vm2076_vm10 = vweird.f32 %v9595_v32 }
 0x212   : > { %vm2090_vm11 = vweird.f32 %v9543_v43  ;;  %v2109_v61 = vand.u32 2147483647, %v9560_v20  ;;  %v7179_v34 = vmul.f32 -1.442695, %v9648_v39  ;;  %3052 = vmatmul.bf16.gmra.mxu0 %v9650_v8  ;;  %vm9660_vm12 = vcmp.eq.f32.partialorder %v2079_v22, 8.507059e+37  ;;  %v1312_v22 = vpop.f32.mrf.mxu2  ;;  %vm9677_vm1 = vmor %vm2075_vm8, %vm2076_vm10 }
 0x213   : > { %v2104_v4 = vadd.f32 %v9621_v27, %v2103_v58  ;;  %vm2105_vm13 = vweird.f32 %v9560_v20  ;;  %7780 = vpow2.f32 %v7178_v35  ;;  %v2082_v42 = vor.u32 1.1754944e-38, %v2081_v31  ;;  %v1126_v47 = vpop.f32.mrf.mxu1 }
 0x214   : > { %v7777_v0 = vpop.eup %7776  ;;  %v2088_v44 = vmul.f32 %v9601_v60, %v2087_v62  ;;  %vm9669_vm15 = vmor %vm2105_vm13, %vm2106_vm9  ;;  %v2112_v9 = vor.u32 1.1754944e-38, %v2111_v2  ;;  %7782 = vpow2.f32 %v7179_v34  ;;  %v2118_v55 = vmul.f32 %v9626_v25, %v2117_v33 }
 0x215   : > { %v2108_v41 = vsel %vm9669_vm15, %v9621_v27, %v2104_v4  ;;  %v9685_v6 = vadd.f32 1.0, %v7777_v0  ;;  %v1311_v31 = vadd.f32 %v1310_v7, %v1010_v45  ;;  %v2078_v13 = vsel %vm9677_vm1, %v9595_v32, %v2074_v38 }
 0x216   : > { %vm2110_vm2 = vcmp.eq.f32.partialorder %v2109_v61, 8.507059e+37  ;;  %vm2120_vm3 = vweird.f32 %v9562_v48  ;;  %v1400_v40 = vadd.f32 %v1399_v53, %v1123_v36  ;;  %v7779_v51 = vpop.eup %7778  ;;  %v2124_v2 = vand.u32 2147483647, %v9562_v48 }
 0x217   : > { %v2113_v59 = vsel %vm2110_vm2, %v2112_v9, %v2108_v41  ;;  %7784 = vrcp.f32 %v9685_v6  ;;  %v1313_v27 = vadd.f32 %v1312_v22, %v1013_v46  ;;  %vm2091_vm0 = vweird.f32 %v9601_v60 }
 0x218   : > { %vm2121_vm4 = vweird.f32 %v9626_v25  ;;  %v2126_v45 = vand.u32 2147483648, %v9562_v48  ;;  %v9696_v7 = vadd.f32 1.0, %v7779_v51  ;;  %v2083_v53 = vsel %vm9660_vm12, %v2082_v42, %v2078_v13  ;;  %vm9714_vm5 = vmor %vm2090_vm11, %vm2091_vm0 }
 0x219   : > { %v7781_v32 = vpop.eup %7780  ;;  %v2089_v36 = vadd.f32 %v9601_v60, %v2088_v44  ;;  %v2119_v62 = vadd.f32 %v9626_v25, %v2118_v55  ;;  %v9703_v58 = vadd.f32 %v8811_v15, %v1311_v31  ;;  %v2752_v35 = vmul.f32 %v2113_v59, %v9427_v37  ;;  %vm9736_vm6 = vmor %vm2120_vm3, %vm2121_vm4 }
 0x21a   : > { %v7783_v33 = vpop.eup %7782  ;;  %7786 = vrcp.f32 %v9696_v7  ;;  %v9708_v38 = vadd.f32 %v8813_v18, %v1400_v40  ;;  %v1402_v61 = vadd.f32 %v1401_v50, %v1126_v47  ;;  %v9718_v24 = vadd.f32 1.0, %v7781_v32  ;;  %v3411_v40 = vld [vmem:[%s15302_s10 + $0xf8] sm:$0xff] }
 0x21b   : > { %v9720_v4 = vadd.f32 1.0, %v7783_v33  ;;  %v9724_v37 = vpack.c.bf16 %v9612_v19, %v9604_v14  ;;  %v9727_v0 = vadd.f32 %v8811_v15, %v1313_v27  ;;  %v2750_v42 = vmul.f32 %v2083_v53, %v9420_v49  ;;  %v1315_v14 = vpop.f32.mrf.mxu2  ;;  %v1404_v19 = vpop.f32.mrf.mxu3  ;;  %3815 = vmatpush.msrb.mxu3 %v3411_v40  ;;  %3525 = vmatpush.msra.mxu1 %v3411_v40 }
 0x21c   : > { %v2097_v44 = vor.u32 1.1754944e-38, %v2096_v1  ;;  %v7180_v9 = vmul.f32 -1.442695, %v9703_v58  ;;  %v2093_v49 = vsel %vm9714_vm5, %v9601_v60, %v2089_v36  ;;  %v2123_v1 = vsel %vm9736_vm6, %v9626_v25, %v2119_v62 }
 0x21d   : > { %v9741_v22 = vpop.eup %7784  ;;  %v2127_v50 = vor.u32 1.1754944e-38, %v2126_v45  ;;  %7788 = vrcp.f32 %v9718_v24  ;;  %v7181_v20 = vmul.f32 -1.442695, %v9708_v38  ;;  %v9754_v41 = vadd.f32 %v8813_v18, %v1402_v61 }
 0x21e   : > { %v2131_v48 = vmul.f32 %v9741_v22, %v9685_v6  ;;  %v9756_v55 = vpack.c.bf16 %v2752_v35, %v2750_v42  ;;  %3210 = vmatmul.bf16.vlgmr.msra.gmra.mxu2 %v9053_v30  ;;  %3299 = vmatmul.bf16.vlgmr.msra.gmra.mxu3 %v9070_v3  ;;  %vm2095_vm7 = vcmp.eq.f32.partialorder %v2094_v52, 8.507059e+37  ;;  %vm2125_vm8 = vcmp.eq.f32.partialorder %v2124_v2, 8.507059e+37  ;;  %v3395_v52 = vld [vmem:[%s15302_s10 + $0x78] sm:$0xff] }
 0x21f   : > { %7790 = vrcp.f32 %v9720_v4  ;;  %3141 = vmatmul.bf16.gmra.mxu1 %v9724_v37  ;;  %v7182_v60 = vmul.f32 -1.442695, %v9727_v0  ;;  %v2098_v31 = vsel %vm2095_vm7, %v2097_v44, %v2093_v49  ;;  %v2128_v46 = vsel %vm2125_vm8, %v2127_v50, %v2123_v1  ;;  %3702 = vmatpush.msrb.mxu2 %v3395_v52 }
 0x220   : > { %v9765_v25 = vpop.eup %7786  ;;  %7792 = vpow2.f32 %v7180_v9  ;;  %v2141_v13 = vand.u32 2147483648, %v9685_v6  ;;  %v2132_v3 = vsub.f32 1.0, %v2131_v48  ;;  %v7183_v43 = vmul.f32 -1.442695, %v9754_v41  ;;  %3412 = vmatpush.msra.mxu0 %v3395_v52 }
 0x221   : > { %v2146_v30 = vmul.f32 %v9765_v25, %v9696_v7  ;;  %7794 = vpow2.f32 %v7181_v20  ;;  %v2751_v59 = vmul.f32 %v2098_v31, %v9423_v57  ;;  %v2753_v2 = vmul.f32 %v2128_v46, %v9450_v12  ;;  %v1016_v12 = vpop.f32.mrf.mxu0 }
 0x222   : > { %3057 = vmatmul.bf16.gmra.mxu0 %v9756_v55  ;;  %7796 = vpow2.f32 %v7182_v60  ;;  %vm2135_vm9 = vweird.f32 %v9685_v6  ;;  %v2139_v27 = vand.u32 2147483647, %v9685_v6  ;;  %v9790_v36 = vor.u32 1.1754944e-38, %v2141_v13 }
 0x223   : > { %v9778_v51 = vpop.eup %7788  ;;  %v2147_v45 = vsub.f32 1.0, %v2146_v30  ;;  %7798 = vpow2.f32 %v7183_v43  ;;  %v1317_v47 = vpop.f32.mrf.mxu2  ;;  %v2154_v62 = vand.u32 2147483647, %v9696_v7  ;;  %v2156_v33 = vand.u32 2147483648, %v9696_v7 }
 0x224   : > { %v2161_v32 = vmul.f32 %v9778_v51, %v9718_v24  ;;  %v9786_v53 = vpop.f32.mrf.mxu3  ;;  %vm2165_vm10 = vweird.f32 %v9718_v24  ;;  %v2133_v61 = vmul.f32 %v9741_v22, %v2132_v3  ;;  %vm2150_vm11 = vweird.f32 %v9696_v7 }
 0x225   : > { %v9788_v57 = vpop.eup %7790  ;;  %v1316_v44 = vadd.f32 %v1315_v14, %v1016_v12  ;;  %vm2136_vm12 = vweird.f32 %v9741_v22  ;;  %v2171_v23 = vand.u32 2147483648, %v9718_v24  ;;  %v1405_v49 = vadd.f32 %v1404_v19, %v8613_v11 }
 0x226   : > { %v7793_v35 = vpop.eup %7792  ;;  %v2162_v34 = vsub.f32 1.0, %v2161_v32  ;;  %v2176_v42 = vmul.f32 %v9788_v57, %v9720_v4  ;;  %v2148_v50 = vmul.f32 %v9765_v25, %v2147_v45  ;;  %vm2166_vm13 = vweird.f32 %v9778_v51  ;;  %vm9845_vm2 = vmor %vm2135_vm9, %vm2136_vm12 }
 0x227   : > { %v9801_v9 = vadd.f32 1.0, %v7793_v35  ;;  %v7795_v1 = vpop.eup %7794  ;;  %v2169_v31 = vand.u32 2147483647, %v9718_v24  ;;  %v2184_v14 = vand.u32 2147483647, %v9720_v4  ;;  %v2186_v46 = vand.u32 2147483648, %v9720_v4  ;;  %vm9819_vm15 = vmor %vm2165_vm10, %vm2166_vm13 }
 0x228   : > { %v2163_v48 = vmul.f32 %v9778_v51, %v2162_v34  ;;  %v2177_v20 = vsub.f32 1.0, %v2176_v42  ;;  %v7797_v60 = vpop.eup %7796  ;;  %v2134_v11 = vadd.f32 %v9741_v22, %v2133_v61  ;;  %v9815_v3 = vadd.f32 %v8811_v15, %v1316_v44 }
 0x229   : > { %7800 = vrcp.f32 %v9801_v9  ;;  %v7799_v13 = vpop.eup %7798  ;;  %v9823_v52 = vadd.f32 1.0, %v7795_v1  ;;  %v9825_v40 = vadd.f32 1.0, %v7797_v60  ;;  %v9827_v45 = vpack.c.bf16 %v2753_v2, %v2751_v59 }
 0x22a   : > { %v2164_v19 = vadd.f32 %v9778_v51, %v2163_v48  ;;  %v2178_v30 = vmul.f32 %v9788_v57, %v2177_v20  ;;  %v9830_v32 = vadd.f32 %v8813_v18, %v1405_v49  ;;  %v2149_v12 = vadd.f32 %v9765_v25, %v2148_v50  ;;  %v3410_v50 = vld [vmem:[%s15302_s10 + $0xf0] sm:$0xff] }
 0x22b   : > { %vm2151_vm1 = vweird.f32 %v9765_v25  ;;  %v2172_v35 = vor.u32 1.1754944e-38, %v2171_v23  ;;  %v9837_v61 = vpop.f32.mrf.mxu2  ;;  %vm2181_vm3 = vweird.f32 %v9788_v57  ;;  %7802 = vrcp.f32 %v9823_v52  ;;  %3816 = vmatpush.msrb.mxu3 %v3410_v50  ;;  %3526 = vmatpush.msra.mxu1 %v3410_v50  ;;  %v15501_v50 = vld [vmem:[#allocation3_spill] sm:$0xff] }
 0x22c   : > { %v2168_v24 = vsel %vm9819_vm15, %v9778_v51, %v2164_v19  ;;  %v9839_v34 = vpop.f32.mrf.mxu3  ;;  %v2179_v2 = vadd.f32 %v9788_v57, %v2178_v30  ;;  %v9852_v51 = vadd.f32 1.0, %v7799_v13  ;;  %v2138_v42 = vsel %vm9845_vm2, %v9741_v22, %v2134_v11  ;;  %vm9867_vm4 = vmor %vm2150_vm11, %vm2151_vm1 }
 0x22d   : > { %vm2170_vm0 = vcmp.eq.f32.partialorder %v2169_v31, 8.507059e+37  ;;  %7804 = vrcp.f32 %v9825_v40  ;;  %v7184_v44 = vmul.f32 -1.442695, %v9815_v3  ;;  %vm2180_vm5 = vweird.f32 %v9720_v4 }
 0x22e   : > { %3215 = vmatmul.bf16.gmra.mxu2 %v9189_v5  ;;  %3304 = vmatmul.bf16.gmra.mxu3 %v9214_v63  ;;  %v2173_v22 = vsel %vm2170_vm0, %v2172_v35, %v2168_v24  ;;  %v7185_v1 = vmul.f32 -1.442695, %v9830_v32  ;;  %v1318_v5 = vadd.f32 %v1317_v47, %v8621_v16  ;;  %vm2140_vm6 = vcmp.eq.f32.partialorder %v2139_v27, 8.507059e+37  ;;  %vm9882_vm8 = vmor %vm2180_vm5, %vm2181_vm3 }
 0x22f   : > { %v9861_v23 = vpop.eup %7800  ;;  %3146 = vmatmul.bf16.gmra.mxu1 %v9827_v45  ;;  %v2153_v63 = vsel %vm9867_vm4, %v9765_v25, %v2149_v12  ;;  %vm2155_vm7 = vcmp.eq.f32.partialorder %v2154_v62, 8.507059e+37  ;;  %v2143_v48 = vsel %vm2140_vm6, %v9790_v36, %v2138_v42  ;;  %v2157_v16 = vor.u32 1.1754944e-38, %v2156_v33 }
 0x230   : > { %v2191_v4 = vmul.f32 %v9861_v23, %v9801_v9  ;;  %v2183_v6 = vsel %vm9882_vm8, %v9788_v57, %v2179_v2  ;;  %7806 = vrcp.f32 %v9852_v51  ;;  %v2756_v25 = vmul.f32 %v2173_v22, %v9644_v29 }
 0x231   : > { %vm2185_vm9 = vcmp.eq.f32.partialorder %v2184_v14, 8.507059e+37  ;;  %v2187_v27 = vor.u32 1.1754944e-38, %v2186_v46  ;;  %7808 = vpow2.f32 %v7184_v44  ;;  %v9896_v47 = vpop.eup %7802  ;;  %v2158_v62 = vsel %vm2155_vm7, %v2157_v16, %v2153_v63  ;;  %v3394_v63 = vld [vmem:[%s15302_s10 + $0x70] sm:$0xff] }
 0x232   : > { %v2192_v20 = vsub.f32 1.0, %v2191_v4  ;;  %7810 = vpow2.f32 %v7185_v1  ;;  %v9899_v36 = vadd.f32 %v8811_v15, %v1318_v5  ;;  %v2754_v33 = vmul.f32 %v2143_v48, %v9592_v56  ;;  %3703 = vmatpush.msrb.mxu2 %v3394_v63  ;;  %3413 = vmatpush.msra.mxu0 %v3394_v63 }
 0x233   : > { %v9901_v7 = vpop.eup %7804  ;;  %v2188_v57 = vsel %vm2185_vm9, %v2187_v27, %v2183_v6  ;;  %v1407_v60 = vadd.f32 %v9786_v53, %v8623_v17  ;;  %v9906_v29 = vpop.f32.mrf.mxu2  ;;  %v2199_v14 = vand.u32 2147483647, %v9801_v9  ;;  %v2206_v46 = vmul.f32 %v9896_v47, %v9823_v52 }
 0x234   : > { %v9908_v31 = vpop.f32.mrf.mxu3  ;;  %v2221_v13 = vmul.f32 %v9901_v7, %v9825_v40  ;;  %v7186_v11 = vmul.f32 -1.442695, %v9899_v36  ;;  %v2755_v56 = vmul.f32 %v2158_v62, %v9619_v26  ;;  %vm2195_vm10 = vweird.f32 %v9801_v9 }
 0x235   : > { %v2201_v17 = vand.u32 2147483648, %v9801_v9  ;;  %v9919_v53 = vpack.c.bf16 %v2756_v25, %v2754_v33  ;;  %v2757_v30 = vmul.f32 %v2188_v57, %v9648_v39  ;;  %v2193_v43 = vmul.f32 %v9861_v23, %v2192_v20 }
 0x236   : > { %v9921_v19 = vpop.eup %7806  ;;  %v2222_v12 = vsub.f32 1.0, %v2221_v13  ;;  %7812 = vpow2.f32 %v7186_v11  ;;  %vm2225_vm11 = vweird.f32 %v9825_v40  ;;  %v2229_v35 = vand.u32 2147483647, %v9825_v40 }
 0x237   : > { %v7809_v24 = vpop.eup %7808  ;;  %v2236_v26 = vmul.f32 %v9921_v19, %v9852_v51  ;;  %v9930_v59 = vadd.f32 %v8813_v18, %v1407_v60  ;;  %3062 = vmatmul.bf16.gmra.mxu0 %v9919_v53  ;;  %vm9933_vm12 = vcmp.eq.f32.partialorder %v2199_v14, 8.507059e+37  ;;  %v2207_v42 = vsub.f32 1.0, %v2206_v46 }
 0x238   : > { %v7811_v2 = vpop.eup %7810  ;;  %v2223_v44 = vmul.f32 %v9901_v7, %v2222_v12  ;;  %vm2226_vm13 = vweird.f32 %v9901_v7  ;;  %v9939_v49 = vadd.f32 1.0, %v7809_v24  ;;  %vm2196_vm15 = vweird.f32 %v9861_v23  ;;  %v15496_v12 = vld [vmem:[#allocation2_spill] sm:$0xff] }
 0x239   : > { %v2231_v22 = vand.u32 2147483648, %v9825_v40  ;;  %v2237_v1 = vsub.f32 1.0, %v2236_v26  ;;  %v9943_v5 = vadd.f32 1.0, %v7811_v2  ;;  %v2194_v4 = vadd.f32 %v9861_v23, %v2193_v43  ;;  %vm9958_vm1 = vmor %vm2225_vm11, %vm2226_vm13 }
 0x23a   : > { %v2224_v48 = vadd.f32 %v9901_v7, %v2223_v44  ;;  %7814 = vrcp.f32 %v9939_v49  ;;  %v9954_v16 = vpack.c.bf16 %v2757_v30, %v2755_v56  ;;  %v7187_v27 = vmul.f32 -1.442695, %v9930_v59  ;;  %vm9980_vm2 = vmor %vm2195_vm10, %vm2196_vm15  ;;  %v15495_v56 = vld [vmem:[#allocation29_spill] sm:$0xff] }
 0x23b   : > { %v2238_v25 = vmul.f32 %v9921_v19, %v2237_v1  ;;  %7816 = vrcp.f32 %v9943_v5  ;;  %v1321_v62 = vadd.f32 %v9837_v61, %v8631_v21  ;;  %v9967_v20 = vpop.f32.mrf.mxu2  ;;  %v2202_v57 = vor.u32 1.1754944e-38, %v2201_v17  ;;  %v10060_v21 = vpop.f32.mrf.mxu0 }
 0x23c   : > { %v9969_v33 = vpop.f32.mrf.mxu3  ;;  %v7813_v40 = vpop.eup %7812  ;;  %v2208_v60 = vmul.f32 %v9896_v47, %v2207_v42  ;;  %v2216_v14 = vand.u32 2147483648, %v9823_v52  ;;  %v2228_v46 = vsel %vm9958_vm1, %v9901_v7, %v2224_v48  ;;  %vm2230_vm3 = vcmp.eq.f32.partialorder %v2229_v35, 8.507059e+37 }
 0x23d   : > { %v2232_v61 = vor.u32 1.1754944e-38, %v2231_v22  ;;  %v2244_v13 = vand.u32 2147483647, %v9852_v51  ;;  %v2246_v11 = vand.u32 2147483648, %v9852_v51  ;;  %v2198_v7 = vsel %vm9980_vm2, %v9861_v23, %v2194_v4 }
 0x23e   : > { %3220 = vmatmul.bf16.gmra.mxu2 %v15495_v56  ;;  %3309 = vmatmul.bf16.gmra.mxu3 %v9456_v10  ;;  %v2239_v9 = vadd.f32 %v9921_v19, %v2238_v25  ;;  %vm2241_vm0 = vweird.f32 %v9921_v19  ;;  %v9993_v17 = vadd.f32 1.0, %v7813_v40  ;;  %7818 = vpow2.f32 %v7187_v27  ;;  %v15502_v27 = vld [vmem:[#allocation4_spill] sm:$0xff]  ;;  %v3409_v56 = vld [vmem:[%s15302_s10 + $0xe8] sm:$0xff] }
 0x23f   : > { %3151 = vmatmul.bf16.gmra.mxu1 %v9954_v16  ;;  %v2233_v30 = vsel %vm2230_vm3, %v2232_v61, %v2228_v46  ;;  %v9997_v43 = vadd.f32 %v8811_v15, %v1321_v62  ;;  %v1410_v10 = vadd.f32 %v9839_v34, %v15496_v12  ;;  %v2209_v23 = vadd.f32 %v9896_v47, %v2208_v60 }
 0x240   : > { %v10001_v24 = vpop.eup %7814  ;;  %vm2211_vm4 = vweird.f32 %v9896_v47  ;;  %vm2240_vm5 = vweird.f32 %v9852_v51  ;;  %7820 = vrcp.f32 %v9993_v17  ;;  %v2203_v26 = vsel %vm9933_vm12, %v2202_v57, %v2198_v7  ;;  %3817 = vmatpush.msrb.mxu3 %v3409_v56  ;;  %3527 = vmatpush.msra.mxu1 %v3409_v56 }
 0x241   : > { %v10007_v35 = vpop.eup %7816  ;;  %vm2210_vm6 = vweird.f32 %v9823_v52  ;;  %v2214_v2 = vand.u32 2147483647, %v9823_v52  ;;  %v2217_v34 = vor.u32 1.1754944e-38, %v2216_v14  ;;  %vm10015_vm7 = vmor %vm2240_vm5, %vm2241_vm0  ;;  %v2760_v51 = vmul.f32 %v2233_v30, %v9727_v0 }
 0x242   : > { %v2243_v44 = vsel %vm10015_vm7, %v9921_v19, %v2239_v9  ;;  %vm2245_vm8 = vcmp.eq.f32.partialorder %v2244_v13, 8.507059e+37  ;;  %v2247_v39 = vor.u32 1.1754944e-38, %v2246_v11  ;;  %vm10023_vm9 = vmor %vm2210_vm6, %vm2211_vm4  ;;  %v2251_v52 = vmul.f32 %v10001_v24, %v9939_v49  ;;  %v3393_v11 = vld [vmem:[%s15302_s10 + $0x68] sm:$0xff] }
 0x243   : > { %v7188_v1 = vmul.f32 -1.442695, %v9997_v43  ;;  %v10031_v63 = vadd.f32 %v8813_v18, %v1410_v10  ;;  %v1323_v0 = vadd.f32 %v9906_v29, %v15501_v50  ;;  %v10035_v4 = vpop.f32.mrf.mxu2  ;;  %v2758_v48 = vmul.f32 %v2203_v26, %v9703_v58  ;;  %3704 = vmatpush.msrb.mxu2 %v3393_v11  ;;  %3414 = vmatpush.msra.mxu0 %v3393_v11  ;;  %v15505_v50 = vld [vmem:[#allocation5_spill] sm:$0xff] }
 0x244   : > { %v10037_v19 = vpop.f32.mrf.mxu3  ;;  %v2213_v6 = vsel %vm10023_vm9, %v9896_v47, %v2209_v23  ;;  %v2266_v25 = vmul.f32 %v10007_v35, %v9943_v5  ;;  %v1412_v62 = vadd.f32 %v9908_v31, %v15502_v27  ;;  %v7819_v40 = vpop.eup %7818  ;;  %v2248_v57 = vsel %vm2245_vm8, %v2247_v39, %v2243_v44 }
 0x245   : > { %7822 = vpow2.f32 %v7188_v1  ;;  %v7189_v29 = vmul.f32 -1.442695, %v10031_v63  ;;  %v10049_v60 = vadd.f32 %v8811_v15, %v1323_v0  ;;  %vm2215_vm10 = vcmp.eq.f32.partialorder %v2214_v2, 8.507059e+37 }
 0x246   : > { %v10051_v14 = vpop.eup %7820  ;;  %v10053_v58 = vadd.f32 1.0, %v7819_v40  ;;  %v10056_v47 = vadd.f32 %v8813_v18, %v1412_v62  ;;  %v10058_v46 = vpack.c.bf16 %v2760_v51, %v2758_v48  ;;  %v2218_v31 = vsel %vm2215_vm10, %v2217_v34, %v2213_v6 }
 0x247   : > { %v2252_v61 = vsub.f32 1.0, %v2251_v52  ;;  %v2281_v13 = vmul.f32 %v10051_v14, %v9993_v17  ;;  %7824 = vpow2.f32 %v7189_v29  ;;  %v2761_v7 = vmul.f32 %v2248_v57, %v9754_v41 }
 0x248   : > { %v2267_v9 = vsub.f32 1.0, %v2266_v25  ;;  %7826 = vrcp.f32 %v10053_v58  ;;  %3067 = vmatmul.bf16.gmra.mxu0 %v10058_v46  ;;  %v2259_v30 = vand.u32 2147483647, %v9939_v49  ;;  %v2261_v12 = vand.u32 2147483648, %v9939_v49 }
 0x249   : > { %v2282_v10 = vsub.f32 1.0, %v2281_v13  ;;  %v7190_v23 = vmul.f32 -1.442695, %v10049_v60  ;;  %v2759_v26 = vmul.f32 %v2218_v31, %v9708_v38  ;;  %v2274_v2 = vand.u32 2147483647, %v9943_v5  ;;  %v10120_v31 = vpop.f32.mrf.mxu1 }
 0x24a   : > { %v2276_v41 = vand.u32 2147483648, %v9943_v5  ;;  %v7191_v34 = vmul.f32 -1.442695, %v10056_v47  ;;  %v2253_v51 = vmul.f32 %v10001_v24, %v2252_v61  ;;  %vm2255_vm11 = vweird.f32 %v9939_v49  ;;  %v10122_v61 = vpop.f32.mrf.mxu0 }
 0x24b   : > { %v7823_v42 = vpop.eup %7822  ;;  %v2268_v44 = vmul.f32 %v10007_v35, %v2267_v9  ;;  %7828 = vpow2.f32 %v7190_v23  ;;  %v10085_v22 = vpack.c.bf16 %v2761_v7, %v2759_v26  ;;  %vm10087_vm12 = vcmp.eq.f32.partialorder %v2259_v30, 8.507059e+37  ;;  %v10096_v48 = vpop.f32.mrf.mxu2 }
 0x24c   : > { %v10083_v39 = vadd.f32 1.0, %v7823_v42  ;;  %v2283_v1 = vmul.f32 %v10051_v14, %v2282_v10  ;;  %7830 = vpow2.f32 %v7191_v34  ;;  %v1326_v0 = vadd.f32 %v9967_v20, %v15505_v50  ;;  %v10098_v6 = vpop.f32.mrf.mxu3  ;;  %v15514_v34 = vld [vmem:[#allocation6_spill] sm:$0xff] }
 0x24d   : > { %v7825_v38 = vpop.eup %7824  ;;  %v2262_v27 = vor.u32 1.1754944e-38, %v2261_v12  ;;  %vm2270_vm13 = vweird.f32 %v9943_v5  ;;  %vm10103_vm15 = vcmp.eq.f32.partialorder %v2274_v2, 8.507059e+37  ;;  %v2277_v40 = vor.u32 1.1754944e-38, %v2276_v41 }
 0x24e   : > { %3225 = vmatmul.bf16.gmra.mxu2 %v9454_v28  ;;  %3314 = vmatmul.bf16.gmra.mxu3 %v9632_v54  ;;  %v10100_v25 = vpop.eup %7826  ;;  %v2254_v28 = vadd.f32 %v10001_v24, %v2253_v51  ;;  %vm2256_vm1 = vweird.f32 %v10001_v24  ;;  %v10112_v20 = vadd.f32 1.0, %v7825_v38  ;;  %v2269_v57 = vadd.f32 %v10007_v35, %v2268_v44 }
 0x24f   : > { %3156 = vmatmul.bf16.gmra.mxu1 %v10085_v22  ;;  %v2296_v54 = vmul.f32 %v10100_v25, %v10053_v58  ;;  %vm2271_vm2 = vweird.f32 %v10007_v35  ;;  %7832 = vrcp.f32 %v10083_v39  ;;  %v10118_v29 = vadd.f32 %v8811_v15, %v1326_v0  ;;  %vm10129_vm0 = vmor %vm2255_vm11, %vm2256_vm1 }
 0x250   : > { %v2284_v13 = vadd.f32 %v10051_v14, %v2283_v1  ;;  %vm2286_vm3 = vweird.f32 %v10051_v14  ;;  %7834 = vrcp.f32 %v10112_v20  ;;  %vm2285_vm4 = vweird.f32 %v9993_v17  ;;  %vm10144_vm5 = vmor %vm2270_vm13, %vm2271_vm2 }
 0x251   : > { %v2297_v11 = vsub.f32 1.0, %v2296_v54  ;;  %v7829_v56 = vpop.eup %7828  ;;  %v2289_v9 = vand.u32 2147483647, %v9993_v17  ;;  %v2291_v30 = vand.u32 2147483648, %v9993_v17  ;;  %v7192_v12 = vmul.f32 -1.442695, %v10118_v29  ;;  %vm10157_vm6 = vmor %vm2285_vm4, %vm2286_vm3 }
 0x252   : > { %v7831_v10 = vpop.eup %7830  ;;  %v2258_v23 = vsel %vm10129_vm0, %v10001_v24, %v2254_v28  ;;  %v2304_v2 = vand.u32 2147483647, %v10053_v58  ;;  %v10150_v17 = vadd.f32 1.0, %v7829_v56  ;;  %v2273_v41 = vsel %vm10144_vm5, %v10007_v35, %v2269_v57  ;;  %v10216_v49 = vpop.f32.mrf.mxu0 }
 0x253   : > { %v2298_v26 = vmul.f32 %v10100_v25, %v2297_v11  ;;  %v10161_v5 = vadd.f32 1.0, %v7831_v10  ;;  %7836 = vpow2.f32 %v7192_v12  ;;  %v1415_v42 = vadd.f32 %v9969_v33, %v15514_v34  ;;  %v10183_v28 = vpop.f32.mrf.mxu2 }
 0x254   : > { %v2288_v51 = vsel %vm10157_vm6, %v10051_v14, %v2284_v13  ;;  %vm2301_vm7 = vweird.f32 %v10100_v25  ;;  %7838 = vrcp.f32 %v10150_v17  ;;  %v2263_v38 = vsel %vm10087_vm12, %v2262_v27, %v2258_v23  ;;  %v10185_v54 = vpop.f32.mrf.mxu3  ;;  %v15520_v23 = vld [vmem:[#allocation8_spill] sm:$0xff] }
 0x255   : > { %v2299_v44 = vadd.f32 %v10100_v25, %v2298_v26  ;;  %v10171_v35 = vpop.eup %7832  ;;  %v2292_v1 = vor.u32 1.1754944e-38, %v2291_v30  ;;  %v2306_v50 = vand.u32 2147483648, %v10053_v58  ;;  %7840 = vrcp.f32 %v10161_v5 }
 0x256   : > { %v10177_v33 = vpop.eup %7834  ;;  %v2278_v14 = vsel %vm10103_vm15, %v2277_v40, %v2273_v41  ;;  %vm2290_vm8 = vcmp.eq.f32.partialorder %v2289_v9, 8.507059e+37  ;;  %vm2300_vm9 = vweird.f32 %v10053_v58  ;;  %v2321_v0 = vand.u32 2147483648, %v10083_v39  ;;  %v15519_v58 = vld [vmem:[#allocation7_spill] sm:$0xff] }
 0x257   : > { %v2293_v52 = vsel %vm2290_vm8, %v2292_v1, %v2288_v51  ;;  %vm10189_vm10 = vmor %vm2300_vm9, %vm2301_vm7  ;;  %vm10193_vm11 = vcmp.eq.f32.partialorder %v2304_v2, 8.507059e+37  ;;  %v10198_v62 = vadd.f32 %v8813_v18, %v1415_v42  ;;  %v1328_v40 = vadd.f32 %v10035_v4, %v15519_v58 }
 0x258   : > { %v2762_v13 = vmul.f32 %v2263_v38, %v9815_v3  ;;  %v2303_v11 = vsel %vm10189_vm10, %v10100_v25, %v2299_v44  ;;  %v2311_v56 = vmul.f32 %v10171_v35, %v10083_v39  ;;  %v2326_v7 = vmul.f32 %v10177_v33, %v10112_v20  ;;  %v10214_v3 = vpop.f32.mrf.mxu1 }
 0x259   : > { %v7837_v9 = vpop.eup %7836  ;;  %v2763_v30 = vmul.f32 %v2278_v14, %v9830_v32  ;;  %v2307_v12 = vor.u32 1.1754944e-38, %v2306_v50  ;;  %v2319_v10 = vand.u32 2147483647, %v10083_v39  ;;  %v1417_v4 = vadd.f32 %v10037_v19, %v15520_v23 }
 0x25a   : > { %v10218_v25 = vpop.eup %7838  ;;  %v2764_v26 = vmul.f32 %v2293_v52, %v9899_v36  ;;  %v10221_v2 = vor.u32 1.1754944e-38, %v2321_v0  ;;  %v2336_v41 = vand.u32 2147483648, %v10112_v20  ;;  %v10224_v24 = vadd.f32 1.0, %v7837_v9  ;;  %v2858_v36 = vld [vmem:[%s15298_s6] sm:$0x3] }
 0x25b   : > { %v10226_v32 = vpop.eup %7840  ;;  %v2308_v34 = vsel %vm10193_vm11, %v2307_v12, %v2303_v11  ;;  %v2341_v19 = vmul.f32 %v10218_v25, %v10150_v17  ;;  %v7193_v42 = vmul.f32 -1.442695, %v10198_v62  ;;  %v10234_v51 = vadd.f32 %v8811_v15, %v1328_v40  ;;  %v3392_v0 = vld [vmem:[%s15302_s10 + $0x60] sm:$0xff]  ;;  %v10268_v9 = vpop.f32.mrf.mxu2 }
 0x25c   : > { %v2312_v44 = vsub.f32 1.0, %v2311_v56  ;;  %v2327_v38 = vsub.f32 1.0, %v2326_v7  ;;  %v2356_v1 = vmul.f32 %v10226_v32, %v10161_v5  ;;  %7842 = vrcp.f32 %v10224_v24  ;;  %3705 = vmatpush.msrb.mxu2 %v3392_v0  ;;  %3415 = vmatpush.msra.mxu0 %v3392_v0  ;;  %v10270_v12 = vpop.f32.mrf.mxu3  ;;  %v10289_v0 = vpop.f32.mrf.mxu0 }
 0x25d   : > { %vm2315_vm12 = vweird.f32 %v10083_v39  ;;  %vm2316_vm13 = vweird.f32 %v10171_v35  ;;  %v2342_v50 = vsub.f32 1.0, %v2341_v19  ;;  %vm2345_vm15 = vweird.f32 %v10150_v17  ;;  %15521 = vst [vmem:[#allocation29_spill] sm:$0xff] %v10289_v0 }
 0x25e   : > { %3230 = vmatmul.bf16.gmra.mxu2 %v9650_v8  ;;  %3319 = vmatmul.bf16.gmra.mxu3 %v9724_v37  ;;  %v10248_v14 = vadd.f32 %v8813_v18, %v1417_v4  ;;  %v3408_v8 = vld [vmem:[%s15302_s10 + $0xe0] sm:$0xff]  ;;  %v2765_v37 = vmul.f32 %v2308_v34, %v9930_v59  ;;  %vm2330_vm1 = vweird.f32 %v10112_v20  ;;  %v2349_v52 = vand.u32 2147483647, %v10150_v17  ;;  %vm10326_vm7 = vmor %vm2315_vm12, %vm2316_vm13 }
 0x25f   : > { %v2357_v27 = vsub.f32 1.0, %v2356_v1  ;;  %v10259_v57 = vperm.slane %v2858_v36, 0  ;;  %3818 = vmatpush.msrb.mxu3 %v3408_v8  ;;  %v2343_v58 = vmul.f32 %v10218_v25, %v2342_v50  ;;  %v2351_v40 = vand.u32 2147483648, %v10150_v17  ;;  %3528 = vmatpush.msra.mxu1 %v3408_v8 }
 0x260   : > { %7844 = vpow2.f32 %v7193_v42  ;;  %v7194_v11 = vmul.f32 -1.442695, %v10234_v51  ;;  %v2313_v59 = vmul.f32 %v10171_v35, %v2312_v44  ;;  %v2328_v56 = vmul.f32 %v10177_v33, %v2327_v38  ;;  %v10287_v50 = vpop.f32.mrf.mxu1 }
 0x261   : > { %vm2346_vm2 = vweird.f32 %v10218_v25  ;;  %v2358_v7 = vmul.f32 %v10226_v32, %v2357_v27  ;;  %v2344_v23 = vadd.f32 %v10218_v25, %v2343_v58  ;;  %vm2361_vm3 = vweird.f32 %v10226_v32  ;;  %v15527_v58 = vld [vmem:[#allocation9_spill] sm:$0xff] }
 0x262   : > { %7846 = vpow2.f32 %v7194_v11  ;;  %v7195_v4 = vmul.f32 -1.442695, %v10248_v14  ;;  %v10275_v34 = vpop.eup %7842  ;;  %v3034_v42 = vadd.f32 %v10060_v21, %v10259_v57  ;;  %v10280_v36 = vpack.c.bf16 %v2764_v26, %v2762_v13  ;;  %vm10298_vm5 = vmor %vm2345_vm15, %vm2346_vm2 }
 0x263   : > { %v2359_v19 = vadd.f32 %v10226_v32, %v2358_v7  ;;  %v10282_v44 = vpack.c.bf16 %v2765_v37, %v2763_v30  ;;  %vm2360_vm0 = vweird.f32 %v10161_v5  ;;  %v2364_v38 = vand.u32 2147483647, %v10161_v5  ;;  %v15530_v7 = vld [vmem:[#allocation10_spill] sm:$0xff] }
 0x264   : > { %v2366_v1 = vand.u32 2147483648, %v10161_v5  ;;  %7848 = vpow2.f32 %v7195_v4  ;;  %v2314_v8 = vadd.f32 %v10171_v35, %v2313_v59  ;;  %v2329_v27 = vadd.f32 %v10177_v33, %v2328_v56  ;;  %3072 = vmatmul.bf16.gmra.mxu0 %v10280_v36  ;;  %vm10314_vm6 = vmor %vm2360_vm0, %vm2361_vm3  ;;  %v10383_v39 = vpop.f32.mrf.mxu0 }
 0x265   : > { %vm2331_vm4 = vweird.f32 %v10177_v33  ;;  %v10303_v13 = vadd.f32 %v10120_v31, %v3034_v42  ;;  %3161 = vmatmul.bf16.gmra.mxu1 %v10282_v44  ;;  %v2334_v26 = vand.u32 2147483647, %v10112_v20  ;;  %v2337_v37 = vor.u32 1.1754944e-38, %v2336_v41 }
 0x266   : > { %v7845_v30 = vpop.eup %7844  ;;  %v2371_v31 = vmul.f32 %v10275_v34, %v10224_v24  ;;  %v1331_v11 = vadd.f32 %v10096_v48, %v15527_v58  ;;  %v2348_v5 = vsel %vm10298_vm5, %v10218_v25, %v2344_v23  ;;  %v2363_v59 = vsel %vm10314_vm6, %v10226_v32, %v2359_v19  ;;  %vm10344_vm8 = vmor %vm2330_vm1, %vm2331_vm4 }
 0x267   : > { %15524 = vst [vmem:[#allocation2_spill] sm:$0xff] %v10303_v13  ;;  %v10336_v56 = vadd.f32 1.0, %v7845_v30  ;;  %v1420_v48 = vadd.f32 %v10098_v6, %v15530_v7  ;;  %vm2350_vm9 = vcmp.eq.f32.partialorder %v2349_v52, 8.507059e+37  ;;  %v2352_v25 = vor.u32 1.1754944e-38, %v2351_v40 }
 0x268   : > { %v7847_v4 = vpop.eup %7846  ;;  %v2367_v23 = vor.u32 1.1754944e-38, %v2366_v1  ;;  %v10349_v21 = vadd.f32 %v8811_v15, %v1331_v11  ;;  %v2318_v32 = vsel %vm10326_vm7, %v10171_v35, %v2314_v8  ;;  %v2333_v6 = vsel %vm10344_vm8, %v10177_v33, %v2329_v27  ;;  %v15533_v35 = vld [vmem:[#allocation11_spill] sm:$0xff]  ;;  %v10368_v33 = vpop.f32.mrf.mxu2 }
 0x269   : > { %vm2365_vm10 = vcmp.eq.f32.partialorder %v2364_v38, 8.507059e+37  ;;  %7850 = vrcp.f32 %v10336_v56  ;;  %v2353_v19 = vsel %vm2350_vm9, %v2352_v25, %v2348_v5  ;;  %v2372_v52 = vsub.f32 1.0, %v2371_v31  ;;  %v10370_v38 = vpop.f32.mrf.mxu3  ;;  %v10381_v41 = vpop.f32.mrf.mxu1  ;;  %v15535_v5 = vld [vmem:[#allocation12_spill] sm:$0xff] }
 0x26a   : > { %v7849_v20 = vpop.eup %7848  ;;  %v2368_v30 = vsel %vm2365_vm10, %v2367_v23, %v2363_v59  ;;  %v10358_v40 = vadd.f32 1.0, %v7847_v4  ;;  %v7196_v17 = vmul.f32 -1.442695, %v10349_v21  ;;  %v10364_v58 = vadd.f32 %v8813_v18, %v1420_v48  ;;  %15534 = vst [vmem:[#allocation3_spill] sm:$0xff] %v10381_v41  ;;  %v15536_v4 = vld [vmem:[#allocation13_spill] sm:$0xff] }
 0x26b   : > { %v10360_v1 = vadd.f32 1.0, %v7849_v20  ;;  %v1333_v8 = vadd.f32 %v10183_v28, %v15533_v35  ;;  %vm2320_vm11 = vcmp.eq.f32.partialorder %v2319_v10, 8.507059e+37  ;;  %vm2335_vm12 = vcmp.eq.f32.partialorder %v2334_v26, 8.507059e+37 }
 0x26c   : > { %7852 = vrcp.f32 %v10358_v40  ;;  %v2323_v27 = vsel %vm2320_vm11, %v10221_v2, %v2318_v32  ;;  %v2338_v31 = vsel %vm2335_vm12, %v2337_v37, %v2333_v6  ;;  %v2768_v28 = vmul.f32 %v2353_v19, %v10049_v60  ;;  %v3391_v32 = vld [vmem:[%s15302_s10 + $0x58] sm:$0xff] }
 0x26d   : > { %7854 = vrcp.f32 %v10360_v1  ;;  %v2769_v11 = vmul.f32 %v2368_v30, %v10056_v47  ;;  %v2373_v26 = vmul.f32 %v10275_v34, %v2372_v52  ;;  %v7197_v2 = vmul.f32 -1.442695, %v10364_v58  ;;  %v3407_v6 = vld [vmem:[%s15302_s10 + $0xd8] sm:$0xff]  ;;  %3706 = vmatpush.msrb.mxu2 %v3391_v32  ;;  %3416 = vmatpush.msra.mxu0 %v3391_v32 }
 0x26e   : > { %3235 = vmatmul.bf16.gmra.mxu2 %v9756_v55  ;;  %3324 = vmatmul.bf16.gmra.mxu3 %v9827_v45  ;;  %7856 = vpow2.f32 %v7196_v17  ;;  %v10390_v37 = vadd.f32 %v8811_v15, %v1333_v8  ;;  %v2766_v55 = vmul.f32 %v2323_v27, %v9997_v43  ;;  %v2767_v45 = vmul.f32 %v2338_v31, %v10031_v63 }
 0x26f   : > { %v10385_v10 = vpop.eup %7850  ;;  %vm2375_vm13 = vweird.f32 %v10224_v24  ;;  %7858 = vpow2.f32 %v7197_v2  ;;  %v1422_v59 = vadd.f32 %v10185_v54, %v15535_v5  ;;  %v3039_v7 = vadd.f32 %v10216_v49, %v10259_v57  ;;  %3819 = vmatpush.msrb.mxu3 %v3407_v6  ;;  %3529 = vmatpush.msra.mxu1 %v3407_v6  ;;  %v15540_v5 = vld [vmem:[#allocation14_spill] sm:$0xff] }
 0x270   : > { %v2386_v60 = vmul.f32 %v10385_v10, %v10336_v56  ;;  %v7198_v47 = vmul.f32 -1.442695, %v10390_v37  ;;  %vm2376_vm15 = vweird.f32 %v10275_v34  ;;  %v10405_v43 = vpack.c.bf16 %v2768_v28, %v2766_v55  ;;  %v10438_v31 = vpop.f32.mrf.mxu2 }
 0x271   : > { %v10407_v63 = vpack.c.bf16 %v2769_v11, %v2767_v45  ;;  %v1336_v42 = vadd.f32 %v10268_v9, %v15536_v4  ;;  %v2374_v23 = vadd.f32 %v10275_v34, %v2373_v26  ;;  %v10417_v49 = vadd.f32 %v8813_v18, %v1422_v59  ;;  %v10440_v28 = vpop.f32.mrf.mxu3  ;;  %vm10446_vm1 = vmor %vm2375_vm13, %vm2376_vm15  ;;  %v10464_v4 = vpop.f32.mrf.mxu0 }
 0x272   : > { %v10402_v48 = vpop.eup %7852  ;;  %7860 = vpow2.f32 %v7198_v47  ;;  %v2379_v9 = vand.u32 2147483647, %v10224_v24  ;;  %v2387_v20 = vsub.f32 1.0, %v2386_v60  ;;  %v10429_v30 = vadd.f32 %v10287_v50, %v3039_v7  ;;  %15541 = vst [vmem:[#allocation5_spill] sm:$0xff] %v10464_v4 }
 0x273   : > { %v10411_v25 = vpop.eup %7854  ;;  %v2401_v54 = vmul.f32 %v10402_v48, %v10358_v40  ;;  %v2381_v17 = vand.u32 2147483648, %v10224_v24  ;;  %v7199_v8 = vmul.f32 -1.442695, %v10417_v49  ;;  %v10436_v27 = vadd.f32 %v8811_v15, %v1336_v42 }
 0x274   : > { %v2416_v19 = vmul.f32 %v10411_v25, %v10360_v1  ;;  %15537 = vst [vmem:[#allocation4_spill] sm:$0xff] %v10429_v30  ;;  %v7857_v52 = vpop.eup %7856  ;;  %3077 = vmatmul.bf16.gmra.mxu0 %v10405_v43  ;;  %v2394_v11 = vand.u32 2147483647, %v10336_v56  ;;  %v2378_v45 = vsel %vm10446_vm1, %v10275_v34, %v2374_v23  ;;  %v2388_v24 = vmul.f32 %v10385_v10, %v2387_v20 }
 0x275   : > { %v2402_v35 = vsub.f32 1.0, %v2401_v54  ;;  %3166 = vmatmul.bf16.gmra.mxu1 %v10407_v63  ;;  %v10451_v2 = vadd.f32 1.0, %v7857_v52  ;;  %v7859_v55 = vpop.eup %7858  ;;  %7862 = vpow2.f32 %v7199_v8  ;;  %v7200_v60 = vmul.f32 -1.442695, %v10436_v27 }
 0x276   : > { %v2417_v26 = vsub.f32 1.0, %v2416_v19  ;;  %v1425_v59 = vadd.f32 %v10270_v12, %v15540_v5  ;;  %vm2380_vm2 = vcmp.eq.f32.partialorder %v2379_v9, 8.507059e+37  ;;  %v2382_v54 = vor.u32 1.1754944e-38, %v2381_v17 }
 0x277   : > { %v2403_v47 = vmul.f32 %v10402_v48, %v2402_v35  ;;  %7864 = vrcp.f32 %v10451_v2  ;;  %vm2390_vm3 = vweird.f32 %v10336_v56  ;;  %v2396_v34 = vand.u32 2147483648, %v10336_v56 }
 0x278   : > { %v10462_v7 = vpop.f32.mrf.mxu1  ;;  %v7861_v42 = vpop.eup %7860  ;;  %vm10468_vm0 = vcmp.eq.f32.partialorder %v2394_v11, 8.507059e+37  ;;  %v2418_v32 = vmul.f32 %v10411_v25, %v2417_v26  ;;  %v10473_v6 = vadd.f32 1.0, %v7859_v55  ;;  %v2383_v20 = vsel %vm2380_vm2, %v2382_v54, %v2378_v45 }
 0x279   : > { %v10475_v12 = vadd.f32 1.0, %v7861_v42  ;;  %vm2391_vm4 = vweird.f32 %v10385_v10  ;;  %vm2406_vm5 = vweird.f32 %v10402_v48  ;;  %7866 = vpow2.f32 %v7200_v60 }
 0x27a   : > { %v2389_v9 = vadd.f32 %v10385_v10, %v2388_v24  ;;  %v2404_v19 = vadd.f32 %v10402_v48, %v2403_v47  ;;  %7868 = vrcp.f32 %v10473_v6  ;;  %v10483_v52 = vadd.f32 %v8813_v18, %v1425_v59  ;;  %vm10497_vm7 = vmor %vm2390_vm3, %vm2391_vm4 }
 0x27b   : > { %v7863_v17 = vpop.eup %7862  ;;  %vm2405_vm6 = vweird.f32 %v10358_v40  ;;  %v2409_v35 = vand.u32 2147483647, %v10358_v40  ;;  %v2411_v8 = vand.u32 2147483648, %v10358_v40  ;;  %v2424_v50 = vand.u32 2147483647, %v10360_v1 }
 0x27c   : > { %v2419_v55 = vadd.f32 %v10411_v25, %v2418_v32  ;;  %vm2421_vm8 = vweird.f32 %v10411_v25  ;;  %v2426_v45 = vand.u32 2147483648, %v10360_v1  ;;  %7870 = vrcp.f32 %v10475_v12  ;;  %vm10516_vm9 = vmor %vm2405_vm6, %vm2406_vm5 }
 0x27d   : > { %v10491_v11 = vpop.eup %7864  ;;  %v10510_v60 = vmul.f32 %v2383_v20, %v10118_v29  ;;  %v2397_v56 = vor.u32 1.1754944e-38, %v2396_v34  ;;  %vm2420_vm10 = vweird.f32 %v10360_v1  ;;  %v2393_v5 = vsel %vm10497_vm7, %v10385_v10, %v2389_v9  ;;  %v15552_v10 = vld [vmem:[#allocation15_spill] sm:$0xff]  ;;  %v3406_v34 = vld [vmem:[%s15302_s10 + $0xd0] sm:$0xff] }
 0x27e   : > { %3240 = vmatmul.bf16.gmra.mxu2 %v9919_v53  ;;  %3329 = vmatmul.bf16.gmra.mxu3 %v9954_v16  ;;  %v10505_v53 = vpop.f32.mrf.mxu2  ;;  %v10507_v16 = vpop.f32.mrf.mxu3  ;;  %v2431_v47 = vmul.f32 %v10491_v11, %v10451_v2  ;;  %v2408_v29 = vsel %vm10516_vm9, %v10402_v48, %v2404_v19  ;;  %v10529_v59 = vadd.f32 1.0, %v7863_v17  ;;  %v7201_v40 = vmul.f32 -1.442695, %v10483_v52  ;;  %vm10534_vm12 = vmor %vm2420_vm10, %vm2421_vm8 }
 0x27f   : > { %v7867_v42 = vpop.eup %7866  ;;  %vm2410_vm11 = vcmp.eq.f32.partialorder %v2409_v35, 8.507059e+37  ;;  %v2412_v54 = vor.u32 1.1754944e-38, %v2411_v8  ;;  %vm10538_vm13 = vcmp.eq.f32.partialorder %v2424_v50, 8.507059e+37  ;;  %v1338_v48 = vadd.f32 %v10368_v33, %v15552_v10  ;;  %v10553_v35 = vpop.f32.mrf.mxu0  ;;  %3820 = vmatpush.msrb.mxu3 %v3406_v34  ;;  %3530 = vmatpush.msra.mxu1 %v3406_v34 }
 0x280   : > { %v10544_v32 = vpop.f32.mrf.mxu1  ;;  %v10546_v20 = vpop.eup %7868  ;;  %v2423_v9 = vsel %vm10534_vm12, %v10411_v25, %v2419_v55  ;;  %v2427_v19 = vor.u32 1.1754944e-38, %v2426_v45  ;;  %v2441_v17 = vand.u32 2147483648, %v10451_v2  ;;  %7872 = vrcp.f32 %v10529_v59  ;;  %v15554_v55 = vld [vmem:[#allocation16_spill] sm:$0xff] }
 0x281   : > { %15553 = vst [vmem:[#allocation6_spill] sm:$0xff] %v10544_v32  ;;  %v2398_v8 = vsel %vm10468_vm0, %v2397_v56, %v2393_v5  ;;  %v2413_v50 = vsel %vm2410_vm11, %v2412_v54, %v2408_v29  ;;  %v2432_v33 = vsub.f32 1.0, %v2431_v47  ;;  %v2446_v26 = vmul.f32 %v10546_v20, %v10473_v6 }
 0x282   : > { %v10559_v24 = vpop.eup %7870  ;;  %v10561_v10 = vadd.f32 1.0, %v7867_v42  ;;  %7874 = vpow2.f32 %v7201_v40  ;;  %v10564_v25 = vadd.f32 %v8811_v15, %v1338_v48  ;;  %v1427_v45 = vadd.f32 %v10370_v38, %v15554_v55 }
 0x283   : > { %v2428_v23 = vsel %vm10538_vm13, %v2427_v19, %v2423_v9  ;;  %vm2435_vm15 = vweird.f32 %v10451_v2  ;;  %v2447_v56 = vsub.f32 1.0, %v2446_v26  ;;  %v2461_v47 = vmul.f32 %v10559_v24, %v10475_v12 }
 0x284   : > { %v10574_v5 = vmul.f32 %v2398_v8, %v10198_v62  ;;  %v2439_v29 = vand.u32 2147483647, %v10451_v2  ;;  %v10577_v40 = vor.u32 1.1754944e-38, %v2441_v17  ;;  %7876 = vrcp.f32 %v10561_v10  ;;  %v3390_v62 = vld [vmem:[%s15302_s10 + $0x50] sm:$0xff] }
 0x285   : > { %v2772_v38 = vmul.f32 %v2413_v50, %v10234_v51  ;;  %v2433_v42 = vmul.f32 %v10491_v11, %v2432_v33  ;;  %vm2450_vm1 = vweird.f32 %v10473_v6  ;;  %v2454_v54 = vand.u32 2147483647, %v10473_v6  ;;  %3707 = vmatpush.msrb.mxu2 %v3390_v62  ;;  %3417 = vmatpush.msra.mxu0 %v3390_v62 }
 0x286   : > { %v2462_v1 = vsub.f32 1.0, %v2461_v47  ;;  %v10590_v48 = vpop.eup %7872  ;;  %v2773_v9 = vmul.f32 %v2428_v23, %v10248_v14  ;;  %v2456_v51 = vand.u32 2147483648, %v10473_v6  ;;  %v7202_v19 = vmul.f32 -1.442695, %v10564_v25  ;;  %v10598_v8 = vpop.f32.mrf.mxu2 }
 0x287   : > { %v10596_v17 = vadd.f32 %v8813_v18, %v1427_v45  ;;  %v10600_v50 = vpop.f32.mrf.mxu3  ;;  %v2448_v33 = vmul.f32 %v10546_v20, %v2447_v56  ;;  %vm2465_vm2 = vweird.f32 %v10475_v12  ;;  %v2469_v26 = vand.u32 2147483647, %v10475_v12 }
 0x288   : > { %v2476_v14 = vmul.f32 %v10590_v48, %v10529_v59  ;;  %v7875_v55 = vpop.eup %7874  ;;  %vm2436_vm3 = vweird.f32 %v10491_v11  ;;  %vm10608_vm0 = vcmp.eq.f32.partialorder %v2439_v29, 8.507059e+37  ;;  %v2463_v23 = vmul.f32 %v10559_v24, %v2462_v1 }
 0x289   : > { %7878 = vpow2.f32 %v7202_v19  ;;  %v7203_v56 = vmul.f32 -1.442695, %v10596_v17  ;;  %v2434_v47 = vadd.f32 %v10491_v11, %v2433_v42  ;;  %vm10615_vm4 = vcmp.eq.f32.partialorder %v2454_v54, 8.507059e+37  ;;  %v10630_v42 = vpop.f32.mrf.mxu0  ;;  %vm10644_vm7 = vmor %vm2435_vm15, %vm2436_vm3 }
 0x28a   : > { %v2477_v62 = vsub.f32 1.0, %v2476_v14  ;;  %v10619_v4 = vadd.f32 1.0, %v7875_v55  ;;  %v10623_v29 = vpop.eup %7876  ;;  %v2457_v0 = vor.u32 1.1754944e-38, %v2456_v51  ;;  %v3044_v1 = vadd.f32 %v10383_v39, %v10259_v57  ;;  %15559 = vst [vmem:[#allocation7_spill] sm:$0xff] %v10630_v42  ;;  %v15567_v55 = vld [vmem:[#allocation17_spill] sm:$0xff] }
 0x28b   : > { %7880 = vpow2.f32 %v7203_v56  ;;  %v10628_v34 = vpack.c.bf16 %v2772_v38, %v10510_v60  ;;  %v2449_v54 = vadd.f32 %v10546_v20, %v2448_v33  ;;  %vm2451_vm5 = vweird.f32 %v10546_v20 }
 0x28c   : > { %v10621_v41 = vpop.f32.mrf.mxu1  ;;  %vm10634_vm6 = vcmp.eq.f32.partialorder %v2469_v26, 8.507059e+37  ;;  %v2478_v14 = vmul.f32 %v10590_v48, %v2477_v62  ;;  %v2464_v60 = vadd.f32 %v10559_v24, %v2463_v23  ;;  %vm2466_vm8 = vweird.f32 %v10559_v24  ;;  %vm10665_vm11 = vmor %vm2450_vm1, %vm2451_vm5  ;;  %v15570_v62 = vld [vmem:[#allocation18_spill] sm:$0xff] }
 0x28d   : > { %v2491_v38 = vmul.f32 %v10623_v29, %v10561_v10  ;;  %7882 = vrcp.f32 %v10619_v4  ;;  %3082 = vmatmul.bf16.gmra.mxu0 %v10628_v34  ;;  %v2471_v2 = vand.u32 2147483648, %v10475_v12  ;;  %vm2480_vm9 = vweird.f32 %v10529_v59  ;;  %vm10685_vm12 = vmor %vm2465_vm2, %vm2466_vm8 }
 0x28e   : > { %3245 = vmatmul.bf16.gmra.mxu2 %v10058_v46  ;;  %3334 = vmatmul.bf16.gmra.mxu3 %v10085_v22  ;;  %v2438_v46 = vsel %vm10644_vm7, %v10491_v11, %v2434_v47  ;;  %vm2481_vm10 = vweird.f32 %v10590_v48  ;;  %v2479_v22 = vadd.f32 %v10590_v48, %v2478_v14  ;;  %v10671_v26 = vadd.f32 %v10462_v7, %v3044_v1 }
 0x28f   : > { %v7879_v51 = vpop.eup %7878  ;;  %v10674_v11 = vpack.c.bf16 %v2773_v9, %v10574_v5  ;;  %v1341_v23 = vadd.f32 %v10438_v31, %v15567_v55  ;;  %v2453_v56 = vsel %vm10665_vm11, %v10546_v20, %v2449_v54  ;;  %v2484_v7 = vand.u32 2147483647, %v10529_v59  ;;  %v10702_v54 = vpop.f32.mrf.mxu2  ;;  %vm10713_vm13 = vmor %vm2480_vm9, %vm2481_vm10 }
 0x290   : > { %15566 = vst [vmem:[#allocation8_spill] sm:$0xff] %v10671_v26  ;;  %v2486_v5 = vand.u32 2147483648, %v10529_v59  ;;  %v10691_v9 = vadd.f32 1.0, %v7879_v51  ;;  %v2468_v31 = vsel %vm10685_vm12, %v10559_v24, %v2464_v60  ;;  %v2492_v20 = vsub.f32 1.0, %v2491_v38  ;;  %v10704_v14 = vpop.f32.mrf.mxu3  ;;  %v3389_v24 = vld [vmem:[%s15302_s10 + $0x48] sm:$0xff] }
 0x291   : > { %v7881_v47 = vpop.eup %7880  ;;  %3171 = vmatmul.bf16.gmra.mxu1 %v10674_v11  ;;  %v10698_v12 = vadd.f32 %v8811_v15, %v1341_v23  ;;  %v1430_v1 = vadd.f32 %v10440_v28, %v15570_v62  ;;  %v2443_v39 = vsel %vm10608_vm0, %v10577_v40, %v2438_v46  ;;  %v2472_v51 = vor.u32 1.1754944e-38, %v2471_v2  ;;  %v15575_v62 = vld [vmem:[#allocation20_spill] sm:$0xff]  ;;  %3708 = vmatpush.msrb.mxu2 %v3389_v24 }
 0x292   : > { %v2501_v60 = vand.u32 2147483648, %v10561_v10  ;;  %7884 = vrcp.f32 %v10691_v9  ;;  %v2458_v40 = vsel %vm10615_vm4, %v2457_v0, %v2453_v56  ;;  %v2483_v45 = vsel %vm10713_vm13, %v10590_v48, %v2479_v22  ;;  %v10741_v48 = vpop.f32.mrf.mxu0  ;;  %3418 = vmatpush.msra.mxu0 %v3389_v24 }
 0x293   : > { %v10721_v38 = vpop.eup %7882  ;;  %v10728_v59 = vadd.f32 1.0, %v7881_v47  ;;  %v7204_v46 = vmul.f32 -1.442695, %v10698_v12  ;;  %v2473_v2 = vsel %vm10634_vm6, %v2472_v51, %v2468_v31  ;;  %v2487_v33 = vor.u32 1.1754944e-38, %v2486_v5 }
 0x294   : > { %v10719_v28 = vpop.f32.mrf.mxu1  ;;  %v2506_v55 = vmul.f32 %v10721_v38, %v10619_v4  ;;  %v10736_v23 = vadd.f32 %v8813_v18, %v1430_v1  ;;  %vm2485_vm15 = vcmp.eq.f32.partialorder %v2484_v7, 8.507059e+37  ;;  %v2493_v0 = vmul.f32 %v10623_v29, %v2492_v20 }
 0x295   : > { %15573 = vst [vmem:[#allocation9_spill] sm:$0xff] %v10719_v28  ;;  %v2499_v32 = vand.u32 2147483647, %v10561_v10  ;;  %7886 = vrcp.f32 %v10728_v59  ;;  %v2774_v22 = vmul.f32 %v2443_v39, %v10349_v21  ;;  %v2775_v19 = vmul.f32 %v2458_v40, %v10364_v58  ;;  %v15574_v21 = vld [vmem:[#allocation19_spill] sm:$0xff] }
 0x296   : > { %v2488_v56 = vsel %vm2485_vm15, %v2487_v33, %v2483_v45  ;;  %v10745_v6 = vor.u32 1.1754944e-38, %v2501_v60  ;;  %v2776_v5 = vmul.f32 %v2473_v2, %v10390_v37  ;;  %vm2496_vm1 = vweird.f32 %v10623_v29 }
 0x297   : > { %7888 = vpow2.f32 %v7204_v46  ;;  %v7205_v7 = vmul.f32 -1.442695, %v10736_v23  ;;  %vm2495_vm2 = vweird.f32 %v10561_v10  ;;  %v2507_v31 = vsub.f32 1.0, %v2506_v55 }
 0x298   : > { %v10750_v47 = vpop.eup %7884  ;;  %v2514_v20 = vand.u32 2147483647, %v10619_v4  ;;  %v1343_v58 = vadd.f32 %v10505_v53, %v15574_v21  ;;  %v1432_v1 = vadd.f32 %v10507_v16, %v15575_v62  ;;  %v2777_v37 = vmul.f32 %v2488_v56, %v10417_v49  ;;  %v3405_v53 = vld [vmem:[%s15302_s10 + $0xc8] sm:$0xff]  ;;  %v10790_v56 = vpop.f32.mrf.mxu3  ;;  %vm10829_vm8 = vmor %vm2495_vm2, %vm2496_vm1 }
 0x299   : > { %v10760_v39 = vadd.f32 %v10623_v29, %v2493_v0  ;;  %v2521_v51 = vmul.f32 %v10750_v47, %v10691_v9  ;;  %7890 = vpow2.f32 %v7205_v7  ;;  %vm2525_vm3 = vweird.f32 %v10691_v9  ;;  %3821 = vmatpush.msrb.mxu3 %v3405_v53  ;;  %v10788_v0 = vpop.f32.mrf.mxu2  ;;  %3531 = vmatpush.msra.mxu1 %v3405_v53  ;;  %v15579_v53 = vld [vmem:[#allocation21_spill] sm:$0xff] }
 0x29a   : > { %v2529_v16 = vand.u32 2147483647, %v10691_v9  ;;  %v10773_v49 = vadd.f32 %v8811_v15, %v1343_v58  ;;  %v10776_v60 = vadd.f32 %v8813_v18, %v1432_v1  ;;  %vm2510_vm0 = vweird.f32 %v10619_v4 }
 0x29b   : > { %v10780_v45 = vpop.eup %7886  ;;  %v2522_v46 = vsub.f32 1.0, %v2521_v51  ;;  %v2531_v2 = vand.u32 2147483648, %v10691_v9  ;;  %v3049_v33 = vadd.f32 %v10553_v35, %v10259_v57  ;;  %v10786_v55 = vpack.c.bf16 %v2776_v5, %v2774_v22 }
 0x29c   : > { %v10778_v40 = vpop.f32.mrf.mxu1  ;;  %v2508_v7 = vmul.f32 %v10721_v38, %v2507_v31  ;;  %vm2511_vm4 = vweird.f32 %v10721_v38  ;;  %v2536_v21 = vmul.f32 %v10780_v45, %v10728_v59  ;;  %v7206_v58 = vmul.f32 -1.442695, %v10773_v49 }
 0x29d   : > { %v7889_v35 = vpop.eup %7888  ;;  %v2523_v22 = vmul.f32 %v10750_v47, %v2522_v46  ;;  %v7207_v5 = vmul.f32 -1.442695, %v10776_v60  ;;  %v10801_v62 = vadd.f32 %v10621_v41, %v3049_v33  ;;  %3087 = vmatmul.bf16.gmra.mxu0 %v10786_v55  ;;  %v10804_v31 = vpack.c.bf16 %v2777_v37, %v2775_v19  ;;  %v15580_v37 = vld [vmem:[#allocation22_spill] sm:$0xff]  ;;  %vm10879_vm13 = vmor %vm2510_vm0, %vm2511_vm4 }
 0x29e   : > { %3250 = vmatmul.bf16.gmra.mxu2 %v10280_v36  ;;  %3339 = vmatmul.bf16.gmra.mxu3 %v10282_v44  ;;  %vm10807_vm5 = vcmp.eq.f32.partialorder %v2499_v32, 8.507059e+37  ;;  %vm2526_vm6 = vweird.f32 %v10750_v47  ;;  %v2537_v36 = vsub.f32 1.0, %v2536_v21  ;;  %v10812_v51 = vadd.f32 1.0, %v7889_v35  ;;  %v10819_v32 = vpop.f32.mrf.mxu0 }
 0x29f   : > { %15576 = vst [vmem:[#allocation10_spill] sm:$0xff] %v10801_v62  ;;  %7892 = vpow2.f32 %v7206_v58  ;;  %v7891_v24 = vpop.eup %7890  ;;  %v2524_v41 = vadd.f32 %v10750_v47, %v2523_v22  ;;  %v1346_v19 = vadd.f32 %v10598_v8, %v15579_v53  ;;  %v1435_v44 = vadd.f32 %v10600_v50, %v15580_v37  ;;  %vm10850_vm10 = vmor %vm2525_vm3, %vm2526_vm6 }
 0x2a0   : > { %7894 = vpow2.f32 %v7207_v5  ;;  %v2538_v46 = vmul.f32 %v10780_v45, %v2537_v36  ;;  %vm2541_vm7 = vweird.f32 %v10780_v45  ;;  %v2546_v33 = vand.u32 2147483648, %v10728_v59  ;;  %v10894_v21 = vpop.f32.mrf.mxu3 }
 0x2a1   : > { %7896 = vrcp.f32 %v10812_v51  ;;  %v2509_v8 = vadd.f32 %v10721_v38, %v2508_v7  ;;  %v2544_v50 = vand.u32 2147483647, %v10728_v59  ;;  %v10835_v58 = vadd.f32 1.0, %v7891_v24  ;;  %3176 = vmatmul.bf16.gmra.mxu1 %v10804_v31 }
 0x2a2   : > { %v10839_v35 = vadd.f32 %v8811_v15, %v1346_v19  ;;  %vm10841_vm9 = vcmp.eq.f32.partialorder %v2514_v20, 8.507059e+37  ;;  %v2516_v10 = vand.u32 2147483648, %v10619_v4  ;;  %v2539_v5 = vadd.f32 %v10780_v45, %v2538_v46  ;;  %v10892_v46 = vpop.f32.mrf.mxu2 }
 0x2a3   : > { %vm2540_vm11 = vweird.f32 %v10728_v59  ;;  %v2498_v20 = vsel %vm10829_vm8, %v10623_v29, %v10760_v39  ;;  %v2528_v24 = vsel %vm10850_vm10, %v10750_v47, %v2524_v41  ;;  %7898 = vrcp.f32 %v10835_v58 }
 0x2a4   : > { %v10856_v36 = vpop.f32.mrf.mxu1  ;;  %vm10867_vm12 = vmor %vm2540_vm11, %vm2541_vm7  ;;  %v10873_v59 = vadd.f32 %v8813_v18, %v1435_v44  ;;  %vm2530_vm15 = vcmp.eq.f32.partialorder %v2529_v16, 8.507059e+37  ;;  %v2532_v47 = vor.u32 1.1754944e-38, %v2531_v2  ;;  %v2547_v41 = vor.u32 1.1754944e-38, %v2546_v33 }
 0x2a5   : > { %v7893_v53 = vpop.eup %7892  ;;  %v2543_v39 = vsel %vm10867_vm12, %v10780_v45, %v2539_v5  ;;  %v2513_v37 = vsel %vm10879_vm13, %v10721_v38, %v2509_v8  ;;  %vm2545_vm1 = vcmp.eq.f32.partialorder %v2544_v50, 8.507059e+37  ;;  %v7208_v4 = vmul.f32 -1.442695, %v10839_v35 }
 0x2a6   : > { %v7895_v19 = vpop.eup %7894  ;;  %v10889_v44 = vadd.f32 1.0, %v7893_v53  ;;  %v2517_v2 = vor.u32 1.1754944e-38, %v2516_v10  ;;  %v2533_v7 = vsel %vm2530_vm15, %v2532_v47, %v2528_v24  ;;  %v2548_v45 = vsel %vm2545_vm1, %v2547_v41, %v2543_v39  ;;  %v10907_v5 = vpop.f32.mrf.mxu0 }
 0x2a7   : > { %v10896_v16 = vpop.eup %7896  ;;  %v10898_v33 = vadd.f32 1.0, %v7895_v19  ;;  %v2503_v38 = vsel %vm10807_vm5, %v10745_v6, %v2498_v20  ;;  %v7209_v50 = vmul.f32 -1.442695, %v10873_v59  ;;  %v2559_v24 = vand.u32 2147483647, %v10812_v51 }
 0x2a8   : > { %v2551_v8 = vmul.f32 %v10896_v16, %v10812_v51  ;;  %7900 = vrcp.f32 %v10889_v44  ;;  %v2518_v10 = vsel %vm10841_vm9, %v2517_v2, %v2513_v37  ;;  %v2561_v9 = vand.u32 2147483648, %v10812_v51 }
 0x2a9   : > { %7902 = vrcp.f32 %v10898_v33  ;;  %v10914_v1 = vpop.eup %7898  ;;  %v2780_v6 = vmul.f32 %v2533_v7, %v10564_v25  ;;  %v2781_v20 = vmul.f32 %v2548_v45, %v10596_v17  ;;  %v2778_v29 = vmul.f32 %v2503_v38, %v10436_v27  ;;  %v15591_v17 = vld [vmem:[#allocation23_spill] sm:$0xff] }
 0x2aa   : > { %v2552_v53 = vsub.f32 1.0, %v2551_v8  ;;  %7904 = vpow2.f32 %v7208_v4  ;;  %v2566_v22 = vmul.f32 %v10914_v1, %v10835_v58  ;;  %v2576_v47 = vand.u32 2147483648, %v10835_v58  ;;  %v15592_v4 = vld [vmem:[#allocation24_spill] sm:$0xff] }
 0x2ab   : > { %v2779_v41 = vmul.f32 %v2518_v10, %v10483_v52  ;;  %v2574_v37 = vand.u32 2147483647, %v10835_v58  ;;  %7906 = vpow2.f32 %v7209_v50  ;;  %vm2555_vm2 = vweird.f32 %v10812_v51  ;;  %v10944_v50 = vpop.f32.mrf.mxu2 }
 0x2ac   : > { %v10922_v39 = vpop.f32.mrf.mxu1  ;;  %v2553_v19 = vmul.f32 %v10896_v16, %v2552_v53  ;;  %v2567_v25 = vsub.f32 1.0, %v2566_v22  ;;  %v1348_v27 = vadd.f32 %v10702_v54, %v15591_v17  ;;  %v1437_v2 = vadd.f32 %v10704_v14, %v15592_v4  ;;  %v10946_v54 = vpop.f32.mrf.mxu3  ;;  %v3388_v22 = vld [vmem:[%s15302_s10 + $0x40] sm:$0xff] }
 0x2ad   : > { %vm10935_vm3 = vcmp.eq.f32.partialorder %v2559_v24, 8.507059e+37  ;;  %v2562_v45 = vor.u32 1.1754944e-38, %v2561_v9  ;;  %vm2570_vm0 = vweird.f32 %v10835_v58  ;;  %v10940_v38 = vpack.c.bf16 %v2780_v6, %v2778_v29  ;;  %3709 = vmatpush.msrb.mxu2 %v3388_v22  ;;  %3419 = vmatpush.msra.mxu0 %v3388_v22 }
 0x2ae   : > { %3255 = vmatmul.bf16.gmra.mxu2 %v10405_v43  ;;  %v10933_v7 = vpop.eup %7900  ;;  %v10942_v8 = vpack.c.bf16 %v2781_v20, %v2779_v41  ;;  %3344 = vmatmul.bf16.gmra.mxu3 %v10407_v63  ;;  %v2568_v14 = vmul.f32 %v10914_v1, %v2567_v25  ;;  %v2577_v10 = vor.u32 1.1754944e-38, %v2576_v47  ;;  %v10955_v9 = vadd.f32 %v8811_v15, %v1348_v27  ;;  %v3404_v47 = vld [vmem:[%s15302_s10 + $0xc0] sm:$0xff]  ;;  %v10975_v41 = vpop.f32.mrf.mxu0 }
 0x2af   : > { %v10949_v43 = vpop.eup %7902  ;;  %v2581_v24 = vmul.f32 %v10933_v7, %v10889_v44  ;;  %v2554_v20 = vadd.f32 %v10896_v16, %v2553_v19  ;;  %vm2556_vm4 = vweird.f32 %v10896_v16  ;;  %vm10959_vm5 = vcmp.eq.f32.partialorder %v2574_v37, 8.507059e+37  ;;  %3092 = vmatmul.bf16.gmra.mxu0 %v10940_v38  ;;  %3822 = vmatpush.msrb.mxu3 %v3404_v47 }
 0x2b0   : > { %v7905_v6 = vpop.eup %7904  ;;  %v2596_v63 = vmul.f32 %v10949_v43, %v10898_v33  ;;  %v10966_v29 = vadd.f32 %v8813_v18, %v1437_v2  ;;  %vm2571_vm6 = vweird.f32 %v10914_v1  ;;  %v2589_v37 = vand.u32 2147483647, %v10889_v44  ;;  %vm10989_vm7 = vmor %vm2555_vm2, %vm2556_vm4  ;;  %3532 = vmatpush.msra.mxu1 %v3404_v47 }
 0x2b1   : > { %v2582_v19 = vsub.f32 1.0, %v2581_v24  ;;  %v10979_v25 = vadd.f32 1.0, %v7905_v6  ;;  %v7907_v17 = vpop.eup %7906  ;;  %v2569_v27 = vadd.f32 %v10914_v1, %v2568_v14  ;;  %v7210_v2 = vmul.f32 -1.442695, %v10955_v9  ;;  %3181 = vmatmul.bf16.gmra.mxu1 %v10942_v8  ;;  %vm11010_vm8 = vmor %vm2570_vm0, %vm2571_vm6  ;;  %v15608_v24 = vld [vmem:[#allocation25_spill] sm:$0xff] }
 0x2b2   : > { %v2597_v4 = vsub.f32 1.0, %v2596_v63  ;;  %v7211_v28 = vmul.f32 -1.442695, %v10966_v29  ;;  %v2591_v14 = vand.u32 2147483648, %v10889_v44  ;;  %v2604_v63 = vand.u32 2147483647, %v10898_v33 }
 0x2b3   : > { %v2583_v6 = vmul.f32 %v10933_v7, %v2582_v19  ;;  %7908 = vrcp.f32 %v10979_v25  ;;  %v2558_v22 = vsel %vm10989_vm7, %v10896_v16, %v2554_v20  ;;  %v2606_v62 = vand.u32 2147483648, %v10898_v33 }
 0x2b4   : > { %v10997_v42 = vpop.f32.mrf.mxu1  ;;  %v2598_v51 = vmul.f32 %v10949_v43, %v2597_v4  ;;  %v3054_v19 = vadd.f32 %v10741_v48, %v10259_v57  ;;  %vm2586_vm9 = vweird.f32 %v10933_v7  ;;  %v11016_v16 = vadd.f32 1.0, %v7907_v17  ;;  %v11023_v48 = vpop.f32.mrf.mxu2 }
 0x2b5   : > { %v2584_v47 = vadd.f32 %v10933_v7, %v2583_v6  ;;  %7910 = vpow2.f32 %v7210_v2  ;;  %v2573_v20 = vsel %vm11010_vm8, %v10914_v1, %v2569_v27  ;;  %vm2585_vm10 = vweird.f32 %v10889_v44  ;;  %v11025_v58 = vpop.f32.mrf.mxu3 }
 0x2b6   : > { %vm2600_vm11 = vweird.f32 %v10898_v33  ;;  %7912 = vpow2.f32 %v7211_v28  ;;  %v2563_v4 = vsel %vm10935_vm3, %v2562_v45, %v2558_v22  ;;  %v2599_v17 = vadd.f32 %v10949_v43, %v2598_v51  ;;  %vm11032_vm13 = vmor %vm2585_vm10, %vm2586_vm9  ;;  %v15611_v33 = vld [vmem:[#allocation26_spill] sm:$0xff] }
 0x2b7   : > { %vm2601_vm12 = vweird.f32 %v10949_v43  ;;  %7914 = vrcp.f32 %v11016_v16  ;;  %vm11036_vm15 = vcmp.eq.f32.partialorder %v2589_v37, 8.507059e+37  ;;  %v2592_v28 = vor.u32 1.1754944e-38, %v2591_v14  ;;  %v11056_v14 = vpop.f32.mrf.mxu0 }
 0x2b8   : > { %vm11040_vm1 = vcmp.eq.f32.partialorder %v2604_v63, 8.507059e+37  ;;  %v11045_v52 = vadd.f32 %v10778_v40, %v3054_v19  ;;  %v2578_v27 = vsel %vm10959_vm5, %v2577_v10, %v2573_v20  ;;  %v2588_v37 = vsel %vm11032_vm13, %v10933_v7, %v2584_v47  ;;  %vm11063_vm2 = vmor %vm2600_vm11, %vm2601_vm12 }
 0x2b9   : > { %v11047_v45 = vpop.eup %7908  ;;  %v2607_v2 = vor.u32 1.1754944e-38, %v2606_v62  ;;  %v1351_v6 = vadd.f32 %v10788_v0, %v15608_v24  ;;  %v11059_v63 = vmul.f32 %v2563_v4, %v10698_v12  ;;  %v2619_v7 = vand.u32 2147483647, %v10979_v25 }
 0x2ba   : > { %15607 = vst [vmem:[#allocation11_spill] sm:$0xff] %v11045_v52  ;;  %v2611_v10 = vmul.f32 %v11047_v45, %v10979_v25  ;;  %v2621_v62 = vand.u32 2147483648, %v10979_v25  ;;  %v2603_v0 = vsel %vm11063_vm2, %v10949_v43, %v2599_v17  ;;  %v1440_v22 = vadd.f32 %v10790_v56, %v15611_v33 }
 0x2bb   : > { %v7911_v53 = vpop.eup %7910  ;;  %v11075_v12 = vadd.f32 %v8811_v15, %v1351_v6  ;;  %v3056_v51 = vadd.f32 %v10819_v32, %v10259_v57  ;;  %v11084_v20 = vmul.f32 %v2578_v27, %v10736_v23  ;;  %v2593_v4 = vsel %vm11036_vm15, %v2592_v28, %v2588_v37 }
 0x2bc   : > { %v11081_v19 = vpop.f32.mrf.mxu1  ;;  %v7913_v47 = vpop.eup %7912  ;;  %v2612_v26 = vsub.f32 1.0, %v2611_v10  ;;  %v11088_v43 = vadd.f32 1.0, %v7911_v53  ;;  %v2636_v24 = vand.u32 2147483648, %v11016_v16  ;;  %v2608_v23 = vsel %vm11040_vm1, %v2607_v2, %v2603_v0  ;;  %v15614_v2 = vld [vmem:[#allocation28_spill] sm:$0xff] }
 0x2bd   : > { %v11090_v17 = vpop.eup %7914  ;;  %v11093_v56 = vadd.f32 1.0, %v7913_v47  ;;  %v7212_v32 = vmul.f32 -1.442695, %v11075_v12  ;;  %v11097_v6 = vadd.f32 %v10856_v36, %v3056_v51  ;;  %vm2615_vm3 = vweird.f32 %v10979_v25  ;;  %v11109_v27 = vpop.f32.mrf.mxu2  ;;  %v15613_v36 = vld [vmem:[#allocation27_spill] sm:$0xff] }
 0x2be   : > { %3260 = vmatmul.bf16.gmra.mxu2 %v10628_v34  ;;  %v2626_v44 = vmul.f32 %v11090_v17, %v11016_v16  ;;  %7916 = vrcp.f32 %v11088_v43  ;;  %v11107_v28 = vadd.f32 %v8813_v18, %v1440_v22  ;;  %v11111_v37 = vpop.f32.mrf.mxu3  ;;  %3349 = vmatmul.bf16.gmra.mxu3 %v10674_v11  ;;  %v11114_v34 = vor.u32 1.1754944e-38, %v2621_v62 }
 0x2bf   : > { %15612 = vst [vmem:[#allocation12_spill] sm:$0xff] %v11097_v6  ;;  %7918 = vrcp.f32 %v11093_v56  ;;  %v1353_v1 = vadd.f32 %v10892_v46, %v15613_v36  ;;  %v1442_v40 = vadd.f32 %v10894_v21, %v15614_v2  ;;  %v2613_v10 = vmul.f32 %v11047_v45, %v2612_v26  ;;  %v11151_v47 = vpop.f32.mrf.mxu0 }
 0x2c0   : > { %v2627_v53 = vsub.f32 1.0, %v2626_v44  ;;  %v2634_v0 = vand.u32 2147483647, %v11016_v16  ;;  %v3059_v33 = vadd.f32 %v10907_v5, %v10259_v57  ;;  %v2784_v11 = vmul.f32 %v2593_v4, %v10773_v49  ;;  %v3387_v5 = vld [vmem:[%s15302_s10 + $0x38] sm:$0xff]  ;;  %v3402_v44 = vld [vmem:[%s15302_s10 + $0xb0] sm:$0xff] }
 0x2c1   : > { %v2785_v62 = vmul.f32 %v2608_v23, %v10776_v60  ;;  %vm2630_vm0 = vweird.f32 %v11016_v16  ;;  %7920 = vpow2.f32 %v7212_v32  ;;  %vm2616_vm4 = vweird.f32 %v11047_v45  ;;  %3710 = vmatpush.msrb.mxu2 %v3387_v5  ;;  %v3386_v23 = vld [vmem:[%s15302_s10 + $0x30] sm:$0xff]  ;;  %3420 = vmatpush.msra.mxu0 %v3387_v5  ;;  %v3385_v16 = vld [vmem:[%s15302_s10 + $0x28] sm:$0xff] }
 0x2c2   : > { %vm11129_vm5 = vcmp.eq.f32.partialorder %v2619_v7, 8.507059e+37  ;;  %v2628_v21 = vmul.f32 %v11090_v17, %v2627_v53  ;;  %v11134_v22 = vor.u32 1.1754944e-38, %v2636_v24  ;;  %v7213_v51 = vmul.f32 -1.442695, %v11107_v28  ;;  %v3403_v7 = vld [vmem:[%s15302_s10 + $0xb8] sm:$0xff]  ;;  %vm11194_vm9 = vmor %vm2615_vm3, %vm2616_vm4 }
 0x2c3   : > { %vm2631_vm6 = vweird.f32 %v11090_v17  ;;  %vm2645_vm7 = vweird.f32 %v11088_v43  ;;  %v11140_v49 = vadd.f32 %v8811_v15, %v1353_v1  ;;  %v11143_v60 = vadd.f32 %v8813_v18, %v1442_v40  ;;  %3823 = vmatpush.msrb.mxu3 %v3403_v7  ;;  %3533 = vmatpush.msra.mxu1 %v3403_v7 }
 0x2c4   : > { %v11153_v4 = vpop.f32.mrf.mxu1  ;;  %v11155_v26 = vpop.eup %7916  ;;  %v2614_v15 = vadd.f32 %v11047_v45, %v2613_v10  ;;  %vm11158_vm8 = vcmp.eq.f32.partialorder %v2634_v0, 8.507059e+37  ;;  %7922 = vpow2.f32 %v7213_v51  ;;  %v11164_v32 = vadd.f32 %v10922_v39, %v3059_v33  ;;  %3711 = vmatpush.msrb.mxu2 %v3386_v23  ;;  %3421 = vmatpush.msra.mxu0 %v3386_v23  ;;  %vm11212_vm10 = vmor %vm2630_vm0, %vm2631_vm6 }
 0x2c5   : > { %v11172_v36 = vpop.eup %7918  ;;  %v2641_v1 = vmul.f32 %v11155_v26, %v11088_v43  ;;  %v2651_v2 = vand.u32 2147483648, %v11088_v43  ;;  %v7214_v39 = vmul.f32 -1.442695, %v11140_v49  ;;  %v7215_v40 = vmul.f32 -1.442695, %v11143_v60  ;;  %3824 = vmatpush.msrb.mxu3 %v3402_v44  ;;  %v11186_v51 = vpop.f32.mrf.mxu2  ;;  %3534 = vmatpush.msra.mxu1 %v3402_v44 }
 0x2c6   : > { %15619 = vst [vmem:[#allocation13_spill] sm:$0xff] %v11164_v32  ;;  %v2629_v10 = vadd.f32 %v11090_v17, %v2628_v21  ;;  %v2656_v53 = vmul.f32 %v11172_v36, %v11093_v56  ;;  %v11184_v33 = vpack.c.bf16 %v2784_v11, %v11059_v63  ;;  %v11188_v18 = vpop.f32.mrf.mxu3  ;;  %v2666_v7 = vand.u32 2147483648, %v11093_v56  ;;  %3712 = vmatpush.msrb.mxu2 %v3385_v16 }
 0x2c7   : > { %v7921_v32 = vpop.eup %7920  ;;  %v2642_v5 = vsub.f32 1.0, %v2641_v1  ;;  %7924 = vpow2.f32 %v7214_v39  ;;  %v11200_v63 = vpack.c.bf16 %v2785_v62, %v11084_v20  ;;  %v2618_v11 = vsel %vm11194_vm9, %v11047_v45, %v2614_v15  ;;  %v8256_v45 = vld [vmem:[%s15298_s6] sm:$0x3]  ;;  %3422 = vmatpush.msra.mxu0 %v3385_v16 }
 0x2c8   : > { %v2657_v0 = vsub.f32 1.0, %v2656_v53  ;;  %v11205_v6 = vadd.f32 1.0, %v7921_v32  ;;  %7926 = vpow2.f32 %v7215_v40  ;;  %3097 = vmatmul.bf16.gmra.mxu0 %v11184_v33  ;;  %vm2646_vm11 = vweird.f32 %v11155_v26  ;;  %v3401_v32 = vld [vmem:[%s15302_s10 + $0xa8] sm:$0xff]  ;;  %v3400_v39 = vld [vmem:[%s15302_s10 + $0xa0] sm:$0xff] }
 0x2c9   : > { %v2643_v20 = vmul.f32 %v11155_v26, %v2642_v5  ;;  %3186 = vmatmul.bf16.gmra.mxu1 %v11200_v63  ;;  %v11222_v62 = vperm.slane %v8256_v45, 1  ;;  %v3061_v15 = vadd.f32 %v10975_v41, %v10259_v57  ;;  %v2633_v44 = vsel %vm11212_vm10, %v11090_v17, %v2629_v10  ;;  %3825 = vmatpush.msrb.mxu3 %v3401_v32  ;;  %v3384_v41 = vld [vmem:[%s15302_s10 + $0x20] sm:$0xff]  ;;  %vm11255_vm15 = vmor %vm2645_vm7, %vm2646_vm11  ;;  %v3383_v5 = vld [vmem:[%s15302_s10 + $0x18] sm:$0xff]  ;;  %v11286_v45 = vpop.f32.mrf.mxu0 }
 0x2ca   : > { %v7923_v23 = vpop.eup %7922  ;;  %v2658_v1 = vmul.f32 %v11172_v36, %v2657_v0  ;;  %vm2661_vm12 = vweird.f32 %v11172_v36  ;;  %7928 = vrcp.f32 %v11205_v6  ;;  %v2623_v17 = vsel %vm11129_vm5, %v11114_v34, %v2618_v11  ;;  %3535 = vmatpush.msra.mxu1 %v3401_v32  ;;  %v3399_v11 = vld [vmem:[%s15302_s10 + $0x98] sm:$0xff]  ;;  %3713 = vmatpush.msrb.mxu2 %v3384_v41 }
 0x2cb   : > { %v2644_v40 = vadd.f32 %v11155_v26, %v2643_v20  ;;  %vm2660_vm13 = vweird.f32 %v11093_v56  ;;  %v11249_v10 = vadd.f32 1.0, %v7923_v23  ;;  %v2652_v0 = vor.u32 1.1754944e-38, %v2651_v2  ;;  %3826 = vmatpush.msrb.mxu3 %v3400_v39  ;;  %3423 = vmatpush.msra.mxu0 %v3384_v41 }
 0x2cc   : > { %v2659_v46 = vadd.f32 %v11172_v36, %v2658_v1  ;;  %v3212_v34 = vadd.f32 %v10944_v50, %v11222_v62  ;;  %v11263_v21 = vadd.f32 %v10997_v42, %v3061_v15  ;;  %v2638_v2 = vsel %vm11158_vm8, %v11134_v22, %v2633_v44  ;;  %vm11281_vm1 = vmor %vm2660_vm13, %vm2661_vm12  ;;  %v11288_v15 = vpop.f32.mrf.mxu1  ;;  %3536 = vmatpush.msra.mxu1 %v3400_v39  ;;  %v3382_v44 = vld [vmem:[%s15302_s10 + $0x10] sm:$0xff] }
 0x2cd   : > { %v7925_v25 = vpop.eup %7924  ;;  %v2648_v42 = vsel %vm11255_vm15, %v11155_v26, %v2644_v40  ;;  %v2667_v20 = vor.u32 1.1754944e-38, %v2666_v7  ;;  %7930 = vrcp.f32 %v11249_v10  ;;  %v15629_v26 = vand.u32 2147483647, %v11088_v43  ;;  %v11298_v32 = vpop.f32.mrf.mxu2  ;;  %v3398_v43 = vld [vmem:[%s15302_s10 + $0x90] sm:$0xff]  ;;  %3424 = vmatpush.msra.mxu0 %v3383_v5  ;;  %3714 = vmatpush.msrb.mxu2 %v3383_v5 }
 0x2ce   : > { %15626 = vst [vmem:[#allocation14_spill] sm:$0xff] %v11263_v21  ;;  %v7927_v22 = vpop.eup %7926  ;;  %v2663_v24 = vsel %vm11281_vm1, %v11172_v36, %v2659_v46  ;;  %v15630_v16 = vand.u32 2147483647, %v11093_v56  ;;  %v2681_v7 = vand.u32 2147483648, %v11205_v6  ;;  %v11300_v23 = vpop.f32.mrf.mxu3  ;;  %3265 = vmatmul.bf16.gmra.mxu2 %v10786_v55  ;;  %3354 = vmatmul.bf16.gmra.mxu3 %v10804_v31  ;;  %v11310_v1 = vadd.f32 1.0, %v7925_v25  ;;  %v3381_v31 = vld [vmem:[%s15302_s10 + $0x8] sm:$0xff] }
 0x2cf   : > { %vm2650_vm2 = vcmp.eq.f32.partialorder %v15629_v26, 8.507059e+37  ;;  %v11312_v41 = vadd.f32 1.0, %v7927_v22  ;;  %3537 = vmatpush.msra.mxu1 %v3399_v11  ;;  %v2786_v40 = vmul.f32 %v2623_v17, %v10839_v35  ;;  %v2787_v53 = vmul.f32 %v2638_v2, %v10873_v59  ;;  %3827 = vmatpush.msrb.mxu3 %v3399_v11  ;;  %v3380_v11 = vld [vmem:[%s15302_s10] sm:$0xff] }
 0x2d0   : > { %vm2665_vm3 = vcmp.eq.f32.partialorder %v15630_v16, 8.507059e+37  ;;  %v2653_v56 = vsel %vm2650_vm2, %v2652_v0, %v2648_v42  ;;  %v11314_v39 = vpop.eup %7928  ;;  %v2696_v46 = vand.u32 2147483648, %v11249_v10  ;;  %v11320_v55 = vadd.f32 %v10946_v54, %v3212_v34  ;;  %v3397_v0 = vld [vmem:[%s15302_s10 + $0x88] sm:$0xff]  ;;  %3425 = vmatpush.msra.mxu0 %v3382_v44  ;;  %3715 = vmatpush.msrb.mxu2 %v3382_v44 }
 0x2d1   : > { %v2668_v36 = vsel %vm2665_vm3, %v2667_v20, %v2663_v24  ;;  %v2671_v35 = vmul.f32 %v11314_v39, %v11205_v6  ;;  %7932 = vrcp.f32 %v11310_v1  ;;  %v3214_v59 = vadd.f32 %v11023_v48, %v11222_v62  ;;  %3538 = vmatpush.msra.mxu1 %v3398_v43  ;;  %v3396_v48 = vld [vmem:[%s15302_s10 + $0x80] sm:$0xff]  ;;  %3828 = vmatpush.msrb.mxu3 %v3398_v43 }
 0x2d2   : > { %v3064_v54 = vadd.f32 %v11056_v14, %v10259_v57  ;;  %v2788_v17 = vmul.f32 %v2653_v56, %v10955_v9  ;;  %v2789_v34 = vmul.f32 %v2668_v36, %v10966_v29  ;;  %v2679_v5 = vand.u32 2147483647, %v11205_v6  ;;  %3426 = vmatpush.msra.mxu0 %v3381_v31  ;;  %3716 = vmatpush.msrb.mxu2 %v3381_v31 }
 0x2d3   : > { %7934 = vrcp.f32 %v11312_v41  ;;  %v11345_v14 = vpop.eup %7930  ;;  %v2672_v25 = vsub.f32 1.0, %v2671_v35  ;;  %vm2675_vm0 = vweird.f32 %v11205_v6  ;;  %v11348_v9 = vor.u32 1.1754944e-38, %v2681_v7  ;;  %3539 = vmatpush.msra.mxu1 %v3397_v0  ;;  %3829 = vmatpush.msrb.mxu3 %v3397_v0 }
 0x2d4   : > { %v2694_v29 = vand.u32 2147483647, %v11249_v10  ;;  %vm2676_vm4 = vweird.f32 %v11314_v39  ;;  %v2686_v2 = vmul.f32 %v11345_v14, %v11249_v10  ;;  %vm2690_vm5 = vweird.f32 %v11249_v10  ;;  %3427 = vmatpush.msra.mxu0 %v3380_v11  ;;  %3717 = vmatpush.msrb.mxu2 %v3380_v11 }
 0x2d5   : > { %v11355_v42 = vor.u32 1.1754944e-38, %v2696_v46  ;;  %v2673_v50 = vmul.f32 %v11314_v39, %v2672_v25  ;;  %v2709_v20 = vand.u32 2147483647, %v11310_v1  ;;  %v2711_v22 = vand.u32 2147483648, %v11310_v1  ;;  %3540 = vmatpush.msra.mxu1 %v3396_v48  ;;  %v3223_v56 = vpop.f32.mrf.mxu2  ;;  %3830 = vmatpush.msrb.mxu3 %v3396_v48  ;;  %vm11408_vm11 = vmor %vm2675_vm0, %vm2676_vm4 }
 0x2d6   : > { %v11361_v26 = vadd.f32 %v11025_v58, %v3214_v59  ;;  %vm11363_vm6 = vcmp.eq.f32.partialorder %v2679_v5, 8.507059e+37  ;;  %v2687_v16 = vsub.f32 1.0, %v2686_v2  ;;  %vm2705_vm7 = vweird.f32 %v11310_v1  ;;  %v3312_v36 = vpop.f32.mrf.mxu3 }
 0x2d7   : > { %v11369_v7 = vadd.f32 %v11081_v19, %v3064_v54  ;;  %v11371_v44 = vpack.c.bf16 %v2788_v17, %v2786_v40  ;;  %v11373_v43 = vpack.c.bf16 %v2789_v34, %v2787_v53  ;;  %v7933_v58 = vpop.eup %7932  ;;  %vm11375_vm8 = vcmp.eq.f32.partialorder %v2694_v29, 8.507059e+37  ;;  %v3070_v17 = vpop.f32.mrf.mxu0 }
 0x2d8   : > { %vm2720_vm9 = vweird.f32 %v11312_v41  ;;  %v3217_v31 = vadd.f32 %v11109_v27, %v11222_v62  ;;  %v3066_v19 = vadd.f32 %v11151_v47, %v10259_v57  ;;  %v3219_v40 = vadd.f32 %v11186_v51, %v11222_v62  ;;  %v3159_v27 = vpop.f32.mrf.mxu1 }
 0x2d9   : > { %15633 = vst [vmem:[#allocation15_spill] sm:$0xff] %v11369_v7  ;;  %v7935_v53 = vpop.eup %7934  ;;  %v2674_v0 = vadd.f32 %v11314_v39, %v2673_v50  ;;  %v2688_v35 = vmul.f32 %v11345_v14, %v2687_v16  ;;  %v2701_v59 = vmul.f32 %v7933_v58, %v11310_v1  ;;  %3102 = vmatmul.bf16.gmra.mxu0 %v11371_v44  ;;  %vm2691_vm10 = vweird.f32 %v11345_v14 }
 0x2da   : > { %v3069_v54 = vadd.f32 %v11286_v45, %v10259_v57  ;;  %v2716_v47 = vmul.f32 %v7935_v53, %v11312_v41  ;;  %v2724_v51 = vand.u32 2147483647, %v11312_v41  ;;  %3191 = vmatmul.bf16.gmra.mxu1 %v11373_v43  ;;  %v11397_v34 = vadd.f32 %v11111_v37, %v3217_v31  ;;  %vm11425_vm13 = vmor %vm2690_vm5, %vm2691_vm10 }
 0x2db   : > { %v2689_v5 = vadd.f32 %v11345_v14, %v2688_v35  ;;  %v2702_v11 = vsub.f32 1.0, %v2701_v59  ;;  %v2726_v48 = vand.u32 2147483648, %v11312_v41  ;;  %v11402_v45 = vadd.f32 %v11153_v4, %v3066_v19 }
 0x2dc   : > { %15636 = vst [vmem:[#allocation16_spill] sm:$0xff] %v11397_v34  ;;  %vm2706_vm12 = vweird.f32 %v7933_v58  ;;  %v2717_v29 = vsub.f32 1.0, %v2716_v47  ;;  %v11413_v37 = vadd.f32 %v11188_v18, %v3219_v40  ;;  %v11416_v2 = vadd.f32 %v11288_v15, %v3069_v54 }
 0x2dd   : > { %15637 = vst [vmem:[#allocation17_spill] sm:$0xff] %v11402_v45  ;;  %v2678_v4 = vsel %vm11408_vm11, %v11314_v39, %v2674_v0  ;;  %v2703_v50 = vmul.f32 %v7933_v58, %v2702_v11  ;;  %v3222_v18 = vadd.f32 %v11298_v32, %v11222_v62  ;;  %v3071_v16 = vadd.f32 %v3070_v17, %v10259_v57  ;;  %v3226_v35 = vpop.f32.mrf.mxu2  ;;  %vm2707_vm1 = vmor %vm2705_vm7, %vm2706_vm12 }
 0x2de   : > { %15640 = vst [vmem:[#allocation18_spill] sm:$0xff] %v11413_v37  ;;  %v2693_v15 = vsel %vm11425_vm13, %v11345_v14, %v2689_v5  ;;  %v2718_v31 = vmul.f32 %v7935_v53, %v2717_v29  ;;  %vm2721_vm15 = vweird.f32 %v7935_v53  ;;  %v3224_v39 = vadd.f32 %v3223_v56, %v11222_v62  ;;  %v3315_v59 = vpop.f32.mrf.mxu3  ;;  %3270 = vmatmul.bf16.gmra.mxu2 %v10940_v38 }
 0x2df   : > { %15641 = vst [vmem:[#allocation19_spill] sm:$0xff] %v11416_v2  ;;  %v2704_v19 = vadd.f32 %v7933_v58, %v2703_v50  ;;  %v2712_v10 = vor.u32 1.1754944e-38, %v2711_v22  ;;  %v11437_v40 = vadd.f32 %v11300_v23, %v3222_v18  ;;  %v11439_v0 = vadd.f32 %v3159_v27, %v3071_v16  ;;  %3359 = vmatmul.bf16.gmra.mxu3 %v10942_v8  ;;  %vm2722_vm3 = vmor %vm2720_vm9, %vm2721_vm15 }
 0x2e0   : > { %v2683_v32 = vsel %vm11363_vm6, %v11348_v9, %v2678_v4  ;;  %v2719_v14 = vadd.f32 %v7935_v53, %v2718_v31  ;;  %v11448_v56 = vadd.f32 %v3312_v36, %v3224_v39  ;;  %v3227_v23 = vadd.f32 %v3226_v35, %v11222_v62 }
 0x2e1   : > { %15644 = vst [vmem:[#allocation20_spill] sm:$0xff] %v11437_v40  ;;  %v2698_v22 = vsel %vm11375_vm8, %v11355_v42, %v2693_v15  ;;  %v2708_v38 = vsel %vm2707_vm1, %v7933_v58, %v2704_v19  ;;  %vm2710_vm2 = vcmp.eq.f32.partialorder %v2709_v20, 8.507059e+37  ;;  %v2727_v9 = vor.u32 1.1754944e-38, %v2726_v48  ;;  %v3073_v42 = vpop.f32.mrf.mxu0 }
 0x2e2   : > { %15645 = vst [vmem:[#allocation21_spill] sm:$0xff] %v11439_v0  ;;  %v2713_v24 = vsel %vm2710_vm2, %v2712_v10, %v2708_v38  ;;  %v2723_v36 = vsel %vm2722_vm3, %v7935_v53, %v2719_v14  ;;  %vm2725_vm0 = vcmp.eq.f32.partialorder %v2724_v51, 8.507059e+37  ;;  %v11460_v54 = vadd.f32 %v3315_v59, %v3227_v23  ;;  %v3162_v58 = vpop.f32.mrf.mxu1 }
 0x2e3   : > { %15646 = vst [vmem:[#allocation22_spill] sm:$0xff] %v11448_v56  ;;  %v2790_v8 = vmul.f32 %v2683_v32, %v11075_v12  ;;  %v2792_v17 = vmul.f32 %v2713_v24, %v11140_v49  ;;  %v2728_v46 = vsel %vm2725_vm0, %v2727_v9, %v2723_v36  ;;  %v2791_v1 = vmul.f32 %v2698_v22, %v11107_v28 }
 0x2e4   : > { %15647 = vst [vmem:[#allocation23_spill] sm:$0xff] %v11460_v54  ;;  %v2793_v20 = vmul.f32 %v2728_v46, %v11143_v60  ;;  %v3074_v41 = vadd.f32 %v3073_v42, %v10259_v57  ;;  %v15659_v46 = vld [vmem:[#allocation3_spill] sm:$0xff]  ;;  %vm4384_vm6 = vcmask 261120  }
 0x2e5   : > { %v2824_v27 = vpack.c.bf16 %v2792_v17, %v2790_v8  ;;  %v3228_v53 = vpop.f32.mrf.mxu2 }
 0x2e6   : > { %v2825_v47 = vpack.c.bf16 %v2793_v20, %v2791_v1  ;;  %v11467_v5 = vadd.f32 %v3162_v58, %v3074_v41  ;;  %v3317_v51 = vpop.f32.mrf.mxu3  ;;  %v3229_v11 = vadd.f32 %v3228_v53, %v11222_v62 }
 0x2e8   : > { %15648 = vst [vmem:[#allocation24_spill] sm:$0xff] %v11467_v5  ;;  %v11470_v12 = vadd.f32 %v3317_v51, %v3229_v11 }
 0x2e9   : > { %3107 = vmatmul.bf16.gmra.mxu0 %v2824_v27  ;;  %v3075_v49 = vpop.f32.mrf.mxu0 }
 0x2ea   : > { %3196 = vmatmul.bf16.gmra.mxu1 %v2825_v47  ;;  %15649 = vst [vmem:[#allocation25_spill] sm:$0xff] %v11470_v12  ;;  %v3164_v48 = vpop.f32.mrf.mxu1  ;;  %v3076_v28 = vadd.f32 %v3075_v49, %v10259_v57 }
 0x2ec   : > { %v11473_v25 = vadd.f32 %v3164_v48, %v3076_v28 }
 0x2ed   : > { %v3231_v60 = vpop.f32.mrf.mxu2 }
 0x2ee   : > { %15650 = vst [vmem:[#allocation26_spill] sm:$0xff] %v11473_v25  ;;  %v3320_v29 = vpop.f32.mrf.mxu3  ;;  %3275 = vmatmul.bf16.gmra.mxu2 %v11184_v33  ;;  %v3232_v4 = vadd.f32 %v3231_v60, %v11222_v62 }
 0x2ef   : > { %3364 = vmatmul.bf16.gmra.mxu3 %v11200_v63  ;;  %v3036_v63 = vadd.f32 %v10122_v61, %v10259_v57 }
 0x2f0   : > { %v11478_v6 = vadd.f32 %v3320_v29, %v3232_v4  ;;  %v15663_v29 = vld [vmem:[#allocation8_spill] sm:$0xff] }
 0x2f1   : > { %v3078_v50 = vpop.f32.mrf.mxu0  ;;  %v11494_v14 = vadd.f32 %v10214_v3, %v3036_v63  ;;  %v15667_v63 = vld [vmem:[#allocation6_spill] sm:$0xff] }
 0x2f2   : > { %15651 = vst [vmem:[#allocation27_spill] sm:$0xff] %v11478_v6  ;;  %v3167_v18 = vpop.f32.mrf.mxu1  ;;  %v3079_v16 = vadd.f32 %v3078_v50, %v10259_v57  ;;  %v15666_v50 = vld [vmem:[#allocation5_spill] sm:$0xff] }
 0x2f3   : > { %15655 = vst [vmem:[#allocation32_spill] sm:$0xff] %v11494_v14 }
 0x2f4   : > { %v11481_v15 = vadd.f32 %v3167_v18, %v3079_v16  ;;  %v3046_v18 = vadd.f32 %v15666_v50, %v10259_v57 }
 0x2f5   : > { %v3233_v31 = vpop.f32.mrf.mxu2 }
 0x2f6   : > { %15652 = vst [vmem:[#allocation28_spill] sm:$0xff] %v11481_v15  ;;  %v3322_v39 = vpop.f32.mrf.mxu3  ;;  %v3234_v19 = vadd.f32 %v3233_v31, %v11222_v62  ;;  %v3638_v31 = vmul.f32 %v10303_v13, %v10303_v13 }
 0x2f8   : > { %v11486_v33 = vadd.f32 %v3322_v39, %v3234_v19  ;;  %v3639_v19 = vmul.f32 %v11320_v55, %v11320_v55 }
 0x2f9   : > { %3428 = vmatmul.f32.vlgmr.msra.gmra.mxu0 %v10303_v13  ;;  %v3080_v10 = vpop.f32.mrf.mxu0 }
 0x2fa   : > { %3541 = vmatmul.f32.vlgmr.msra.gmra.mxu1 %v11320_v55  ;;  %15653 = vst [vmem:[#allocation30_spill] sm:$0xff] %v11486_v33  ;;  %v3081_v35 = vadd.f32 %v3080_v10, %v10259_v57  ;;  %v3169_v59 = vpop.f32.mrf.mxu1  ;;  %v11537_v10 = vadd.f32 %v15667_v63, %v3046_v18 }
 0x2fc   : > { %v11491_v32 = vadd.f32 %v3169_v59, %v3081_v35  ;;  %15668 = vst [vmem:[#allocation5_spill] sm:$0xff] %v11537_v10 }
 0x2fd   : > { %v3236_v23 = vpop.f32.mrf.mxu2 }
 0x2fe   : > { %15654 = vst [vmem:[#allocation31_spill] sm:$0xff] %v11491_v32  ;;  %v3325_v22 = vpop.f32.mrf.mxu3  ;;  %3280 = vmatmul.bf16.gmra.mxu2 %v11371_v44  ;;  %v3237_v38 = vadd.f32 %v3236_v23, %v11222_v62  ;;  %v15658_v44 = vld [vmem:[#allocation29_spill] sm:$0xff] }
 0x2ff   : > { %3369 = vmatmul.bf16.gmra.mxu3 %v11373_v43  ;;  %v3041_v8 = vadd.f32 %v15658_v44, %v10259_v57  ;;  %v3640_v44 = vmul.f32 %v11494_v14, %v11494_v14 }
 0x300   : > { %v11501_v61 = vadd.f32 %v3325_v22, %v3237_v38 }
 0x301   : > { %3431 = vmatmul.f32.gmra.mxu0 %v11494_v14  ;;  %v11512_v42 = vadd.f32 %v15659_v46, %v3041_v8  ;;  %v3641_v8 = vmul.f32 %v11361_v26, %v11361_v26 }
 0x302   : > { %3544 = vmatmul.f32.gmra.mxu1 %v11361_v26  ;;  %15656 = vst [vmem:[#allocation33_spill] sm:$0xff] %v11501_v61 }
 0x303   : > { %15660 = vst [vmem:[#allocation29_spill] sm:$0xff] %v11512_v42 }
 0x305   : > { %v3238_v9 = vpop.f32.mrf.mxu2 }
 0x306   : > { %v3327_v24 = vpop.f32.mrf.mxu3  ;;  %v3239_v36 = vadd.f32 %v3238_v9, %v11222_v62 }
 0x308   : > { %v11506_v3 = vadd.f32 %v3327_v24, %v3239_v36 }
 0x309   : > { %3434 = vmatmul.f32.gmra.mxu0 %v10429_v30 }
 0x30a   : > { %3547 = vmatmul.f32.gmra.mxu1 %v11397_v34  ;;  %15657 = vst [vmem:[#allocation34_spill] sm:$0xff] %v11506_v3  ;;  %v3083_v43 = vpop.f32.mrf.mxu0 }
 0x30b   : > { %v3084_v17 = vadd.f32 %v3083_v43, %v10259_v57 }
 0x30d   : > { %v3241_v58 = vpop.f32.mrf.mxu2 }
 0x30e   : > { %v3330_v1 = vpop.f32.mrf.mxu3  ;;  %3285 = vmatmul.bf16.gmra.mxu2 %v2824_v27  ;;  %v3172_v20 = vpop.f32.mrf.mxu1  ;;  %v3242_v41 = vadd.f32 %v3241_v58, %v11222_v62 }
 0x30f   : > { %3374 = vmatmul.bf16.gmra.mxu3 %v2825_v47  ;;  %v11516_v53 = vadd.f32 %v3172_v20, %v3084_v17 }
 0x310   : > { %v11519_v51 = vadd.f32 %v3330_v1, %v3242_v41  ;;  %v15671_v1 = vld [vmem:[#allocation10_spill] sm:$0xff] }
 0x311   : > { %3437 = vmatmul.f32.gmra.mxu0 %v11512_v42  ;;  %15661 = vst [vmem:[#allocation3_spill] sm:$0xff] %v11516_v53 }
 0x312   : > { %3550 = vmatmul.f32.gmra.mxu1 %v11413_v37  ;;  %15662 = vst [vmem:[#allocation35_spill] sm:$0xff] %v11519_v51  ;;  %v3085_v11 = vpop.f32.mrf.mxu0 }
 0x313   : > { %v3086_v49 = vadd.f32 %v3085_v11, %v10259_v57  ;;  %v15674_v11 = vld [vmem:[#allocation7_spill] sm:$0xff] }
 0x315   : > { %v3243_v48 = vpop.f32.mrf.mxu2 }
 0x316   : > { %v3332_v28 = vpop.f32.mrf.mxu3  ;;  %v3174_v60 = vpop.f32.mrf.mxu1  ;;  %v3244_v27 = vadd.f32 %v3243_v48, %v11222_v62  ;;  %v3642_v48 = vmul.f32 %v10429_v30, %v10429_v30 }
 0x317   : > { %v11524_v4 = vadd.f32 %v3174_v60, %v3086_v49  ;;  %v3051_v49 = vadd.f32 %v15674_v11, %v10259_v57  ;;  %v3643_v60 = vmul.f32 %v11397_v34, %v11397_v34  ;;  %v3647_v11 = vmul.f32 %v11437_v40, %v11437_v40 }
 0x318   : > { %v11527_v47 = vadd.f32 %v3332_v28, %v3244_v27  ;;  %v15675_v27 = vld [vmem:[#allocation9_spill] sm:$0xff] }
 0x319   : > { %3440 = vmatmul.f32.gmra.mxu0 %v15663_v29  ;;  %15664 = vst [vmem:[#allocation36_spill] sm:$0xff] %v11524_v4  ;;  %v11565_v50 = vadd.f32 %v15675_v27, %v3051_v49 }
 0x31a   : > { %3553 = vmatmul.f32.gmra.mxu1 %v11437_v40  ;;  %15665 = vst [vmem:[#allocation37_spill] sm:$0xff] %v11527_v47  ;;  %v3088_v16 = vpop.f32.mrf.mxu0 }
 0x31b   : > { %v3089_v39 = vadd.f32 %v3088_v16, %v10259_v57  ;;  %15676 = vst [vmem:[#allocation7_spill] sm:$0xff] %v11565_v50 }
 0x31d   : > { %v3246_v35 = vpop.f32.mrf.mxu2 }
 0x31e   : > { %v3335_v59 = vpop.f32.mrf.mxu3  ;;  %3718 = vmatmul.f32.vlgmr.msrb.gmra.mxu2 %v3638_v31  ;;  %v3177_v23 = vpop.f32.mrf.mxu1  ;;  %v3247_v22 = vadd.f32 %v3246_v35, %v11222_v62 }
 0x31f   : > { %3831 = vmatmul.f32.vlgmr.msrb.gmra.mxu3 %v3639_v19  ;;  %v11541_v38 = vadd.f32 %v3177_v23, %v3089_v39 }
 0x320   : > { %v11544_v9 = vadd.f32 %v3335_v59, %v3247_v22  ;;  %v3644_v59 = vmul.f32 %v11512_v42, %v11512_v42  ;;  %v3645_v22 = vmul.f32 %v11413_v37, %v11413_v37 }
 0x321   : > { %3443 = vmatmul.f32.gmra.mxu0 %v11537_v10  ;;  %15669 = vst [vmem:[#allocation6_spill] sm:$0xff] %v11541_v38 }
 0x322   : > { %3556 = vmatmul.f32.gmra.mxu1 %v11448_v56  ;;  %15670 = vst [vmem:[#allocation38_spill] sm:$0xff] %v11544_v9  ;;  %v3090_v24 = vpop.f32.mrf.mxu0  ;;  %v3667_v30 = vmul.f32 %v11544_v9, %v11544_v9 }
 0x323   : > { %v3091_v36 = vadd.f32 %v3090_v24, %v10259_v57 }
 0x325   : > { %v3248_v43 = vpop.f32.mrf.mxu2 }
 0x326   : > { %v3337_v17 = vpop.f32.mrf.mxu3  ;;  %3721 = vmatmul.f32.gmra.mxu2 %v3640_v44  ;;  %v3179_v46 = vpop.f32.mrf.mxu1  ;;  %v3249_v58 = vadd.f32 %v3248_v43, %v11222_v62 }
 0x327   : > { %3834 = vmatmul.f32.gmra.mxu3 %v3641_v8  ;;  %v11553_v20 = vadd.f32 %v3179_v46, %v3091_v36 }
 0x328   : > { %v11556_v41 = vadd.f32 %v3337_v17, %v3249_v58  ;;  %v3646_v58 = vmul.f32 %v15663_v29, %v15663_v29 }
 0x329   : > { %3446 = vmatmul.f32.gmra.mxu0 %v15671_v1  ;;  %15672 = vst [vmem:[#allocation39_spill] sm:$0xff] %v11553_v20 }
 0x32a   : > { %3559 = vmatmul.f32.gmra.mxu1 %v11460_v54  ;;  %15673 = vst [vmem:[#allocation40_spill] sm:$0xff] %v11556_v41  ;;  %v3669_v13 = vmul.f32 %v11556_v41, %v11556_v41 }
 0x32c   : > { %v3093_v28 = vpop.f32.mrf.mxu0 }
 0x32d   : > { %v3094_v18 = vadd.f32 %v3093_v28, %v10259_v57  ;;  %v3251_v16 = vpop.f32.mrf.mxu2 }
 0x32e   : > { %v3340_v31 = vpop.f32.mrf.mxu3  ;;  %3724 = vmatmul.f32.gmra.mxu2 %v3642_v48  ;;  %v3182_v39 = vpop.f32.mrf.mxu1  ;;  %v3252_v19 = vadd.f32 %v3251_v16, %v11222_v62 }
 0x32f   : > { %3837 = vmatmul.f32.gmra.mxu3 %v3643_v60  ;;  %v11570_v63 = vadd.f32 %v3182_v39, %v3094_v18  ;;  %v15681_v60 = vld [vmem:[#allocation12_spill] sm:$0xff]  ;;  %v3648_v18 = vmul.f32 %v11537_v10, %v11537_v10 }
 0x330   : > { %v11573_v35 = vadd.f32 %v3340_v31, %v3252_v19  ;;  %v3649_v31 = vmul.f32 %v11448_v56, %v11448_v56 }
 0x331   : > { %3449 = vmatmul.f32.gmra.mxu0 %v11565_v50  ;;  %15677 = vst [vmem:[#allocation9_spill] sm:$0xff] %v11570_v63 }
 0x332   : > { %3562 = vmatmul.f32.gmra.mxu1 %v11470_v12  ;;  %15678 = vst [vmem:[#allocation41_spill] sm:$0xff] %v11573_v35 }
 0x334   : > { %v3095_v23 = vpop.f32.mrf.mxu0 }
 0x335   : > { %v3096_v24 = vadd.f32 %v3095_v23, %v10259_v57  ;;  %v3253_v36 = vpop.f32.mrf.mxu2 }
 0x336   : > { %v3342_v44 = vpop.f32.mrf.mxu3  ;;  %3727 = vmatmul.f32.gmra.mxu2 %v3644_v59  ;;  %v3184_v8 = vpop.f32.mrf.mxu1  ;;  %v3254_v43 = vadd.f32 %v3253_v36, %v11222_v62  ;;  %v15684_v36 = vld [vmem:[#allocation13_spill] sm:$0xff] }
 0x337   : > { %3840 = vmatmul.f32.gmra.mxu3 %v3645_v22  ;;  %v11582_v17 = vadd.f32 %v3184_v8, %v3096_v24  ;;  %v3650_v8 = vmul.f32 %v15671_v1, %v15671_v1 }
 0x338   : > { %v11585_v46 = vadd.f32 %v3342_v44, %v3254_v43 }
 0x339   : > { %3452 = vmatmul.f32.gmra.mxu0 %v11045_v52  ;;  %15679 = vst [vmem:[#allocation42_spill] sm:$0xff] %v11582_v17 }
 0x33a   : > { %3565 = vmatmul.f32.gmra.mxu1 %v11478_v6  ;;  %15680 = vst [vmem:[#allocation43_spill] sm:$0xff] %v11585_v46 }
 0x33d   : > { %v3256_v49 = vpop.f32.mrf.mxu2 }
 0x33e   : > { %v3345_v48 = vpop.f32.mrf.mxu3  ;;  %3730 = vmatmul.f32.gmra.mxu2 %v3646_v58  ;;  %v3257_v28 = vadd.f32 %v3256_v49, %v11222_v62  ;;  %v3651_v58 = vmul.f32 %v11460_v54, %v11460_v54  ;;  %v3682_v54 = vmul.f32 %v11541_v38, %v11541_v38 }
 0x33f   : > { %3843 = vmatmul.f32.gmra.mxu3 %v3647_v11 }
 0x340   : > { %v11594_v27 = vadd.f32 %v3345_v48, %v3257_v28 }
 0x341   : > { %3455 = vmatmul.f32.gmra.mxu0 %v15681_v60 }
 0x342   : > { %3568 = vmatmul.f32.gmra.mxu1 %v11486_v33  ;;  %15682 = vst [vmem:[#allocation44_spill] sm:$0xff] %v11594_v27 }
 0x345   : > { %v3098_v16 = vpop.f32.mrf.mxu0  ;;  %v3258_v59 = vpop.f32.mrf.mxu2 }
 0x346   : > { %v3099_v39 = vadd.f32 %v3098_v16, %v10259_v57  ;;  %v3187_v19 = vpop.f32.mrf.mxu1  ;;  %3733 = vmatmul.f32.gmra.mxu2 %v3648_v18  ;;  %v3259_v23 = vadd.f32 %v3258_v59, %v11222_v62  ;;  %v3347_v22 = vpop.f32.mrf.mxu3  ;;  %v3653_v59 = vmul.f32 %v11470_v12, %v11470_v12 }
 0x347   : > { %3846 = vmatmul.f32.gmra.mxu3 %v3649_v31 }
 0x348   : > { %v11602_v24 = vadd.f32 %v3187_v19, %v3099_v39  ;;  %v11606_v44 = vadd.f32 %v3347_v22, %v3259_v23  ;;  %v3652_v39 = vmul.f32 %v11565_v50, %v11565_v50 }
 0x349   : > { %3458 = vmatmul.f32.gmra.mxu0 %v15684_v36 }
 0x34a   : > { %15683 = vst [vmem:[#allocation45_spill] sm:$0xff] %v11602_v24  ;;  %3571 = vmatmul.f32.gmra.mxu1 %v11501_v61 }
 0x34b   : > { %15685 = vst [vmem:[#allocation46_spill] sm:$0xff] %v11606_v44 }
 0x34d   : > { %v3100_v43 = vpop.f32.mrf.mxu0  ;;  %v3261_v48 = vpop.f32.mrf.mxu2 }
 0x34e   : > { %v3101_v11 = vadd.f32 %v3100_v43, %v10259_v57  ;;  %v3189_v49 = vpop.f32.mrf.mxu1  ;;  %3736 = vmatmul.f32.gmra.mxu2 %v3650_v8  ;;  %v3262_v28 = vadd.f32 %v3261_v48, %v11222_v62  ;;  %v3350_v18 = vpop.f32.mrf.mxu3  ;;  %v3654_v48 = vmul.f32 %v11045_v52, %v11045_v52 }
 0x34f   : > { %3849 = vmatmul.f32.gmra.mxu3 %v3651_v58 }
 0x350   : > { %v11614_v16 = vadd.f32 %v3189_v49, %v3101_v11  ;;  %v11618_v31 = vadd.f32 %v3350_v18, %v3262_v28  ;;  %v3655_v18 = vmul.f32 %v11478_v6, %v11478_v6 }
 0x351   : > { %3461 = vmatmul.f32.gmra.mxu0 %v11263_v21 }
 0x352   : > { %15686 = vst [vmem:[#allocation47_spill] sm:$0xff] %v11614_v16  ;;  %3574 = vmatmul.f32.gmra.mxu1 %v11506_v3 }
 0x353   : > { %15687 = vst [vmem:[#allocation48_spill] sm:$0xff] %v11618_v31 }
 0x355   : > { %v3263_v8 = vpop.f32.mrf.mxu2 }
 0x356   : > { %v3103_v19 = vpop.f32.mrf.mxu0  ;;  %3739 = vmatmul.f32.gmra.mxu2 %v3652_v39  ;;  %v3264_v43 = vadd.f32 %v3263_v8, %v11222_v62  ;;  %v3352_v58 = vpop.f32.mrf.mxu3 }
 0x357   : > { %v3104_v23 = vadd.f32 %v3103_v19, %v10259_v57  ;;  %v3192_v22 = vpop.f32.mrf.mxu1  ;;  %3852 = vmatmul.f32.gmra.mxu3 %v3653_v59 }
 0x358   : > { %v11630_v49 = vadd.f32 %v3352_v58, %v3264_v43  ;;  %v3656_v58 = vmul.f32 %v15681_v60, %v15681_v60 }
 0x359   : > { %v11626_v11 = vadd.f32 %v3192_v22, %v3104_v23  ;;  %3464 = vmatmul.f32.gmra.mxu0 %v11369_v7 }
 0x35a   : > { %3577 = vmatmul.f32.gmra.mxu1 %v11519_v51  ;;  %15689 = vst [vmem:[#allocation50_spill] sm:$0xff] %v11630_v49 }
 0x35b   : > { %15688 = vst [vmem:[#allocation49_spill] sm:$0xff] %v11626_v11 }
 0x35d   : > { %v3266_v8 = vpop.f32.mrf.mxu2 }
 0x35e   : > { %v3105_v28 = vpop.f32.mrf.mxu0  ;;  %3742 = vmatmul.f32.gmra.mxu2 %v3654_v48  ;;  %v3267_v59 = vadd.f32 %v3266_v8, %v11222_v62  ;;  %v3355_v23 = vpop.f32.mrf.mxu3 }
 0x35f   : > { %v3106_v39 = vadd.f32 %v3105_v28, %v10259_v57  ;;  %v3194_v19 = vpop.f32.mrf.mxu1  ;;  %3855 = vmatmul.f32.gmra.mxu3 %v3655_v18  ;;  %v3657_v28 = vmul.f32 %v11486_v33, %v11486_v33 }
 0x360   : > { %v11642_v43 = vadd.f32 %v3355_v23, %v3267_v59  ;;  %v3658_v23 = vmul.f32 %v15684_v36, %v15684_v36 }
 0x361   : > { %v11638_v22 = vadd.f32 %v3194_v19, %v3106_v39  ;;  %3467 = vmatmul.f32.gmra.mxu0 %v11402_v45 }
 0x362   : > { %3580 = vmatmul.f32.gmra.mxu1 %v11527_v47  ;;  %15691 = vst [vmem:[#allocation52_spill] sm:$0xff] %v11642_v43 }
 0x363   : > { %15690 = vst [vmem:[#allocation51_spill] sm:$0xff] %v11638_v22 }
 0x365   : > { %v3268_v50 = vpop.f32.mrf.mxu2 }
 0x366   : > { %v3108_v52 = vpop.f32.mrf.mxu0  ;;  %3745 = vmatmul.f32.gmra.mxu2 %v3656_v58  ;;  %v3269_v18 = vadd.f32 %v3268_v50, %v11222_v62  ;;  %v3357_v39 = vpop.f32.mrf.mxu3 }
 0x367   : > { %v3109_v48 = vadd.f32 %v3108_v52, %v10259_v57  ;;  %v3197_v8 = vpop.f32.mrf.mxu1  ;;  %3858 = vmatmul.f32.gmra.mxu3 %v3657_v28  ;;  %v3659_v52 = vmul.f32 %v11501_v61, %v11501_v61 }
 0x368   : > { %v11654_v59 = vadd.f32 %v3357_v39, %v3269_v18  ;;  %v3660_v39 = vmul.f32 %v11263_v21, %v11263_v21 }
 0x369   : > { %v11650_v19 = vadd.f32 %v3197_v8, %v3109_v48  ;;  %3470 = vmatmul.f32.gmra.mxu0 %v11416_v2 }
 0x36a   : > { %3583 = vmatmul.f32.gmra.mxu1 %v11544_v9  ;;  %15693 = vst [vmem:[#allocation54_spill] sm:$0xff] %v11654_v59 }
 0x36b   : > { %15692 = vst [vmem:[#allocation53_spill] sm:$0xff] %v11650_v19 }
 0x36d   : > { %v3271_v1 = vpop.f32.mrf.mxu2 }
 0x36e   : > { %v3110_v60 = vpop.f32.mrf.mxu0  ;;  %3748 = vmatmul.f32.gmra.mxu2 %v3658_v23  ;;  %v3272_v28 = vadd.f32 %v3271_v1, %v11222_v62  ;;  %v3360_v48 = vpop.f32.mrf.mxu3 }
 0x36f   : > { %v3111_v58 = vadd.f32 %v3110_v60, %v10259_v57  ;;  %v3199_v50 = vpop.f32.mrf.mxu1  ;;  %3861 = vmatmul.f32.gmra.mxu3 %v3659_v52  ;;  %v3661_v57 = vmul.f32 %v11506_v3, %v11506_v3 }
 0x370   : > { %v11666_v18 = vadd.f32 %v3360_v48, %v3272_v28  ;;  %v3662_v28 = vmul.f32 %v11369_v7, %v11369_v7  ;;  %v11700_v7 = vld [vmem:[%s15303_s11 + $0x30] sm:$0xff] }
 0x371   : > { %v11662_v8 = vadd.f32 %v3199_v50, %v3111_v58  ;;  %3473 = vmatmul.f32.gmra.mxu0 %v11439_v0  ;;  %v4383_v50 = vld [vmem:[%s15303_s11 + $0x38] sm:$0xff]  ;;  %7662 = vmatpush.msra.mxu2 %v11700_v7 }
 0x372   : > { %3586 = vmatmul.f32.gmra.mxu1 %v11556_v41  ;;  %15695 = vst [vmem:[#allocation56_spill] sm:$0xff] %v11666_v18  ;;  %4960 = vmatpush.msra.mxu3 %v4383_v50  ;;  %v3671_v41 = vmul.f32 %v11573_v35, %v11573_v35 }
 0x373   : > { %15694 = vst [vmem:[#allocation55_spill] sm:$0xff] %v11662_v8  ;;  %4606 = vmatpush.msrb.mxu1 %v4383_v50  ;;  %4493 = vmatpush.msrb.mxu0 %v11700_v7 }
 0x375   : > { %v3273_v1 = vpop.f32.mrf.mxu2 }
 0x376   : > { %v11670_v36 = vpop.f32.mrf.mxu0  ;;  %3751 = vmatmul.f32.gmra.mxu2 %v3660_v39  ;;  %v3274_v23 = vadd.f32 %v3273_v1, %v11222_v62  ;;  %v3362_v52 = vpop.f32.mrf.mxu3  ;;  %v3663_v39 = vmul.f32 %v11519_v51, %v11519_v51 }
 0x377   : > { %v11674_v60 = vpop.f32.mrf.mxu1  ;;  %3864 = vmatmul.f32.gmra.mxu3 %v3661_v57 }
 0x378   : > { %v11679_v58 = vadd.f32 %v3362_v52, %v3274_v23  ;;  %v11821_v33 = vadd.f32 %v11674_v60, %v11670_v36 }
 0x379   : > { %3476 = vmatmul.f32.gmra.mxu0 %v11467_v5 }
 0x37a   : > { %3589 = vmatmul.f32.gmra.mxu1 %v11573_v35  ;;  %15696 = vst [vmem:[#allocation57_spill] sm:$0xff] %v11679_v58 }
 0x37d   : > { %v3276_v1 = vpop.f32.mrf.mxu2 }
 0x37e   : > { %v11686_v48 = vpop.f32.mrf.mxu0  ;;  %3754 = vmatmul.f32.gmra.mxu2 %v3662_v28  ;;  %v3277_v23 = vadd.f32 %v3276_v1, %v11222_v62  ;;  %v3365_v52 = vpop.f32.mrf.mxu3  ;;  %v3664_v28 = vmul.f32 %v11402_v45, %v11402_v45  ;;  %v3666_v45 = vmul.f32 %v11416_v2, %v11416_v2 }
 0x37f   : > { %v11690_v57 = vpop.f32.mrf.mxu1  ;;  %3867 = vmatmul.f32.gmra.mxu3 %v3663_v39  ;;  %v3665_v39 = vmul.f32 %v11527_v47, %v11527_v47 }
 0x380   : > { %v11695_v50 = vadd.f32 %v3365_v52, %v3277_v23 }
 0x381   : > { %3479 = vmatmul.f32.gmra.mxu0 %v11473_v25 }
 0x382   : > { %3592 = vmatmul.f32.gmra.mxu1 %v11585_v46  ;;  %15697 = vst [vmem:[#allocation58_spill] sm:$0xff] %v11695_v50 }
 0x385   : > { %v3278_v23 = vpop.f32.mrf.mxu2 }
 0x386   : > { %v11706_v1 = vpop.f32.mrf.mxu0  ;;  %3757 = vmatmul.f32.gmra.mxu2 %v3664_v28  ;;  %v3279_v52 = vadd.f32 %v3278_v23, %v11222_v62  ;;  %v3367_v10 = vpop.f32.mrf.mxu3 }
 0x387   : > { %v11710_v21 = vpop.f32.mrf.mxu1  ;;  %3870 = vmatmul.f32.gmra.mxu3 %v3665_v39 }
 0x388   : > { %v11715_v29 = vadd.f32 %v3367_v10, %v3279_v52  ;;  %v3668_v52 = vmul.f32 %v11439_v0, %v11439_v0 }
 0x389   : > { %3482 = vmatmul.f32.gmra.mxu0 %v11481_v15 }
 0x38a   : > { %3595 = vmatmul.f32.gmra.mxu1 %v11594_v27  ;;  %15698 = vst [vmem:[#allocation59_spill] sm:$0xff] %v11715_v29 }
 0x38d   : > { %v3281_v28 = vpop.f32.mrf.mxu2 }
 0x38e   : > { %v11719_v42 = vpop.f32.mrf.mxu0  ;;  %3760 = vmatmul.f32.gmra.mxu2 %v3666_v45  ;;  %v3282_v39 = vadd.f32 %v3281_v28, %v11222_v62  ;;  %v3370_v23 = vpop.f32.mrf.mxu3 }
 0x38f   : > { %v11723_v14 = vpop.f32.mrf.mxu1  ;;  %3873 = vmatmul.f32.gmra.mxu3 %v3667_v30 }
 0x390   : > { %v11728_v10 = vadd.f32 %v3370_v23, %v3282_v39  ;;  %v3670_v23 = vmul.f32 %v11467_v5, %v11467_v5  ;;  %v3673_v5 = vmul.f32 %v11585_v46, %v11585_v46 }
 0x391   : > { %3485 = vmatmul.f32.gmra.mxu0 %v11491_v32 }
 0x392   : > { %3598 = vmatmul.f32.gmra.mxu1 %v11606_v44  ;;  %15699 = vst [vmem:[#allocation60_spill] sm:$0xff] %v11728_v10 }
 0x395   : > { %v3283_v45 = vpop.f32.mrf.mxu2 }
 0x396   : > { %v11732_v2 = vpop.f32.mrf.mxu0  ;;  %3763 = vmatmul.f32.gmra.mxu2 %v3668_v52  ;;  %v3284_v30 = vadd.f32 %v3283_v45, %v11222_v62  ;;  %v3372_v28 = vpop.f32.mrf.mxu3 }
 0x397   : > { %v11736_v9 = vpop.f32.mrf.mxu1  ;;  %3876 = vmatmul.f32.gmra.mxu3 %v3669_v13 }
 0x398   : > { %v11741_v39 = vadd.f32 %v3372_v28, %v3284_v30  ;;  %v3672_v28 = vmul.f32 %v11473_v25, %v11473_v25  ;;  %v3675_v25 = vmul.f32 %v11594_v27, %v11594_v27 }
 0x399   : > { %3488 = vmatmul.f32.gmra.mxu0 %v11516_v53 }
 0x39a   : > { %3601 = vmatmul.f32.gmra.mxu1 %v11618_v31  ;;  %15700 = vst [vmem:[#allocation61_spill] sm:$0xff] %v11741_v39 }
 0x39d   : > { %v3286_v52 = vpop.f32.mrf.mxu2 }
 0x39e   : > { %v11745_v0 = vpop.f32.mrf.mxu0  ;;  %3766 = vmatmul.f32.gmra.mxu2 %v3670_v23  ;;  %v3287_v13 = vadd.f32 %v3286_v52, %v11222_v62  ;;  %v3375_v45 = vpop.f32.mrf.mxu3 }
 0x39f   : > { %v11749_v51 = vpop.f32.mrf.mxu1  ;;  %3879 = vmatmul.f32.gmra.mxu3 %v3671_v41 }
 0x3a0   : > { %v11754_v30 = vadd.f32 %v3375_v45, %v3287_v13  ;;  %v3674_v45 = vmul.f32 %v11481_v15, %v11481_v15  ;;  %v11960_v37 = vadd.f32 %v11749_v51, %v11745_v0  ;;  %v3692_v51 = vmul.f32 %v11614_v16, %v11614_v16 }
 0x3a1   : > { %3491 = vmatmul.f32.gmra.mxu0 %v11524_v4 }
 0x3a2   : > { %3604 = vmatmul.f32.gmra.mxu1 %v11630_v49  ;;  %15701 = vst [vmem:[#allocation62_spill] sm:$0xff] %v11754_v30  ;;  %v3933_v0 = vmul.f32 %v11960_v37, %v11960_v37 }
 0x3a5   : > { %v3288_v47 = vpop.f32.mrf.mxu2 }
 0x3a6   : > { %3769 = vmatmul.f32.gmra.mxu2 %v3672_v28  ;;  %v11762_v23 = vpop.f32.mrf.mxu0  ;;  %v3289_v41 = vadd.f32 %v3288_v47, %v11222_v62  ;;  %v3377_v52 = vpop.f32.mrf.mxu3  ;;  %v3677_v47 = vmul.f32 %v11606_v44, %v11606_v44 }
 0x3a7   : > { %v11760_v35 = vpop.f32.mrf.mxu1  ;;  %3882 = vmatmul.f32.gmra.mxu3 %v3673_v5  ;;  %v3676_v5 = vmul.f32 %v11491_v32, %v11491_v32  ;;  %v3678_v32 = vmul.f32 %v11516_v53, %v11516_v53  ;;  %v3680_v53 = vmul.f32 %v11524_v4, %v11524_v4 }
 0x3a8   : > { %v11767_v13 = vadd.f32 %v3377_v52, %v3289_v41 }
 0x3a9   : > { %3494 = vmatmul.f32.gmra.mxu0 %v11541_v38  ;;  %v3685_v38 = vmul.f32 %v11654_v59, %v11654_v59 }
 0x3aa   : > { %3607 = vmatmul.f32.gmra.mxu1 %v11642_v43  ;;  %15702 = vst [vmem:[#allocation63_spill] sm:$0xff] %v11767_v13 }
 0x3ad   : > { %v3719_v28 = vpop.f32.mrf.mxu2 }
 0x3ae   : > { %3772 = vmatmul.f32.gmra.mxu2 %v3674_v45  ;;  %v3832_v61 = vpop.f32.mrf.mxu3  ;;  %v11776_v62 = vpop.f32.mrf.mxu0 }
 0x3af   : > { %v11773_v46 = vpop.f32.mrf.mxu1  ;;  %3885 = vmatmul.f32.gmra.mxu3 %v3675_v25  ;;  %v4381_v25 = vld [vmem:[%s15303_s11 + $0x28] sm:$0xff]  ;;  %v3833_v4 = vadd.f32 %v3832_v61, %v3719_v28  ;;  %v11841_v61 = vadd.f32 %v11690_v57, %v11686_v48 }
 0x3b0   : > { %4607 = vmatpush.msrb.mxu1 %v4381_v25  ;;  %4961 = vmatpush.msra.mxu3 %v4381_v25  ;;  %v11803_v25 = vld [vmem:[%s15303_s11 + $0x20] sm:$0xff] }
 0x3b1   : > { %3497 = vmatmul.f32.gmra.mxu0 %v11553_v20  ;;  %7663 = vmatpush.msra.mxu2 %v11803_v25 }
 0x3b2   : > { %3610 = vmatmul.f32.gmra.mxu1 %v11654_v59  ;;  %4494 = vmatpush.msrb.mxu0 %v11803_v25 }
 0x3b5   : > { %v3722_v52 = vpop.f32.mrf.mxu2 }
 0x3b6   : > { %3775 = vmatmul.f32.gmra.mxu2 %v3676_v5  ;;  %v3835_v15 = vpop.f32.mrf.mxu3  ;;  %v11790_v45 = vpop.f32.mrf.mxu0  ;;  %v3679_v5 = vmul.f32 %v11618_v31, %v11618_v31 }
 0x3b7   : > { %v11783_v41 = vpop.f32.mrf.mxu1  ;;  %3888 = vmatmul.f32.gmra.mxu3 %v3677_v47 }
 0x3b9   : > { %3500 = vmatmul.f32.gmra.mxu0 %v11570_v63 }
 0x3ba   : > { %3613 = vmatmul.f32.gmra.mxu1 %v11666_v18 }
 0x3bd   : > { %v3725_v47 = vpop.f32.mrf.mxu2 }
 0x3be   : > { %3778 = vmatmul.f32.gmra.mxu2 %v3678_v32  ;;  %v3838_v27 = vpop.f32.mrf.mxu3  ;;  %v11809_v31 = vpop.f32.mrf.mxu0  ;;  %v3681_v32 = vmul.f32 %v11630_v49, %v11630_v49  ;;  %v3928_v49 = vmul.f32 %v11821_v33, %v11821_v33 }
 0x3bf   : > { %v11796_v44 = vpop.f32.mrf.mxu1  ;;  %3891 = vmatmul.f32.gmra.mxu3 %v3679_v5 }
 0x3c0   : > { %v3960_v12 = vsub.f32 %v3833_v4, %v3928_v49  ;;  %v3836_v4 = vadd.f32 %v3835_v15, %v3722_v52  ;;  %v3929_v49 = vmul.f32 %v11841_v61, %v11841_v61  ;;  %v4378_v52 = vld [vmem:[%s15303_s11 + $0x10] sm:$0xff] }
 0x3c1   : > { %3503 = vmatmul.f32.gmra.mxu0 %v11582_v17  ;;  %7664 = vmatpush.msra.mxu2 %v4378_v52 }
 0x3c2   : > { %3616 = vmatmul.f32.gmra.mxu1 %v11679_v58  ;;  %v3992_v28 = vmax.f32 %v3960_v12, 0.0  ;;  %v11861_v12 = vadd.f32 %v11710_v21, %v11706_v1  ;;  %v3839_v1 = vadd.f32 %v3838_v27, %v3725_v47  ;;  %4495 = vmatpush.msrb.mxu0 %v4378_v52 }
 0x3c5   : > { %v11815_v3 = vpop.f32.mrf.mxu2 }
 0x3c6   : > { %3781 = vmatmul.f32.gmra.mxu2 %v3680_v53  ;;  %v11817_v6 = vpop.f32.mrf.mxu3  ;;  %v3683_v53 = vmul.f32 %v11642_v43, %v11642_v43  ;;  %v11835_v36 = vpop.f32.mrf.mxu0  ;;  %v3961_v43 = vsub.f32 %v3836_v4, %v3929_v49  ;;  %v4377_v4 = vld [vmem:[%s15303_s11 + $0x8] sm:$0xff]  ;;  %v3930_v49 = vmul.f32 %v11861_v12, %v11861_v12 }
 0x3c7   : > { %v11813_v5 = vpop.f32.mrf.mxu1  ;;  %3894 = vmatmul.f32.gmra.mxu3 %v3681_v32 }
 0x3c8   : > { %v3993_v21 = vmax.f32 %v3961_v43, 0.0  ;;  %v3687_v43 = vmul.f32 %v11666_v18, %v11666_v18  ;;  %v3962_v47 = vsub.f32 %v3839_v1, %v3930_v49  ;;  %v3842_v1 = vadd.f32 %v11817_v6, %v11815_v3 }
 0x3c9   : > { %3506 = vmatmul.f32.gmra.mxu0 %v11602_v24 }
 0x3ca   : > { %3619 = vmatmul.f32.gmra.mxu1 %v11695_v50  ;;  %v11886_v27 = vadd.f32 1e-05, %v3993_v21  ;;  %v3994_v21 = vmax.f32 %v3962_v47, 0.0 }
 0x3cc   : > { %v11917_v49 = vadd.f32 1e-05, %v3994_v21  ;;  %vm4072_vm9 = vweird.f32 %v11886_v27 }
 0x3cd   : > { %v11833_v40 = vpop.f32.mrf.mxu2 }
 0x3ce   : > { %3784 = vmatmul.f32.gmra.mxu2 %v3682_v54  ;;  %v11837_v60 = vpop.f32.mrf.mxu3  ;;  %v3684_v54 = vmul.f32 %v11553_v20, %v11553_v20  ;;  %v11864_v15 = vpop.f32.mrf.mxu0  ;;  %vm4082_vm12 = vweird.f32 %v11917_v49 }
 0x3cf   : > { %v11831_v32 = vpop.f32.mrf.mxu1  ;;  %3897 = vmatmul.f32.gmra.mxu3 %v3683_v53  ;;  %v11851_v53 = vadd.f32 1e-05, %v3992_v28  ;;  %v4379_v28 = vld [vmem:[%s15303_s11 + $0x18] sm:$0xff]  ;;  %v3845_v21 = vadd.f32 %v11837_v60, %v11833_v40 }
 0x3d0   : > { %4608 = vmatpush.msrb.mxu1 %v4379_v28  ;;  %4962 = vmatpush.msra.mxu3 %v4379_v28 }
 0x3d1   : > { %3509 = vmatmul.f32.gmra.mxu0 %v11614_v16  ;;  %7936 = vrsqrt.f32 %v11851_v53  ;;  %vm4062_vm5 = vweird.f32 %v11851_v53 }
 0x3d2   : > { %3622 = vmatmul.f32.gmra.mxu1 %v11715_v29  ;;  %4963 = vmatpush.msra.mxu3 %v4377_v4  ;;  %7938 = vrsqrt.f32 %v11886_v27 }
 0x3d3   : > { %4609 = vmatpush.msrb.mxu1 %v4377_v4  ;;  %7940 = vrsqrt.f32 %v11917_v49 }
 0x3d5   : > { %v11855_v57 = vpop.f32.mrf.mxu2 }
 0x3d6   : > { %3787 = vmatmul.f32.gmra.mxu2 %v3684_v54  ;;  %v11857_v56 = vpop.f32.mrf.mxu3  ;;  %v3686_v54 = vmul.f32 %v11570_v63, %v11570_v63  ;;  %v11899_v63 = vadd.f32 %v11723_v14, %v11719_v42  ;;  %v11909_v4 = vpop.f32.mrf.mxu0  ;;  %v3688_v42 = vmul.f32 %v11582_v17, %v11582_v17  ;;  %v11930_v17 = vadd.f32 %v11736_v9, %v11732_v2 }
 0x3d7   : > { %v11853_v48 = vpop.f32.mrf.mxu1  ;;  %3900 = vmatmul.f32.gmra.mxu3 %v3685_v38  ;;  %v4376_v38 = vld [vmem:[%s15303_s11] sm:$0xff]  ;;  %v11895_v34 = vpop.eup %7936  ;;  %v3690_v2 = vmul.f32 %v11602_v24, %v11602_v24 }
 0x3d8   : > { %4496 = vmatpush.msrb.mxu0 %v4376_v38  ;;  %7665 = vmatpush.msra.mxu2 %v4376_v38  ;;  %v3931_v14 = vmul.f32 %v11899_v63, %v11899_v63  ;;  %v11926_v47 = vpop.eup %7938  ;;  %vm4063_vm4 = vweird.f32 %v11895_v34 }
 0x3d9   : > { %3512 = vmatmul.f32.gmra.mxu0 %v11626_v11  ;;  %v11956_v24 = vpop.eup %7940  ;;  %vm4064_vm7 = vmor %vm4062_vm5, %vm4063_vm4  ;;  %vm4073_vm8 = vweird.f32 %v11926_v47 }
 0x3da   : > { %3625 = vmatmul.f32.gmra.mxu1 %v11728_v10  ;;  %4847 = vmatpush.msrb.mxu2 %v11700_v7  ;;  %v4057_v7 = vmul.f32 %v11895_v34, %v11851_v53  ;;  %vm4074_vm10 = vmor %vm4072_vm9, %vm4073_vm8  ;;  %vm4083_vm11 = vweird.f32 %v11956_v24 }
 0x3db   : > { %vm4084_vm13 = vmor %vm4082_vm12, %vm4083_vm11 }
 0x3dc   : > { %4848 = vmatpush.msrb.mxu2 %v11803_v25  ;;  %v3689_v25 = vmul.f32 %v11679_v58, %v11679_v58 }
 0x3dd   : > { %v11890_v28 = vpop.f32.mrf.mxu2 }
 0x3de   : > { %3790 = vmatmul.f32.gmra.mxu2 %v3686_v54  ;;  %v11892_v59 = vpop.f32.mrf.mxu3  ;;  %v3963_v54 = vsub.f32 %v3842_v1, %v3931_v14  ;;  %v3932_v14 = vmul.f32 %v11930_v17, %v11930_v17  ;;  %v11943_v9 = vpop.f32.mrf.mxu0 }
 0x3df   : > { %v11888_v20 = vpop.f32.mrf.mxu1  ;;  %3903 = vmatmul.f32.gmra.mxu3 %v3687_v43  ;;  %4849 = vmatpush.msrb.mxu2 %v4378_v52  ;;  %v4058_v52 = vmul.f32 %v11895_v34, %v4057_v7  ;;  %v4067_v7 = vmul.f32 %v11926_v47, %v11886_v27 }
 0x3e1   : > { %3515 = vmatmul.f32.gmra.mxu0 %v11638_v22  ;;  %4850 = vmatpush.msrb.mxu2 %v4376_v38  ;;  %v3995_v38 = vmax.f32 %v3963_v54, 0.0  ;;  %v4059_v1 = vmul.f32 0.5, %v4058_v52  ;;  %v3964_v54 = vsub.f32 %v3845_v21, %v3932_v14  ;;  %v4068_v52 = vmul.f32 %v11926_v47, %v4067_v7 }
 0x3e2   : > { %3628 = vmatmul.f32.gmra.mxu1 %v11741_v39  ;;  %v3848_v21 = vadd.f32 %v11857_v56, %v11855_v57  ;;  %v3693_v56 = vmul.f32 %v11715_v29, %v11715_v29 }
 0x3e3   : > { %v4060_v60 = vsub.f32 1.5, %v4059_v1  ;;  %v4077_v1 = vmul.f32 %v11956_v24, %v11917_v49  ;;  %v4069_v14 = vmul.f32 0.5, %v4068_v52 }
 0x3e5   : > { %v11921_v3 = vpop.f32.mrf.mxu2  ;;  %v4061_v7 = vmul.f32 %v11895_v34, %v4060_v60  ;;  %v4070_v16 = vsub.f32 1.5, %v4069_v14  ;;  %v4078_v53 = vmul.f32 %v11956_v24, %v4077_v1  ;;  %v3694_v14 = vmul.f32 %v11626_v11, %v11626_v11 }
 0x3e6   : > { %3793 = vmatmul.f32.gmra.mxu2 %v3688_v42  ;;  %v11924_v43 = vpop.f32.mrf.mxu3  ;;  %v3691_v42 = vmul.f32 %v11695_v50, %v11695_v50  ;;  %v11984_v60 = vpop.f32.mrf.mxu0 }
 0x3e7   : > { %v11919_v6 = vpop.f32.mrf.mxu1  ;;  %3906 = vmatmul.f32.gmra.mxu3 %v3689_v25  ;;  %v11947_v25 = vadd.f32 1e-05, %v3995_v38  ;;  %v3996_v38 = vmax.f32 %v3964_v54, 0.0  ;;  %v11987_v52 = vsel %vm4064_vm7, %v11895_v34, %v4061_v7  ;;  %v4071_v7 = vmul.f32 %v11926_v47, %v4070_v16 }
 0x3e9   : > { %3518 = vmatmul.f32.gmra.mxu0 %v11650_v19  ;;  %7942 = vrsqrt.f32 %v11947_v25  ;;  %v11978_v57 = vadd.f32 1e-05, %v3996_v38  ;;  %v11996_v38 = vadd.f32 %v11760_v35, %v11762_v23  ;;  %v4079_v35 = vmul.f32 0.5, %v4078_v53 }
 0x3ea   : > { %3631 = vmatmul.f32.gmra.mxu1 %v11754_v30  ;;  %vm4092_vm1 = vweird.f32 %v11947_v25 }
 0x3eb   : > { %7944 = vrsqrt.f32 %v11978_v57  ;;  %v3934_v23 = vmul.f32 %v11996_v38, %v11996_v38  ;;  %vm4102_vm0 = vweird.f32 %v11978_v57 }
 0x3ed   : > { %v11951_v40 = vpop.f32.mrf.mxu2 }
 0x3ee   : > { %3796 = vmatmul.f32.gmra.mxu2 %v3690_v2  ;;  %v11954_v18 = vpop.f32.mrf.mxu3  ;;  %v3965_v2 = vsub.f32 %v3848_v21, %v3933_v0  ;;  %v3851_v21 = vadd.f32 %v11892_v59, %v11890_v28  ;;  %v3695_v0 = vmul.f32 %v11728_v10, %v11728_v10 }
 0x3ef   : > { %v11949_v58 = vpop.f32.mrf.mxu1  ;;  %3909 = vmatmul.f32.gmra.mxu3 %v3691_v42  ;;  %v11992_v29 = vpop.eup %7942 }
 0x3f0   : > { %v3997_v34 = vmax.f32 %v3965_v2, 0.0  ;;  %v4087_v1 = vmul.f32 %v11992_v29, %v11947_v25  ;;  %v3966_v28 = vsub.f32 %v3851_v21, %v3934_v23  ;;  %v4080_v2 = vsub.f32 1.5, %v4079_v35  ;;  %v12036_v21 = vpop.f32.mrf.mxu0 }
 0x3f1   : > { %3521 = vmatmul.f32.gmra.mxu0 %v11662_v8  ;;  %v12028_v27 = vpop.eup %7944  ;;  %v3696_v23 = vmul.f32 %v11638_v22, %v11638_v22  ;;  %vm4093_vm15 = vweird.f32 %v11992_v29 }
 0x3f2   : > { %3634 = vmatmul.f32.gmra.mxu1 %v11767_v13  ;;  %v12016_v59 = vadd.f32 1e-05, %v3997_v34  ;;  %v4088_v53 = vmul.f32 %v11992_v29, %v4087_v1  ;;  %v12032_v34 = vadd.f32 %v11773_v46, %v11776_v62  ;;  %v3854_v1 = vadd.f32 %v11924_v43, %v11921_v3  ;;  %vm4094_vm2 = vmor %vm4092_vm1, %vm4093_vm15 }
 0x3f3   : > { %v4081_v46 = vmul.f32 %v11956_v24, %v4080_v2  ;;  %vm4103_vm3 = vweird.f32 %v12028_v27 }
 0x3f4   : > { %7946 = vrsqrt.f32 %v12016_v59  ;;  %v4089_v62 = vmul.f32 0.5, %v4088_v53  ;;  %v3935_v35 = vmul.f32 %v12032_v34, %v12032_v34  ;;  %vm4104_vm4 = vmor %vm4102_vm0, %vm4103_vm3  ;;  %vm4112_vm7 = vweird.f32 %v12016_v59 }
 0x3f5   : > { %v11982_v54 = vpop.f32.mrf.mxu2  ;;  %v12061_v2 = vsel %vm4084_vm13, %v11956_v24, %v4081_v46 }
 0x3f6   : > { %3799 = vmatmul.f32.gmra.mxu2 %v3692_v51  ;;  %v11990_v50 = vpop.f32.mrf.mxu3  ;;  %v3967_v43 = vsub.f32 %v3854_v1, %v3935_v35  ;;  %v4090_v53 = vsub.f32 1.5, %v4089_v62  ;;  %v3857_v1 = vadd.f32 %v11954_v18, %v11951_v40  ;;  %v3698_v35 = vmul.f32 %v11650_v19, %v11650_v19 }
 0x3f7   : > { %v11980_v42 = vpop.f32.mrf.mxu1  ;;  %3912 = vmatmul.f32.gmra.mxu3 %v3693_v56  ;;  %v12023_v56 = vsel %vm4074_vm10, %v11926_v47, %v4071_v7  ;;  %v3998_v47 = vmax.f32 %v3966_v28, 0.0  ;;  %v4097_v7 = vmul.f32 %v12028_v27, %v11978_v57  ;;  %v3699_v18 = vmul.f32 %v11754_v30, %v11754_v30 }
 0x3f8   : > { %v3999_v24 = vmax.f32 %v3967_v43, 0.0  ;;  %v12081_v46 = vpop.f32.mrf.mxu0 }
 0x3f9   : > { %7344 = vmatmul.msk.f32.vlgmr.msrb.gmra.mxu0 %vm4384_vm6, %v11987_v52  ;;  %v12054_v3 = vadd.f32 1e-05, %v3998_v47  ;;  %v4098_v22 = vmul.f32 %v12028_v27, %v4097_v7  ;;  %v12070_v47 = vadd.f32 %v11783_v41, %v11790_v45  ;;  %v4091_v41 = vmul.f32 %v11992_v29, %v4090_v53 }
 0x3fa   : > { %7376 = vmatmul.msk.f32.vlgmr.msrb.gmra.mxu1 %vm4384_vm6, %v11987_v52  ;;  %v12066_v49 = vpop.eup %7946  ;;  %v12092_v40 = vadd.f32 1e-05, %v3999_v24  ;;  %v12108_v24 = vadd.f32 %v11796_v44, %v11809_v31 }
 0x3fb   : > { %7948 = vrsqrt.f32 %v12054_v3  ;;  %v4107_v7 = vmul.f32 %v12066_v49, %v12016_v59  ;;  %v4099_v45 = vmul.f32 0.5, %v4098_v22  ;;  %v3936_v62 = vmul.f32 %v12070_v47, %v12070_v47 }
 0x3fc   : > { %v12099_v22 = vsel %vm4094_vm2, %v11992_v29, %v4091_v41  ;;  %7950 = vrsqrt.f32 %v12092_v40  ;;  %v3937_v31 = vmul.f32 %v12108_v24, %v12108_v24  ;;  %vm4113_vm5 = vweird.f32 %v12066_v49 }
 0x3fd   : > { %v12020_v16 = vpop.f32.mrf.mxu2  ;;  %v4100_v53 = vsub.f32 1.5, %v4099_v45  ;;  %v4108_v19 = vmul.f32 %v12066_v49, %v4107_v7  ;;  %v3700_v45 = vmul.f32 %v11662_v8, %v11662_v8  ;;  %vm4114_vm8 = vmor %vm4112_vm7, %vm4113_vm5  ;;  %v12186_v59 = vadd.f32 %v11831_v32, %v11864_v15 }
 0x3fe   : > { %3802 = vmatmul.f32.gmra.mxu2 %v3694_v14  ;;  %v12026_v11 = vpop.f32.mrf.mxu3  ;;  %v3697_v14 = vmul.f32 %v11741_v39, %v11741_v39  ;;  %vm4122_vm10 = vweird.f32 %v12054_v3  ;;  %vm4132_vm13 = vweird.f32 %v12092_v40 }
 0x3ff   : > { %v12018_v51 = vpop.f32.mrf.mxu1  ;;  %3915 = vmatmul.f32.gmra.mxu3 %v3695_v0  ;;  %v4101_v41 = vmul.f32 %v12028_v27, %v4100_v53  ;;  %v4109_v44 = vmul.f32 0.5, %v4108_v19  ;;  %v3939_v15 = vmul.f32 %v12186_v59, %v12186_v59 }
 0x401   : > { %7345 = vmatmul.msk.f32.gmra.mxu0 %vm4384_vm6, %v12023_v56  ;;  %v12104_v25 = vpop.eup %7948  ;;  %v4110_v53 = vsub.f32 1.5, %v4109_v44  ;;  %v12163_v44 = vmul.f32 %v11987_v52, %v11821_v33 }
 0x402   : > { %7377 = vmatmul.msk.f32.gmra.mxu1 %vm4384_vm6, %v12023_v56  ;;  %v4117_v7 = vmul.f32 %v12104_v25, %v12054_v3  ;;  %v12142_v57 = vpop.eup %7950  ;;  %vm4123_vm9 = vweird.f32 %v12104_v25 }
 0x403   : > { %vm4124_vm11 = vmor %vm4122_vm10, %vm4123_vm9  ;;  %vm4133_vm12 = vweird.f32 %v12142_v57 }
 0x404   : > { %v4118_v8 = vmul.f32 %v12104_v25, %v4117_v7  ;;  %v4127_v7 = vmul.f32 %v12142_v57, %v12092_v40  ;;  %vm4134_vm15 = vmor %vm4132_vm13, %vm4133_vm12 }
 0x405   : > { %v12058_v28 = vpop.f32.mrf.mxu2 }
 0x406   : > { %3805 = vmatmul.f32.gmra.mxu2 %v3696_v23  ;;  %v12064_v10 = vpop.f32.mrf.mxu3  ;;  %v3968_v23 = vsub.f32 %v3857_v1, %v3936_v62  ;;  %v3860_v1 = vadd.f32 %v11990_v50, %v11982_v54  ;;  %v12125_v62 = vpop.f32.mrf.mxu0  ;;  %v3701_v50 = vmul.f32 %v11767_v13, %v11767_v13 }
 0x407   : > { %v12056_v0 = vpop.f32.mrf.mxu1  ;;  %3918 = vmatmul.f32.gmra.mxu3 %v3697_v14 }
 0x408   : > { %v4000_v29 = vmax.f32 %v3968_v23, 0.0  ;;  %v12137_v23 = vsel %vm4104_vm4, %v12028_v27, %v4101_v41  ;;  %v4111_v41 = vmul.f32 %v12066_v49, %v4110_v53  ;;  %v4128_v53 = vmul.f32 %v12142_v57, %v4127_v7 }
 0x409   : > { %7346 = vmatmul.msk.f32.gmra.mxu0 %vm4384_vm6, %v12061_v2 }
 0x40a   : > { %7378 = vmatmul.msk.f32.gmra.mxu1 %vm4384_vm6, %v12061_v2  ;;  %v12130_v54 = vadd.f32 1e-05, %v4000_v29  ;;  %v12146_v29 = vadd.f32 %v11813_v5, %v11835_v36  ;;  %v4119_v5 = vmul.f32 0.5, %v4118_v8  ;;  %v12175_v8 = vsel %vm4114_vm8, %v12066_v49, %v4111_v41 }
 0x40b   : > { %v4129_v32 = vmul.f32 0.5, %v4128_v53  ;;  %v12203_v41 = vmul.f32 %v12023_v56, %v11841_v61  ;;  %v12224_v56 = vadd.f32 %v11853_v48, %v11909_v4 }
 0x40c   : > { %7952 = vrsqrt.f32 %v12130_v54  ;;  %v3938_v36 = vmul.f32 %v12146_v29, %v12146_v29  ;;  %vm4142_vm2 = vweird.f32 %v12130_v54 }
 0x40d   : > { %v12096_v43 = vpop.f32.mrf.mxu2  ;;  %15703 = vst [vmem:[#allocation64_spill] sm:$0xff] %v12203_v41 }
 0x40e   : > { %3808 = vmatmul.f32.gmra.mxu2 %v3698_v35  ;;  %v12102_v39 = vpop.f32.mrf.mxu3  ;;  %v3969_v35 = vsub.f32 %v3860_v1, %v3937_v31  ;;  %v3863_v1 = vadd.f32 %v12026_v11, %v12020_v16 }
 0x40f   : > { %v12094_v14 = vpop.f32.mrf.mxu1  ;;  %3921 = vmatmul.f32.gmra.mxu3 %v3699_v18 }
 0x410   : > { %v4001_v27 = vmax.f32 %v3969_v35, 0.0  ;;  %v3970_v11 = vsub.f32 %v3863_v1, %v3938_v36  ;;  %v4120_v35 = vsub.f32 1.5, %v4119_v5 }
 0x411   : > { %7347 = vmatmul.msk.f32.gmra.mxu0 %vm4384_vm6, %v12099_v22 }
 0x412   : > { %7379 = vmatmul.msk.f32.gmra.mxu1 %vm4384_vm6, %v12099_v22  ;;  %v12166_v31 = vadd.f32 1e-05, %v4001_v27  ;;  %v12182_v52 = vpop.eup %7952  ;;  %v4002_v49 = vmax.f32 %v3970_v11, 0.0  ;;  %v3866_v27 = vadd.f32 %v12064_v10, %v12058_v28  ;;  %v4121_v7 = vmul.f32 %v12104_v25, %v4120_v35 }
 0x413   : > { %v4137_v1 = vmul.f32 %v12182_v52, %v12130_v54  ;;  %v4130_v35 = vsub.f32 1.5, %v4129_v32  ;;  %vm4143_vm1 = vweird.f32 %v12182_v52 }
 0x414   : > { %7954 = vrsqrt.f32 %v12166_v31  ;;  %v12206_v5 = vadd.f32 1e-05, %v4002_v49  ;;  %v3971_v10 = vsub.f32 %v3866_v27, %v3939_v15  ;;  %v12213_v11 = vsel %vm4124_vm11, %v12104_v25, %v4121_v7  ;;  %vm4144_vm3 = vmor %vm4142_vm2, %vm4143_vm1 }
 0x415   : > { %v12134_v19 = vpop.f32.mrf.mxu2  ;;  %v4138_v53 = vmul.f32 %v12182_v52, %v4137_v1  ;;  %v3869_v49 = vadd.f32 %v12102_v39, %v12096_v43  ;;  %v4131_v48 = vmul.f32 %v12142_v57, %v4130_v35  ;;  %v3940_v1 = vmul.f32 %v12224_v56, %v12224_v56 }
 0x416   : > { %3811 = vmatmul.f32.gmra.mxu2 %v3700_v45  ;;  %v12140_v30 = vpop.f32.mrf.mxu3  ;;  %7956 = vrsqrt.f32 %v12206_v5  ;;  %v4003_v25 = vmax.f32 %v3971_v10, 0.0  ;;  %v12243_v7 = vmul.f32 %v12061_v2, %v11861_v12  ;;  %v12264_v2 = vadd.f32 %v11888_v20, %v11943_v9 }
 0x417   : > { %v12132_v18 = vpop.f32.mrf.mxu1  ;;  %3924 = vmatmul.f32.gmra.mxu3 %v3701_v50  ;;  %v12172_v50 = vpop.f32.mrf.mxu0  ;;  %v4139_v4 = vmul.f32 0.5, %v4138_v53  ;;  %v3972_v39 = vsub.f32 %v3869_v49, %v3940_v1  ;;  %v12253_v10 = vsel %vm4134_vm15, %v12142_v57, %v4131_v48  ;;  %v3872_v57 = vadd.f32 %v12140_v30, %v12134_v19 }
 0x418   : > { %15704 = vst [vmem:[#allocation65_spill] sm:$0xff] %v12243_v7  ;;  %v12246_v32 = vadd.f32 1e-05, %v4003_v25  ;;  %v12283_v48 = vmul.f32 %v12099_v22, %v11899_v63  ;;  %v12304_v22 = vadd.f32 %v11919_v6, %v11984_v60  ;;  %vm4152_vm4 = vweird.f32 %v12166_v31 }
 0x419   : > { %7348 = vmatmul.msk.f32.gmra.mxu0 %vm4384_vm6, %v12137_v23  ;;  %v4140_v35 = vsub.f32 1.5, %v4139_v4  ;;  %v4004_v40 = vmax.f32 %v3972_v39, 0.0  ;;  %vm4162_vm8 = vweird.f32 %v12206_v5 }
 0x41a   : > { %7380 = vmatmul.msk.f32.gmra.mxu1 %vm4384_vm6, %v12137_v23  ;;  %v12220_v61 = vpop.eup %7954  ;;  %7958 = vrsqrt.f32 %v12246_v32  ;;  %v3942_v60 = vmul.f32 %v12304_v22, %v12304_v22  ;;  %vm4172_vm11 = vweird.f32 %v12246_v32 }
 0x41b   : > { %v4147_v27 = vmul.f32 %v12220_v61, %v12166_v31  ;;  %v4141_v20 = vmul.f32 %v12182_v52, %v4140_v35  ;;  %v12286_v30 = vadd.f32 1e-05, %v4004_v40  ;;  %vm4153_vm0 = vweird.f32 %v12220_v61 }
 0x41c   : > { %v12260_v12 = vpop.eup %7956  ;;  %vm4154_vm5 = vmor %vm4152_vm4, %vm4153_vm0  ;;  %v12344_v31 = vadd.f32 %v11949_v58, %v12036_v21 }
 0x41d   : > { %v12170_v45 = vpop.f32.mrf.mxu2  ;;  %v4148_v53 = vmul.f32 %v12220_v61, %v4147_v27  ;;  %v4157_v49 = vmul.f32 %v12260_v12, %v12206_v5  ;;  %v3941_v27 = vmul.f32 %v12264_v2, %v12264_v2  ;;  %v12293_v39 = vsel %vm4144_vm3, %v12182_v52, %v4141_v20 }
 0x41e   : > { %v12178_v33 = vpop.f32.mrf.mxu3  ;;  %7960 = vrsqrt.f32 %v12286_v30  ;;  %vm4163_vm7 = vweird.f32 %v12260_v12  ;;  %v3943_v21 = vmul.f32 %v12344_v31, %v12344_v31  ;;  %v12384_v5 = vadd.f32 %v11980_v42, %v12081_v46 }
 0x41f   : > { %v12168_v16 = vpop.f32.mrf.mxu1  ;;  %7440 = vmatmul.msk.f32.vlgmr.msra.gmra.mxu3 %vm4384_vm6, %v12163_v44  ;;  %v12228_v3 = vpop.f32.mrf.mxu0  ;;  %v4149_v9 = vmul.f32 0.5, %v4148_v53  ;;  %v3973_v19 = vsub.f32 %v3872_v57, %v3941_v27  ;;  %v4158_v53 = vmul.f32 %v12260_v12, %v4157_v49  ;;  %v3875_v52 = vadd.f32 %v12178_v33, %v12170_v45  ;;  %vm4164_vm9 = vmor %vm4162_vm8, %vm4163_vm7 }
 0x420   : > { %v12300_v63 = vpop.eup %7958  ;;  %v12321_v49 = vmul.f32 %v12137_v23, %v11930_v17  ;;  %v3944_v46 = vmul.f32 %v12384_v5, %v12384_v5  ;;  %vm4182_vm15 = vweird.f32 %v12286_v30 }
 0x421   : > { %7349 = vmatmul.msk.f32.gmra.mxu0 %vm4384_vm6, %v12175_v8  ;;  %v4150_v35 = vsub.f32 1.5, %v4149_v9  ;;  %v4005_v54 = vmax.f32 %v3973_v19, 0.0  ;;  %v4167_v40 = vmul.f32 %v12300_v63, %v12246_v32  ;;  %v4159_v6 = vmul.f32 0.5, %v4158_v53 }
 0x422   : > { %7381 = vmatmul.msk.f32.gmra.mxu1 %vm4384_vm6, %v12175_v8  ;;  %15705 = vst [vmem:[#allocation66_spill] sm:$0xff] %v12321_v49  ;;  %v3974_v33 = vsub.f32 %v3875_v52, %v3942_v60  ;;  %vm4173_vm10 = vweird.f32 %v12300_v63 }
 0x423   : > { %v4151_v57 = vmul.f32 %v12220_v61, %v4150_v35  ;;  %v12326_v45 = vadd.f32 1e-05, %v4005_v54  ;;  %v4160_v35 = vsub.f32 1.5, %v4159_v6  ;;  %v4168_v53 = vmul.f32 %v12300_v63, %v4167_v40  ;;  %vm4174_vm12 = vmor %vm4172_vm11, %vm4173_vm10 }
 0x424   : > { %v12340_v23 = vpop.eup %7960 }
 0x425   : > { %v12210_v36 = vpop.f32.mrf.mxu2  ;;  %v12333_v19 = vsel %vm4154_vm5, %v12220_v61, %v4151_v57  ;;  %7962 = vrsqrt.f32 %v12326_v45  ;;  %v4006_v61 = vmax.f32 %v3974_v33, 0.0  ;;  %v4177_v52 = vmul.f32 %v12340_v23, %v12286_v30 }
 0x426   : > { %v12216_v13 = vpop.f32.mrf.mxu3  ;;  %v4161_v40 = vmul.f32 %v12260_v12, %v4160_v35  ;;  %v4169_v58 = vmul.f32 0.5, %v4168_v53  ;;  %v12361_v57 = vmul.f32 %v12175_v8, %v11960_v37  ;;  %vm4183_vm13 = vweird.f32 %v12340_v23 }
 0x427   : > { %v12208_v28 = vpop.f32.mrf.mxu1  ;;  %7441 = vmatmul.msk.f32.gmra.mxu3 %vm4384_vm6, %v12203_v41  ;;  %v12273_v25 = vpop.f32.mrf.mxu0  ;;  %v3878_v54 = vadd.f32 %v12216_v13, %v12210_v36  ;;  %v12364_v6 = vadd.f32 1e-05, %v4006_v61  ;;  %vm4184_vm1 = vmor %vm4182_vm15, %vm4183_vm13  ;;  %vm4192_vm3 = vweird.f32 %v12326_v45 }
 0x428   : > { %15706 = vst [vmem:[#allocation67_spill] sm:$0xff] %v12361_v57  ;;  %v12373_v35 = vsel %vm4164_vm9, %v12260_v12, %v4161_v40  ;;  %v4170_v53 = vsub.f32 1.5, %v4169_v58  ;;  %v12401_v40 = vmul.f32 %v12213_v11, %v11996_v38 }
 0x429   : > { %7350 = vmatmul.msk.f32.gmra.mxu0 %vm4384_vm6, %v12213_v11  ;;  %v3975_v13 = vsub.f32 %v3878_v54, %v3943_v21  ;;  %7964 = vrsqrt.f32 %v12364_v6  ;;  %vm4202_vm5 = vweird.f32 %v12364_v6 }
 0x42a   : > { %7382 = vmatmul.msk.f32.gmra.mxu1 %vm4384_vm6, %v12213_v11  ;;  %15707 = vst [vmem:[#allocation68_spill] sm:$0xff] %v12401_v40  ;;  %v12422_v11 = vadd.f32 %v12018_v51, %v12125_v62 }
 0x42b   : > { %v12380_v8 = vpop.eup %7962  ;;  %v4007_v12 = vmax.f32 %v3975_v13, 0.0 }
 0x42c   : > { %v4187_v54 = vmul.f32 %v12380_v8, %v12326_v45  ;;  %vm4193_vm2 = vweird.f32 %v12380_v8 }
 0x42d   : > { %v12250_v15 = vpop.f32.mrf.mxu2  ;;  %v12404_v58 = vadd.f32 1e-05, %v4007_v12  ;;  %vm4194_vm0 = vmor %vm4192_vm3, %vm4193_vm2 }
 0x42e   : > { %v12256_v41 = vpop.f32.mrf.mxu3 }
 0x42f   : > { %v12248_v43 = vpop.f32.mrf.mxu1  ;;  %7442 = vmatmul.msk.f32.gmra.mxu3 %vm4384_vm6, %v12243_v7  ;;  %v12323_v20 = vpop.f32.mrf.mxu0  ;;  %v3881_v61 = vadd.f32 %v12256_v41, %v12250_v15  ;;  %7966 = vrsqrt.f32 %v12404_v58  ;;  %vm4212_vm9 = vweird.f32 %v12404_v58 }
 0x430   : > { %v12418_v38 = vpop.eup %7964 }
 0x431   : > { %7351 = vmatmul.msk.f32.gmra.mxu0 %vm4384_vm6, %v12253_v10  ;;  %v3976_v41 = vsub.f32 %v3881_v61, %v3944_v46  ;;  %v4197_v61 = vmul.f32 %v12418_v38, %v12364_v6  ;;  %vm4203_vm4 = vweird.f32 %v12418_v38 }
 0x432   : > { %7383 = vmatmul.msk.f32.gmra.mxu1 %vm4384_vm6, %v12253_v10  ;;  %vm4204_vm7 = vmor %vm4202_vm5, %vm4203_vm4 }
 0x435   : > { %v12290_v1 = vpop.f32.mrf.mxu2 }
 0x436   : > { %v12296_v7 = vpop.f32.mrf.mxu3 }
 0x437   : > { %v12288_v4 = vpop.f32.mrf.mxu1  ;;  %7443 = vmatmul.msk.f32.gmra.mxu3 %vm4384_vm6, %v12283_v48  ;;  %v12370_v33 = vpop.f32.mrf.mxu0  ;;  %v3884_v12 = vadd.f32 %v12296_v7, %v12290_v1 }
 0x439   : > { %7352 = vmatmul.msk.f32.gmra.mxu0 %vm4384_vm6, %v12293_v39 }
 0x43a   : > { %7384 = vmatmul.msk.f32.gmra.mxu1 %vm4384_vm6, %v12293_v39 }
 0x43d   : > { %v12330_v27 = vpop.f32.mrf.mxu2 }
 0x43e   : > { %v12336_v17 = vpop.f32.mrf.mxu3 }
 0x43f   : > { %v12328_v9 = vpop.f32.mrf.mxu1  ;;  %7444 = vmatmul.msk.f32.gmra.mxu3 %vm4384_vm6, %v12321_v49  ;;  %v4178_v49 = vmul.f32 %v12340_v23, %v4177_v52  ;;  %v4171_v52 = vmul.f32 %v12300_v63, %v4170_v53  ;;  %v4188_v53 = vmul.f32 %v12380_v8, %v4187_v54  ;;  %v12426_v32 = vpop.f32.mrf.mxu0  ;;  %v3945_v54 = vmul.f32 %v12422_v11, %v12422_v11 }
 0x441   : > { %7353 = vmatmul.msk.f32.gmra.mxu0 %vm4384_vm6, %v12333_v19  ;;  %v4179_v42 = vmul.f32 0.5, %v4178_v49  ;;  %v12411_v13 = vsel %vm4174_vm12, %v12300_v63, %v4171_v52  ;;  %v4008_v63 = vmax.f32 %v3976_v41, 0.0  ;;  %v4189_v62 = vmul.f32 0.5, %v4188_v53 }
 0x442   : > { %7385 = vmatmul.msk.f32.gmra.mxu1 %vm4384_vm6, %v12333_v19  ;;  %v12441_v52 = vmul.f32 %v12253_v10, %v12032_v34  ;;  %v3977_v7 = vsub.f32 %v3884_v12, %v3945_v54  ;;  %v4198_v53 = vmul.f32 %v12418_v38, %v4197_v61  ;;  %v12458_v34 = vpop.eup %7966  ;;  %v12462_v10 = vadd.f32 %v12056_v0, %v12172_v50 }
 0x443   : > { %v4180_v49 = vsub.f32 1.5, %v4179_v42  ;;  %v12444_v42 = vadd.f32 1e-05, %v4008_v63  ;;  %v4207_v12 = vmul.f32 %v12458_v34, %v12404_v58  ;;  %vm4213_vm8 = vweird.f32 %v12458_v34 }
 0x444   : > { %15708 = vst [vmem:[#allocation69_spill] sm:$0xff] %v12441_v52  ;;  %v4009_v30 = vmax.f32 %v3977_v7, 0.0  ;;  %v4199_v50 = vmul.f32 0.5, %v4198_v53  ;;  %v3946_v61 = vmul.f32 %v12462_v10, %v12462_v10  ;;  %vm4214_vm10 = vmor %vm4212_vm9, %vm4213_vm8  ;;  %v12582_v58 = vadd.f32 %v12168_v16, %v12323_v20 }
 0x445   : > { %v12368_v60 = vpop.f32.mrf.mxu2  ;;  %v4181_v51 = vmul.f32 %v12340_v23, %v4180_v49  ;;  %v4190_v49 = vsub.f32 1.5, %v4189_v62  ;;  %7968 = vrsqrt.f32 %v12444_v42  ;;  %v4208_v53 = vmul.f32 %v12458_v34, %v4207_v12 }
 0x446   : > { %v12376_v37 = vpop.f32.mrf.mxu3  ;;  %v3949_v20 = vmul.f32 %v12582_v58, %v12582_v58  ;;  %vm4222_vm12 = vweird.f32 %v12444_v42 }
 0x447   : > { %v12366_v36 = vpop.f32.mrf.mxu1  ;;  %7445 = vmatmul.msk.f32.gmra.mxu3 %vm4384_vm6, %v12361_v57  ;;  %v12451_v41 = vsel %vm4184_vm1, %v12340_v23, %v4181_v51  ;;  %v3887_v23 = vadd.f32 %v12336_v17, %v12330_v27  ;;  %v12471_v63 = vpop.f32.mrf.mxu0  ;;  %v4191_v0 = vmul.f32 %v12380_v8, %v4190_v49  ;;  %v12481_v51 = vmul.f32 %v12293_v39, %v12070_v47 }
 0x448   : > { %v12484_v27 = vadd.f32 1e-05, %v4009_v30  ;;  %v4200_v49 = vsub.f32 1.5, %v4199_v50  ;;  %v12502_v39 = vadd.f32 %v12094_v14, %v12228_v3  ;;  %v4209_v14 = vmul.f32 0.5, %v4208_v53 }
 0x449   : > { %7354 = vmatmul.msk.f32.gmra.mxu0 %vm4384_vm6, %v12373_v35  ;;  %15709 = vst [vmem:[#allocation70_spill] sm:$0xff] %v12481_v51  ;;  %v3978_v17 = vsub.f32 %v3887_v23, %v3946_v61  ;;  %v12491_v7 = vsel %vm4194_vm0, %v12380_v8, %v4191_v0  ;;  %v3890_v8 = vadd.f32 %v12376_v37, %v12368_v60 }
 0x44a   : > { %7386 = vmatmul.msk.f32.gmra.mxu1 %vm4384_vm6, %v12373_v35  ;;  %7970 = vrsqrt.f32 %v12484_v27  ;;  %v4201_v23 = vmul.f32 %v12418_v38, %v4200_v49  ;;  %v3947_v3 = vmul.f32 %v12502_v39, %v12502_v39  ;;  %v12521_v0 = vmul.f32 %v12333_v19, %v12108_v24 }
 0x44b   : > { %v12498_v47 = vpop.eup %7968  ;;  %v4010_v45 = vmax.f32 %v3978_v17, 0.0  ;;  %v4210_v49 = vsub.f32 1.5, %v4209_v14  ;;  %v12542_v19 = vadd.f32 %v12132_v18, %v12273_v25  ;;  %vm4232_vm1 = vweird.f32 %v12484_v27 }
 0x44c   : > { %v4217_v30 = vmul.f32 %v12498_v47, %v12444_v42  ;;  %v3979_v37 = vsub.f32 %v3890_v8, %v3947_v3  ;;  %v12531_v17 = vsel %vm4204_vm7, %v12418_v38, %v4201_v23  ;;  %vm4223_vm11 = vweird.f32 %v12498_v47 }
 0x44d   : > { %v12408_v21 = vpop.f32.mrf.mxu2  ;;  %v12524_v60 = vadd.f32 1e-05, %v4010_v45  ;;  %v4211_v8 = vmul.f32 %v12458_v34, %v4210_v49  ;;  %v3948_v25 = vmul.f32 %v12542_v19, %v12542_v19  ;;  %vm4224_vm13 = vmor %vm4222_vm12, %vm4223_vm11 }
 0x44e   : > { %v12414_v57 = vpop.f32.mrf.mxu3  ;;  %v4218_v53 = vmul.f32 %v12498_v47, %v4217_v30  ;;  %v4011_v6 = vmax.f32 %v3979_v37, 0.0  ;;  %v12559_v30 = vmul.f32 %v12373_v35, %v12146_v29 }
 0x44f   : > { %v12406_v15 = vpop.f32.mrf.mxu1  ;;  %7446 = vmatmul.msk.f32.gmra.mxu3 %vm4384_vm6, %v12401_v40  ;;  %v12517_v12 = vpop.f32.mrf.mxu0  ;;  %7972 = vrsqrt.f32 %v12524_v60  ;;  %v3893_v38 = vadd.f32 %v12414_v57, %v12408_v21  ;;  %v12571_v37 = vsel %vm4214_vm10, %v12458_v34, %v4211_v8  ;;  %v12599_v8 = vmul.f32 %v12411_v13, %v12186_v59 }
 0x450   : > { %v12538_v24 = vpop.eup %7970  ;;  %v4219_v18 = vmul.f32 0.5, %v4218_v53  ;;  %15710 = vst [vmem:[#allocation71_spill] sm:$0xff] %v12559_v30  ;;  %v12562_v23 = vadd.f32 1e-05, %v4011_v6  ;;  %vm4242_vm0 = vweird.f32 %v12524_v60 }
 0x451   : > { %7355 = vmatmul.msk.f32.gmra.mxu0 %vm4384_vm6, %v12411_v13  ;;  %v4227_v45 = vmul.f32 %v12538_v24, %v12484_v27  ;;  %v3980_v57 = vsub.f32 %v3893_v38, %v3948_v25  ;;  %15711 = vst [vmem:[#allocation72_spill] sm:$0xff] %v12599_v8  ;;  %vm4233_vm15 = vweird.f32 %v12538_v24  ;;  %v12666_v27 = vadd.f32 %v12248_v43, %v12426_v32 }
 0x452   : > { %7387 = vmatmul.msk.f32.gmra.mxu1 %vm4384_vm6, %v12411_v13  ;;  %v4220_v49 = vsub.f32 1.5, %v4219_v18  ;;  %7974 = vrsqrt.f32 %v12562_v23  ;;  %v12620_v13 = vadd.f32 %v12208_v28, %v12370_v33  ;;  %vm4234_vm2 = vmor %vm4232_vm1, %vm4233_vm15  ;;  %vm4252_vm7 = vweird.f32 %v12562_v23 }
 0x453   : > { %v4228_v53 = vmul.f32 %v12538_v24, %v4227_v45  ;;  %v4012_v34 = vmax.f32 %v3980_v57, 0.0 }
 0x454   : > { %v4221_v45 = vmul.f32 %v12498_v47, %v4220_v49 }
 0x455   : > { %v12448_v46 = vpop.f32.mrf.mxu2  ;;  %v12578_v35 = vpop.eup %7972  ;;  %v4229_v16 = vmul.f32 0.5, %v4228_v53  ;;  %v12602_v18 = vadd.f32 1e-05, %v4012_v34 }
 0x456   : > { %v12454_v40 = vpop.f32.mrf.mxu3  ;;  %v4237_v38 = vmul.f32 %v12578_v35, %v12524_v60  ;;  %v12609_v57 = vsel %vm4224_vm13, %v12498_v47, %v4221_v45  ;;  %v7657_v47 = vld [vmem:[%s15300_s8 + $0x78] sm:$0xff]  ;;  %v3950_v45 = vmul.f32 %v12620_v13, %v12620_v13  ;;  %vm4243_vm3 = vweird.f32 %v12578_v35 }
 0x457   : > { %v12446_v1 = vpop.f32.mrf.mxu1  ;;  %7447 = vmatmul.msk.f32.gmra.mxu3 %vm4384_vm6, %v12441_v52  ;;  %v12568_v3 = vpop.f32.mrf.mxu0  ;;  %v3896_v6 = vadd.f32 %v12454_v40, %v12448_v46  ;;  %v4230_v49 = vsub.f32 1.5, %v4229_v16  ;;  %7976 = vrsqrt.f32 %v12602_v18  ;;  %6792 = vmatpush.bf16.msra.mxu1 %v7657_v47  ;;  %v12642_v16 = vmul.f32 %v12451_v41, %v12224_v56  ;;  %v7649_v56 = vld [vmem:[%s15300_s8 + $0x38] sm:$0xff]  ;;  %vm4244_vm4 = vmor %vm4242_vm0, %vm4243_vm3 }
 0x458   : > { %v4238_v53 = vmul.f32 %v12578_v35, %v4237_v38  ;;  %v12616_v59 = vpop.eup %7974  ;;  %6703 = vmatpush.bf16.msra.mxu0 %v7649_v56  ;;  %vm4262_vm10 = vweird.f32 %v12602_v18 }
 0x459   : > { %7356 = vmatmul.msk.f32.gmra.mxu0 %vm4384_vm6, %v12451_v41  ;;  %v3981_v40 = vsub.f32 %v3896_v6, %v3949_v20  ;;  %v4247_v28 = vmul.f32 %v12616_v59, %v12562_v23  ;;  %v4231_v33 = vmul.f32 %v12538_v24, %v4230_v49  ;;  %15712 = vst [vmem:[#allocation73_spill] sm:$0xff] %v12642_v16  ;;  %vm4253_vm5 = vweird.f32 %v12616_v59 }
 0x45a   : > { %7388 = vmatmul.msk.f32.gmra.mxu1 %vm4384_vm6, %v12451_v41  ;;  %v4239_v38 = vmul.f32 0.5, %v4238_v53  ;;  %vm4254_vm8 = vmor %vm4252_vm7, %vm4253_vm5 }
 0x45b   : > { %v4013_v34 = vmax.f32 %v3981_v40, 0.0  ;;  %v12652_v49 = vsel %vm4234_vm2, %v12538_v24, %v4231_v33  ;;  %v4248_v47 = vmul.f32 %v12616_v59, %v4247_v28  ;;  %v3951_v33 = vmul.f32 %v12666_v27, %v12666_v27 }
 0x45c   : > { %v4240_v53 = vsub.f32 1.5, %v4239_v38  ;;  %v12685_v38 = vmul.f32 %v12491_v7, %v12264_v2 }
 0x45d   : > { %v12488_v54 = vpop.f32.mrf.mxu2  ;;  %v12645_v20 = vadd.f32 1e-05, %v4013_v34  ;;  %v12662_v41 = vpop.eup %7976  ;;  %v4249_v32 = vmul.f32 0.5, %v4248_v47 }
 0x45e   : > { %v12494_v52 = vpop.f32.mrf.mxu3  ;;  %v4257_v28 = vmul.f32 %v12662_v41, %v12602_v18  ;;  %v4241_v43 = vmul.f32 %v12578_v35, %v4240_v53  ;;  %vm4263_vm9 = vweird.f32 %v12662_v41  ;;  %v12786_v18 = vadd.f32 %v12366_v36, %v12568_v3 }
 0x45f   : > { %v12486_v62 = vpop.f32.mrf.mxu1  ;;  %7448 = vmatmul.msk.f32.gmra.mxu3 %vm4384_vm6, %v12481_v51  ;;  %v12624_v42 = vpop.f32.mrf.mxu0  ;;  %v3899_v6 = vadd.f32 %v12494_v52, %v12488_v54  ;;  %7978 = vrsqrt.f32 %v12645_v20  ;;  %v4250_v47 = vsub.f32 1.5, %v4249_v32  ;;  %vm4264_vm11 = vmor %vm4262_vm10, %vm4263_vm9  ;;  %vm4272_vm13 = vweird.f32 %v12645_v20 }
 0x460   : > { %v12695_v53 = vsel %vm4244_vm4, %v12578_v35, %v4241_v43  ;;  %v4258_v56 = vmul.f32 %v12662_v41, %v4257_v28  ;;  %v12725_v43 = vmul.f32 %v12531_v17, %v12304_v22 }
 0x461   : > { %7357 = vmatmul.msk.f32.gmra.mxu0 %vm4384_vm6, %v12491_v7  ;;  %v3982_v52 = vsub.f32 %v3899_v6, %v3950_v45 }
 0x462   : > { %7389 = vmatmul.msk.f32.gmra.mxu1 %vm4384_vm6, %v12491_v7  ;;  %v12706_v7 = vadd.f32 %v12288_v4, %v12471_v63  ;;  %v4259_v4 = vmul.f32 0.5, %v4258_v56  ;;  %15713 = vst [vmem:[#allocation74_spill] sm:$0xff] %v12725_v43 }
 0x463   : > { %v4014_v24 = vmax.f32 %v3982_v52, 0.0 }
 0x464   : > { %v3952_v63 = vmul.f32 %v12706_v7, %v12706_v7  ;;  %v4260_v56 = vsub.f32 1.5, %v4259_v4 }
 0x465   : > { %v12528_v61 = vpop.f32.mrf.mxu2  ;;  %v12702_v2 = vpop.eup %7978 }
 0x466   : > { %v12534_v51 = vpop.f32.mrf.mxu3  ;;  %vm4273_vm12 = vweird.f32 %v12702_v2 }
 0x467   : > { %v12526_v50 = vpop.f32.mrf.mxu1  ;;  %7449 = vmatmul.msk.f32.gmra.mxu3 %vm4384_vm6, %v12521_v0  ;;  %v3902_v34 = vadd.f32 %v12534_v51, %v12528_v61  ;;  %v12675_v6 = vpop.f32.mrf.mxu0  ;;  %v12688_v51 = vadd.f32 1e-05, %v4014_v24  ;;  %v4267_v24 = vmul.f32 %v12702_v2, %v12645_v20  ;;  %vm4274_vm15 = vmor %vm4272_vm13, %vm4273_vm12  ;;  %v7648_v20 = vld [vmem:[%s15300_s8 + $0x30] sm:$0xff] }
 0x468   : > { %6704 = vmatpush.bf16.msra.mxu0 %v7648_v20 }
 0x469   : > { %7358 = vmatmul.msk.f32.gmra.mxu0 %vm4384_vm6, %v12531_v17  ;;  %v3983_v61 = vsub.f32 %v3902_v34, %v3951_v33  ;;  %7980 = vrsqrt.f32 %v12688_v51  ;;  %v4251_v34 = vmul.f32 %v12616_v59, %v4250_v47  ;;  %v4268_v22 = vmul.f32 %v12702_v2, %v4267_v24 }
 0x46a   : > { %7390 = vmatmul.msk.f32.gmra.mxu1 %vm4384_vm6, %v12531_v17  ;;  %vm4282_vm2 = vweird.f32 %v12688_v51 }
 0x46b   : > { %v4015_v60 = vmax.f32 %v3983_v61, 0.0  ;;  %v12739_v47 = vsel %vm4254_vm8, %v12616_v59, %v4251_v34  ;;  %v4269_v24 = vmul.f32 0.5, %v4268_v22  ;;  %v12763_v34 = vmul.f32 %v12571_v37, %v12344_v31 }
 0x46d   : > { %v12566_v14 = vpop.f32.mrf.mxu2  ;;  %v4270_v22 = vsub.f32 1.5, %v4269_v24 }
 0x46e   : > { %v12574_v29 = vpop.f32.mrf.mxu3 }
 0x46f   : > { %v12564_v21 = vpop.f32.mrf.mxu1  ;;  %7450 = vmatmul.msk.f32.gmra.mxu3 %vm4384_vm6, %v12559_v30  ;;  %v3905_v35 = vadd.f32 %v12574_v29, %v12566_v14  ;;  %v12721_v28 = vpop.f32.mrf.mxu0  ;;  %v12730_v14 = vadd.f32 %v12328_v9, %v12517_v12  ;;  %v12732_v29 = vadd.f32 1e-05, %v4015_v60  ;;  %v4271_v3 = vmul.f32 %v12702_v2, %v4270_v22 }
 0x470   : > { %v12746_v9 = vpop.eup %7980 }
 0x471   : > { %7359 = vmatmul.msk.f32.gmra.mxu0 %vm4384_vm6, %v12571_v37  ;;  %v3984_v32 = vsub.f32 %v3905_v35, %v3952_v63  ;;  %v3953_v23 = vmul.f32 %v12730_v14, %v12730_v14  ;;  %7982 = vrsqrt.f32 %v12732_v29  ;;  %v4277_v60 = vmul.f32 %v12746_v9, %v12688_v51 }
 0x472   : > { %7391 = vmatmul.msk.f32.gmra.mxu1 %vm4384_vm6, %v12571_v37  ;;  %v4261_v35 = vmul.f32 %v12662_v41, %v4260_v56  ;;  %v12820_v22 = vsel %vm4274_vm15, %v12702_v2, %v4271_v3  ;;  %vm4283_vm1 = vweird.f32 %v12746_v9  ;;  %vm4292_vm4 = vweird.f32 %v12732_v29 }
 0x473   : > { %v4016_v59 = vmax.f32 %v3984_v32, 0.0  ;;  %vm4284_vm3 = vmor %vm4282_vm2, %vm4283_vm1 }
 0x474   : > { %v12775_v56 = vsel %vm4264_vm11, %v12662_v41, %v4261_v35  ;;  %v7656_v41 = vld [vmem:[%s15300_s8 + $0x70] sm:$0xff]  ;;  %v12806_v35 = vmul.f32 %v12609_v57, %v12384_v5 }
 0x475   : > { %v12606_v25 = vpop.f32.mrf.mxu2  ;;  %6793 = vmatpush.bf16.msra.mxu1 %v7656_v41 }
 0x476   : > { %v12612_v30 = vpop.f32.mrf.mxu3  ;;  %15714 = vst [vmem:[#allocation75_spill] sm:$0xff] %v12806_v35 }
 0x477   : > { %v12604_v46 = vpop.f32.mrf.mxu1  ;;  %7451 = vmatmul.msk.f32.gmra.mxu3 %vm4384_vm6, %v12599_v8  ;;  %v3908_v12 = vadd.f32 %v12612_v30, %v12606_v25  ;;  %v12766_v30 = vadd.f32 1e-05, %v4016_v59  ;;  %v12772_v32 = vpop.f32.mrf.mxu0 }
 0x478   : > { %v12782_v37 = vpop.eup %7982 }
 0x479   : > { %7360 = vmatmul.msk.f32.gmra.mxu0 %vm4384_vm6, %v12609_v57  ;;  %v3985_v4 = vsub.f32 %v3908_v12, %v3953_v23  ;;  %7984 = vrsqrt.f32 %v12766_v30  ;;  %v4287_v36 = vmul.f32 %v12782_v37, %v12732_v29  ;;  %vm4293_vm0 = vweird.f32 %v12782_v37 }
 0x47a   : > { %7392 = vmatmul.msk.f32.gmra.mxu1 %vm4384_vm6, %v12609_v57  ;;  %vm4294_vm5 = vmor %vm4292_vm4, %vm4293_vm0  ;;  %vm4302_vm8 = vweird.f32 %v12766_v30 }
 0x47b   : > { %v4017_v12 = vmax.f32 %v3985_v4, 0.0  ;;  %v4288_v5 = vmul.f32 %v12782_v37, %v4287_v36 }
 0x47d   : > { %v12649_v40 = vpop.f32.mrf.mxu2  ;;  %v12808_v24 = vadd.f32 1e-05, %v4017_v12 }
 0x47e   : > { %v12655_v8 = vpop.f32.mrf.mxu3 }
 0x47f   : > { %v12647_v54 = vpop.f32.mrf.mxu1  ;;  %7452 = vmatmul.msk.f32.gmra.mxu3 %vm4384_vm6, %v12642_v16  ;;  %v3911_v23 = vadd.f32 %v12655_v8, %v12649_v40  ;;  %v12813_v8 = vadd.f32 %v12406_v15, %v12624_v42  ;;  %v12830_v15 = vpop.eup %7984  ;;  %7986 = vrsqrt.f32 %v12808_v24  ;;  %vm4312_vm11 = vweird.f32 %v12808_v24 }
 0x480   : > { %v3522_v42 = vpop.f32.mrf.mxu0  ;;  %v4297_v36 = vmul.f32 %v12830_v15, %v12766_v30  ;;  %vm4303_vm7 = vweird.f32 %v12830_v15 }
 0x481   : > { %7361 = vmatmul.msk.f32.gmra.mxu0 %vm4384_vm6, %v12652_v49  ;;  %v3955_v12 = vmul.f32 %v12813_v8, %v12813_v8  ;;  %vm4304_vm9 = vmor %vm4302_vm8, %vm4303_vm7 }
 0x482   : > { %7393 = vmatmul.msk.f32.gmra.mxu1 %vm4384_vm6, %v12652_v49 }
 0x485   : > { %v12692_v52 = vpop.f32.mrf.mxu2  ;;  %v12855_v20 = vpop.eup %7986 }
 0x486   : > { %v12698_v16 = vpop.f32.mrf.mxu3  ;;  %vm4313_vm10 = vweird.f32 %v12855_v20 }
 0x487   : > { %v12690_v45 = vpop.f32.mrf.mxu1  ;;  %7453 = vmatmul.msk.f32.gmra.mxu3 %vm4384_vm6, %v12685_v38  ;;  %v3914_v2 = vadd.f32 %v12698_v16, %v12692_v52  ;;  %vm4314_vm12 = vmor %vm4312_vm11, %vm4313_vm10 }
 0x489   : > { %7362 = vmatmul.msk.f32.gmra.mxu0 %vm4384_vm6, %v12695_v53  ;;  %v3987_v16 = vsub.f32 %v3914_v2, %v3955_v12  ;;  %v4307_v2 = vmul.f32 %v12855_v20, %v12808_v24 }
 0x48a   : > { %7394 = vmatmul.msk.f32.gmra.mxu1 %vm4384_vm6, %v12695_v53 }
 0x48d   : > { %v12736_v61 = vpop.f32.mrf.mxu2 }
 0x48e   : > { %v12742_v17 = vpop.f32.mrf.mxu3 }
 0x48f   : > { %v12734_v33 = vpop.f32.mrf.mxu1  ;;  %7454 = vmatmul.msk.f32.gmra.mxu3 %vm4384_vm6, %v12725_v43  ;;  %v4278_v43 = vmul.f32 %v12746_v9, %v4277_v60  ;;  %v3954_v60 = vmul.f32 %v12786_v18, %v12786_v18 }
 0x491   : > { %7363 = vmatmul.msk.f32.gmra.mxu0 %vm4384_vm6, %v12739_v47  ;;  %v4279_v59 = vmul.f32 0.5, %v4278_v43  ;;  %v3986_v40 = vsub.f32 %v3911_v23, %v3954_v60  ;;  %v12846_v60 = vadd.f32 %v12564_v21, %v3522_v42 }
 0x492   : > { %7395 = vmatmul.msk.f32.gmra.mxu1 %vm4384_vm6, %v12739_v47 }
 0x493   : > { %v4280_v41 = vsub.f32 1.5, %v4279_v59  ;;  %v4018_v23 = vmax.f32 %v3986_v40, 0.0  ;;  %v4289_v59 = vmul.f32 0.5, %v4288_v5  ;;  %v3959_v51 = vmul.f32 %v12846_v60, %v12846_v60 }
 0x495   : > { %v12770_v63 = vpop.f32.mrf.mxu2  ;;  %v4281_v3 = vmul.f32 %v12746_v9, %v4280_v41  ;;  %v12853_v52 = vadd.f32 1e-05, %v4018_v23  ;;  %v12859_v41 = vadd.f32 %v12446_v1, %v12675_v6  ;;  %v4290_v5 = vsub.f32 1.5, %v4289_v59  ;;  %v12884_v59 = vpop.f32.mrf.mxu0 }
 0x496   : > { %v12778_v31 = vpop.f32.mrf.mxu3  ;;  %v4019_v6 = vmax.f32 %v3987_v16, 0.0 }
 0x497   : > { %v12768_v25 = vpop.f32.mrf.mxu1  ;;  %7455 = vmatmul.msk.f32.gmra.mxu3 %vm4384_vm6, %v12763_v34  ;;  %v12862_v21 = vsel %vm4284_vm3, %v12746_v9, %v4281_v3  ;;  %v3917_v9 = vadd.f32 %v12742_v17, %v12736_v61  ;;  %7988 = vrsqrt.f32 %v12853_v52  ;;  %v3956_v23 = vmul.f32 %v12859_v41, %v12859_v41 }
 0x498   : > { %v12888_v61 = vmul.f32 %v12695_v53, %v12462_v10  ;;  %v12890_v17 = vadd.f32 1e-05, %v4019_v6  ;;  %vm4322_vm3 = vweird.f32 %v12853_v52 }
 0x499   : > { %7364 = vmatmul.msk.f32.gmra.mxu0 %vm4384_vm6, %v12775_v56 }
 0x49a   : > { %7396 = vmatmul.msk.f32.gmra.mxu1 %vm4384_vm6, %v12775_v56 }
 0x49d   : > { %v12817_v43 = vpop.f32.mrf.mxu2  ;;  %v12907_v53 = vpop.eup %7988 }
 0x49e   : > { %v12823_v57 = vpop.f32.mrf.mxu3  ;;  %vm4323_vm2 = vweird.f32 %v12907_v53 }
 0x49f   : > { %v12815_v4 = vpop.f32.mrf.mxu1  ;;  %7456 = vmatmul.msk.f32.gmra.mxu3 %vm4384_vm6, %v12806_v35  ;;  %v12850_v35 = vmul.f32 %v12652_v49, %v12422_v11  ;;  %v4298_v11 = vmul.f32 %v12830_v15, %v4297_v36  ;;  %v4291_v36 = vmul.f32 %v12782_v37, %v4290_v5  ;;  %v4308_v5 = vmul.f32 %v12855_v20, %v4307_v2  ;;  %vm4324_vm0 = vmor %vm4322_vm3, %vm4323_vm2 }
 0x4a1   : > { %7365 = vmatmul.msk.f32.gmra.mxu0 %vm4384_vm6, %v12820_v22  ;;  %v4299_v3 = vmul.f32 0.5, %v4298_v11  ;;  %v4309_v6 = vmul.f32 0.5, %v4308_v5  ;;  %v5064_v5 = vmul.f32 %v12647_v54, %v11361_v26  ;;  %v5189_v26 = vld [vmem:[%s15299_s7] sm:$0x3]  ;;  %v3923_v54 = vadd.f32 %v12823_v57, %v12817_v43 }
 0x4a2   : > { %7397 = vmatmul.msk.f32.gmra.mxu1 %vm4384_vm6, %v12820_v22  ;;  %v12971_v57 = vperm.slane %v5189_v26, 1 }
 0x4a5   : > { %v3812_v40 = vpop.f32.mrf.mxu2 }
 0x4a6   : > { %v3925_v49 = vpop.f32.mrf.mxu3 }
 0x4a7   : > { %7457 = vmatmul.msk.f32.gmra.mxu3 %vm4384_vm6, %v12850_v35  ;;  %v12869_v42 = vpop.f32.mrf.mxu1  ;;  %v3926_v1 = vadd.f32 %v3925_v49, %v3812_v40  ;;  %v3988_v40 = vsub.f32 %v3917_v9, %v3956_v23  ;;  %v12895_v49 = vadd.f32 %v12486_v62, %v12721_v28  ;;  %v3920_v62 = vadd.f32 %v12778_v31, %v12770_v63 }
 0x4a8   : > { %v4317_v9 = vmul.f32 %v12907_v53, %v12853_v52  ;;  %v12927_v31 = vmul.f32 %v12739_v47, %v12502_v39 }
 0x4a9   : > { %7366 = vmatmul.msk.f32.gmra.mxu0 %vm4384_vm6, %v12862_v21  ;;  %v3991_v12 = vsub.f32 %v3926_v1, %v3959_v51  ;;  %v12901_v51 = vsel %vm4294_vm5, %v12782_v37, %v4291_v36  ;;  %v4300_v1 = vsub.f32 1.5, %v4299_v3  ;;  %v4020_v28 = vmax.f32 %v3988_v40, 0.0  ;;  %v12936_v3 = vpop.f32.mrf.mxu0 }
 0x4aa   : > { %7398 = vmatmul.msk.f32.gmra.mxu1 %vm4384_vm6, %v12862_v21  ;;  %v3957_v29 = vmul.f32 %v12895_v49, %v12895_v49  ;;  %v12934_v36 = vadd.f32 %v12526_v50, %v12772_v32  ;;  %v4318_v30 = vmul.f32 %v12907_v53, %v4317_v9  ;;  %v5062_v50 = vmul.f32 %v12604_v46, %v11320_v55 }
 0x4ab   : > { %v4023_v16 = vmax.f32 %v3991_v12, 0.0  ;;  %v4301_v2 = vmul.f32 %v12830_v15, %v4300_v1  ;;  %v12929_v12 = vadd.f32 1e-05, %v4020_v28  ;;  %vm4332_vm5 = vweird.f32 %v12890_v17 }
 0x4ac   : > { %v3989_v63 = vsub.f32 %v3920_v62, %v3957_v29  ;;  %v3958_v55 = vmul.f32 %v12934_v36, %v12934_v36  ;;  %v7655_v29 = vld [vmem:[%s15300_s8 + $0x68] sm:$0xff]  ;;  %v4319_v9 = vmul.f32 0.5, %v4318_v30 }
 0x4ad   : > { %v12898_v11 = vadd.f32 1e-05, %v4023_v16  ;;  %v4310_v16 = vsub.f32 1.5, %v4309_v6  ;;  %v12943_v39 = vsel %vm4304_vm9, %v12830_v15, %v4301_v2  ;;  %v12975_v2 = vmul.f32 %v12775_v56, %v12542_v19  ;;  %6794 = vmatpush.bf16.msra.mxu1 %v7655_v29 }
 0x4ae   : > { %v12903_v10 = vpop.f32.mrf.mxu3  ;;  %v4021_v32 = vmax.f32 %v3989_v63, 0.0  ;;  %v4320_v19 = vsub.f32 1.5, %v4319_v9  ;;  %v13020_v29 = vmul.f32 %v12820_v22, %v12582_v58  ;;  %vm4342_vm9 = vweird.f32 %v12929_v12 }
 0x4af   : > { %7458 = vmatmul.msk.f32.gmra.mxu3 %vm4384_vm6, %v12888_v61  ;;  %7990 = vrsqrt.f32 %v12898_v11  ;;  %v12919_v37 = vpop.f32.mrf.mxu1  ;;  %v4311_v28 = vmul.f32 %v12855_v20, %v4310_v16  ;;  %v5126_v43 = vsub.f32 %v5062_v50, %v12903_v10  ;;  %v3990_v16 = vsub.f32 %v3923_v54, %v3958_v55 }
 0x4b0   : > { %7992 = vrsqrt.f32 %v12890_v17  ;;  %v12977_v63 = vadd.f32 1e-05, %v4021_v32  ;;  %vm4372_vm15 = vweird.f32 %v12898_v11  ;;  %v4321_v55 = vmul.f32 %v12907_v53, %v4320_v19 }
 0x4b1   : > { %7367 = vmatmul.msk.f32.gmra.mxu0 %vm4384_vm6, %v12901_v51  ;;  %7994 = vrsqrt.f32 %v12929_v12  ;;  %v12988_v30 = vsel %vm4314_vm12, %v12855_v20, %v4311_v28  ;;  %v12991_v56 = vadd.f32 %v12971_v57, %v5126_v43  ;;  %v12996_v24 = vpop.f32.mrf.mxu0  ;;  %v7647_v20 = vld [vmem:[%s15300_s8 + $0x28] sm:$0xff]  ;;  %v4022_v54 = vmax.f32 %v3990_v16, 0.0 }
 0x4b2   : > { %7399 = vmatmul.msk.f32.gmra.mxu1 %vm4384_vm6, %v12901_v51  ;;  %7996 = vrsqrt.f32 %v12977_v63  ;;  %6705 = vmatpush.bf16.msra.mxu0 %v7647_v20  ;;  %vm4352_vm12 = vweird.f32 %v12977_v63 }
 0x4b5   : > { %v7991_v23 = vpop.eup %7990 }
 0x4b6   : > { %v12938_v40 = vpop.eup %7992  ;;  %v4367_v47 = vmul.f32 %v7991_v23, %v12898_v11  ;;  %v4968_v1 = vpop.f32.mrf.mxu3  ;;  %vm4373_vm13 = vweird.f32 %v7991_v23 }
 0x4b7   : > { %7459 = vmatmul.msk.f32.gmra.mxu3 %vm4384_vm6, %v12927_v31  ;;  %v5128_v62 = vsub.f32 %v5064_v5, %v4968_v1  ;;  %v4327_v46 = vmul.f32 %v12938_v40, %v12890_v17  ;;  %v12979_v5 = vpop.f32.mrf.mxu1  ;;  %v12985_v10 = vpop.eup %7994  ;;  %vm4374_vm1 = vmor %vm4372_vm15, %vm4373_vm13  ;;  %vm4333_vm4 = vweird.f32 %v12938_v40 }
 0x4b8   : > { %v4368_v15 = vmul.f32 %v7991_v23, %v4367_v47  ;;  %v13029_v16 = vpop.eup %7996  ;;  %vm4334_vm7 = vmor %vm4332_vm5, %vm4333_vm4  ;;  %vm4343_vm8 = vweird.f32 %v12985_v10 }
 0x4b9   : > { %7368 = vmatmul.msk.f32.gmra.mxu0 %vm4384_vm6, %v12943_v39  ;;  %v12983_v1 = vadd.f32 %v12971_v57, %v5128_v62  ;;  %v4328_v50 = vmul.f32 %v12938_v40, %v4327_v46  ;;  %v4337_v62 = vmul.f32 %v12985_v10, %v12929_v12  ;;  %v7473_v46 = vmul.f32 -1.442695, %v12991_v56  ;;  %vm4344_vm10 = vmor %vm4342_vm9, %vm4343_vm8 }
 0x4ba   : > { %7400 = vmatmul.msk.f32.gmra.mxu1 %vm4384_vm6, %v12943_v39  ;;  %v4369_v6 = vmul.f32 0.5, %v4368_v15  ;;  %v4347_v20 = vmul.f32 %v13029_v16, %v12977_v63  ;;  %vm4353_vm11 = vweird.f32 %v13029_v16 }
 0x4bb   : > { %v7475_v15 = vmul.f32 -1.442695, %v12983_v1  ;;  %v4329_v28 = vmul.f32 0.5, %v4328_v50  ;;  %v4338_v58 = vmul.f32 %v12985_v10, %v4337_v62  ;;  %v13044_v50 = vpop.f32.mrf.mxu0  ;;  %vm4354_vm13 = vmor %vm4352_vm12, %vm4353_vm11 }
 0x4bc   : > { %v4370_v47 = vsub.f32 1.5, %v4369_v6  ;;  %v13022_v6 = vadd.f32 1e-05, %v4022_v54  ;;  %v4348_v17 = vmul.f32 %v13029_v16, %v4347_v20 }
 0x4bd   : > { %7998 = vpow2.f32 %v7475_v15  ;;  %v4330_v19 = vsub.f32 1.5, %v4329_v28  ;;  %v4339_v15 = vmul.f32 0.5, %v4338_v58 }
 0x4be   : > { %v4971_v32 = vpop.f32.mrf.mxu3  ;;  %v4371_v26 = vmul.f32 %v7991_v23, %v4370_v47  ;;  %v13032_v47 = vsel %vm4324_vm0, %v12907_v53, %v4321_v55  ;;  %8000 = vpow2.f32 %v7473_v46  ;;  %v13057_v46 = vmul.f32 %v12862_v21, %v12620_v13 }
 0x4bf   : > { %7460 = vmatmul.msk.f32.gmra.mxu3 %vm4384_vm6, %v12975_v2  ;;  %v13027_v43 = vpop.f32.mrf.mxu1  ;;  %8002 = vrsqrt.f32 %v13022_v6  ;;  %v4331_v54 = vmul.f32 %v12938_v40, %v4330_v19  ;;  %v4340_v13 = vsub.f32 1.5, %v4339_v15 }
 0x4c0   : > { %v13011_v11 = vsel %vm4374_vm1, %v7991_v23, %v4371_v26  ;;  %v15715_v23 = vld [vmem:[#allocation18_spill] sm:$0xff]  ;;  %vm4362_vm1 = vweird.f32 %v13022_v6 }
 0x4c1   : > { %7369 = vmatmul.msk.f32.gmra.mxu0 %vm4384_vm6, %v12988_v30  ;;  %7375 = vmatmul.msk.f32.vlgmr.msra.gmra.mxu2 %vm4384_vm6, %v13011_v11  ;;  %v5068_v9 = vmul.f32 %v12734_v33, %v15715_v23  ;;  %v15716_v33 = vld [vmem:[#allocation16_spill] sm:$0xff]  ;;  %15717 = vst [vmem:[#allocation18_spill] sm:$0xff] %v13057_v46  ;;  %v7653_v23 = vld [vmem:[%s15300_s8 + $0x58] sm:$0xff] }
 0x4c2   : > { %7401 = vmatmul.msk.f32.gmra.mxu1 %vm4384_vm6, %v12988_v30  ;;  %v5066_v52 = vmul.f32 %v12690_v45, %v15716_v33  ;;  %v7654_v45 = vld [vmem:[%s15300_s8 + $0x60] sm:$0xff] }
 0x4c3   : > { %v7999_v26 = vpop.eup %7998  ;;  %6795 = vmatpush.bf16.msra.mxu1 %v7654_v45  ;;  %v13099_v15 = vpop.f32.mrf.mxu0  ;;  %v15720_v45 = vld [vmem:[#allocation22_spill] sm:$0xff] }
 0x4c4   : > { %v5130_v62 = vsub.f32 %v5066_v52, %v4971_v32  ;;  %v8001_v55 = vpop.eup %8000  ;;  %v13063_v32 = vadd.f32 1.0, %v7999_v26  ;;  %v7652_v52 = vld [vmem:[%s15300_s8 + $0x50] sm:$0xff]  ;;  %v4349_v26 = vmul.f32 0.5, %v4348_v17 }
 0x4c6   : > { %v4974_v22 = vpop.f32.mrf.mxu3  ;;  %v13074_v21 = vadd.f32 %v12971_v57, %v5130_v62  ;;  %8004 = vrcp.f32 %v13063_v32  ;;  %v13104_v62 = vmul.f32 %v12901_v51, %v12666_v27  ;;  %v4350_v17 = vsub.f32 1.5, %v4349_v26 }
 0x4c7   : > { %7461 = vmatmul.msk.f32.gmra.mxu3 %vm4384_vm6, %v13020_v29  ;;  %v5132_v53 = vsub.f32 %v5068_v9, %v4974_v22  ;;  %v13068_v9 = vpop.eup %8002  ;;  %v13079_v58 = vpop.f32.mrf.mxu1  ;;  %v13081_v22 = vadd.f32 1.0, %v8001_v55  ;;  %6796 = vmatpush.bf16.msra.mxu1 %v7653_v23  ;;  %v5072_v55 = vmul.f32 %v12815_v4, %v15720_v45  ;;  %v7651_v23 = vld [vmem:[%s15300_s8 + $0x48] sm:$0xff]  ;;  %v15721_v4 = vld [vmem:[#allocation20_spill] sm:$0xff]  ;;  %vm5565_vm4 = vweird.f32 %v13063_v32 }
 0x4c8   : > { %v4357_v33 = vmul.f32 %v13068_v9, %v13022_v6  ;;  %v7477_v20 = vmul.f32 -1.442695, %v13074_v21  ;;  %15719 = vst [vmem:[#allocation16_spill] sm:$0xff] %v13104_v62  ;;  %vm4363_vm15 = vweird.f32 %v13068_v9 }
 0x4c9   : > { %7370 = vmatmul.msk.f32.gmra.mxu0 %vm4384_vm6, %v13032_v47  ;;  %7408 = vmatmul.msk.f32.vlgmr.msrb.gmra.mxu2 %vm4384_vm6, %v12163_v44  ;;  %v13061_v28 = vadd.f32 %v12971_v57, %v5132_v53  ;;  %v13071_v44 = vsel %vm4334_vm7, %v12938_v40, %v4331_v54  ;;  %v4341_v53 = vmul.f32 %v12985_v10, %v4340_v13  ;;  %v15718_v54 = vld [vmem:[#allocation64_spill] sm:$0xff]  ;;  %8006 = vrcp.f32 %v13081_v22  ;;  %vm4364_vm2 = vmor %vm4362_vm1, %vm4363_vm15 }
 0x4ca   : > { %7402 = vmatmul.msk.f32.gmra.mxu1 %vm4384_vm6, %v13032_v47  ;;  %v4358_v27 = vmul.f32 %v13068_v9, %v4357_v33  ;;  %v7650_v33 = vld [vmem:[%s15300_s8 + $0x40] sm:$0xff]  ;;  %vm5535_vm5 = vweird.f32 %v13081_v22 }
 0x4cb   : > { %v7479_v40 = vmul.f32 -1.442695, %v13061_v28  ;;  %6797 = vmatpush.bf16.msra.mxu1 %v7652_v52  ;;  %v13113_v13 = vsel %vm4344_vm10, %v12985_v10, %v4341_v53 }
 0x4cc   : > { %v13118_v12 = vpop.eup %8004 }
 0x4cd   : > { %8008 = vpow2.f32 %v7479_v40  ;;  %v5070_v40 = vmul.f32 %v12768_v25, %v15721_v4  ;;  %v5561_v26 = vmul.f32 %v13118_v12, %v13063_v32  ;;  %v4351_v25 = vmul.f32 %v13029_v16, %v4350_v17 }
 0x4ce   : > { %v4977_v19 = vpop.f32.mrf.mxu3  ;;  %8010 = vpow2.f32 %v7477_v20  ;;  %v13141_v4 = vmul.f32 %v12943_v39, %v12706_v7  ;;  %vm5566_vm3 = vweird.f32 %v13118_v12 }
 0x4cf   : > { %7462 = vmatmul.msk.f32.gmra.mxu3 %vm4384_vm6, %v13057_v46  ;;  %v13126_v52 = vpop.eup %8006  ;;  %v13128_v53 = vpop.f32.mrf.mxu1  ;;  %6798 = vmatpush.bf16.msra.mxu1 %v7651_v23  ;;  %v5134_v45 = vsub.f32 %v5070_v40, %v4977_v19  ;;  %v5562_v17 = vsub.f32 1.0, %v5561_v26  ;;  %v13156_v7 = vsel %vm4354_vm13, %v13029_v16, %v4351_v25  ;;  %v7646_v25 = vld [vmem:[%s15300_s8 + $0x20] sm:$0xff]  ;;  %vm13221_vm7 = vmor %vm5565_vm4, %vm5566_vm3 }
 0x4d0   : > { %15723 = vst [vmem:[#allocation64_spill] sm:$0xff] %v13141_v4  ;;  %v5531_v23 = vmul.f32 %v13126_v52, %v13081_v22  ;;  %v13149_v46 = vpop.f32.mrf.mxu0  ;;  %6706 = vmatpush.bf16.msra.mxu0 %v7646_v25  ;;  %vm5536_vm0 = vweird.f32 %v13126_v52 }
 0x4d1   : > { %7371 = vmatmul.msk.f32.gmra.mxu0 %vm4384_vm6, %v13071_v44  ;;  %7409 = vmatmul.msk.f32.gmra.mxu2 %vm4384_vm6, %v15718_v54  ;;  %v4359_v54 = vmul.f32 0.5, %v4358_v27  ;;  %v13159_v27 = vadd.f32 %v12971_v57, %v5134_v45  ;;  %v13187_v45 = vmul.f32 %v12988_v30, %v12730_v14  ;;  %vm13240_vm8 = vmor %vm5535_vm5, %vm5536_vm0 }
 0x4d2   : > { %7403 = vmatmul.msk.f32.gmra.mxu1 %vm4384_vm6, %v13071_v44 }
 0x4d3   : > { %v8009_v20 = vpop.eup %8008  ;;  %6799 = vmatpush.bf16.msra.mxu1 %v7650_v33  ;;  %v4360_v39 = vsub.f32 1.5, %v4359_v54  ;;  %v5563_v33 = vmul.f32 %v13118_v12, %v5562_v17  ;;  %v7481_v26 = vmul.f32 -1.442695, %v13159_v27  ;;  %15724 = vst [vmem:[#allocation22_spill] sm:$0xff] %v13187_v45 }
 0x4d4   : > { %v13153_v19 = vadd.f32 1.0, %v8009_v20 }
 0x4d5   : > { %v4361_v20 = vmul.f32 %v13068_v9, %v4360_v39  ;;  %v15726_v39 = vld [vmem:[#allocation23_spill] sm:$0xff] }
 0x4d6   : > { %v4980_v51 = vpop.f32.mrf.mxu3  ;;  %8012 = vrcp.f32 %v13153_v19  ;;  %vm5625_vm13 = vweird.f32 %v13153_v19 }
 0x4d7   : > { %7463 = vmatmul.msk.f32.gmra.mxu3 %vm4384_vm6, %v13104_v62  ;;  %v5136_v10 = vsub.f32 %v5072_v55, %v4980_v51  ;;  %v15722_v55 = vld [vmem:[#allocation65_spill] sm:$0xff]  ;;  %v8011_v51 = vpop.eup %8010  ;;  %v13182_v54 = vpop.f32.mrf.mxu1  ;;  %v13196_v17 = vsel %vm4364_vm2, %v13068_v9, %v4361_v20 }
 0x4d8   : > { %v13165_v40 = vadd.f32 1.0, %v8011_v51  ;;  %v15725_v51 = vld [vmem:[#allocation25_spill] sm:$0xff]  ;;  %v13202_v6 = vpop.f32.mrf.mxu0 }
 0x4d9   : > { %7372 = vmatmul.msk.f32.gmra.mxu0 %vm4384_vm6, %v13113_v13  ;;  %7410 = vmatmul.msk.f32.gmra.mxu2 %vm4384_vm6, %v15722_v55  ;;  %v13147_v62 = vadd.f32 %v12971_v57, %v5136_v10  ;;  %v5532_v10 = vsub.f32 1.0, %v5531_v23  ;;  %v5076_v23 = vmul.f32 %v12919_v37, %v15725_v51  ;;  %v5074_v37 = vmul.f32 %v12869_v42, %v15726_v39 }
 0x4da   : > { %7404 = vmatmul.msk.f32.gmra.mxu1 %vm4384_vm6, %v13113_v13  ;;  %8014 = vrcp.f32 %v13165_v40  ;;  %v5541_v42 = vand.u32 2147483648, %v13081_v22  ;;  %v13236_v39 = vmul.f32 %v13032_v47, %v12786_v18  ;;  %vm5595_vm15 = vweird.f32 %v13165_v40 }
 0x4db   : > { %v7483_v16 = vmul.f32 -1.442695, %v13147_v62  ;;  %v5533_v55 = vmul.f32 %v13126_v52, %v5532_v10  ;;  %v5571_v10 = vand.u32 2147483648, %v13063_v32 }
 0x4dc   : > { %v13200_v30 = vpop.eup %8012  ;;  %v5542_v18 = vor.u32 1.1754944e-38, %v5541_v42 }
 0x4dd   : > { %8016 = vpow2.f32 %v7483_v16  ;;  %v5534_v9 = vadd.f32 %v13126_v52, %v5533_v55  ;;  %v5569_v16 = vand.u32 2147483647, %v13063_v32  ;;  %v5539_v55 = vand.u32 2147483647, %v13081_v22 }
 0x4de   : > { %v13161_v63 = vpop.f32.mrf.mxu3  ;;  %8018 = vpow2.f32 %v7481_v26  ;;  %v5621_v51 = vmul.f32 %v13200_v30, %v13153_v19  ;;  %v5572_v26 = vor.u32 1.1754944e-38, %v5571_v10  ;;  %vm5626_vm11 = vweird.f32 %v13200_v30 }
 0x4df   : > { %7464 = vmatmul.msk.f32.gmra.mxu3 %vm4384_vm6, %v13141_v4  ;;  %vm5570_vm9 = vcmp.eq.f32.partialorder %v5569_v16, 8.507059e+37  ;;  %vm5540_vm10 = vcmp.eq.f32.partialorder %v5539_v55, 8.507059e+37  ;;  %vm13305_vm1 = vmor %vm5625_vm13, %vm5626_vm11 }
 0x4e0   : > { %v13215_v20 = vpop.eup %8014  ;;  %v5622_v10 = vsub.f32 1.0, %v5621_v51  ;;  %v15732_v51 = vld [vmem:[#allocation67_spill] sm:$0xff] }
 0x4e1   : > { %7373 = vmatmul.msk.f32.gmra.mxu0 %vm4384_vm6, %v13156_v7  ;;  %7411 = vmatmul.msk.f32.gmra.mxu2 %vm4384_vm6, %v12283_v48  ;;  %v5564_v48 = vadd.f32 %v13118_v12, %v5563_v33  ;;  %vm5596_vm12 = vweird.f32 %v13215_v20 }
 0x4e2   : > { %7405 = vmatmul.msk.f32.gmra.mxu1 %vm4384_vm6, %v13156_v7  ;;  %v5623_v55 = vmul.f32 %v13200_v30, %v5622_v10  ;;  %vm13323_vm2 = vmor %vm5595_vm15, %vm5596_vm12 }
 0x4e3   : > { %v8017_v25 = vpop.eup %8016  ;;  %v5568_v32 = vsel %vm13221_vm7, %v13118_v12, %v5564_v48  ;;  %v5538_v48 = vsel %vm13240_vm8, %v13126_v52, %v5534_v9 }
 0x4e4   : > { %v8019_v12 = vpop.eup %8018  ;;  %v5573_v47 = vsel %vm5570_vm9, %v5572_v26, %v5568_v32  ;;  %v5543_v52 = vsel %vm5540_vm10, %v5542_v18, %v5538_v48  ;;  %v5624_v48 = vadd.f32 %v13200_v30, %v5623_v55 }
 0x4e5   : > { %v13261_v9 = vadd.f32 1.0, %v8019_v12  ;;  %v6478_v16 = vmul.f32 %v5573_v47, %v12983_v1  ;;  %v13276_v1 = vmul.f32 %v13071_v44, %v12813_v8  ;;  %v15733_v12 = vld [vmem:[#allocation30_spill] sm:$0xff]  ;;  %v15734_v8 = vld [vmem:[#allocation27_spill] sm:$0xff]  ;;  %v5631_v47 = vand.u32 2147483648, %v13153_v19 }
 0x4e6   : > { %v4986_v14 = vpop.f32.mrf.mxu3  ;;  %v5078_v44 = vmul.f32 %v12979_v5, %v15734_v8  ;;  %v5601_v5 = vand.u32 2147483648, %v13165_v40 }
 0x4e7   : > { %7465 = vmatmul.msk.f32.gmra.mxu3 %vm4384_vm6, %v13187_v45  ;;  %v5140_v33 = vsub.f32 %v5076_v23, %v4986_v14  ;;  %v5138_v23 = vsub.f32 %v5074_v37, %v13161_v63  ;;  %v15729_v14 = vld [vmem:[#allocation66_spill] sm:$0xff]  ;;  %v5591_v63 = vmul.f32 %v13215_v20, %v13165_v40  ;;  %v13254_v45 = vadd.f32 1.0, %v8017_v25 }
 0x4e8   : > { %v6476_v25 = vmul.f32 %v5543_v52, %v12991_v56  ;;  %v5080_v56 = vmul.f32 %v13027_v43, %v15733_v12  ;;  %v5629_v52 = vand.u32 2147483647, %v13153_v19  ;;  %v5599_v19 = vand.u32 2147483647, %v13165_v40  ;;  %v15741_v40 = vld [vmem:[#allocation34_spill] sm:$0xff] }
 0x4e9   : > { %7374 = vmatmul.msk.f32.gmra.mxu0 %vm4384_vm6, %v13196_v17  ;;  %7412 = vmatmul.msk.f32.gmra.mxu2 %vm4384_vm6, %v15729_v14  ;;  %v13250_v37 = vadd.f32 %v12971_v57, %v5140_v33  ;;  %v13252_v14 = vpop.f32.mrf.mxu1  ;;  %v13257_v4 = vadd.f32 %v12971_v57, %v5138_v23  ;;  %v5592_v33 = vsub.f32 1.0, %v5591_v63  ;;  %8020 = vrcp.f32 %v13254_v45 }
 0x4ea   : > { %7406 = vmatmul.msk.f32.gmra.mxu1 %vm4384_vm6, %v13196_v17  ;;  %8022 = vrcp.f32 %v13261_v9  ;;  %v6540_v23 = vpack.c.bf16 %v6478_v16, %v6476_v25  ;;  %v13319_v12 = vmul.f32 %v13113_v13, %v12859_v41  ;;  %vm5630_vm3 = vcmp.eq.f32.partialorder %v5629_v52, 8.507059e+37 }
 0x4eb   : > { %v7487_v42 = vmul.f32 -1.442695, %v13250_v37  ;;  %v7485_v32 = vmul.f32 -1.442695, %v13257_v4  ;;  %v5593_v26 = vmul.f32 %v13215_v20, %v5592_v33  ;;  %v7645_v33 = vld [vmem:[%s15300_s8 + $0x18] sm:$0xff]  ;;  %v5602_v41 = vor.u32 1.1754944e-38, %v5601_v5 }
 0x4ec   : > { %6707 = vmatpush.bf16.msra.mxu0 %v7645_v33  ;;  %vm5600_vm0 = vcmp.eq.f32.partialorder %v5599_v19, 8.507059e+37  ;;  %vm5685_vm7 = vweird.f32 %v13254_v45  ;;  %vm5655_vm8 = vweird.f32 %v13261_v9 }
 0x4ed   : > { %8024 = vpow2.f32 %v7487_v42  ;;  %v5594_v43 = vadd.f32 %v13215_v20, %v5593_v26  ;;  %v15737_v26 = vld [vmem:[#allocation68_spill] sm:$0xff] }
 0x4ee   : > { %v4989_v22 = vpop.f32.mrf.mxu3  ;;  %8026 = vpow2.f32 %v7485_v32  ;;  %v5628_v32 = vsel %vm13305_vm1, %v13200_v30, %v5624_v48 }
 0x4ef   : > { %7466 = vmatmul.msk.f32.gmra.mxu3 %vm4384_vm6, %v13236_v39  ;;  %v13285_v18 = vpop.eup %8020 }
 0x4f0   : > { %v13299_v42 = vpop.eup %8022  ;;  %vm5686_vm4 = vweird.f32 %v13285_v18 }
 0x4f1   : > { %7413 = vmatmul.msk.f32.gmra.mxu2 %vm4384_vm6, %v15732_v51  ;;  %v13291_v10 = vpop.f32.mrf.mxu1  ;;  %v5681_v51 = vmul.f32 %v13285_v18, %v13254_v45  ;;  %v5651_v48 = vmul.f32 %v13299_v42, %v13261_v9  ;;  %vm5656_vm5 = vweird.f32 %v13299_v42  ;;  %vm13381_vm9 = vmor %vm5685_vm7, %vm5686_vm4 }
 0x4f2   : > { %7407 = vmatmul.msk.f32.gmra.mxu1 %vm4384_vm6, %v13011_v11  ;;  %vm13399_vm10 = vmor %vm5655_vm8, %vm5656_vm5 }
 0x4f3   : > { %v8025_v55 = vpop.eup %8024 }
 0x4f4   : > { %v8027_v30 = vpop.eup %8026  ;;  %v13335_v8 = vadd.f32 1.0, %v8025_v55 }
 0x4f6   : > { %v4992_v63 = vpop.f32.mrf.mxu3  ;;  %8028 = vrcp.f32 %v13335_v8  ;;  %vm5745_vm1 = vweird.f32 %v13335_v8 }
 0x4f7   : > { %7467 = vmatmul.msk.f32.gmra.mxu3 %vm4384_vm6, %v13276_v1  ;;  %v5144_v16 = vsub.f32 %v5080_v56, %v4992_v63  ;;  %v5632_v56 = vor.u32 1.1754944e-38, %v5631_v47 }
 0x4f9   : > { %7414 = vmatmul.msk.f32.gmra.mxu2 %vm4384_vm6, %v15737_v26  ;;  %v13333_v63 = vadd.f32 %v12971_v57, %v5144_v16  ;;  %v5633_v13 = vsel %vm5630_vm3, %v5632_v56, %v5628_v32  ;;  %v5652_v16 = vsub.f32 1.0, %v5651_v48  ;;  %v13346_v25 = vpop.f32.mrf.mxu1  ;;  %v5691_v48 = vand.u32 2147483648, %v13254_v45 }
 0x4fa   : > { %6800 = vmatmul.bf16.vlgmr.msra.gmra.mxu1 %v6540_v23  ;;  %v5142_v23 = vsub.f32 %v5078_v44, %v4989_v22  ;;  %v5598_v22 = vsel %vm13323_vm2, %v13215_v20, %v5594_v43  ;;  %v5682_v44 = vsub.f32 1.0, %v5681_v51  ;;  %v13342_v43 = vadd.f32 1.0, %v8027_v30  ;;  %v15740_v51 = vld [vmem:[#allocation69_spill] sm:$0xff] }
 0x4fb   : > { %v5603_v20 = vsel %vm5600_vm0, %v5602_v41, %v5598_v22  ;;  %v6482_v52 = vmul.f32 %v5633_v13, %v13061_v28  ;;  %v7491_v5 = vmul.f32 -1.442695, %v13333_v63  ;;  %v13357_v28 = vmul.f32 %v13156_v7, %v12895_v49  ;;  %v15742_v49 = vld [vmem:[#allocation33_spill] sm:$0xff] }
 0x4fc   : > { %v13338_v47 = vadd.f32 %v12971_v57, %v5142_v23  ;;  %v6480_v55 = vmul.f32 %v5603_v20, %v13074_v21  ;;  %v5683_v19 = vmul.f32 %v13285_v18, %v5682_v44  ;;  %8030 = vrcp.f32 %v13342_v43  ;;  %v13366_v22 = vpop.eup %8028 }
 0x4fd   : > { %v5653_v23 = vmul.f32 %v13299_v42, %v5652_v16  ;;  %8032 = vpow2.f32 %v7491_v5  ;;  %v5084_v21 = vmul.f32 %v13128_v53, %v15741_v40  ;;  %v5082_v7 = vmul.f32 %v13079_v58, %v15742_v49 }
 0x4fe   : > { %v4995_v33 = vpop.f32.mrf.mxu3  ;;  %v7489_v32 = vmul.f32 -1.442695, %v13338_v47  ;;  %v6542_v26 = vpack.c.bf16 %v6482_v52, %v6480_v55  ;;  %v5684_v56 = vadd.f32 %v13285_v18, %v5683_v19  ;;  %v5689_v41 = vand.u32 2147483647, %v13254_v45  ;;  %v15745_v19 = vld [vmem:[#allocation70_spill] sm:$0xff] }
 0x4ff   : > { %7468 = vmatmul.msk.f32.gmra.mxu3 %vm4384_vm6, %v13319_v12  ;;  %v5654_v53 = vadd.f32 %v13299_v42, %v5653_v23  ;;  %v5661_v20 = vand.u32 2147483648, %v13261_v9  ;;  %v5659_v16 = vand.u32 2147483647, %v13261_v9  ;;  %v5741_v5 = vmul.f32 %v13366_v22, %v13335_v8 }
 0x500   : > { %8034 = vpow2.f32 %v7489_v32  ;;  %v5688_v45 = vsel %vm13381_vm9, %v13285_v18, %v5684_v56  ;;  %v5146_v55 = vsub.f32 %v5082_v7, %v4995_v33  ;;  %v13395_v32 = vmul.f32 %v13196_v17, %v12934_v36 }
 0x501   : > { %7415 = vmatmul.msk.f32.gmra.mxu2 %vm4384_vm6, %v15740_v51  ;;  %v5692_v9 = vor.u32 1.1754944e-38, %v5691_v48  ;;  %v13403_v23 = vpop.f32.mrf.mxu1  ;;  %v5658_v33 = vsel %vm13399_vm10, %v13299_v42, %v5654_v53  ;;  %vm5690_vm11 = vcmp.eq.f32.partialorder %v5689_v41, 8.507059e+37  ;;  %v5662_v17 = vor.u32 1.1754944e-38, %v5661_v20 }
 0x502   : > { %v13375_v44 = vpop.eup %8030  ;;  %vm5660_vm12 = vcmp.eq.f32.partialorder %v5659_v16, 8.507059e+37  ;;  %v5742_v56 = vsub.f32 1.0, %v5741_v5  ;;  %vm5746_vm13 = vweird.f32 %v13366_v22  ;;  %vm5715_vm3 = vweird.f32 %v13342_v43 }
 0x503   : > { %v8033_v52 = vpop.eup %8032  ;;  %v5693_v40 = vsel %vm5690_vm11, %v5692_v9, %v5688_v45  ;;  %v5663_v42 = vsel %vm5660_vm12, %v5662_v17, %v5658_v33  ;;  %v15748_v45 = vld [vmem:[#allocation37_spill] sm:$0xff]  ;;  %vm5716_vm15 = vweird.f32 %v13375_v44  ;;  %v5751_v9 = vand.u32 2147483648, %v13335_v8  ;;  %vm13450_vm2 = vmor %vm5745_vm1, %vm5746_vm13 }
 0x504   : > { %v6486_v48 = vmul.f32 %v5693_v40, %v13147_v62  ;;  %v5743_v20 = vmul.f32 %v13366_v22, %v5742_v56  ;;  %v5088_v5 = vmul.f32 %v13252_v14, %v15748_v45  ;;  %v5749_v14 = vand.u32 2147483647, %v13335_v8  ;;  %vm13472_vm0 = vmor %vm5715_vm3, %vm5716_vm15  ;;  %v15756_v40 = vld [vmem:[#allocation72_spill] sm:$0xff] }
 0x505   : > { %v5721_v17 = vand.u32 2147483648, %v13342_v43  ;;  %v13456_v56 = vmul.f32 %v13011_v11, %v12846_v60  ;;  %v5719_v8 = vand.u32 2147483647, %v13342_v43  ;;  %v7644_v60 = vld [vmem:[%s15300_s8 + $0x10] sm:$0xff] }
 0x506   : > { %v4998_v30 = vpop.f32.mrf.mxu3  ;;  %v8035_v18 = vpop.eup %8034  ;;  %vm5750_vm4 = vcmp.eq.f32.partialorder %v5749_v14, 8.507059e+37  ;;  %6708 = vmatpush.bf16.msra.mxu0 %v7644_v60 }
 0x507   : > { %7469 = vmatmul.msk.f32.gmra.mxu3 %vm4384_vm6, %v13357_v28  ;;  %v5148_v13 = vsub.f32 %v5084_v21, %v4998_v30  ;;  %v13413_v21 = vadd.f32 1.0, %v8033_v52  ;;  %v13416_v30 = vadd.f32 %v12971_v57, %v5146_v55  ;;  %v13420_v7 = vadd.f32 1.0, %v8035_v18  ;;  %15752 = vst [vmem:[#allocation20_spill] sm:$0xff] %v13456_v56 }
 0x508   : > { %vm5720_vm5 = vcmp.eq.f32.partialorder %v5719_v8, 8.507059e+37  ;;  %v15757_v8 = vld [vmem:[#allocation40_spill] sm:$0xff] }
 0x509   : > { %7416 = vmatmul.msk.f32.gmra.mxu2 %vm4384_vm6, %v15745_v19  ;;  %v13411_v36 = vadd.f32 %v12971_v57, %v5148_v13  ;;  %8036 = vrcp.f32 %v13413_v21  ;;  %v6484_v13 = vmul.f32 %v5663_v42, %v13159_v27  ;;  %v7493_v58 = vmul.f32 -1.442695, %v13416_v30  ;;  %v13432_v62 = vpop.f32.mrf.mxu1 }
 0x50a   : > { %6805 = vmatmul.bf16.gmra.mxu1 %v6542_v26  ;;  %v5711_v26 = vmul.f32 %v13375_v44, %v13342_v43  ;;  %8038 = vrcp.f32 %v13420_v7  ;;  %v5744_v27 = vadd.f32 %v13366_v22, %v5743_v20  ;;  %v5752_v43 = vor.u32 1.1754944e-38, %v5751_v9 }
 0x50b   : > { %v7495_v41 = vmul.f32 -1.442695, %v13411_v36  ;;  %v6544_v16 = vpack.c.bf16 %v6486_v48, %v6484_v13  ;;  %vm5805_vm9 = vweird.f32 %v13413_v21  ;;  %vm5775_vm11 = vweird.f32 %v13420_v7 }
 0x50c   : > { %v5712_v53 = vsub.f32 1.0, %v5711_v26  ;;  %v5748_v48 = vsel %vm13450_vm2, %v13366_v22, %v5744_v27 }
 0x50d   : > { %8040 = vpow2.f32 %v7495_v41  ;;  %v15753_v41 = vld [vmem:[#allocation71_spill] sm:$0xff] }
 0x50e   : > { %v5001_v49 = vpop.f32.mrf.mxu3  ;;  %v5713_v52 = vmul.f32 %v13375_v44, %v5712_v53  ;;  %8042 = vpow2.f32 %v7493_v58  ;;  %v5722_v58 = vor.u32 1.1754944e-38, %v5721_v17 }
 0x50f   : > { %7470 = vmatmul.msk.f32.gmra.mxu3 %vm4384_vm6, %v13395_v32  ;;  %v13438_v19 = vpop.eup %8036 }
 0x510   : > { %v5714_v18 = vadd.f32 %v13375_v44, %v5713_v52  ;;  %v13447_v26 = vpop.eup %8038  ;;  %v5801_v53 = vmul.f32 %v13438_v19, %v13413_v21  ;;  %v5753_v52 = vsel %vm5750_vm4, %v5752_v43, %v5748_v48  ;;  %v5092_v48 = vmul.f32 %v13346_v25, %v15757_v8 }
 0x511   : > { %7417 = vmatmul.msk.f32.gmra.mxu2 %vm4384_vm6, %v12521_v0  ;;  %v15749_v0 = vld [vmem:[#allocation35_spill] sm:$0xff]  ;;  %v5771_v13 = vmul.f32 %v13447_v26, %v13420_v7  ;;  %vm5806_vm7 = vweird.f32 %v13438_v19  ;;  %vm5776_vm8 = vweird.f32 %v13447_v26  ;;  %v5811_v43 = vand.u32 2147483648, %v13413_v21 }
 0x512   : > { %v5086_v51 = vmul.f32 %v13182_v54, %v15749_v0  ;;  %v5809_v25 = vand.u32 2147483647, %v13413_v21  ;;  %vm13525_vm10 = vmor %vm5805_vm9, %vm5806_vm7 }
 0x513   : > { %v8041_v42 = vpop.eup %8040  ;;  %v5772_v9 = vsub.f32 1.0, %v5771_v13  ;;  %vm13540_vm12 = vmor %vm5775_vm11, %vm5776_vm8 }
 0x514   : > { %v5150_v54 = vsub.f32 %v5086_v51, %v5001_v49  ;;  %v8043_v22 = vpop.eup %8042  ;;  %v5718_v49 = vsel %vm13472_vm0, %v13375_v44, %v5714_v18  ;;  %v13491_v44 = vpop.f32.mrf.mxu1  ;;  %v6490_v51 = vmul.f32 %v5753_v52, %v13250_v37  ;;  %vm5810_vm13 = vcmp.eq.f32.partialorder %v5809_v25, 8.507059e+37  ;;  %v15764_v25 = vld [vmem:[#allocation41_spill] sm:$0xff] }
 0x515   : > { %v13493_v0 = vadd.f32 1.0, %v8043_v22  ;;  %v5773_v37 = vmul.f32 %v13447_v26, %v5772_v9  ;;  %v15761_v9 = vld [vmem:[#allocation73_spill] sm:$0xff] }
 0x516   : > { %v5004_v55 = vpop.f32.mrf.mxu3  ;;  %v13489_v45 = vadd.f32 %v12971_v57, %v5150_v54  ;;  %v13504_v54 = vpop.f32.mrf.mxu0 }
 0x517   : > { %v5152_v33 = vsub.f32 %v5088_v5, %v5004_v55  ;;  %7471 = vmatmul.msk.f32.gmra.mxu3 %vm4384_vm6, %v13456_v56  ;;  %v5802_v5 = vsub.f32 1.0, %v5801_v53  ;;  %v5723_v55 = vsel %vm5720_vm5, %v5722_v58, %v5718_v49  ;;  %v15758_v53 = vld [vmem:[#allocation38_spill] sm:$0xff]  ;;  %v5774_v49 = vadd.f32 %v13447_v26, %v5773_v37 }
 0x518   : > { %v7497_v14 = vmul.f32 -1.442695, %v13489_v45  ;;  %v5781_v58 = vand.u32 2147483648, %v13420_v7  ;;  %vm5835_vm0 = vweird.f32 %v13493_v0 }
 0x519   : > { %7418 = vmatmul.msk.f32.gmra.mxu2 %vm4384_vm6, %v15753_v41  ;;  %v13484_v20 = vadd.f32 %v12971_v57, %v5152_v33  ;;  %v6488_v33 = vmul.f32 %v5723_v55, %v13257_v4  ;;  %v5803_v17 = vmul.f32 %v13438_v19, %v5802_v5  ;;  %v5090_v4 = vmul.f32 %v13291_v10, %v15758_v53 }
 0x51a   : > { %6810 = vmatmul.bf16.gmra.mxu1 %v6544_v16  ;;  %v13486_v16 = vadd.f32 1.0, %v8041_v42  ;;  %v5782_v37 = vor.u32 1.1754944e-38, %v5781_v58 }
 0x51b   : > { %v7499_v18 = vmul.f32 -1.442695, %v13484_v20  ;;  %v6546_v42 = vpack.c.bf16 %v6490_v51, %v6488_v33  ;;  %v5804_v41 = vadd.f32 %v13438_v19, %v5803_v17  ;;  %v5779_v51 = vand.u32 2147483647, %v13420_v7 }
 0x51c   : > { %8044 = vrcp.f32 %v13486_v16  ;;  %v13523_v52 = vpop.f32.mrf.mxu1  ;;  %v5812_v33 = vor.u32 1.1754944e-38, %v5811_v43  ;;  %vm5865_vm2 = vweird.f32 %v13486_v16 }
 0x51d   : > { %8046 = vrcp.f32 %v13493_v0  ;;  %v5808_v21 = vsel %vm13525_vm10, %v13438_v19, %v5804_v41  ;;  %v5778_v19 = vsel %vm13540_vm12, %v13447_v26, %v5774_v49  ;;  %vm5780_vm15 = vcmp.eq.f32.partialorder %v5779_v51, 8.507059e+37 }
 0x51e   : > { %v5007_v27 = vpop.f32.mrf.mxu3  ;;  %8048 = vpow2.f32 %v7499_v18 }
 0x51f   : > { %8050 = vpow2.f32 %v7497_v14  ;;  %v5154_v10 = vsub.f32 %v5090_v4, %v5007_v27 }
 0x521   : > { %7419 = vmatmul.msk.f32.gmra.mxu2 %vm4384_vm6, %v15756_v40  ;;  %v13553_v40 = vadd.f32 %v12971_v57, %v5154_v10  ;;  %v5094_v10 = vmul.f32 %v13403_v23, %v15764_v25  ;;  %v15765_v23 = vld [vmem:[#allocation43_spill] sm:$0xff] }
 0x522   : > { %v13513_v11 = vpop.eup %8044  ;;  %v7643_v25 = vld [vmem:[%s15300_s8 + $0x8] sm:$0xff] }
 0x523   : > { %v13520_v13 = vpop.eup %8046  ;;  %v5861_v27 = vmul.f32 %v13513_v11, %v13486_v16  ;;  %v7501_v49 = vmul.f32 -1.442695, %v13553_v40  ;;  %vm5866_vm1 = vweird.f32 %v13513_v11  ;;  %6709 = vmatpush.bf16.msra.mxu0 %v7643_v25 }
 0x524   : > { %v8049_v55 = vpop.eup %8048  ;;  %v5831_v17 = vmul.f32 %v13520_v13, %v13493_v0  ;;  %vm5836_vm3 = vweird.f32 %v13520_v13  ;;  %vm13597_vm4 = vmor %vm5865_vm2, %vm5866_vm1 }
 0x525   : > { %v8051_v18 = vpop.eup %8050  ;;  %v13555_v8 = vadd.f32 1.0, %v8049_v55  ;;  %v5862_v53 = vsub.f32 1.0, %v5861_v27  ;;  %v13572_v55 = vpop.f32.mrf.mxu1  ;;  %v5096_v27 = vmul.f32 %v13432_v62, %v15765_v23  ;;  %vm13617_vm5 = vmor %vm5835_vm0, %vm5836_vm3 }
 0x526   : > { %v5010_v60 = vpop.f32.mrf.mxu3  ;;  %v13559_v4 = vadd.f32 1.0, %v8051_v18 }
 0x527   : > { %v5156_v22 = vsub.f32 %v5092_v48, %v5010_v60  ;;  %v13557_v48 = vpop.f32.mrf.mxu0  ;;  %v5783_v60 = vsel %vm5780_vm15, %v5782_v37, %v5778_v19  ;;  %8052 = vrcp.f32 %v13555_v8  ;;  %v5863_v5 = vmul.f32 %v13513_v11, %v5862_v53 }
 0x528   : > { %v6492_v58 = vmul.f32 %v5783_v60, %v13338_v47  ;;  %8054 = vrcp.f32 %v13559_v4  ;;  %v5841_v53 = vand.u32 2147483648, %v13493_v0  ;;  %vm5925_vm11 = vweird.f32 %v13555_v8 }
 0x529   : > { %7420 = vmatmul.msk.f32.gmra.mxu2 %vm4384_vm6, %v15761_v9  ;;  %v13545_v7 = vadd.f32 %v12971_v57, %v5156_v22  ;;  %v5832_v22 = vsub.f32 1.0, %v5831_v17  ;;  %v5864_v47 = vadd.f32 %v13513_v11, %v5863_v5  ;;  %v5869_v17 = vand.u32 2147483647, %v13486_v16 }
 0x52a   : > { %6815 = vmatmul.bf16.gmra.mxu1 %v6546_v42  ;;  %v5813_v42 = vsel %vm5810_vm13, %v5812_v33, %v5808_v21  ;;  %vm5895_vm12 = vweird.f32 %v13559_v4 }
 0x52b   : > { %v7503_v26 = vmul.f32 -1.442695, %v13545_v7  ;;  %v6494_v43 = vmul.f32 %v5813_v42, %v13333_v63  ;;  %v5833_v51 = vmul.f32 %v13520_v13, %v5832_v22  ;;  %vm5870_vm7 = vcmp.eq.f32.partialorder %v5869_v17, 8.507059e+37 }
 0x52d   : > { %8056 = vpow2.f32 %v7503_v26  ;;  %v6548_v21 = vpack.c.bf16 %v6494_v43, %v6492_v58  ;;  %v13579_v18 = vpop.eup %8052  ;;  %v5834_v62 = vadd.f32 %v13520_v13, %v5833_v51  ;;  %v5839_v26 = vand.u32 2147483647, %v13493_v0 }
 0x52e   : > { %v5013_v41 = vpop.f32.mrf.mxu3  ;;  %8058 = vpow2.f32 %v7501_v49  ;;  %v13586_v33 = vpop.eup %8054  ;;  %v5921_v43 = vmul.f32 %v13579_v18, %v13555_v8  ;;  %v15768_v49 = vld [vmem:[#allocation74_spill] sm:$0xff]  ;;  %v5842_v51 = vor.u32 1.1754944e-38, %v5841_v53  ;;  %vm5926_vm9 = vweird.f32 %v13579_v18 }
 0x52f   : > { %v5158_v63 = vsub.f32 %v5094_v10, %v5013_v41  ;;  %v13588_v19 = vpop.f32.mrf.mxu0  ;;  %v5838_v58 = vsel %vm13617_vm5, %v13520_v13, %v5834_v62  ;;  %v5891_v5 = vmul.f32 %v13586_v33, %v13559_v4  ;;  %vm5840_vm8 = vcmp.eq.f32.partialorder %v5839_v26, 8.507059e+37  ;;  %v15771_v13 = vld [vmem:[#allocation44_spill] sm:$0xff]  ;;  %vm13670_vm13 = vmor %vm5925_vm11, %vm5926_vm9 }
 0x530   : > { %v5098_v62 = vmul.f32 %v13491_v44, %v15771_v13  ;;  %vm5896_vm10 = vweird.f32 %v13586_v33 }
 0x531   : > { %7421 = vmatmul.msk.f32.gmra.mxu2 %vm4384_vm6, %v12685_v38  ;;  %v5871_v38 = vand.u32 2147483648, %v13486_v16  ;;  %v13584_v14 = vadd.f32 %v12971_v57, %v5158_v63  ;;  %v5868_v16 = vsel %vm13597_vm4, %v13513_v11, %v5864_v47  ;;  %v5922_v47 = vsub.f32 1.0, %v5921_v43  ;;  %v15772_v43 = vld [vmem:[#allocation46_spill] sm:$0xff]  ;;  %vm13690_vm15 = vmor %vm5895_vm12, %vm5896_vm10 }
 0x533   : > { %v8057_v42 = vpop.eup %8056  ;;  %v5872_v11 = vor.u32 1.1754944e-38, %v5871_v38  ;;  %v7505_v10 = vmul.f32 -1.442695, %v13584_v14 }
 0x534   : > { %v8059_v60 = vpop.eup %8058  ;;  %v13627_v63 = vadd.f32 1.0, %v8057_v42  ;;  %v5892_v42 = vsub.f32 1.0, %v5891_v5  ;;  %v5901_v5 = vand.u32 2147483648, %v13559_v4 }
 0x535   : > { %v5873_v23 = vsel %vm5870_vm7, %v5872_v11, %v5868_v16  ;;  %8060 = vpow2.f32 %v7505_v10 }
 0x536   : > { %v5016_v9 = vpop.f32.mrf.mxu3  ;;  %v6498_v17 = vmul.f32 %v5873_v23, %v13411_v36  ;;  %8062 = vrcp.f32 %v13627_v63  ;;  %v5893_v44 = vmul.f32 %v13586_v33, %v5892_v42  ;;  %vm5985_vm4 = vweird.f32 %v13627_v63 }
 0x537   : > { %v5160_v37 = vsub.f32 %v5096_v27, %v5016_v9  ;;  %v13631_v27 = vadd.f32 1.0, %v8059_v60  ;;  %v13639_v53 = vpop.f32.mrf.mxu0  ;;  %v5923_v60 = vmul.f32 %v13579_v18, %v5922_v47 }
 0x538   : > { %v5894_v47 = vadd.f32 %v13586_v33, %v5893_v44 }
 0x539   : > { %v13608_v22 = vadd.f32 %v12971_v57, %v5160_v37  ;;  %7422 = vmatmul.msk.f32.gmra.mxu2 %vm4384_vm6, %v15768_v49  ;;  %v5843_v37 = vsel %vm5840_vm8, %v5842_v51, %v5838_v58  ;;  %8064 = vrcp.f32 %v13631_v27  ;;  %v5100_v49 = vmul.f32 %v13523_v52, %v15772_v43 }
 0x53a   : > { %6820 = vmatmul.bf16.gmra.mxu1 %v6548_v21  ;;  %v13629_v21 = vpop.f32.mrf.mxu1  ;;  %v6496_v41 = vmul.f32 %v5843_v37, %v13416_v30  ;;  %v5924_v30 = vadd.f32 %v13579_v18, %v5923_v60  ;;  %v5931_v52 = vand.u32 2147483648, %v13555_v8  ;;  %v15777_v60 = vld [vmem:[#allocation2_spill] sm:$0xff]  ;;  %v5898_v43 = vsel %vm13690_vm15, %v13586_v33, %v5894_v47 }
 0x53b   : > { %v7507_v9 = vmul.f32 -1.442695, %v13608_v22  ;;  %v8061_v36 = vpop.eup %8060  ;;  %vm5955_vm7 = vweird.f32 %v13631_v27 }
 0x53c   : > { %v6550_v16 = vpack.c.bf16 %v6498_v17, %v6496_v41  ;;  %v13650_v0 = vpop.eup %8062  ;;  %v13676_v13 = vadd.f32 1.0, %v8061_v36  ;;  %v15776_v41 = vld [vmem:[#allocation75_spill] sm:$0xff] }
 0x53d   : > { %8066 = vpow2.f32 %v7507_v9  ;;  %v5929_v9 = vand.u32 2147483647, %v13555_v8  ;;  %v5981_v37 = vmul.f32 %v13650_v0, %v13627_v63  ;;  %v5928_v8 = vsel %vm13670_vm13, %v13579_v18, %v5924_v30 }
 0x53e   : > { %v5019_v38 = vpop.f32.mrf.mxu3  ;;  %8068 = vrcp.f32 %v13676_v13  ;;  %vm5986_vm3 = vweird.f32 %v13650_v0  ;;  %vm6015_vm12 = vweird.f32 %v13676_v13 }
 0x53f   : > { %v5162_v26 = vsub.f32 %v5098_v62, %v5019_v38  ;;  %v5899_v62 = vand.u32 2147483647, %v13559_v4  ;;  %v5932_v4 = vor.u32 1.1754944e-38, %v5931_v52  ;;  %v13698_v36 = vpop.f32.mrf.mxu0  ;;  %vm5930_vm1 = vcmp.eq.f32.partialorder %v5929_v9, 8.507059e+37  ;;  %vm13746_vm5 = vmor %vm5985_vm4, %vm5986_vm3 }
 0x540   : > { %v5982_v52 = vsub.f32 1.0, %v5981_v37 }
 0x541   : > { %7423 = vmatmul.msk.f32.gmra.mxu2 %vm4384_vm6, %v12763_v34  ;;  %v13655_v11 = vadd.f32 %v12971_v57, %v5162_v26  ;;  %v13657_v34 = vpop.eup %8064  ;;  %v5061_v26 = vmul.f32 %v12884_v59, %v15777_v60  ;;  %v8257_v59 = vld [vmem:[%s15299_s7] sm:$0x3]  ;;  %vm5900_vm2 = vcmp.eq.f32.partialorder %v5899_v62, 8.507059e+37 }
 0x542   : > { %v13659_v58 = vpop.f32.mrf.mxu1  ;;  %v13706_v30 = vperm.slane %v8257_v59, 0  ;;  %v5983_v44 = vmul.f32 %v13650_v0, %v5982_v52  ;;  %vm5956_vm0 = vweird.f32 %v13657_v34 }
 0x543   : > { %v8067_v23 = vpop.eup %8066  ;;  %v7509_v17 = vmul.f32 -1.442695, %v13655_v11  ;;  %vm13761_vm8 = vmor %vm5955_vm7, %vm5956_vm0 }
 0x544   : > { %v13648_v25 = vpop.f32.mrf.mxu2  ;;  %v13696_v18 = vadd.f32 1.0, %v8067_v23  ;;  %v5984_v59 = vadd.f32 %v13650_v0, %v5983_v44  ;;  %v5959_v44 = vand.u32 2147483647, %v13631_v27 }
 0x545   : > { %15773 = vst [vmem:[#allocation65_spill] sm:$0xff] %v13648_v25  ;;  %8070 = vpow2.f32 %v7509_v17 }
 0x546   : > { %v5022_v10 = vpop.f32.mrf.mxu3  ;;  %8072 = vrcp.f32 %v13696_v18  ;;  %vm5960_vm10 = vcmp.eq.f32.partialorder %v5959_v44, 8.507059e+37  ;;  %v15787_v44 = vld [vmem:[#allocation4_spill] sm:$0xff] }
 0x547   : > { %v5164_v51 = vsub.f32 %v5100_v49, %v5022_v10  ;;  %v5902_v49 = vor.u32 1.1754944e-38, %v5901_v5  ;;  %v5933_v10 = vsel %vm5930_vm1, %v5932_v4, %v5928_v8  ;;  %v15780_v8 = vld [vmem:[#allocation48_spill] sm:$0xff]  ;;  %v13734_v52 = vpop.f32.mrf.mxu0  ;;  %vm6045_vm1 = vweird.f32 %v13696_v18 }
 0x548   : > { %v6502_v5 = vmul.f32 %v5933_v10, %v13484_v20  ;;  %v5102_v37 = vmul.f32 %v13572_v55, %v15780_v8  ;;  %v13724_v20 = vpop.eup %8068  ;;  %v15781_v10 = vld [vmem:[#allocation32_spill] sm:$0xff] }
 0x549   : > { %v13684_v42 = vadd.f32 %v12971_v57, %v5164_v51  ;;  %7424 = vmatmul.msk.f32.gmra.mxu2 %vm4384_vm6, %v15776_v41  ;;  %v5903_v41 = vsel %vm5900_vm2, %v5902_v49, %v5898_v43  ;;  %v5961_v49 = vand.u32 2147483648, %v13631_v27  ;;  %vm6016_vm11 = vweird.f32 %v13724_v20 }
 0x54a   : > { %6825 = vmatmul.bf16.gmra.mxu1 %v6550_v16  ;;  %v5951_v16 = vmul.f32 %v13657_v34, %v13631_v27  ;;  %v13717_v60 = vpop.f32.mrf.mxu1  ;;  %v6500_v62 = vmul.f32 %v5903_v41, %v13489_v45  ;;  %vm13824_vm15 = vmor %vm6015_vm12, %vm6016_vm11 }
 0x54b   : > { %v7511_v51 = vmul.f32 -1.442695, %v13684_v42 }
 0x54c   : > { %v4852_v23 = vpop.f32.mrf.mxu2  ;;  %v5952_v33 = vsub.f32 1.0, %v5951_v16  ;;  %v8071_v16 = vpop.eup %8070  ;;  %v6552_v43 = vpack.c.bf16 %v6502_v5, %v6500_v62  ;;  %v5962_v62 = vor.u32 1.1754944e-38, %v5961_v49 }
 0x54d   : > { %v5125_v38 = vsub.f32 %v5061_v26, %v4852_v23  ;;  %8074 = vpow2.f32 %v7511_v51  ;;  %v13727_v55 = vpop.eup %8072  ;;  %v5991_v51 = vand.u32 2147483648, %v13627_v63  ;;  %v6011_v23 = vmul.f32 %v13724_v20, %v13676_v13 }
 0x54e   : > { %v5025_v9 = vpop.f32.mrf.mxu3  ;;  %v5953_v26 = vmul.f32 %v13657_v34, %v5952_v33  ;;  %v5989_v33 = vand.u32 2147483647, %v13627_v63  ;;  %v13752_v8 = vadd.f32 1.0, %v8071_v16  ;;  %v5988_v63 = vsel %vm13746_vm5, %v13650_v0, %v5984_v59 }
 0x54f   : > { %v13713_v47 = vadd.f32 %v13706_v30, %v5125_v38  ;;  %v5166_v4 = vsub.f32 %v5102_v37, %v5025_v9  ;;  %v6041_v9 = vmul.f32 %v13727_v55, %v13696_v18  ;;  %v6012_v16 = vsub.f32 1.0, %v6011_v23 }
 0x550   : > { %v5954_v41 = vadd.f32 %v13657_v34, %v5953_v26  ;;  %vm5990_vm9 = vcmp.eq.f32.partialorder %v5989_v33, 8.507059e+37  ;;  %v13788_v33 = vpop.f32.mrf.mxu0  ;;  %vm6046_vm13 = vweird.f32 %v13727_v55 }
 0x551   : > { %v7472_v17 = vmul.f32 -1.442695, %v13713_v47  ;;  %7425 = vmatmul.msk.f32.gmra.mxu2 %vm4384_vm6, %v12850_v35  ;;  %v5063_v35 = vmul.f32 %v12936_v3, %v15781_v10  ;;  %v13744_v5 = vadd.f32 %v12971_v57, %v5166_v4  ;;  %v5992_v4 = vor.u32 1.1754944e-38, %v5991_v51  ;;  %vm13838_vm2 = vmor %vm6045_vm1, %vm6046_vm13 }
 0x552   : > { %v13772_v27 = vpop.f32.mrf.mxu1  ;;  %v5958_v0 = vsel %vm13761_vm8, %v13657_v34, %v5954_v41  ;;  %v6013_v34 = vmul.f32 %v13724_v20, %v6012_v16 }
 0x553   : > { %8076 = vpow2.f32 %v7472_v17  ;;  %v8075_v38 = vpop.eup %8074  ;;  %v7513_v59 = vmul.f32 -1.442695, %v13744_v5  ;;  %v5993_v10 = vsel %vm5990_vm9, %v5992_v4, %v5988_v63  ;;  %v5963_v3 = vsel %vm5960_vm10, %v5962_v62, %v5958_v0 }
 0x554   : > { %v4855_v45 = vpop.f32.mrf.mxu2  ;;  %8078 = vrcp.f32 %v13752_v8  ;;  %v6506_v41 = vmul.f32 %v5993_v10, %v13545_v7  ;;  %v5065_v63 = vmul.f32 %v12996_v24, %v15787_v44  ;;  %v6014_v7 = vadd.f32 %v13724_v20, %v6013_v34 }
 0x555   : > { %v5127_v37 = vsub.f32 %v5063_v35, %v4855_v45  ;;  %v6042_v35 = vsub.f32 1.0, %v6041_v9  ;;  %v6021_v4 = vand.u32 2147483648, %v13676_v13  ;;  %v6019_v34 = vand.u32 2147483647, %v13676_v13 }
 0x556   : > { %v5028_v23 = vpop.f32.mrf.mxu3  ;;  %vm6075_vm9 = vweird.f32 %v13752_v8 }
 0x557   : > { %v13768_v45 = vadd.f32 %v13706_v30, %v5127_v37  ;;  %v6043_v9 = vmul.f32 %v13727_v55, %v6042_v35  ;;  %vm6020_vm3 = vcmp.eq.f32.partialorder %v6019_v34, 8.507059e+37 }
 0x559   : > { %v8077_v17 = vpop.eup %8076  ;;  %7426 = vmatmul.msk.f32.gmra.mxu2 %vm4384_vm6, %v12888_v61  ;;  %v7474_v51 = vmul.f32 -1.442695, %v13768_v45  ;;  %v15786_v61 = vld [vmem:[#allocation50_spill] sm:$0xff]  ;;  %v6044_v35 = vadd.f32 %v13727_v55, %v6043_v9 }
 0x55a   : > { %6830 = vmatmul.bf16.gmra.mxu1 %v6552_v43  ;;  %v13765_v43 = vadd.f32 1.0, %v8075_v38  ;;  %v13777_v49 = vadd.f32 1.0, %v8077_v17  ;;  %v5104_v38 = vmul.f32 %v13629_v21, %v15786_v61  ;;  %v6504_v17 = vmul.f32 %v5963_v3, %v13553_v40  ;;  %v7642_v21 = vld [vmem:[%s15300_s8] sm:$0xff]  ;;  %v13797_v26 = vpop.eup %8078  ;;  %v15788_v40 = vld [vmem:[#allocation29_spill] sm:$0xff]  ;;  %v15789_v61 = vld [vmem:[#allocation52_spill] sm:$0xff]  ;;  %v13820_v3 = vpop.f32.mrf.mxu1 }
 0x55b   : > { %v5067_v0 = vmul.f32 %v13044_v50, %v15788_v40  ;;  %6710 = vmatpush.bf16.msra.mxu0 %v7642_v21  ;;  %v6071_v13 = vmul.f32 %v13797_v26, %v13752_v8  ;;  %vm6076_vm5 = vweird.f32 %v13797_v26 }
 0x55c   : > { %8080 = vrcp.f32 %v13777_v49  ;;  %v5168_v37 = vsub.f32 %v5104_v38, %v5028_v23  ;;  %v4858_v62 = vpop.f32.mrf.mxu2  ;;  %v5106_v38 = vmul.f32 %v13659_v58, %v15789_v61  ;;  %v6018_v58 = vsel %vm13824_vm15, %v13724_v20, %v6014_v7 }
 0x55d   : > { %8082 = vrcp.f32 %v13765_v43  ;;  %v5129_v23 = vsub.f32 %v5065_v63, %v4858_v62  ;;  %v6022_v63 = vor.u32 1.1754944e-38, %v6021_v4  ;;  %v6048_v20 = vsel %vm13838_vm2, %v13727_v55, %v6044_v35 }
 0x55e   : > { %8084 = vpow2.f32 %v7513_v59  ;;  %v13803_v16 = vadd.f32 %v12971_v57, %v5168_v37  ;;  %v6554_v59 = vpack.c.bf16 %v6506_v41, %v6504_v17  ;;  %v6051_v41 = vand.u32 2147483648, %v13696_v18  ;;  %v5031_v37 = vpop.f32.mrf.mxu3 }
 0x55f   : > { %8086 = vpow2.f32 %v7474_v51  ;;  %v6049_v17 = vand.u32 2147483647, %v13696_v18  ;;  %v5170_v40 = vsub.f32 %v5106_v38, %v5031_v37  ;;  %v13852_v4 = vadd.f32 %v13706_v30, %v5129_v23  ;;  %v13857_v38 = vpop.f32.mrf.mxu0 }
 0x560   : > { %v7515_v9 = vmul.f32 -1.442695, %v13803_v16  ;;  %v6052_v61 = vor.u32 1.1754944e-38, %v6051_v41  ;;  %v6023_v37 = vsel %vm6020_vm3, %v6022_v63, %v6018_v58  ;;  %v15794_v41 = vld [vmem:[#allocation8_spill] sm:$0xff]  ;;  %v15795_v58 = vld [vmem:[#allocation54_spill] sm:$0xff]  ;;  %vm6105_vm4 = vweird.f32 %v13765_v43 }
 0x561   : > { %7427 = vmatmul.msk.f32.gmra.mxu2 %vm4384_vm6, %v12927_v31  ;;  %vm6050_vm0 = vcmp.eq.f32.partialorder %v6049_v17, 8.507059e+37  ;;  %v13862_v35 = vadd.f32 %v12971_v57, %v5170_v40  ;;  %vm5520_vm8 = vweird.f32 %v13777_v49 }
 0x562   : > { %v13807_v24 = vpop.eup %8080  ;;  %8088 = vpow2.f32 %v7515_v9  ;;  %v6053_v55 = vsel %vm6050_vm0, %v6052_v61, %v6048_v20  ;;  %vm13970_vm0 = vmor %vm6075_vm9, %vm6076_vm5 }
 0x563   : > { %v13812_v10 = vpop.eup %8082  ;;  %v5516_v51 = vmul.f32 %v13807_v24, %v13777_v49  ;;  %vm5521_vm7 = vweird.f32 %v13807_v24 }
 0x564   : > { %v8085_v31 = vpop.eup %8084  ;;  %v6101_v50 = vmul.f32 %v13812_v10, %v13765_v43  ;;  %v4861_v9 = vpop.f32.mrf.mxu2  ;;  %vm6106_vm10 = vweird.f32 %v13812_v10  ;;  %vm13905_vm11 = vmor %vm5520_vm8, %vm5521_vm7 }
 0x565   : > { %v8087_v44 = vpop.eup %8086  ;;  %v5517_v7 = vsub.f32 1.0, %v5516_v51  ;;  %v13849_v18 = vadd.f32 1.0, %v8085_v31  ;;  %v5131_v51 = vsub.f32 %v5067_v0, %v4861_v9  ;;  %v7476_v31 = vmul.f32 -1.442695, %v13852_v4  ;;  %vm13942_vm2 = vmor %vm6105_vm4, %vm6106_vm10 }
 0x566   : > { %v13844_v62 = vadd.f32 1.0, %v8087_v44  ;;  %v13869_v44 = vmul.f32 %v13099_v15, %v15794_v41  ;;  %v6102_v63 = vsub.f32 1.0, %v6101_v50  ;;  %v5034_v21 = vpop.f32.mrf.mxu3  ;;  %v6508_v0 = vmul.f32 %v6023_v37, %v13584_v14  ;;  %v13883_v15 = vpop.f32.mrf.mxu1 }
 0x567   : > { %v5518_v23 = vmul.f32 %v13807_v24, %v5517_v7  ;;  %v13874_v17 = vadd.f32 %v13706_v30, %v5131_v51  ;;  %v5524_v51 = vand.u32 2147483647, %v13777_v49  ;;  %vm6135_vm8 = vweird.f32 %v13849_v18 }
 0x568   : > { %8090 = vrcp.f32 %v13844_v62  ;;  %v8089_v34 = vpop.eup %8088  ;;  %v6103_v37 = vmul.f32 %v13812_v10, %v6102_v63  ;;  %vm5550_vm15 = vweird.f32 %v13844_v62 }
 0x569   : > { %7428 = vmatmul.msk.f32.gmra.mxu2 %vm4384_vm6, %v12975_v2  ;;  %8092 = vrcp.f32 %v13849_v18  ;;  %v5108_v2 = vmul.f32 %v13717_v60, %v15795_v58  ;;  %v13879_v20 = vadd.f32 1.0, %v8089_v34  ;;  %v7517_v60 = vmul.f32 -1.442695, %v13862_v35 }
 0x56a   : > { %6835 = vmatmul.bf16.gmra.mxu1 %v6554_v59  ;;  %v6072_v59 = vsub.f32 1.0, %v6071_v13  ;;  %v6510_v13 = vmul.f32 %v6053_v55, %v13608_v22  ;;  %v7478_v50 = vmul.f32 -1.442695, %v13874_v17  ;;  %v5519_v14 = vadd.f32 %v13807_v24, %v5518_v23 }
 0x56b   : > { %v5172_v9 = vsub.f32 %v5108_v2, %v5034_v21  ;;  %8094 = vpow2.f32 %v7476_v31  ;;  %v5526_v55 = vand.u32 2147483648, %v13777_v49  ;;  %v5556_v34 = vand.u32 2147483648, %v13844_v62  ;;  %v13913_v2 = vpop.f32.mrf.mxu0 }
 0x56c   : > { %v6073_v61 = vmul.f32 %v13797_v26, %v6072_v59  ;;  %8096 = vrcp.f32 %v13879_v20  ;;  %v6556_v41 = vpack.c.bf16 %v6510_v13, %v6508_v0  ;;  %v5523_v49 = vsel %vm13905_vm11, %v13807_v24, %v5519_v14 }
 0x56d   : > { %8098 = vpow2.f32 %v7478_v50  ;;  %v13911_v58 = vadd.f32 %v12971_v57, %v5172_v9  ;;  %v6104_v21 = vadd.f32 %v13812_v10, %v6103_v37  ;;  %v5527_v50 = vor.u32 1.1754944e-38, %v5526_v55 }
 0x56e   : > { %v13881_v7 = vpop.eup %8090  ;;  %8100 = vpow2.f32 %v7517_v60  ;;  %v4864_v60 = vpop.f32.mrf.mxu2  ;;  %vm5525_vm13 = vcmp.eq.f32.partialorder %v5524_v51, 8.507059e+37  ;;  %v5557_v31 = vor.u32 1.1754944e-38, %v5556_v34  ;;  %v6074_v51 = vadd.f32 %v13797_v26, %v6073_v61 }
 0x56f   : > { %v5546_v22 = vmul.f32 %v13881_v7, %v13844_v62  ;;  %v13898_v59 = vpop.eup %8092  ;;  %vm5551_vm12 = vweird.f32 %v13881_v7  ;;  %v7519_v13 = vmul.f32 -1.442695, %v13911_v58  ;;  %v5528_v37 = vsel %vm5525_vm13, %v5527_v50, %v5523_v49  ;;  %v13950_v50 = vpop.f32.mrf.mxu1 }
 0x570   : > { %v6131_v0 = vmul.f32 %v13898_v59, %v13849_v18  ;;  %vm13933_vm1 = vmor %vm5550_vm15, %vm5551_vm12  ;;  %v5133_v34 = vsub.f32 %v13869_v44, %v4864_v60  ;;  %v6081_v61 = vand.u32 2147483648, %v13752_v8  ;;  %v6475_v56 = vmul.f32 %v5528_v37, %v13713_v47  ;;  %v15802_v44 = vld [vmem:[#allocation18_spill] sm:$0xff] }
 0x571   : > { %v5547_v23 = vsub.f32 1.0, %v5546_v22  ;;  %7429 = vmatmul.msk.f32.gmra.mxu2 %vm4384_vm6, %v13020_v29  ;;  %v5554_v29 = vand.u32 2147483647, %v13844_v62  ;;  %v8095_v9 = vpop.eup %8094  ;;  %v6109_v22 = vand.u32 2147483647, %v13765_v43  ;;  %8102 = vpow2.f32 %v7519_v13 }
 0x572   : > { %v13928_v14 = vpop.eup %8096  ;;  %v6132_v13 = vsub.f32 1.0, %v6131_v0  ;;  %v15806_v37 = vand.u32 2147483647, %v13752_v8  ;;  %vm6136_vm7 = vweird.f32 %v13898_v59  ;;  %vm6165_vm12 = vweird.f32 %v13879_v20 }
 0x573   : > { %v5548_v63 = vmul.f32 %v13881_v7, %v5547_v23  ;;  %v6111_v23 = vand.u32 2147483648, %v13765_v43  ;;  %v8099_v40 = vpop.eup %8098  ;;  %vm5555_vm3 = vcmp.eq.f32.partialorder %v5554_v29, 8.507059e+37  ;;  %v6108_v43 = vsel %vm13942_vm2, %v13812_v10, %v6104_v21  ;;  %v15803_v29 = vld [vmem:[#allocation56_spill] sm:$0xff]  ;;  %vm14021_vm9 = vmor %vm6135_vm8, %vm6136_vm7 }
 0x574   : > { %v5110_v60 = vmul.f32 %v13772_v27, %v15803_v29  ;;  %vm6110_vm4 = vcmp.eq.f32.partialorder %v6109_v22, 8.507059e+37  ;;  %v13974_v47 = vadd.f32 1.0, %v8099_v40  ;;  %v13982_v27 = vadd.f32 %v13706_v30, %v5133_v34  ;;  %v15809_v29 = vld [vmem:[#allocation10_spill] sm:$0xff] }
 0x575   : > { %v5549_v24 = vadd.f32 %v13881_v7, %v5548_v63  ;;  %v8101_v63 = vpop.eup %8100  ;;  %vm6080_vm5 = vcmp.eq.f32.partialorder %v15806_v37, 8.507059e+37  ;;  %v6133_v40 = vmul.f32 %v13898_v59, %v6132_v13  ;;  %v6139_v13 = vand.u32 2147483647, %v13849_v18 }
 0x576   : > { %v13979_v0 = vadd.f32 1.0, %v8101_v63  ;;  %v7480_v63 = vmul.f32 -1.442695, %v13982_v27  ;;  %vm6166_vm11 = vweird.f32 %v13928_v14 }
 0x577   : > { %v5553_v49 = vsel %vm13933_vm1, %v13881_v7, %v5549_v24  ;;  %v6161_v7 = vmul.f32 %v13928_v14, %v13879_v20  ;;  %v8103_v24 = vpop.eup %8102  ;;  %v14013_v10 = vpop.f32.mrf.mxu1  ;;  %vm14035_vm10 = vcmp.eq.f32.partialorder %v6139_v13, 8.507059e+37  ;;  %vm14071_vm13 = vmor %vm6165_vm12, %vm6166_vm11 }
 0x578   : > { %v5558_v25 = vsel %vm5555_vm3, %v5557_v31, %v5553_v49  ;;  %v6082_v31 = vor.u32 1.1754944e-38, %v6081_v61  ;;  %v15807_v49 = vld [vmem:[#allocation5_spill] sm:$0xff]  ;;  %v4867_v61 = vpop.f32.mrf.mxu2 }
 0x579   : > { %v6477_v55 = vmul.f32 %v5558_v25, %v13768_v45  ;;  %7430 = vmatmul.msk.f32.gmra.mxu2 %vm4384_vm6, %v15802_v44  ;;  %v6112_v25 = vor.u32 1.1754944e-38, %v6111_v23  ;;  %v6078_v45 = vsel %vm13970_vm0, %v13797_v26, %v6074_v51  ;;  %v13987_v23 = vpop.f32.mrf.mxu0  ;;  %v6162_v62 = vsub.f32 1.0, %v6161_v7  ;;  %v15808_v44 = vld [vmem:[#allocation16_spill] sm:$0xff] }
 0x57a   : > { %6840 = vmatmul.bf16.gmra.mxu1 %v6556_v41  ;;  %v13960_v41 = vadd.f32 1.0, %v8095_v9  ;;  %v5037_v9 = vpop.f32.mrf.mxu3  ;;  %v6083_v51 = vsel %vm6080_vm5, %v6082_v31, %v6078_v45  ;;  %v5071_v8 = vmul.f32 %v13149_v46, %v15807_v49  ;;  %v15810_v45 = vld [vmem:[#allocation57_spill] sm:$0xff]  ;;  %vm5610_vm0 = vweird.f32 %v13974_v47 }
 0x57b   : > { %v6539_v21 = vpack.c.bf16 %v6477_v55, %v6475_v56  ;;  %v6113_v22 = vsel %vm6110_vm4, %v6112_v25, %v6108_v43  ;;  %v13990_v56 = vadd.f32 1.0, %v8103_v24  ;;  %v5174_v26 = vsub.f32 %v5110_v60, %v5037_v9 }
 0x57c   : > { %8104 = vrcp.f32 %v13960_v41  ;;  %v6514_v34 = vmul.f32 %v6113_v22, %v13684_v42  ;;  %v6134_v43 = vadd.f32 %v13898_v59, %v6133_v40  ;;  %v6512_v55 = vmul.f32 %v6083_v51, %v13655_v11  ;;  %v15813_v22 = vld [vmem:[#allocation7_spill] sm:$0xff] }
 0x57d   : > { %6711 = vmatmul.bf16.vlgmr.msra.gmra.mxu0 %v6539_v21  ;;  %8106 = vrcp.f32 %v13974_v47  ;;  %v6163_v7 = vmul.f32 %v13928_v14, %v6162_v62  ;;  %v14005_v46 = vadd.f32 %v12971_v57, %v5174_v26  ;;  %v5135_v42 = vsub.f32 %v5071_v8, %v4867_v61 }
 0x57e   : > { %8108 = vrcp.f32 %v13979_v0  ;;  %v14011_v60 = vmul.f32 %v13202_v6, %v15809_v29  ;;  %v6141_v25 = vand.u32 2147483648, %v13849_v18  ;;  %v5112_v21 = vmul.f32 %v13820_v3, %v15810_v45  ;;  %v15818_v29 = vld [vmem:[#allocation58_spill] sm:$0xff] }
 0x57f   : > { %8110 = vrcp.f32 %v13990_v56  ;;  %v6558_v24 = vpack.c.bf16 %v6514_v34, %v6512_v55  ;;  %v7521_v6 = vmul.f32 -1.442695, %v14005_v46  ;;  %v14030_v40 = vmul.f32 %v13504_v54, %v15813_v22 }
 0x580   : > { %8112 = vpow2.f32 %v7480_v63  ;;  %v6138_v18 = vsel %vm14021_vm9, %v13898_v59, %v6134_v43  ;;  %v14040_v62 = vadd.f32 %v13706_v30, %v5135_v42  ;;  %v6164_v51 = vadd.f32 %v13928_v14, %v6163_v7  ;;  %v4870_v7 = vpop.f32.mrf.mxu2  ;;  %v15817_v42 = vld [vmem:[#allocation11_spill] sm:$0xff] }
 0x581   : > { %7431 = vmatmul.msk.f32.gmra.mxu2 %vm4384_vm6, %v15808_v44  ;;  %8114 = vpow2.f32 %v7521_v6  ;;  %v6142_v8 = vor.u32 1.1754944e-38, %v6141_v25  ;;  %v6171_v59 = vand.u32 2147483648, %v13879_v20  ;;  %v14052_v63 = vpop.f32.mrf.mxu0  ;;  %v6169_v61 = vand.u32 2147483647, %v13879_v20  ;;  %v15821_v6 = vld [vmem:[#allocation64_spill] sm:$0xff] }
 0x582   : > { %v14017_v11 = vpop.eup %8104  ;;  %v5040_v37 = vpop.f32.mrf.mxu3  ;;  %15816 = vst [vmem:[#allocation25_spill] sm:$0xff] %v14052_v63  ;;  %v7482_v13 = vmul.f32 -1.442695, %v14040_v62  ;;  %v14063_v44 = vmul.f32 %v13557_v48, %v15817_v42  ;;  %v5114_v25 = vmul.f32 %v13883_v15, %v15818_v29  ;;  %v6168_v48 = vsel %vm14071_vm13, %v13928_v14, %v6164_v51 }
 0x583   : > { %v14026_v31 = vpop.eup %8106  ;;  %v5176_v54 = vsub.f32 %v5112_v21, %v5040_v37  ;;  %v5576_v34 = vmul.f32 %v14017_v11, %v13960_v41  ;;  %v6143_v20 = vsel %vm14035_vm10, %v6142_v8, %v6138_v18  ;;  %v15822_v37 = vld [vmem:[#allocation59_spill] sm:$0xff]  ;;  %v6172_v18 = vor.u32 1.1754944e-38, %v6171_v59  ;;  %v14091_v42 = vpop.f32.mrf.mxu1 }
 0x584   : > { %v14042_v26 = vpop.eup %8108  ;;  %v5606_v43 = vmul.f32 %v14026_v31, %v13974_v47  ;;  %8116 = vpow2.f32 %v7482_v13  ;;  %v14087_v22 = vmul.f32 %v13950_v50, %v15822_v37  ;;  %vm6170_vm15 = vcmp.eq.f32.partialorder %v6169_v61, 8.507059e+37 }
 0x585   : > { %v14046_v49 = vpop.eup %8110  ;;  %v14059_v55 = vadd.f32 %v12971_v57, %v5176_v54  ;;  %v6191_v21 = vmul.f32 %v14042_v26, %v13979_v0  ;;  %v5577_v3 = vsub.f32 1.0, %v5576_v34  ;;  %v5586_v54 = vand.u32 2147483648, %v13960_v41 }
 0x586   : > { %v8113_v9 = vpop.eup %8112  ;;  %v6221_v15 = vmul.f32 %v14046_v49, %v13990_v56  ;;  %v5607_v14 = vsub.f32 1.0, %v5606_v43  ;;  %v5137_v51 = vsub.f32 %v14011_v60, %v4870_v7  ;;  %v6516_v29 = vmul.f32 %v6143_v20, %v13744_v5 }
 0x587   : > { %v8115_v8 = vpop.eup %8114  ;;  %v6173_v45 = vsel %vm6170_vm15, %v6172_v18, %v6168_v48  ;;  %v14094_v63 = vadd.f32 1.0, %v8113_v9  ;;  %v5584_v50 = vand.u32 2147483647, %v13960_v41  ;;  %v5578_v61 = vmul.f32 %v14017_v11, %v5577_v3 }
 0x588   : > { %v6222_v59 = vsub.f32 1.0, %v6221_v15  ;;  %v14097_v34 = vadd.f32 1.0, %v8115_v8  ;;  %vm5580_vm1 = vweird.f32 %v13960_v41  ;;  %v14101_v60 = vor.u32 1.1754944e-38, %v5586_v54  ;;  %v4873_v54 = vpop.f32.mrf.mxu2  ;;  %v15826_v8 = vld [vmem:[#allocation22_spill] sm:$0xff]  ;;  %v15838_v41 = vld [vmem:[#allocation60_spill] sm:$0xff] }
 0x589   : > { %7432 = vmatmul.msk.f32.gmra.mxu2 %vm4384_vm6, %v15821_v6  ;;  %v6192_v6 = vsub.f32 1.0, %v6191_v21  ;;  %v6199_v43 = vand.u32 2147483647, %v13979_v0  ;;  %v6518_v5 = vmul.f32 %v6173_v45, %v13803_v16  ;;  %v6201_v20 = vand.u32 2147483648, %v13979_v0 }
 0x58a   : > { %6845 = vmatmul.bf16.gmra.mxu1 %v6558_v24  ;;  %v7523_v24 = vmul.f32 -1.442695, %v14059_v55  ;;  %v5043_v13 = vpop.f32.mrf.mxu3  ;;  %v8117_v7 = vpop.eup %8116  ;;  %v5608_v21 = vmul.f32 %v14026_v31, %v5607_v14  ;;  %v14108_v9 = vadd.f32 %v13706_v30, %v5137_v51  ;;  %vm5581_vm2 = vweird.f32 %v14017_v11 }
 0x58b   : > { %v5178_v37 = vsub.f32 %v5114_v25, %v5043_v13  ;;  %v6193_v25 = vmul.f32 %v14042_v26, %v6192_v6  ;;  %v14113_v48 = vadd.f32 1.0, %v8117_v7  ;;  %vm14117_vm3 = vcmp.eq.f32.partialorder %v5584_v50, 8.507059e+37  ;;  %vm14145_vm7 = vmor %vm5580_vm1, %vm5581_vm2 }
 0x58c   : > { %8118 = vpow2.f32 %v7523_v24  ;;  %v14115_v24 = vpop.f32.mrf.mxu0  ;;  %v6223_v18 = vmul.f32 %v14046_v49, %v6222_v59  ;;  %v5579_v14 = vadd.f32 %v14017_v11, %v5578_v61  ;;  %vm5611_vm4 = vweird.f32 %v14026_v31 }
 0x58d   : > { %8120 = vrcp.f32 %v14094_v63  ;;  %15823 = vst [vmem:[#allocation23_spill] sm:$0xff] %v14115_v24  ;;  %v14125_v3 = vadd.f32 %v12971_v57, %v5178_v37  ;;  %v5614_v51 = vand.u32 2147483647, %v13974_v47  ;;  %v5609_v13 = vadd.f32 %v14026_v31, %v5608_v21  ;;  %vm14166_vm11 = vmor %vm5610_vm0, %vm5611_vm4 }
 0x58e   : > { %8122 = vrcp.f32 %v14097_v34  ;;  %v6560_v6 = vpack.c.bf16 %v6518_v5, %v6516_v29  ;;  %v7484_v50 = vmul.f32 -1.442695, %v14108_v9  ;;  %v6194_v59 = vadd.f32 %v14042_v26, %v6193_v25  ;;  %v14155_v25 = vpop.f32.mrf.mxu1 }
 0x58f   : > { %8124 = vrcp.f32 %v14113_v48  ;;  %vm6196_vm5 = vweird.f32 %v14042_v26  ;;  %v5616_v37 = vand.u32 2147483648, %v13974_v47  ;;  %v5139_v61 = vsub.f32 %v14030_v40, %v4873_v54  ;;  %v15837_v40 = vld [vmem:[#allocation12_spill] sm:$0xff] }
 0x590   : > { %v6224_v29 = vadd.f32 %v14046_v49, %v6223_v18  ;;  %vm6226_vm8 = vweird.f32 %v14046_v49  ;;  %v7525_v5 = vmul.f32 -1.442695, %v14125_v3  ;;  %vm6195_vm9 = vweird.f32 %v13979_v0 }
 0x591   : > { %7433 = vmatmul.msk.f32.gmra.mxu2 %vm4384_vm6, %v15826_v8  ;;  %vm14158_vm10 = vcmp.eq.f32.partialorder %v6199_v43, 8.507059e+37  ;;  %vm6225_vm12 = vweird.f32 %v13990_v56  ;;  %v5583_v0 = vsel %vm14145_vm7, %v14017_v11, %v5579_v14  ;;  %vm14179_vm13 = vmor %vm6195_vm9, %vm6196_vm5  ;;  %v5613_v47 = vsel %vm14166_vm11, %v14026_v31, %v5609_v13 }
 0x592   : > { %v8119_v15 = vpop.eup %8118  ;;  %v6229_v54 = vand.u32 2147483647, %v13990_v56  ;;  %v6198_v11 = vsel %vm14179_vm13, %v14042_v26, %v6194_v59  ;;  %v6202_v14 = vor.u32 1.1754944e-38, %v6201_v20  ;;  %v5617_v7 = vor.u32 1.1754944e-38, %v5616_v37  ;;  %vm14194_vm15 = vmor %vm6225_vm12, %vm6226_vm8 }
 0x593   : > { %v14134_v45 = vadd.f32 1.0, %v8119_v15  ;;  %v14153_v21 = vpop.eup %8120  ;;  %v6231_v15 = vand.u32 2147483648, %v13990_v56  ;;  %v14199_v31 = vadd.f32 %v13706_v30, %v5139_v61  ;;  %vm5615_vm1 = vcmp.eq.f32.partialorder %v5614_v51, 8.507059e+37 }
 0x594   : > { %v14172_v18 = vpop.eup %8122  ;;  %v6228_v56 = vsel %vm14194_vm15, %v14046_v49, %v6224_v29  ;;  %v5588_v26 = vsel %vm14117_vm3, %v14101_v60, %v5583_v0  ;;  %v5618_v20 = vsel %vm5615_vm1, %v5617_v7, %v5613_v47  ;;  %v5636_v51 = vmul.f32 %v14153_v21, %v14094_v63  ;;  %v14215_v49 = vpop.f32.mrf.mxu0 }
 0x595   : > { %8126 = vrcp.f32 %v14134_v45  ;;  %v14187_v8 = vpop.eup %8124  ;;  %v6203_v24 = vsel %vm14158_vm10, %v6202_v14, %v6198_v11  ;;  %vm6230_vm2 = vcmp.eq.f32.partialorder %v6229_v54, 8.507059e+37  ;;  %v6251_v16 = vmul.f32 %v14172_v18, %v14097_v34 }
 0x596   : > { %8128 = vpow2.f32 %v7484_v50  ;;  %v5666_v13 = vmul.f32 %v14187_v8, %v14113_v48  ;;  %v5046_v50 = vpop.f32.mrf.mxu3  ;;  %v7486_v29 = vmul.f32 -1.442695, %v14199_v31  ;;  %v14231_v0 = vmul.f32 %v14013_v10, %v15838_v41 }
 0x597   : > { %8130 = vpow2.f32 %v7525_v5  ;;  %v6479_v43 = vmul.f32 %v5588_v26, %v13852_v4  ;;  %v6481_v47 = vmul.f32 %v5618_v20, %v13874_v17  ;;  %v5637_v54 = vsub.f32 1.0, %v5636_v51  ;;  %v4876_v26 = vpop.f32.mrf.mxu2 }
 0x598   : > { %v5667_v37 = vsub.f32 1.0, %v5666_v13  ;;  %8132 = vpow2.f32 %v7486_v29  ;;  %v5180_v14 = vsub.f32 %v14087_v22, %v5046_v50  ;;  %vm5640_vm3 = vweird.f32 %v14094_v63 }
 0x599   : > { %7434 = vmatmul.msk.f32.gmra.mxu2 %vm4384_vm6, %v13236_v39  ;;  %v5646_v39 = vand.u32 2147483648, %v14094_v63  ;;  %vm5641_vm0 = vweird.f32 %v14153_v21  ;;  %vm5670_vm4 = vweird.f32 %v14113_v48  ;;  %v5638_v20 = vmul.f32 %v14153_v21, %v5637_v54 }
 0x59a   : > { %6850 = vmatmul.bf16.gmra.mxu1 %v6560_v6  ;;  %v6232_v6 = vor.u32 1.1754944e-38, %v6231_v15  ;;  %v14227_v15 = vmul.f32 %v13588_v19, %v15837_v40  ;;  %v5644_v19 = vand.u32 2147483647, %v14094_v63  ;;  %v14239_v40 = vpop.f32.mrf.mxu1  ;;  %v5668_v17 = vmul.f32 %v14187_v8, %v5667_v37  ;;  %vm14311_vm15 = vmor %vm5640_vm3, %vm5641_vm0 }
 0x59b   : > { %v14213_v59 = vpop.eup %8126  ;;  %v14242_v4 = vor.u32 1.1754944e-38, %v5646_v39  ;;  %v14248_v22 = vadd.f32 %v12971_v57, %v5180_v14  ;;  %v5674_v51 = vand.u32 2147483647, %v14113_v48  ;;  %v5676_v50 = vand.u32 2147483648, %v14113_v48 }
 0x59c   : > { %v6233_v60 = vsel %vm6230_vm2, %v6232_v6, %v6228_v56  ;;  %v6281_v61 = vmul.f32 %v14213_v59, %v14134_v45  ;;  %v8129_v5 = vpop.eup %8128  ;;  %v6520_v56 = vmul.f32 %v6203_v24, %v13862_v35  ;;  %v6252_v6 = vsub.f32 1.0, %v6251_v16 }
 0x59d   : > { %v8131_v7 = vpop.eup %8130  ;;  %v6522_v13 = vmul.f32 %v6233_v60, %v13911_v58  ;;  %v14245_v10 = vadd.f32 1.0, %v8129_v5  ;;  %v6541_v58 = vpack.c.bf16 %v6481_v47, %v6479_v43  ;;  %v6289_v16 = vand.u32 2147483647, %v14134_v45  ;;  %v14271_v43 = vpop.f32.mrf.mxu0 }
 0x59e   : > { %v6282_v11 = vsub.f32 1.0, %v6281_v61  ;;  %v14258_v24 = vadd.f32 1.0, %v8131_v7  ;;  %v6253_v39 = vmul.f32 %v14172_v18, %v6252_v6  ;;  %v7527_v60 = vmul.f32 -1.442695, %v14248_v22  ;;  %v8133_v61 = vpop.eup %8132  ;;  %v5049_v41 = vpop.f32.mrf.mxu3 }
 0x59f   : > { %6716 = vmatmul.bf16.gmra.mxu0 %v6541_v58  ;;  %v6562_v37 = vpack.c.bf16 %v6522_v13, %v6520_v56  ;;  %vm14263_vm5 = vcmp.eq.f32.partialorder %v5644_v19, 8.507059e+37  ;;  %vm5671_vm7 = vweird.f32 %v14187_v8  ;;  %8134 = vrcp.f32 %v14245_v10  ;;  %v15850_v56 = vld [vmem:[#allocation61_spill] sm:$0xff] }
 0x5a0   : > { %v6283_v35 = vmul.f32 %v14213_v59, %v6282_v11  ;;  %v5141_v5 = vsub.f32 %v14063_v44, %v4876_v26  ;;  %vm6286_vm8 = vweird.f32 %v14213_v59  ;;  %v6291_v54 = vand.u32 2147483648, %v14134_v45  ;;  %vm14290_vm11 = vmor %vm5670_vm4, %vm5671_vm7 }
 0x5a1   : > { %7435 = vmatmul.msk.f32.gmra.mxu2 %vm4384_vm6, %v13276_v1  ;;  %v5669_v1 = vadd.f32 %v14187_v8, %v5668_v17  ;;  %8136 = vpow2.f32 %v7527_v60  ;;  %v5639_v11 = vadd.f32 %v14153_v21, %v5638_v20  ;;  %v14278_v14 = vadd.f32 1.0, %v8133_v61  ;;  %v15855_v20 = vld [vmem:[#allocation21_spill] sm:$0xff] }
 0x5a2   : > { %v6284_v47 = vadd.f32 %v14213_v59, %v6283_v35  ;;  %8138 = vrcp.f32 %v14258_v24  ;;  %v14281_v7 = vadd.f32 %v13706_v30, %v5141_v5  ;;  %v6254_v44 = vadd.f32 %v14172_v18, %v6253_v39  ;;  %v14323_v58 = vpop.f32.mrf.mxu1 }
 0x5a3   : > { %vm6255_vm9 = vweird.f32 %v14097_v34  ;;  %vm6256_vm10 = vweird.f32 %v14172_v18  ;;  %vm6285_vm12 = vweird.f32 %v14134_v45  ;;  %v6261_v13 = vand.u32 2147483648, %v14097_v34  ;;  %v15853_v45 = vld [vmem:[#allocation17_spill] sm:$0xff] }
 0x5a4   : > { %v5673_v19 = vsel %vm14290_vm11, %v14187_v8, %v5669_v1  ;;  %vm14301_vm13 = vmor %vm6285_vm12, %vm6286_vm8  ;;  %v7488_v48 = vmul.f32 -1.442695, %v14281_v7  ;;  %v5182_v17 = vsub.f32 %v14231_v0, %v5049_v41  ;;  %v6259_v8 = vand.u32 2147483647, %v14097_v34 }
 0x5a5   : > { %vm5675_vm1 = vcmp.eq.f32.partialorder %v5674_v51, 8.507059e+37  ;;  %v5677_v26 = vor.u32 1.1754944e-38, %v5676_v50  ;;  %v6288_v35 = vsel %vm14301_vm13, %v14213_v59, %v6284_v47  ;;  %v14321_v0 = vpop.eup %8134  ;;  %v5643_v63 = vsel %vm14311_vm15, %v14153_v21, %v5639_v11  ;;  %vm14332_vm2 = vmor %vm6255_vm9, %vm6256_vm10  ;;  %v15849_v47 = vld [vmem:[#allocation13_spill] sm:$0xff] }
 0x5a6   : > { %vm6290_vm3 = vcmp.eq.f32.partialorder %v6289_v16, 8.507059e+37  ;;  %v6292_v59 = vor.u32 1.1754944e-38, %v6291_v54  ;;  %8140 = vrcp.f32 %v14278_v14  ;;  %v6258_v50 = vsel %vm14332_vm2, %v14172_v18, %v6254_v44  ;;  %v5052_v41 = vpop.f32.mrf.mxu3  ;;  %v14359_v44 = vpop.f32.mrf.mxu0 }
 0x5a7   : > { %v8137_v51 = vpop.eup %8136  ;;  %v5678_v39 = vsel %vm5675_vm1, %v5677_v26, %v5673_v19  ;;  %v14341_v21 = vadd.f32 %v12971_v57, %v5182_v17  ;;  %8142 = vpow2.f32 %v7488_v48  ;;  %v5648_v1 = vsel %vm14263_vm5, %v14242_v4, %v5643_v63  ;;  %v15854_v63 = vld [vmem:[#allocation19_spill] sm:$0xff] }
 0x5a8   : > { %v14344_v60 = vpop.eup %8138  ;;  %v6293_v61 = vsel %vm6290_vm3, %v6292_v59, %v6288_v35  ;;  %v14346_v16 = vadd.f32 1.0, %v8137_v51  ;;  %vm6260_vm0 = vcmp.eq.f32.partialorder %v6259_v8, 8.507059e+37  ;;  %v6485_v11 = vmul.f32 %v5678_v39, %v14040_v62 }
 0x5a9   : > { %7436 = vmatmul.msk.f32.gmra.mxu2 %vm4384_vm6, %v13319_v12  ;;  %v4879_v12 = vpop.f32.mrf.mxu2  ;;  %v7529_v18 = vmul.f32 -1.442695, %v14341_v21  ;;  %v5120_v4 = vmul.f32 %v14091_v42, %v15850_v56  ;;  %v6526_v29 = vmul.f32 %v6293_v61, %v14059_v55  ;;  %v6311_v19 = vmul.f32 %v14344_v60, %v14258_v24  ;;  %v15852_v42 = vld [vmem:[#allocation15_spill] sm:$0xff] }
 0x5aa   : > { %6855 = vmatmul.bf16.gmra.mxu1 %v6562_v37  ;;  %v5143_v34 = vsub.f32 %v14227_v15, %v4879_v12  ;;  %v6262_v37 = vor.u32 1.1754944e-38, %v6261_v13  ;;  %v5081_v15 = vmul.f32 %v13639_v53, %v15849_v47  ;;  %8144 = vrcp.f32 %v14346_v16  ;;  %v15851_v53 = vld [vmem:[#allocation14_spill] sm:$0xff] }
 0x5ab   : > { %v5696_v13 = vmul.f32 %v14321_v0, %v14245_v10  ;;  %v14372_v62 = vmul.f32 %v13698_v36, %v15851_v53  ;;  %v6483_v48 = vmul.f32 %v5648_v1, %v13982_v27  ;;  %8146 = vpow2.f32 %v7529_v18 }
 0x5ac   : > { %v14353_v5 = vadd.f32 %v13706_v30, %v5143_v34  ;;  %v6263_v54 = vsel %vm6260_vm0, %v6262_v37, %v6258_v50  ;;  %v14368_v6 = vpop.eup %8140  ;;  %v14378_v55 = vmul.f32 %v13734_v52, %v15852_v42  ;;  %v14382_v8 = vmul.f32 %v13788_v33, %v15853_v45 }
 0x5ad   : > { %v6524_v26 = vmul.f32 %v6263_v54, %v14005_v46  ;;  %v5184_v35 = vsub.f32 %v5120_v4, %v5052_v41  ;;  %v8143_v36 = vpop.eup %8142  ;;  %v14389_v27 = vmul.f32 %v13857_v38, %v15854_v63  ;;  %v14393_v59 = vmul.f32 %v13913_v2, %v15855_v20  ;;  %v15857_v38 = vld [vmem:[#allocation63_spill] sm:$0xff]  ;;  %v14405_v2 = vpop.f32.mrf.mxu1 }
 0x5ae   : > { %v7490_v17 = vmul.f32 -1.442695, %v14353_v5  ;;  %v6543_v52 = vpack.c.bf16 %v6485_v11, %v6483_v48  ;;  %v5697_v33 = vsub.f32 1.0, %v5696_v13  ;;  %v6312_v51 = vsub.f32 1.0, %v6311_v19  ;;  %v14429_v45 = vpop.f32.mrf.mxu0 }
 0x5af   : > { %v5726_v46 = vmul.f32 %v14368_v6, %v14278_v14  ;;  %v6564_v50 = vpack.c.bf16 %v6526_v29, %v6524_v26  ;;  %v14403_v37 = vmul.f32 %v14239_v40, %v15857_v38  ;;  %v14408_v61 = vadd.f32 %v12971_v57, %v5184_v35 }
 0x5b0   : > { %8148 = vpow2.f32 %v7490_v17  ;;  %v14397_v39 = vpop.eup %8144  ;;  %6721 = vmatmul.bf16.gmra.mxu0 %v6543_v52  ;;  %v5704_v18 = vand.u32 2147483647, %v14245_v10  ;;  %v5706_v41 = vand.u32 2147483648, %v14245_v10  ;;  %v14414_v54 = vadd.f32 1.0, %v8143_v36 }
 0x5b1   : > { %7437 = vmatmul.msk.f32.gmra.mxu2 %vm4384_vm6, %v13357_v28  ;;  %v4882_v12 = vpop.f32.mrf.mxu2  ;;  %v15856_v28 = vld [vmem:[#allocation62_spill] sm:$0xff]  ;;  %v6341_v47 = vmul.f32 %v14397_v39, %v14346_v16  ;;  %v8147_v11 = vpop.eup %8146  ;;  %vm5700_vm4 = vweird.f32 %v14245_v10  ;;  %v7531_v40 = vmul.f32 -1.442695, %v14408_v61  ;;  %v6313_v29 = vmul.f32 %v14344_v60, %v6312_v51 }
 0x5b2   : > { %v5122_v34 = vmul.f32 %v14155_v25, %v15856_v28  ;;  %v5145_v1 = vsub.f32 %v5081_v15, %v4882_v12  ;;  %v5055_v25 = vpop.f32.mrf.mxu3  ;;  %v5698_v15 = vmul.f32 %v14321_v0, %v5697_v33  ;;  %v5727_v13 = vsub.f32 1.0, %v5726_v46 }
 0x5b3   : > { %v14423_v19 = vadd.f32 1.0, %v8147_v11  ;;  %v6342_v48 = vsub.f32 1.0, %v6341_v47  ;;  %8150 = vpow2.f32 %v7531_v40  ;;  %vm14431_vm5 = vcmp.eq.f32.partialorder %v5704_v18, 8.507059e+37 }
 0x5b4   : > { %v14419_v56 = vadd.f32 %v13706_v30, %v5145_v1  ;;  %v5186_v4 = vsub.f32 %v5122_v34, %v5055_v25  ;;  %v5707_v35 = vor.u32 1.1754944e-38, %v5706_v41  ;;  %v6319_v36 = vand.u32 2147483647, %v14258_v24 }
 0x5b5   : > { %8152 = vrcp.f32 %v14414_v54  ;;  %vm5701_vm7 = vweird.f32 %v14321_v0  ;;  %v6321_v63 = vand.u32 2147483648, %v14258_v24  ;;  %v5699_v52 = vadd.f32 %v14321_v0, %v5698_v15  ;;  %v14457_v38 = vpop.f32.mrf.mxu1 }
 0x5b6   : > { %v8149_v53 = vpop.eup %8148  ;;  %v7492_v17 = vmul.f32 -1.442695, %v14419_v56  ;;  %v14427_v42 = vadd.f32 %v12971_v57, %v5186_v4  ;;  %8154 = vrcp.f32 %v14423_v19  ;;  %v5728_v12 = vmul.f32 %v14368_v6, %v5727_v13  ;;  %vm14463_vm11 = vmor %vm5700_vm4, %vm5701_vm7 }
 0x5b7   : > { %v14442_v20 = vadd.f32 1.0, %v8149_v53  ;;  %v6314_v46 = vadd.f32 %v14344_v60, %v6313_v29  ;;  %vm6316_vm8 = vweird.f32 %v14344_v60  ;;  %vm6315_vm9 = vweird.f32 %v14258_v24 }
 0x5b8   : > { %8156 = vpow2.f32 %v7492_v17  ;;  %v7533_v33 = vmul.f32 -1.442695, %v14427_v42  ;;  %vm14452_vm10 = vcmp.eq.f32.partialorder %v6319_v36, 8.507059e+37  ;;  %v5734_v28 = vand.u32 2147483647, %v14278_v14  ;;  %vm14477_vm13 = vmor %vm6315_vm9, %vm6316_vm8  ;;  %v15868_v17 = vld [vmem:[#allocation20_spill] sm:$0xff] }
 0x5b9   : > { %7438 = vmatmul.msk.f32.gmra.mxu2 %vm4384_vm6, %v13395_v32  ;;  %v4885_v51 = vpop.f32.mrf.mxu2  ;;  %v6343_v32 = vmul.f32 %v14397_v39, %v6342_v48  ;;  %8158 = vrcp.f32 %v14442_v20  ;;  %v8151_v34 = vpop.eup %8150  ;;  %v6322_v18 = vor.u32 1.1754944e-38, %v6321_v63  ;;  %vm5730_vm12 = vweird.f32 %v14278_v14 }
 0x5ba   : > { %6860 = vmatmul.bf16.gmra.mxu1 %v6564_v50  ;;  %8160 = vpow2.f32 %v7533_v33  ;;  %v5736_v24 = vand.u32 2147483648, %v14278_v14  ;;  %v5147_v41 = vsub.f32 %v14372_v62, %v4885_v51  ;;  %v5703_v25 = vsel %vm14463_vm11, %v14321_v0, %v5699_v52  ;;  %v14518_v51 = vpop.f32.mrf.mxu0 }
 0x5bb   : > { %v14470_v47 = vpop.eup %8152  ;;  %v5729_v11 = vadd.f32 %v14368_v6, %v5728_v12  ;;  %vm5731_vm15 = vweird.f32 %v14368_v6  ;;  %v14483_v40 = vadd.f32 1.0, %v8151_v34  ;;  %v6318_v62 = vsel %vm14477_vm13, %v14344_v60, %v6314_v46 }
 0x5bc   : > { %v14485_v4 = vpop.eup %8154  ;;  %v6344_v0 = vadd.f32 %v14397_v39, %v6343_v32  ;;  %vm6346_vm1 = vweird.f32 %v14397_v39  ;;  %v14493_v15 = vadd.f32 %v13706_v30, %v5147_v41  ;;  %vm14495_vm2 = vcmp.eq.f32.partialorder %v5734_v28, 8.507059e+37  ;;  %vm14512_vm3 = vmor %vm5730_vm12, %vm5731_vm15  ;;  %v5058_v32 = vpop.f32.mrf.mxu3 }
 0x5bd   : > { %v6349_v53 = vand.u32 2147483647, %v14346_v16  ;;  %v6351_v48 = vand.u32 2147483648, %v14346_v16  ;;  %8162 = vrcp.f32 %v14483_v40  ;;  %v5708_v36 = vsel %vm14431_vm5, %v5707_v35, %v5703_v25 }
 0x5be   : > { %v8157_v29 = vpop.eup %8156  ;;  %v5737_v52 = vor.u32 1.1754944e-38, %v5736_v24  ;;  %vm6345_vm0 = vweird.f32 %v14346_v16  ;;  %v7494_v12 = vmul.f32 -1.442695, %v14493_v15  ;;  %v6323_v26 = vsel %vm14452_vm10, %v6322_v18, %v6318_v62 }
 0x5bf   : > { %v14504_v60 = vpop.eup %8158  ;;  %v5733_v35 = vsel %vm14512_vm3, %v14368_v6, %v5729_v11  ;;  %v5756_v16 = vmul.f32 %v14470_v47, %v14414_v54  ;;  %v5766_v28 = vand.u32 2147483648, %v14414_v54  ;;  %v6371_v6 = vmul.f32 %v14485_v4, %v14423_v19 }
 0x5c0   : > { %v8161_v33 = vpop.eup %8160  ;;  %v5786_v46 = vmul.f32 %v14504_v60, %v14442_v20  ;;  %v14541_v34 = vadd.f32 1.0, %v8157_v29  ;;  %v6487_v1 = vmul.f32 %v5708_v36, %v14108_v9  ;;  %vm6350_vm4 = vcmp.eq.f32.partialorder %v6349_v53, 8.507059e+37  ;;  %v14553_v9 = vpop.f32.mrf.mxu1 }
 0x5c1   : > { %7439 = vmatmul.msk.f32.gmra.mxu2 %vm4384_vm6, %v15868_v17  ;;  %vm14527_vm6 = vmor %vm6345_vm0, %vm6346_vm1  ;;  %v6352_v18 = vor.u32 1.1754944e-38, %v6351_v48  ;;  %v5738_v41 = vsel %vm14495_vm2, %v5737_v52, %v5733_v35  ;;  %v14546_v25 = vadd.f32 1.0, %v8161_v33  ;;  %8164 = vpow2.f32 %v7494_v12  ;;  %v4888_v17 = vpop.f32.mrf.mxu2 }
 0x5c2   : > { %v6348_v50 = vsel %vm14527_vm6, %v14397_v39, %v6344_v0  ;;  %v5787_v24 = vsub.f32 1.0, %v5786_v46  ;;  %v5188_v39 = vsub.f32 %v14403_v37, %v5058_v32  ;;  %v6528_v11 = vmul.f32 %v6323_v26, %v14125_v3  ;;  %v14579_v32 = vpop.f32.mrf.mxu0 }
 0x5c3   : > { %v14549_v10 = vpop.eup %8162  ;;  %v6353_v62 = vsel %vm6350_vm4, %v6352_v18, %v6348_v50  ;;  %v5757_v0 = vsub.f32 1.0, %v5756_v16  ;;  %v5764_v29 = vand.u32 2147483647, %v14414_v54  ;;  %v14555_v53 = vor.u32 1.1754944e-38, %v5766_v28 }
 0x5c4   : > { %v6372_v48 = vsub.f32 1.0, %v6371_v6  ;;  %v6401_v13 = vmul.f32 %v14549_v10, %v14483_v40  ;;  %8166 = vrcp.f32 %v14541_v34  ;;  %v6489_v37 = vmul.f32 %v5738_v41, %v14199_v31 }
 0x5c5   : > { %vm5760_vm5 = vweird.f32 %v14414_v54  ;;  %vm5761_vm7 = vweird.f32 %v14470_v47  ;;  %v6379_v3 = vand.u32 2147483647, %v14423_v19  ;;  %v5788_v36 = vmul.f32 %v14504_v60, %v5787_v24 }
 0x5c6   : > { %v6530_v63 = vmul.f32 %v6353_v62, %v14248_v22  ;;  %vm6375_vm8 = vweird.f32 %v14423_v19  ;;  %v6402_v52 = vsub.f32 1.0, %v6401_v13  ;;  %8168 = vrcp.f32 %v14546_v25  ;;  %vm14629_vm3 = vmor %vm5760_vm5, %vm5761_vm7 }
 0x5c7   : > { %v14569_v12 = vadd.f32 %v12971_v57, %v5188_v39  ;;  %v5758_v31 = vmul.f32 %v14470_v47, %v5757_v0  ;;  %v6381_v33 = vand.u32 2147483648, %v14423_v19  ;;  %v5794_v26 = vand.u32 2147483647, %v14442_v20  ;;  %v8165_v14 = vpop.eup %8164 }
 0x5c8   : > { %v5796_v35 = vand.u32 2147483648, %v14442_v20  ;;  %v6373_v16 = vmul.f32 %v14485_v4, %v6372_v48  ;;  %vm5791_vm9 = vweird.f32 %v14504_v60  ;;  %v6403_v22 = vmul.f32 %v14549_v10, %v6402_v52 }
 0x5c9   : > { %v7535_v46 = vmul.f32 -1.442695, %v14569_v12  ;;  %vm14581_vm10 = vcmp.eq.f32.partialorder %v5764_v29, 8.507059e+37  ;;  %v5789_v50 = vadd.f32 %v14504_v60, %v5788_v36  ;;  %vm6406_vm11 = vweird.f32 %v14549_v10 }
 0x5ca   : > { %v14587_v28 = vadd.f32 1.0, %v8165_v14  ;;  %v6545_v6 = vpack.c.bf16 %v6489_v37, %v6487_v1  ;;  %v14589_v18 = vpop.eup %8166  ;;  %v6404_v24 = vadd.f32 %v14549_v10, %v6403_v22  ;;  %v6566_v41 = vpack.c.bf16 %v6530_v63, %v6528_v11 }
 0x5cb   : > { %8170 = vpow2.f32 %v7535_v46  ;;  %v5149_v39 = vsub.f32 %v14378_v55, %v4888_v17  ;;  %v5759_v62 = vadd.f32 %v14470_v47, %v5758_v31  ;;  %vm5790_vm12 = vweird.f32 %v14442_v20  ;;  %v4891_v20 = vpop.f32.mrf.mxu2 }
 0x5cc   : > { %v6411_v0 = vand.u32 2147483648, %v14483_v40  ;;  %8172 = vrcp.f32 %v14587_v28  ;;  %6726 = vmatmul.bf16.gmra.mxu0 %v6545_v6  ;;  %v14597_v29 = vpop.eup %8168  ;;  %v6374_v1 = vadd.f32 %v14485_v4, %v6373_v16  ;;  %vm6376_vm13 = vweird.f32 %v14485_v4  ;;  %vm14603_vm15 = vmor %vm5790_vm12, %vm5791_vm9  ;;  %6865 = vmatmul.bf16.gmra.mxu1 %v6566_v41 }
 0x5cd   : > { %vm6405_vm1 = vweird.f32 %v14483_v40  ;;  %v6409_v55 = vand.u32 2147483647, %v14483_v40  ;;  %v6382_v48 = vor.u32 1.1754944e-38, %v6381_v33  ;;  %v5793_v13 = vsel %vm14603_vm15, %v14504_v60, %v5789_v50  ;;  %v14623_v40 = vpop.f32.mrf.mxu1  ;;  %vm14644_vm6 = vmor %vm6375_vm8, %vm6376_vm13 }
 0x5ce   : > { %vm14614_vm2 = vmor %vm6405_vm1, %vm6406_vm11  ;;  %v5816_v37 = vmul.f32 %v14589_v18, %v14541_v34  ;;  %v14621_v36 = vadd.f32 %v13706_v30, %v5149_v39  ;;  %vm5795_vm0 = vcmp.eq.f32.partialorder %v5794_v26, 8.507059e+37  ;;  %v5797_v63 = vor.u32 1.1754944e-38, %v5796_v35  ;;  %v14669_v39 = vpop.f32.mrf.mxu0 }
 0x5cf   : > { %v6408_v52 = vsel %vm14614_vm2, %v14549_v10, %v6404_v24  ;;  %v5151_v31 = vsub.f32 %v14382_v8, %v4891_v20  ;;  %v5763_v33 = vsel %vm14629_vm3, %v14470_v47, %v5759_v62  ;;  %v6412_v26 = vor.u32 1.1754944e-38, %v6411_v0 }
 0x5d0   : > { %v6431_v35 = vmul.f32 %v14597_v29, %v14546_v25  ;;  %v7496_v10 = vmul.f32 -1.442695, %v14621_v36  ;;  %v6378_v8 = vsel %vm14644_vm6, %v14485_v4, %v6374_v1  ;;  %v5798_v47 = vsel %vm5795_vm0, %v5797_v63, %v5793_v13 }
 0x5d1   : > { %v8171_v14 = vpop.eup %8170  ;;  %vm6410_vm4 = vcmp.eq.f32.partialorder %v6409_v55, 8.507059e+37  ;;  %v14655_v16 = vadd.f32 %v13706_v30, %v5151_v31  ;;  %v5817_v50 = vsub.f32 1.0, %v5816_v37  ;;  %v5768_v24 = vsel %vm14581_vm10, %v14555_v53, %v5763_v33 }
 0x5d2   : > { %v14657_v22 = vpop.eup %8172  ;;  %v6413_v46 = vsel %vm6410_vm4, %v6412_v26, %v6408_v52  ;;  %v14659_v6 = vadd.f32 1.0, %v8171_v14  ;;  %8174 = vpow2.f32 %v7496_v10  ;;  %vm6380_vm5 = vcmp.eq.f32.partialorder %v6379_v3, 8.507059e+37 }
 0x5d3   : > { %v5846_v4 = vmul.f32 %v14657_v22, %v14587_v28  ;;  %v7498_v41 = vmul.f32 -1.442695, %v14655_v16  ;;  %v6383_v62 = vsel %vm6380_vm5, %v6382_v48, %v6378_v8  ;;  %v6493_v0 = vmul.f32 %v5798_v47, %v14353_v5  ;;  %v4894_v19 = vpop.f32.mrf.mxu2 }
 0x5d4   : > { %v6432_v1 = vsub.f32 1.0, %v6431_v35  ;;  %8176 = vrcp.f32 %v14659_v6  ;;  %v6534_v11 = vmul.f32 %v6413_v46, %v14408_v61  ;;  %v5824_v53 = vand.u32 2147483647, %v14541_v34 }
 0x5d5   : > { %v5847_v57 = vsub.f32 1.0, %v5846_v4  ;;  %8178 = vpow2.f32 %v7498_v41  ;;  %v6491_v3 = vmul.f32 %v5768_v24, %v14281_v7  ;;  %v5818_v55 = vmul.f32 %v14589_v18, %v5817_v50  ;;  %v14688_v63 = vpop.f32.mrf.mxu1 }
 0x5d6   : > { %vm5820_vm7 = vweird.f32 %v14541_v34  ;;  %v5153_v20 = vsub.f32 %v14389_v27, %v4894_v19  ;;  %v6532_v5 = vmul.f32 %v6383_v62, %v14341_v21  ;;  %v5826_v48 = vand.u32 2147483648, %v14541_v34 }
 0x5d7   : > { %vm6435_vm8 = vweird.f32 %v14546_v25  ;;  %v5848_v61 = vmul.f32 %v14657_v22, %v5847_v57  ;;  %v6433_v17 = vmul.f32 %v14597_v29, %v6432_v1  ;;  %v5854_v37 = vand.u32 2147483647, %v14587_v28  ;;  %v14730_v1 = vpop.f32.mrf.mxu0 }
 0x5d8   : > { %v8175_v13 = vpop.eup %8174  ;;  %v6547_v7 = vpack.c.bf16 %v6493_v0, %v6491_v3  ;;  %v14686_v60 = vadd.f32 %v13706_v30, %v5153_v20  ;;  %vm14690_vm9 = vcmp.eq.f32.partialorder %v5824_v53, 8.507059e+37  ;;  %vm5851_vm10 = vweird.f32 %v14657_v22 }
 0x5d9   : > { %v5849_v21 = vadd.f32 %v14657_v22, %v5848_v61  ;;  %v14696_v52 = vadd.f32 1.0, %v8175_v13  ;;  %v6568_v31 = vpack.c.bf16 %v6534_v11, %v6532_v5  ;;  %v5819_v54 = vadd.f32 %v14589_v18, %v5818_v55 }
 0x5da   : > { %v8177_v33 = vpop.eup %8176  ;;  %vm5821_vm11 = vweird.f32 %v14589_v18  ;;  %v5856_v26 = vand.u32 2147483648, %v14587_v28  ;;  %v7500_v35 = vmul.f32 -1.442695, %v14686_v60  ;;  %v6439_v14 = vand.u32 2147483647, %v14546_v25 }
 0x5db   : > { %v8179_v10 = vpop.eup %8178  ;;  %vm5850_vm12 = vweird.f32 %v14587_v28  ;;  %v6461_v8 = vmul.f32 %v8177_v33, %v14659_v6  ;;  %8180 = vrcp.f32 %v14696_v52  ;;  %v6434_v47 = vadd.f32 %v14597_v29, %v6433_v17  ;;  %vm14721_vm2 = vmor %vm5820_vm7, %vm5821_vm11  ;;  %v4897_v0 = vpop.f32.mrf.mxu2 }
 0x5dc   : > { %vm6436_vm13 = vweird.f32 %v14597_v29  ;;  %v6441_v46 = vand.u32 2147483648, %v14546_v25  ;;  %vm14711_vm15 = vmor %vm5850_vm12, %vm5851_vm10  ;;  %vm14715_vm1 = vcmp.eq.f32.partialorder %v5854_v37, 8.507059e+37  ;;  %6731 = vmatmul.bf16.gmra.mxu0 %v6547_v7  ;;  %v14728_v62 = vadd.f32 1.0, %v8179_v10  ;;  %6870 = vmatmul.bf16.gmra.mxu1 %v6568_v31 }
 0x5dd   : > { %v5853_v4 = vsel %vm14711_vm15, %v14657_v22, %v5849_v21  ;;  %v6462_v41 = vsub.f32 1.0, %v6461_v8  ;;  %8182 = vpow2.f32 %v7500_v35  ;;  %v5823_v34 = vsel %vm14721_vm2, %v14589_v18, %v5819_v54  ;;  %vm14741_vm3 = vmor %vm6435_vm8, %vm6436_vm13  ;;  %v14763_v7 = vpop.f32.mrf.mxu1  ;;  %v15893_v8 = vld [vmem:[#allocation24_spill] sm:$0xff] }
 0x5de   : > { %v5857_v11 = vor.u32 1.1754944e-38, %v5856_v26  ;;  %v6471_v53 = vand.u32 2147483648, %v14659_v6  ;;  %v5155_v57 = vsub.f32 %v14393_v59, %v4897_v0  ;;  %vm6466_vm0 = vweird.f32 %v8177_v33 }
 0x5df   : > { %v6463_v19 = vmul.f32 %v8177_v33, %v6462_v41  ;;  %v6469_v3 = vand.u32 2147483647, %v14659_v6  ;;  %8184 = vrcp.f32 %v14728_v62  ;;  %v5827_v18 = vor.u32 1.1754944e-38, %v5826_v48 }
 0x5e0   : > { %v6438_v55 = vsel %vm14741_vm3, %v14597_v29, %v6434_v47  ;;  %v5858_v59 = vsel %vm14715_vm1, %v5857_v11, %v5853_v4  ;;  %v14753_v25 = vadd.f32 %v13706_v30, %v5155_v57  ;;  %vm6440_vm6 = vcmp.eq.f32.partialorder %v6439_v14, 8.507059e+37 }
 0x5e1   : > { %v14755_v20 = vpop.eup %8180  ;;  %v6442_v5 = vor.u32 1.1754944e-38, %v6441_v46  ;;  %v6464_v61 = vadd.f32 %v8177_v33, %v6463_v19  ;;  %vm6465_vm4 = vweird.f32 %v14659_v6  ;;  %v5828_v48 = vsel %vm14690_vm9, %v5827_v18, %v5823_v34  ;;  %v15895_v18 = vld [vmem:[#allocation25_spill] sm:$0xff] }
 0x5e2   : > { %vm6467_vm5 = vmor %vm6465_vm4, %vm6466_vm0  ;;  %v6472_v13 = vor.u32 1.1754944e-38, %v6471_v53  ;;  %v5876_v29 = vmul.f32 %v14755_v20, %v14696_v52  ;;  %v7502_v17 = vmul.f32 -1.442695, %v14753_v25  ;;  %v6497_v31 = vmul.f32 %v5858_v59, %v14493_v15 }
 0x5e3   : > { %v8183_v37 = vpop.eup %8182  ;;  %v6443_v21 = vsel %vm6440_vm6, %v6442_v5, %v6438_v55  ;;  %v6468_v54 = vsel %vm6467_vm5, %v8177_v33, %v6464_v61  ;;  %vm6470_vm7 = vcmp.eq.f32.partialorder %v6469_v3, 8.507059e+37  ;;  %v4900_v14 = vpop.f32.mrf.mxu2  ;;  %v5093_v47 = vmul.f32 %v13987_v23, %v15893_v8  ;;  %v15894_v3 = vld [vmem:[#allocation26_spill] sm:$0xff]  ;;  %v15898_v8 = vld [vmem:[#allocation28_spill] sm:$0xff] }
 0x5e4   : > { %v6473_v26 = vsel %vm6470_vm7, %v6472_v13, %v6468_v54  ;;  %v5877_v6 = vsub.f32 1.0, %v5876_v29  ;;  %v14766_v35 = vadd.f32 1.0, %v8183_v37  ;;  %8186 = vpow2.f32 %v7502_v17  ;;  %v14775_v33 = vpop.f32.mrf.mxu0 }
 0x5e5   : > { %v8185_v27 = vpop.eup %8184  ;;  %v6538_v10 = vmul.f32 %v6473_v26, %v14569_v12  ;;  %v6495_v46 = vmul.f32 %v5828_v48, %v14419_v56  ;;  %v6536_v15 = vmul.f32 %v6443_v21, %v14427_v42  ;;  %v5157_v41 = vsub.f32 %v5093_v47, %v4900_v14  ;;  %v14793_v59 = vpop.f32.mrf.mxu1  ;;  %v15899_v47 = vld [vmem:[#allocation23_spill] sm:$0xff] }
 0x5e6   : > { %v5906_v50 = vmul.f32 %v8185_v27, %v14728_v62  ;;  %8188 = vrcp.f32 %v14766_v35  ;;  %v5878_v24 = vmul.f32 %v14755_v20, %v5877_v6  ;;  %vm5911_vm8 = vweird.f32 %v8185_v27 }
 0x5e7   : > { %v6549_v4 = vpack.c.bf16 %v6497_v31, %v6495_v46  ;;  %v6570_v12 = vpack.c.bf16 %v6538_v10, %v6536_v15  ;;  %v14779_v23 = vadd.f32 %v13706_v30, %v5157_v41  ;;  %vm5910_vm9 = vweird.f32 %v14728_v62 }
 0x5e8   : > { %v5907_v28 = vsub.f32 1.0, %v5906_v50  ;;  %v5914_v56 = vand.u32 2147483647, %v14728_v62  ;;  %v5916_v42 = vand.u32 2147483648, %v14728_v62  ;;  %v5879_v53 = vadd.f32 %v14755_v20, %v5878_v24  ;;  %vm14797_vm11 = vmor %vm5910_vm9, %vm5911_vm8  ;;  %v15900_v62 = vld [vmem:[#allocation31_spill] sm:$0xff] }
 0x5e9   : > { %vm5881_vm10 = vweird.f32 %v14755_v20  ;;  %v7504_v22 = vmul.f32 -1.442695, %v14779_v23  ;;  %v5095_v55 = vmul.f32 %v15895_v18, %v15894_v3  ;;  %v5886_v5 = vand.u32 2147483648, %v14696_v52 }
 0x5ea   : > { %v8187_v0 = vpop.eup %8186  ;;  %v5908_v34 = vmul.f32 %v8185_v27, %v5907_v28  ;;  %vm5880_vm12 = vweird.f32 %v14696_v52  ;;  %v5884_v48 = vand.u32 2147483647, %v14696_v52  ;;  %v5917_v29 = vor.u32 1.1754944e-38, %v5916_v42 }
 0x5eb   : > { %v14784_v11 = vadd.f32 1.0, %v8187_v0  ;;  %v4903_v61 = vpop.f32.mrf.mxu2  ;;  %vm5882_vm13 = vmor %vm5880_vm12, %vm5881_vm10  ;;  %vm5915_vm15 = vcmp.eq.f32.partialorder %v5914_v56, 8.507059e+37  ;;  %v5887_v31 = vor.u32 1.1754944e-38, %v5886_v5  ;;  %vm5940_vm4 = vweird.f32 %v14766_v35 }
 0x5ec   : > { %v5909_v57 = vadd.f32 %v8185_v27, %v5908_v34  ;;  %6736 = vmatmul.bf16.gmra.mxu0 %v6549_v4  ;;  %v14789_v19 = vpop.eup %8188  ;;  %6875 = vmatmul.bf16.gmra.mxu1 %v6570_v12  ;;  %v5159_v17 = vsub.f32 %v5095_v55, %v4903_v61  ;;  %v5883_v37 = vsel %vm5882_vm13, %v14755_v20, %v5879_v53  ;;  %v14814_v52 = vpop.f32.mrf.mxu0  ;;  %vm5885_vm1 = vcmp.eq.f32.partialorder %v5884_v48, 8.507059e+37 }
 0x5ed   : > { %8190 = vrcp.f32 %v14784_v11  ;;  %v5936_v21 = vmul.f32 %v14789_v19, %v14766_v35  ;;  %v5097_v20 = vmul.f32 %v15899_v47, %v15898_v8  ;;  %vm5941_vm3 = vweird.f32 %v14789_v19 }
 0x5ee   : > { %v5913_v13 = vsel %vm14797_vm11, %v8185_v27, %v5909_v57  ;;  %8192 = vpow2.f32 %v7504_v22  ;;  %v14812_v26 = vadd.f32 %v13706_v30, %v5159_v17  ;;  %v5888_v27 = vsel %vm5885_vm1, %v5887_v31, %v5883_v37  ;;  %vm5942_vm5 = vmor %vm5940_vm4, %vm5941_vm3 }
 0x5ef   : > { %v5918_v54 = vsel %vm5915_vm15, %v5917_v29, %v5913_v13  ;;  %v5937_v50 = vsub.f32 1.0, %v5936_v21  ;;  %v6499_v4 = vmul.f32 %v5888_v27, %v14621_v36  ;;  %vm5970_vm0 = vweird.f32 %v14784_v11 }
 0x5f0   : > { %v7506_v10 = vmul.f32 -1.442695, %v14812_v26  ;;  %v6501_v46 = vmul.f32 %v5918_v54, %v14655_v16  ;;  %v5976_v36 = vand.u32 2147483648, %v14784_v11  ;;  %v5974_v18 = vand.u32 2147483647, %v14784_v11 }
 0x5f1   : > { %v5938_v0 = vmul.f32 %v14789_v19, %v5937_v50  ;;  %v5099_v61 = vmul.f32 %v14215_v49, %v15900_v62  ;;  %v5946_v48 = vand.u32 2147483648, %v14766_v35  ;;  %v5944_v29 = vand.u32 2147483647, %v14766_v35 }
 0x5f2   : > { %8194 = vpow2.f32 %v7506_v10  ;;  %v6551_v56 = vpack.c.bf16 %v6501_v46, %v6499_v4  ;;  %vm5975_vm7 = vcmp.eq.f32.partialorder %v5974_v18, 8.507059e+37 }
 0x5f3   : > { %v8191_v6 = vpop.eup %8190  ;;  %v4906_v28 = vpop.f32.mrf.mxu2  ;;  %v5939_v3 = vadd.f32 %v14789_v19, %v5938_v0  ;;  %v5947_v31 = vor.u32 1.1754944e-38, %v5946_v48  ;;  %vm5945_vm8 = vcmp.eq.f32.partialorder %v5944_v29, 8.507059e+37 }
 0x5f4   : > { %v8193_v14 = vpop.eup %8192  ;;  %v5966_v15 = vmul.f32 %v8191_v6, %v14784_v11  ;;  %v5161_v12 = vsub.f32 %v5097_v20, %v4906_v28  ;;  %vm5971_vm2 = vweird.f32 %v8191_v6  ;;  %v14833_v22 = vpop.f32.mrf.mxu0  ;;  %v5977_v11 = vor.u32 1.1754944e-38, %v5976_v36  ;;  %v15901_v20 = vld [vmem:[#allocation3_spill] sm:$0xff]  ;;  %v15902_v36 = vld [vmem:[#allocation36_spill] sm:$0xff] }
 0x5f5   : > { %v14821_v24 = vadd.f32 1.0, %v8193_v14  ;;  %vm5972_vm6 = vmor %vm5970_vm0, %vm5971_vm2  ;;  %v5943_v21 = vsel %vm5942_vm5, %v14789_v19, %v5939_v3  ;;  %v5101_v46 = vmul.f32 %v14271_v43, %v15901_v20  ;;  %v5103_v3 = vmul.f32 %v14359_v44, %v15902_v36 }
 0x5f6   : > { %v5967_v41 = vsub.f32 1.0, %v5966_v15  ;;  %v14827_v42 = vadd.f32 %v13706_v30, %v5161_v12 }
 0x5f7   : > { %8196 = vrcp.f32 %v14821_v24  ;;  %vm6000_vm13 = vweird.f32 %v14821_v24  ;;  %v6004_v44 = vand.u32 2147483647, %v14821_v24 }
 0x5f8   : > { %v5968_v34 = vmul.f32 %v8191_v6, %v5967_v41  ;;  %v7508_v53 = vmul.f32 -1.442695, %v14827_v42  ;;  %v8195_v57 = vpop.eup %8194 }
 0x5f9   : > { %v14837_v55 = vadd.f32 1.0, %v8195_v57  ;;  %vm6005_vm2 = vcmp.eq.f32.partialorder %v6004_v44, 8.507059e+37 }
 0x5fa   : > { %v5969_v16 = vadd.f32 %v8191_v6, %v5968_v34  ;;  %8198 = vpow2.f32 %v7508_v53 }
 0x5fb   : > { %v4909_v13 = vpop.f32.mrf.mxu2  ;;  %8200 = vrcp.f32 %v14837_v55  ;;  %v6036_v53 = vand.u32 2147483648, %v14837_v55  ;;  %vm6030_vm11 = vweird.f32 %v14837_v55 }
 0x5fc   : > { %6741 = vmatmul.bf16.gmra.mxu0 %v6551_v56  ;;  %v5973_v17 = vsel %vm5972_vm6, %v8191_v6, %v5969_v16  ;;  %v5163_v37 = vsub.f32 %v5099_v61, %v4909_v13  ;;  %v5948_v6 = vsel %vm5945_vm8, %v5947_v31, %v5943_v21  ;;  %v14863_v28 = vpop.f32.mrf.mxu0  ;;  %v6034_v16 = vand.u32 2147483647, %v14837_v55  ;;  %v15000_v21 = vpop.f32.mrf.mxu1 }
 0x5fd   : > { %v14839_v5 = vpop.eup %8196  ;;  %v5978_v54 = vsel %vm5975_vm7, %v5977_v11, %v5973_v17  ;;  %v6503_v4 = vmul.f32 %v5948_v6, %v14686_v60  ;;  %v6006_v61 = vand.u32 2147483648, %v14821_v24  ;;  %v14895_v11 = vld [vmem:[%s15301_s9] ss:$0 sm:$0xff] }
 0x5fe   : > { %v5996_v49 = vmul.f32 %v14839_v5, %v14821_v24  ;;  %v14854_v27 = vadd.f32 %v13706_v30, %v5163_v37  ;;  %v6505_v47 = vmul.f32 %v5978_v54, %v14753_v25  ;;  %vm6001_vm10 = vweird.f32 %v14839_v5 }
 0x5ff   : > { %vm14899_vm15 = vmor %vm6000_vm13, %vm6001_vm10  ;;  %vm6035_vm1 = vcmp.eq.f32.partialorder %v6034_v16, 8.507059e+37  ;;  %v6007_v6 = vor.u32 1.1754944e-38, %v6006_v61 }
 0x600   : > { %v8199_v35 = vpop.eup %8198  ;;  %v7510_v14 = vmul.f32 -1.442695, %v14854_v27  ;;  %v5997_v19 = vsub.f32 1.0, %v5996_v49  ;;  %v6553_v34 = vpack.c.bf16 %v6505_v47, %v6503_v4  ;;  %v6037_v49 = vor.u32 1.1754944e-38, %v6036_v53  ;;  %v15907_v4 = vld [vmem:[#allocation6_spill] sm:$0xff] }
 0x601   : > { %v14856_v10 = vadd.f32 1.0, %v8199_v35  ;;  %v8201_v8 = vpop.eup %8200 }
 0x602   : > { %v6026_v50 = vmul.f32 %v8201_v8, %v14837_v55  ;;  %8202 = vpow2.f32 %v7510_v14  ;;  %v5998_v0 = vmul.f32 %v14839_v5, %v5997_v19  ;;  %vm6031_vm9 = vweird.f32 %v8201_v8 }
 0x603   : > { %v4912_v15 = vpop.f32.mrf.mxu2  ;;  %8204 = vrcp.f32 %v14856_v10  ;;  %vm14882_vm12 = vmor %vm6030_vm11, %vm6031_vm9  ;;  %vm6060_vm5 = vweird.f32 %v14856_v10 }
 0x604   : > { %v6027_v41 = vsub.f32 1.0, %v6026_v50  ;;  %v5165_v12 = vsub.f32 %v5101_v46, %v4912_v15  ;;  %v5999_v18 = vadd.f32 %v14839_v5, %v5998_v0  ;;  %v6712_v37 = vpop.f32.mrf.mxu0 }
 0x605   : > { %v6713_v35 = vadd.f32 %v14895_v11, %v6712_v37  ;;  %v6066_v37 = vand.u32 2147483648, %v14856_v10 }
 0x606   : > { %v6028_v25 = vmul.f32 %v8201_v8, %v6027_v41  ;;  %v14869_v56 = vadd.f32 %v13706_v30, %v5165_v12  ;;  %v6003_v24 = vsel %vm14899_vm15, %v14839_v5, %v5999_v18  ;;  %v5105_v41 = vmul.f32 %v14429_v45, %v15907_v4 }
 0x607   : > { %v6802_v5 = vadd.f32 %v14323_v58, %v6713_v35  ;;  %v6008_v19 = vsel %vm6005_vm2, %v6007_v6, %v6003_v24 }
 0x608   : > { %v6029_v43 = vadd.f32 %v8201_v8, %v6028_v25  ;;  %v7512_v60 = vmul.f32 -1.442695, %v14869_v56  ;;  %v8203_v57 = vpop.eup %8202  ;;  %v6507_v0 = vmul.f32 %v6008_v19, %v14779_v23 }
 0x609   : > { %v14879_v62 = vpop.eup %8204  ;;  %v14886_v13 = vadd.f32 1.0, %v8203_v57  ;;  %6881 = vst.msk [vmem:[%s14917_s28] sm:$0xff] %vm1217_vm14, %v6802_v5 }
 0x60a   : > { %8206 = vpow2.f32 %v7512_v60  ;;  %v6033_v55 = vsel %vm14882_vm12, %v8201_v8, %v6029_v43  ;;  %v6056_v31 = vmul.f32 %v14879_v62, %v14856_v10  ;;  %vm6061_vm3 = vweird.f32 %v14879_v62 }
 0x60b   : > { %v4915_v29 = vpop.f32.mrf.mxu2  ;;  %8208 = vrcp.f32 %v14886_v13  ;;  %v6038_v14 = vsel %vm6035_vm1, %v6037_v49, %v6033_v55  ;;  %v6096_v23 = vand.u32 2147483648, %v14886_v13  ;;  %vm6090_vm6 = vweird.f32 %v14886_v13  ;;  %v15908_v55 = vld [vmem:[#allocation39_spill] sm:$0xff]  ;;  %vm6062_vm7 = vmor %vm6060_vm5, %vm6061_vm3 }
 0x60c   : > { %6746 = vmatmul.bf16.gmra.mxu0 %v6553_v34  ;;  %v5167_v17 = vsub.f32 %v5103_v3, %v4915_v29  ;;  %v6509_v20 = vmul.f32 %v6038_v14, %v14812_v26  ;;  %v6057_v46 = vsub.f32 1.0, %v6056_v31  ;;  %v6714_v16 = vpop.f32.mrf.mxu0  ;;  %v6094_v29 = vand.u32 2147483647, %v14886_v13 }
 0x60d   : > { %v6715_v60 = vadd.f32 %v14895_v11, %v6714_v16  ;;  %v6067_v14 = vor.u32 1.1754944e-38, %v6066_v37 }
 0x60e   : > { %v14910_v54 = vadd.f32 %v13706_v30, %v5167_v17  ;;  %v6058_v26 = vmul.f32 %v14879_v62, %v6057_v46  ;;  %v6555_v43 = vpack.c.bf16 %v6509_v20, %v6507_v0  ;;  %v5107_v17 = vmul.f32 %v14518_v51, %v15908_v55 }
 0x60f   : > { %v6804_v18 = vadd.f32 %v14405_v2, %v6715_v60  ;;  %v6097_v51 = vor.u32 1.1754944e-38, %v6096_v23  ;;  %vm6095_vm8 = vcmp.eq.f32.partialorder %v6094_v29, 8.507059e+37 }
 0x610   : > { %v7514_v8 = vmul.f32 -1.442695, %v14910_v54  ;;  %v8207_v47 = vpop.eup %8206  ;;  %v6059_v61 = vadd.f32 %v14879_v62, %v6058_v26 }
 0x611   : > { %v14922_v50 = vadd.f32 1.0, %v8207_v47  ;;  %v8209_v15 = vpop.eup %8208  ;;  %6882 = vst.msk [vmem:[%s14917_s28 + $0x8] sm:$0xff] %vm1217_vm14, %v6804_v18 }
 0x612   : > { %8210 = vpow2.f32 %v7514_v8  ;;  %v6086_v34 = vmul.f32 %v8209_v15, %v14886_v13  ;;  %vm6091_vm0 = vweird.f32 %v8209_v15  ;;  %v6064_v13 = vand.u32 2147483647, %v14856_v10 }
 0x613   : > { %v4918_v12 = vpop.f32.mrf.mxu2  ;;  %8212 = vrcp.f32 %v14922_v50  ;;  %vm14950_vm4 = vmor %vm6090_vm6, %vm6091_vm0  ;;  %v6063_v31 = vsel %vm6062_vm7, %v14879_v62, %v6059_v61  ;;  %vm6120_vm15 = vweird.f32 %v14922_v50 }
 0x614   : > { %v5169_v58 = vsub.f32 %v5105_v41, %v4918_v12  ;;  %v6087_v25 = vsub.f32 1.0, %v6086_v34  ;;  %vm6065_vm9 = vcmp.eq.f32.partialorder %v6064_v13, 8.507059e+37  ;;  %v6124_v13 = vand.u32 2147483647, %v14922_v50 }
 0x615   : > { %v6068_v19 = vsel %vm6065_vm9, %v6067_v14, %v6063_v31 }
 0x616   : > { %v14933_v53 = vadd.f32 %v13706_v30, %v5169_v58  ;;  %v6088_v45 = vmul.f32 %v8209_v15, %v6087_v25  ;;  %v6511_v26 = vmul.f32 %v6068_v19, %v14827_v42  ;;  %vm6125_vm3 = vcmp.eq.f32.partialorder %v6124_v13, 8.507059e+37 }
 0x618   : > { %v8211_v57 = vpop.eup %8210  ;;  %v7516_v3 = vmul.f32 -1.442695, %v14933_v53  ;;  %v6089_v48 = vadd.f32 %v8209_v15, %v6088_v45 }
 0x619   : > { %v14938_v36 = vadd.f32 1.0, %v8211_v57  ;;  %v14945_v44 = vpop.eup %8212 }
 0x61a   : > { %v6093_v49 = vsel %vm14950_vm4, %v8209_v15, %v6089_v48  ;;  %v6116_v35 = vmul.f32 %v14945_v44, %v14922_v50  ;;  %v15911_v15 = vld [vmem:[#allocation9_spill] sm:$0xff]  ;;  %vm6121_vm11 = vweird.f32 %v14945_v44 }
 0x61b   : > { %8214 = vrcp.f32 %v14938_v36  ;;  %v4921_v2 = vpop.f32.mrf.mxu2  ;;  %v6098_v8 = vsel %vm6095_vm8, %v6097_v51, %v6093_v49  ;;  %v5109_v4 = vmul.f32 %v14579_v32, %v15911_v15  ;;  %vm6150_vm12 = vweird.f32 %v14938_v36  ;;  %vm6122_vm1 = vmor %vm6120_vm15, %vm6121_vm11 }
 0x61c   : > { %6751 = vmatmul.bf16.gmra.mxu0 %v6555_v43  ;;  %8216 = vpow2.f32 %v7516_v3  ;;  %v5171_v24 = vsub.f32 %v5107_v17, %v4921_v2  ;;  %v6717_v6 = vpop.f32.mrf.mxu0  ;;  %v6513_v41 = vmul.f32 %v6098_v8, %v14854_v27  ;;  %v6117_v12 = vsub.f32 1.0, %v6116_v35  ;;  %v15912_v17 = vld [vmem:[#allocation42_spill] sm:$0xff] }
 0x61d   : > { %v6718_v5 = vadd.f32 %v14895_v11, %v6717_v6  ;;  %v6156_v3 = vand.u32 2147483648, %v14938_v36  ;;  %v6154_v48 = vand.u32 2147483647, %v14938_v36  ;;  %v5111_v37 = vmul.f32 %v14669_v39, %v15912_v17 }
 0x61e   : > { %v14967_v10 = vadd.f32 %v13706_v30, %v5171_v24  ;;  %v6557_v16 = vpack.c.bf16 %v6513_v41, %v6511_v26  ;;  %v6126_v2 = vand.u32 2147483648, %v14922_v50  ;;  %v15035_v26 = vpop.f32.mrf.mxu1 }
 0x61f   : > { %v6807_v62 = vadd.f32 %v14457_v38, %v6718_v5  ;;  %v6118_v38 = vmul.f32 %v14945_v44, %v6117_v12  ;;  %v6157_v39 = vor.u32 1.1754944e-38, %v6156_v3  ;;  %vm6155_vm2 = vcmp.eq.f32.partialorder %v6154_v48, 8.507059e+37 }
 0x620   : > { %v7518_v20 = vmul.f32 -1.442695, %v14967_v10  ;;  %v6127_v6 = vor.u32 1.1754944e-38, %v6126_v2 }
 0x621   : > { %v8215_v47 = vpop.eup %8214  ;;  %6883 = vst.msk [vmem:[%s14917_s28 + $0x10] sm:$0xff] %vm1217_vm14, %v6807_v62  ;;  %v6119_v61 = vadd.f32 %v14945_v44, %v6118_v38 }
 0x622   : > { %v8217_v46 = vpop.eup %8216  ;;  %v6146_v0 = vmul.f32 %v8215_v47, %v14938_v36  ;;  %8218 = vpow2.f32 %v7518_v20  ;;  %vm6151_vm10 = vweird.f32 %v8215_v47 }
 0x623   : > { %v14976_v34 = vadd.f32 1.0, %v8217_v46  ;;  %v4924_v58 = vpop.f32.mrf.mxu2  ;;  %vm15004_vm13 = vmor %vm6150_vm12, %vm6151_vm10  ;;  %v6123_v24 = vsel %vm6122_vm1, %v14945_v44, %v6119_v61 }
 0x624   : > { %v6147_v25 = vsub.f32 1.0, %v6146_v0  ;;  %v5173_v43 = vsub.f32 %v5109_v4, %v4924_v58  ;;  %v6719_v60 = vpop.f32.mrf.mxu0  ;;  %v15915_v4 = vld [vmem:[#allocation45_spill] sm:$0xff] }
 0x625   : > { %8220 = vrcp.f32 %v14976_v34  ;;  %v6720_v57 = vadd.f32 %v14895_v11, %v6719_v60  ;;  %v5113_v41 = vmul.f32 %v14730_v1, %v15915_v4  ;;  %v15916_v60 = vld [vmem:[#allocation47_spill] sm:$0xff]  ;;  %v6186_v48 = vand.u32 2147483648, %v14976_v34 }
 0x626   : > { %v6148_v32 = vmul.f32 %v8215_v47, %v6147_v25  ;;  %v14984_v27 = vadd.f32 %v13706_v30, %v5173_v43  ;;  %vm6180_vm7 = vweird.f32 %v14976_v34  ;;  %v6184_v2 = vand.u32 2147483647, %v14976_v34 }
 0x627   : > { %v6809_v18 = vadd.f32 %v14553_v9, %v6720_v57 }
 0x628   : > { %v6149_v45 = vadd.f32 %v8215_v47, %v6148_v32  ;;  %v7520_v23 = vmul.f32 -1.442695, %v14984_v27  ;;  %v8219_v42 = vpop.eup %8218  ;;  %vm6185_vm10 = vcmp.eq.f32.partialorder %v6184_v2, 8.507059e+37 }
 0x629   : > { %v14994_v29 = vadd.f32 1.0, %v8219_v42  ;;  %6884 = vst.msk [vmem:[%s14917_s28 + $0x18] sm:$0xff] %vm1217_vm14, %v6809_v18 }
 0x62a   : > { %8222 = vpow2.f32 %v7520_v23  ;;  %v6153_v49 = vsel %vm15004_vm13, %v8215_v47, %v6149_v45  ;;  %v6128_v47 = vsel %vm6125_vm3, %v6127_v6, %v6123_v24 }
 0x62b   : > { %v14996_v55 = vpop.eup %8220  ;;  %v4927_v36 = vpop.f32.mrf.mxu2  ;;  %8224 = vrcp.f32 %v14994_v29  ;;  %v6158_v50 = vsel %vm6155_vm2, %v6157_v39, %v6153_v49  ;;  %v6515_v58 = vmul.f32 %v6128_v47, %v14869_v56  ;;  %v5115_v56 = vmul.f32 %v14775_v33, %v15916_v60  ;;  %v15919_v47 = vld [vmem:[#allocation49_spill] sm:$0xff] }
 0x62c   : > { %6756 = vmatmul.bf16.gmra.mxu0 %v6557_v16  ;;  %v5175_v51 = vsub.f32 %v5111_v37, %v4927_v36  ;;  %v6176_v31 = vmul.f32 %v14996_v55, %v14976_v34  ;;  %v6517_v46 = vmul.f32 %v6158_v50, %v14910_v54  ;;  %v6216_v45 = vand.u32 2147483648, %v14994_v29  ;;  %v15076_v34 = vpop.f32.mrf.mxu1 }
 0x62d   : > { %v6722_v35 = vpop.f32.mrf.mxu0  ;;  %vm6181_vm6 = vweird.f32 %v14996_v55  ;;  %vm6210_vm4 = vweird.f32 %v14994_v29  ;;  %v6214_v61 = vand.u32 2147483647, %v14994_v29 }
 0x62e   : > { %v15021_v14 = vadd.f32 %v13706_v30, %v5175_v51  ;;  %v6723_v8 = vadd.f32 %v14895_v11, %v6722_v35  ;;  %v6177_v15 = vsub.f32 1.0, %v6176_v31  ;;  %v6559_v43 = vpack.c.bf16 %v6517_v46, %v6515_v58  ;;  %vm6182_vm8 = vmor %vm6180_vm7, %vm6181_vm6 }
 0x62f   : > { %v6217_v36 = vor.u32 1.1754944e-38, %v6216_v45  ;;  %vm6215_vm9 = vcmp.eq.f32.partialorder %v6214_v61, 8.507059e+37  ;;  %v6187_v51 = vor.u32 1.1754944e-38, %v6186_v48 }
 0x630   : > { %v8223_v5 = vpop.eup %8222  ;;  %v7522_v44 = vmul.f32 -1.442695, %v15021_v14  ;;  %v6812_v20 = vadd.f32 %v14623_v40, %v6723_v8  ;;  %v6178_v54 = vmul.f32 %v14996_v55, %v6177_v15 }
 0x631   : > { %v15024_v19 = vadd.f32 1.0, %v8223_v5  ;;  %v8225_v62 = vpop.eup %8224 }
 0x632   : > { %v6206_v12 = vmul.f32 %v8225_v62, %v14994_v29  ;;  %6885 = vst.msk [vmem:[%s14917_s28 + $0x20] sm:$0xff] %vm1217_vm14, %v6812_v20  ;;  %8226 = vpow2.f32 %v7522_v44  ;;  %vm6211_vm0 = vweird.f32 %v8225_v62  ;;  %v6179_v18 = vadd.f32 %v14996_v55, %v6178_v54 }
 0x633   : > { %v4930_v0 = vpop.f32.mrf.mxu2  ;;  %8228 = vrcp.f32 %v15024_v19  ;;  %vm15055_vm5 = vmor %vm6210_vm4, %vm6211_vm0  ;;  %v5117_v44 = vmul.f32 %v14814_v52, %v15919_v47  ;;  %vm6240_vm1 = vweird.f32 %v15024_v19 }
 0x634   : > { %v6207_v25 = vsub.f32 1.0, %v6206_v12  ;;  %v5177_v40 = vsub.f32 %v5113_v41, %v4930_v0  ;;  %v6183_v13 = vsel %vm6182_vm8, %v14996_v55, %v6179_v18 }
 0x635   : > { %v6724_v38 = vpop.f32.mrf.mxu0  ;;  %v6188_v6 = vsel %vm6185_vm10, %v6187_v51, %v6183_v13 }
 0x636   : > { %v6208_v32 = vmul.f32 %v8225_v62, %v6207_v25  ;;  %v15040_v1 = vadd.f32 %v13706_v30, %v5177_v40  ;;  %v6725_v16 = vadd.f32 %v14895_v11, %v6724_v38  ;;  %v15093_v25 = vpop.f32.mrf.mxu1 }
 0x638   : > { %v6209_v57 = vadd.f32 %v8225_v62, %v6208_v32  ;;  %v7524_v23 = vmul.f32 -1.442695, %v15040_v1  ;;  %v6814_v42 = vadd.f32 %v14688_v63, %v6725_v16  ;;  %v8227_v3 = vpop.eup %8226 }
 0x639   : > { %v15052_v33 = vpop.eup %8228  ;;  %v15059_v37 = vadd.f32 1.0, %v8227_v3 }
 0x63a   : > { %8230 = vpow2.f32 %v7524_v23  ;;  %6886 = vst.msk [vmem:[%s14917_s28 + $0x28] sm:$0xff] %vm1217_vm14, %v6814_v42  ;;  %v6213_v29 = vsel %vm15055_vm5, %v8225_v62, %v6209_v57  ;;  %v6236_v49 = vmul.f32 %v15052_v33, %v15024_v19  ;;  %v6519_v62 = vmul.f32 %v6188_v6, %v14933_v53  ;;  %v15920_v57 = vld [vmem:[#allocation51_spill] sm:$0xff] }
 0x63b   : > { %v4933_v63 = vpop.f32.mrf.mxu2  ;;  %8232 = vrcp.f32 %v15059_v37  ;;  %v6218_v24 = vsel %vm6215_vm9, %v6217_v36, %v6213_v29  ;;  %vm6241_vm11 = vweird.f32 %v15052_v33  ;;  %vm6270_vm13 = vweird.f32 %v15059_v37  ;;  %v15923_v36 = vld [vmem:[#allocation53_spill] sm:$0xff] }
 0x63c   : > { %6761 = vmatmul.bf16.gmra.mxu0 %v6559_v43  ;;  %v5179_v9 = vsub.f32 %v5115_v56, %v4933_v63  ;;  %v6521_v50 = vmul.f32 %v6218_v24, %v14967_v10  ;;  %v6237_v8 = vsub.f32 1.0, %v6236_v49  ;;  %v6276_v40 = vand.u32 2147483648, %v15059_v37  ;;  %vm6242_vm2 = vmor %vm6240_vm1, %vm6241_vm11 }
 0x63d   : > { %v6274_v16 = vand.u32 2147483647, %v15059_v37  ;;  %v5119_v45 = vmul.f32 %v14833_v22, %v15920_v57  ;;  %v6246_v23 = vand.u32 2147483648, %v15024_v19  ;;  %v5121_v13 = vmul.f32 %v14863_v28, %v15923_v36 }
 0x63e   : > { %v15074_v39 = vadd.f32 %v13706_v30, %v5179_v9  ;;  %v6238_v4 = vmul.f32 %v15052_v33, %v6237_v8  ;;  %v6561_v10 = vpack.c.bf16 %v6521_v50, %v6519_v62  ;;  %v6277_v22 = vor.u32 1.1754944e-38, %v6276_v40  ;;  %v15135_v50 = vpop.f32.mrf.mxu1 }
 0x63f   : > { %vm6275_vm3 = vcmp.eq.f32.partialorder %v6274_v16, 8.507059e+37 }
 0x640   : > { %v7526_v31 = vmul.f32 -1.442695, %v15074_v39  ;;  %v8231_v35 = vpop.eup %8230  ;;  %v6239_v38 = vadd.f32 %v15052_v33, %v6238_v4 }
 0x641   : > { %v15080_v55 = vadd.f32 1.0, %v8231_v35  ;;  %v8233_v5 = vpop.eup %8232 }
 0x642   : > { %8234 = vpow2.f32 %v7526_v31  ;;  %v6266_v46 = vmul.f32 %v8233_v5, %v15059_v37  ;;  %vm6271_vm12 = vweird.f32 %v8233_v5  ;;  %v6243_v48 = vsel %vm6242_vm2, %v15052_v33, %v6239_v38  ;;  %v15925_v38 = vld [vmem:[#allocation65_spill] sm:$0xff] }
 0x643   : > { %v4936_v20 = vpop.f32.mrf.mxu2  ;;  %8236 = vrcp.f32 %v15080_v55  ;;  %vm15109_vm15 = vmor %vm6270_vm13, %vm6271_vm12  ;;  %v6247_v37 = vor.u32 1.1754944e-38, %v6246_v23  ;;  %v6306_v16 = vand.u32 2147483648, %v15080_v55  ;;  %vm6300_vm8 = vweird.f32 %v15080_v55 }
 0x644   : > { %v5181_v15 = vsub.f32 %v5117_v44, %v4936_v20  ;;  %v6267_v41 = vsub.f32 1.0, %v6266_v46  ;;  %v6304_v57 = vand.u32 2147483647, %v15080_v55 }
 0x646   : > { %v15089_v0 = vadd.f32 %v13706_v30, %v5181_v15  ;;  %v6268_v52 = vmul.f32 %v8233_v5, %v6267_v41  ;;  %vm6305_vm11 = vcmp.eq.f32.partialorder %v6304_v57, 8.507059e+37 }
 0x648   : > { %v8235_v58 = vpop.eup %8234  ;;  %v7528_v43 = vmul.f32 -1.442695, %v15089_v0  ;;  %v6269_v32 = vadd.f32 %v8233_v5, %v6268_v52 }
 0x649   : > { %v6727_v12 = vpop.f32.mrf.mxu0  ;;  %v15097_v54 = vadd.f32 1.0, %v8235_v58  ;;  %v15103_v56 = vpop.eup %8236 }
 0x64a   : > { %v6728_v53 = vadd.f32 %v14895_v11, %v6727_v12  ;;  %v6273_v18 = vsel %vm15109_vm15, %v8233_v5, %v6269_v32  ;;  %v6296_v17 = vmul.f32 %v15103_v56, %v15080_v55  ;;  %vm6301_vm4 = vweird.f32 %v15103_v56 }
 0x64b   : > { %8238 = vrcp.f32 %v15097_v54  ;;  %v4939_v3 = vpop.f32.mrf.mxu2  ;;  %v6278_v63 = vsel %vm6275_vm3, %v6277_v22, %v6273_v18  ;;  %vm6330_vm5 = vweird.f32 %v15097_v54  ;;  %v6336_v12 = vand.u32 2147483648, %v15097_v54  ;;  %vm6302_vm9 = vmor %vm6300_vm8, %vm6301_vm4 }
 0x64c   : > { %v6817_v60 = vadd.f32 %v14763_v7, %v6728_v53  ;;  %6766 = vmatmul.bf16.gmra.mxu0 %v6561_v10  ;;  %v6244_v7 = vand.u32 2147483647, %v15024_v19  ;;  %8240 = vpow2.f32 %v7528_v43  ;;  %v5183_v61 = vsub.f32 %v5119_v45, %v4939_v3  ;;  %v15924_v43 = vld [vmem:[#allocation55_spill] sm:$0xff]  ;;  %v15174_v45 = vpop.f32.mrf.mxu1 }
 0x64d   : > { %v6525_v24 = vmul.f32 %v6278_v63, %v15021_v14  ;;  %v6297_v31 = vsub.f32 1.0, %v6296_v17  ;;  %v6334_v10 = vand.u32 2147483647, %v15097_v54  ;;  %v5123_v32 = vmul.f32 %v15925_v38, %v15924_v43 }
 0x64e   : > { %6887 = vst.msk [vmem:[%s14917_s28 + $0x30] sm:$0xff] %vm1217_vm14, %v6817_v60  ;;  %v15126_v2 = vadd.f32 %v13706_v30, %v5183_v61  ;;  %vm6245_vm0 = vcmp.eq.f32.partialorder %v6244_v7, 8.507059e+37  ;;  %v6337_v23 = vor.u32 1.1754944e-38, %v6336_v12  ;;  %v6307_v7 = vor.u32 1.1754944e-38, %v6306_v16 }
 0x64f   : > { %v6248_v49 = vsel %vm6245_vm0, %v6247_v37, %v6243_v48  ;;  %v6298_v14 = vmul.f32 %v15103_v56, %v6297_v31  ;;  %vm6335_vm10 = vcmp.eq.f32.partialorder %v6334_v10, 8.507059e+37 }
 0x650   : > { %v7530_v33 = vmul.f32 -1.442695, %v15126_v2  ;;  %v6523_v47 = vmul.f32 %v6248_v49, %v14984_v27 }
 0x651   : > { %v6729_v19 = vpop.f32.mrf.mxu0  ;;  %v8239_v9 = vpop.eup %8238  ;;  %v6299_v58 = vadd.f32 %v15103_v56, %v6298_v14 }
 0x652   : > { %v6730_v29 = vadd.f32 %v14895_v11, %v6729_v19  ;;  %v8241_v51 = vpop.eup %8240  ;;  %v6326_v35 = vmul.f32 %v8239_v9, %v15097_v54  ;;  %8242 = vpow2.f32 %v7530_v33  ;;  %v6563_v62 = vpack.c.bf16 %v6525_v24, %v6523_v47 }
 0x653   : > { %v15137_v8 = vadd.f32 1.0, %v8241_v51  ;;  %v4942_v5 = vpop.f32.mrf.mxu2  ;;  %vm6331_vm6 = vweird.f32 %v8239_v9  ;;  %v6303_v3 = vsel %vm6302_vm9, %v15103_v56, %v6299_v58 }
 0x654   : > { %v6819_v6 = vadd.f32 %v14793_v59, %v6730_v29  ;;  %v6327_v28 = vsub.f32 1.0, %v6326_v35  ;;  %v5185_v44 = vsub.f32 %v5121_v13, %v4942_v5  ;;  %vm15163_vm7 = vmor %vm6330_vm5, %vm6331_vm6  ;;  %v6308_v37 = vsel %vm6305_vm11, %v6307_v7, %v6303_v3  ;;  %v15196_v24 = vpop.f32.mrf.mxu1 }
 0x655   : > { %8244 = vrcp.f32 %v15137_v8  ;;  %v6366_v14 = vand.u32 2147483648, %v15137_v8  ;;  %vm6360_vm2 = vweird.f32 %v15137_v8 }
 0x656   : > { %6888 = vst.msk [vmem:[%s14917_s28 + $0x38] sm:$0xff] %vm1217_vm14, %v6819_v6  ;;  %v6328_v20 = vmul.f32 %v8239_v9, %v6327_v28  ;;  %v15145_v59 = vadd.f32 %v13706_v30, %v5185_v44 }
 0x658   : > { %v6329_v15 = vadd.f32 %v8239_v9, %v6328_v20  ;;  %v7532_v27 = vmul.f32 -1.442695, %v15145_v59  ;;  %v8243_v41 = vpop.eup %8242 }
 0x659   : > { %v6732_v46 = vpop.f32.mrf.mxu0  ;;  %v15154_v52 = vadd.f32 1.0, %v8243_v41 }
 0x65a   : > { %v6733_v4 = vadd.f32 %v14895_v11, %v6732_v46  ;;  %8246 = vpow2.f32 %v7532_v27  ;;  %v6367_v27 = vor.u32 1.1754944e-38, %v6366_v14 }
 0x65b   : > { %v15157_v40 = vpop.eup %8244  ;;  %v4945_v54 = vpop.f32.mrf.mxu2  ;;  %8248 = vrcp.f32 %v15154_v52  ;;  %v6396_v35 = vand.u32 2147483648, %v15154_v52  ;;  %vm6390_vm15 = vweird.f32 %v15154_v52  ;;  %v6394_v47 = vand.u32 2147483647, %v15154_v52 }
 0x65c   : > { %v6822_v53 = vadd.f32 %v15000_v21, %v6733_v4  ;;  %6771 = vmatmul.bf16.gmra.mxu0 %v6563_v62  ;;  %v6333_v21 = vsel %vm15163_vm7, %v8239_v9, %v6329_v15  ;;  %v5187_v42 = vsub.f32 %v5123_v32, %v4945_v54  ;;  %v6356_v55 = vmul.f32 %v15157_v40, %v15137_v8  ;;  %v6838_v12 = vpop.f32.mrf.mxu1 }
 0x65d   : > { %v6338_v18 = vsel %vm6335_vm10, %v6337_v23, %v6333_v21  ;;  %vm6361_vm13 = vweird.f32 %v15157_v40  ;;  %v6364_v62 = vand.u32 2147483647, %v15137_v8  ;;  %v6397_v15 = vor.u32 1.1754944e-38, %v6396_v35 }
 0x65e   : > { %6889 = vst.msk [vmem:[%s14917_s28 + $0x40] sm:$0xff] %vm1217_vm14, %v6822_v53  ;;  %v15182_v61 = vadd.f32 %v13706_v30, %v5187_v42  ;;  %v6529_v29 = vmul.f32 %v6338_v18, %v15074_v39  ;;  %v6357_v9 = vsub.f32 1.0, %v6356_v55  ;;  %v6527_v30 = vmul.f32 %v6308_v37, %v15040_v1  ;;  %vm6362_vm3 = vmor %vm6360_vm2, %vm6361_vm13 }
 0x65f   : > { %vm6395_vm0 = vcmp.eq.f32.partialorder %v6394_v47, 8.507059e+37  ;;  %vm6365_vm6 = vcmp.eq.f32.partialorder %v6364_v62, 8.507059e+37 }
 0x660   : > { %v8247_v48 = vpop.eup %8246  ;;  %v7534_v56 = vmul.f32 -1.442695, %v15182_v61  ;;  %v6358_v33 = vmul.f32 %v15157_v40, %v6357_v9  ;;  %v6565_v51 = vpack.c.bf16 %v6529_v29, %v6527_v30 }
 0x661   : > { %v6734_v22 = vpop.f32.mrf.mxu0  ;;  %v15185_v63 = vadd.f32 1.0, %v8247_v48  ;;  %v8249_v19 = vpop.eup %8248 }
 0x662   : > { %v6735_v17 = vadd.f32 %v14895_v11, %v6734_v22  ;;  %v6386_v13 = vmul.f32 %v8249_v19, %v15154_v52  ;;  %8250 = vpow2.f32 %v7534_v56  ;;  %vm6391_vm12 = vweird.f32 %v8249_v19 }
 0x663   : > { %8252 = vrcp.f32 %v15185_v63  ;;  %v6359_v5 = vadd.f32 %v15157_v40, %v6358_v33  ;;  %vm6392_vm1 = vmor %vm6390_vm15, %vm6391_vm12  ;;  %v6426_v7 = vand.u32 2147483648, %v15185_v63  ;;  %vm6420_vm9 = vweird.f32 %v15185_v63 }
 0x664   : > { %v6824_v36 = vadd.f32 %v15035_v26, %v6735_v17  ;;  %v6387_v49 = vsub.f32 1.0, %v6386_v13  ;;  %v6841_v55 = vpop.f32.mrf.mxu1  ;;  %v6424_v18 = vand.u32 2147483647, %v15185_v63 }
 0x665   : > { %v6427_v37 = vor.u32 1.1754944e-38, %v6426_v7 }
 0x666   : > { %6890 = vst.msk [vmem:[%s14917_s28 + $0x48] sm:$0xff] %vm1217_vm14, %v6824_v36  ;;  %v6388_v31 = vmul.f32 %v8249_v19, %v6387_v49  ;;  %vm6425_vm12 = vcmp.eq.f32.partialorder %v6424_v18, 8.507059e+37 }
 0x668   : > { %v6389_v1 = vadd.f32 %v8249_v19, %v6388_v31  ;;  %v8251_v6 = vpop.eup %8250 }
 0x669   : > { %v6737_v39 = vpop.f32.mrf.mxu0  ;;  %v8253_v44 = vpop.eup %8252  ;;  %v5513_v20 = vadd.f32 1.0, %v8251_v6 }
 0x66a   : > { %v6738_v26 = vadd.f32 %v14895_v11, %v6737_v39  ;;  %v6393_v46 = vsel %vm6392_vm1, %v8249_v19, %v6389_v1  ;;  %v6416_v4 = vmul.f32 %v8253_v44, %v15185_v63  ;;  %vm6421_vm5 = vweird.f32 %v8253_v44 }
 0x66b   : > { %8254 = vrcp.f32 %v5513_v20  ;;  %v6398_v41 = vsel %vm6395_vm0, %v6397_v15, %v6393_v46  ;;  %vm6450_vm7 = vweird.f32 %v5513_v20  ;;  %v6454_v3 = vand.u32 2147483647, %v5513_v20  ;;  %vm6422_vm10 = vmor %vm6420_vm9, %vm6421_vm5 }
 0x66c   : > { %v6827_v28 = vadd.f32 %v15076_v34, %v6738_v26  ;;  %6776 = vmatmul.bf16.gmra.mxu0 %v6565_v51  ;;  %v6363_v34 = vsel %vm6362_vm3, %v15157_v40, %v6359_v5  ;;  %v6533_v52 = vmul.f32 %v6398_v41, %v15126_v2  ;;  %v6417_v53 = vsub.f32 1.0, %v6416_v4  ;;  %v6843_v13 = vpop.f32.mrf.mxu1 }
 0x66d   : > { %v6368_v58 = vsel %vm6365_vm6, %v6367_v27, %v6363_v34  ;;  %v6456_v2 = vand.u32 2147483648, %v5513_v20  ;;  %vm6455_vm11 = vcmp.eq.f32.partialorder %v6454_v3, 8.507059e+37 }
 0x66e   : > { %6891 = vst.msk [vmem:[%s14917_s28 + $0x50] sm:$0xff] %vm1217_vm14, %v6827_v28  ;;  %v6531_v40 = vmul.f32 %v6368_v58, %v15089_v0  ;;  %v6418_v16 = vmul.f32 %v8253_v44, %v6417_v53 }
 0x66f   : > { %v6457_v48 = vor.u32 1.1754944e-38, %v6456_v2 }
 0x670   : > { %v6567_v54 = vpack.c.bf16 %v6533_v52, %v6531_v40  ;;  %v6419_v42 = vadd.f32 %v8253_v44, %v6418_v16 }
 0x671   : > { %v6739_v10 = vpop.f32.mrf.mxu0  ;;  %v8255_v38 = vpop.eup %8254 }
 0x672   : > { %v6740_v8 = vadd.f32 %v14895_v11, %v6739_v10  ;;  %v6446_v32 = vmul.f32 %v8255_v38, %v5513_v20  ;;  %vm6451_vm4 = vweird.f32 %v8255_v38  ;;  %v6423_v17 = vsel %vm6422_vm10, %v8253_v44, %v6419_v42 }
 0x673   : > { %vm6452_vm8 = vmor %vm6450_vm7, %vm6451_vm4  ;;  %v6428_v29 = vsel %vm6425_vm12, %v6427_v37, %v6423_v17 }
 0x674   : > { %v6829_v43 = vadd.f32 %v15093_v25, %v6740_v8  ;;  %v6447_v60 = vsub.f32 1.0, %v6446_v32  ;;  %v6535_v36 = vmul.f32 %v6428_v29, %v15145_v59  ;;  %v6846_v31 = vpop.f32.mrf.mxu1 }
 0x676   : > { %6892 = vst.msk [vmem:[%s14917_s28 + $0x58] sm:$0xff] %vm1217_vm14, %v6829_v43  ;;  %v6448_v21 = vmul.f32 %v8255_v38, %v6447_v60 }
 0x678   : > { %v6449_v25 = vadd.f32 %v8255_v38, %v6448_v21 }
 0x679   : > { %v6742_v57 = vpop.f32.mrf.mxu0 }
 0x67a   : > { %v6743_v23 = vadd.f32 %v14895_v11, %v6742_v57  ;;  %v6453_v22 = vsel %vm6452_vm8, %v8255_v38, %v6449_v25 }
 0x67c   : > { %v6832_v0 = vadd.f32 %v15135_v50, %v6743_v23  ;;  %6781 = vmatmul.bf16.gmra.mxu0 %v6567_v54  ;;  %v6458_v50 = vsel %vm6455_vm11, %v6457_v48, %v6453_v22  ;;  %v6848_v1 = vpop.f32.mrf.mxu1 }
 0x67d   : > { %v6537_v63 = vmul.f32 %v6458_v50, %v15182_v61 }
 0x67e   : > { %6893 = vst.msk [vmem:[%s14917_s28 + $0x60] sm:$0xff] %vm1217_vm14, %v6832_v0 }
 0x67f   : > { %v6569_v30 = vpack.c.bf16 %v6537_v63, %v6535_v36 }
 0x681   : > { %v6744_v56 = vpop.f32.mrf.mxu0 }
 0x682   : > { %v6745_v19 = vadd.f32 %v14895_v11, %v6744_v56 }
 0x684   : > { %v6834_v9 = vadd.f32 %v15174_v45, %v6745_v19  ;;  %v6851_v47 = vpop.f32.mrf.mxu1 }
 0x686   : > { %6894 = vst.msk [vmem:[%s14917_s28 + $0x68] sm:$0xff] %vm1217_vm14, %v6834_v9 }
 0x689   : > { %v6747_v49 = vpop.f32.mrf.mxu0 }
 0x68a   : > { %v6748_v33 = vadd.f32 %v14895_v11, %v6747_v49 }
 0x68c   : > { %v6837_v51 = vadd.f32 %v15196_v24, %v6748_v33  ;;  %6786 = vmatmul.bf16.gmra.mxu0 %v6569_v30  ;;  %v6853_v20 = vpop.f32.mrf.mxu1 }
 0x68e   : > { %6895 = vst.msk [vmem:[%s14917_s28 + $0x70] sm:$0xff] %vm1217_vm14, %v6837_v51 }
 0x691   : > { %v6749_v61 = vpop.f32.mrf.mxu0 }
 0x692   : > { %v6750_v45 = vadd.f32 %v14895_v11, %v6749_v61 }
 0x694   : > { %v6839_v59 = vadd.f32 %v6838_v12, %v6750_v45  ;;  %v6856_v34 = vpop.f32.mrf.mxu1 }
 0x696   : > { %6896 = vst.msk [vmem:[%s14917_s28 + $0x78] sm:$0xff] %vm1217_vm14, %v6839_v59 }
 0x699   : > { %v6752_v39 = vpop.f32.mrf.mxu0 }
 0x69a   : > { %v6753_v26 = vadd.f32 %v14895_v11, %v6752_v39 }
 0x69c   : > { %v6842_v35 = vadd.f32 %v6841_v55, %v6753_v26  ;;  %v6858_v12 = vpop.f32.mrf.mxu1 }
 0x69e   : > { %6897 = vst.msk [vmem:[%s14917_s28 + $0x80] sm:$0xff] %vm1217_vm14, %v6842_v35 }
 0x6a1   : > { %v6754_v24 = vpop.f32.mrf.mxu0 }
 0x6a2   : > { %v6755_v6 = vadd.f32 %v14895_v11, %v6754_v24 }
 0x6a4   : > { %v6844_v5 = vadd.f32 %v6843_v13, %v6755_v6  ;;  %v6861_v38 = vpop.f32.mrf.mxu1 }
 0x6a6   : > { %6898 = vst.msk [vmem:[%s14917_s28 + $0x88] sm:$0xff] %vm1217_vm14, %v6844_v5 }
 0x6a9   : > { %v6757_v28 = vpop.f32.mrf.mxu0 }
 0x6aa   : > { %v6758_v44 = vadd.f32 %v14895_v11, %v6757_v28 }
 0x6ac   : > { %v6847_v14 = vadd.f32 %v6846_v31, %v6758_v44  ;;  %v6863_v60 = vpop.f32.mrf.mxu1 }
 0x6ae   : > { %6899 = vst.msk [vmem:[%s14917_s28 + $0x90] sm:$0xff] %vm1217_vm14, %v6847_v14 }
 0x6b1   : > { %v6759_v62 = vpop.f32.mrf.mxu0 }
 0x6b2   : > { %v6760_v46 = vadd.f32 %v14895_v11, %v6759_v62 }
 0x6b4   : > { %v6849_v15 = vadd.f32 %v6848_v1, %v6760_v46  ;;  %v6866_v23 = vpop.f32.mrf.mxu1 }
 0x6b6   : > { %6900 = vst.msk [vmem:[%s14917_s28 + $0x98] sm:$0xff] %vm1217_vm14, %v6849_v15 }
 0x6b9   : > { %v6762_v4 = vpop.f32.mrf.mxu0 }
 0x6ba   : > { %v6763_v27 = vadd.f32 %v14895_v11, %v6762_v4 }
 0x6bc   : > { %v6852_v41 = vadd.f32 %v6851_v47, %v6763_v27  ;;  %v6868_v55 = vpop.f32.mrf.mxu1 }
 0x6be   : > { %6901 = vst.msk [vmem:[%s14917_s28 + $0xa0] sm:$0xff] %vm1217_vm14, %v6852_v41 }
 0x6c1   : > { %v6764_v10 = vpop.f32.mrf.mxu0 }
 0x6c2   : > { %v6765_v8 = vadd.f32 %v14895_v11, %v6764_v10 }
 0x6c4   : > { %v6854_v58 = vadd.f32 %v6853_v20, %v6765_v8  ;;  %v6871_v17 = vpop.f32.mrf.mxu1 }
 0x6c6   : > { %6902 = vst.msk [vmem:[%s14917_s28 + $0xa8] sm:$0xff] %vm1217_vm14, %v6854_v58 }
 0x6c9   : > { %v6767_v52 = vpop.f32.mrf.mxu0 }
 0x6ca   : > { %v6768_v53 = vadd.f32 %v14895_v11, %v6767_v52 }
 0x6cc   : > { %v6857_v43 = vadd.f32 %v6856_v34, %v6768_v53  ;;  %v6873_v19 = vpop.f32.mrf.mxu1 }
 0x6ce   : > { %6903 = vst.msk [vmem:[%s14917_s28 + $0xb0] sm:$0xff] %vm1217_vm14, %v6857_v43 }
 0x6d1   : > { %v6769_v40 = vpop.f32.mrf.mxu0 }
 0x6d2   : > { %v6770_v32 = vadd.f32 %v14895_v11, %v6769_v40 }
 0x6d4   : > { %v6859_v16 = vadd.f32 %v6858_v12, %v6770_v32  ;;  %v6876_v36 = vpop.f32.mrf.mxu1 }
 0x6d6   : > { %6904 = vst.msk [vmem:[%s14917_s28 + $0xb8] sm:$0xff] %vm1217_vm14, %v6859_v16 }
 0x6d9   : > { %v6772_v54 = vpop.f32.mrf.mxu0 }
 0x6da   : > { %v6773_v57 = vadd.f32 %v14895_v11, %v6772_v54 }
 0x6dc   : > { %v6862_v21 = vadd.f32 %v6861_v38, %v6773_v57  ;;  %v6878_v31 = vpop.f32.mrf.mxu1 }
 0x6de   : > { %6905 = vst.msk [vmem:[%s14917_s28 + $0xc0] sm:$0xff] %vm1217_vm14, %v6862_v21 }
 0x6e1   : > { %v6774_v2 = vpop.f32.mrf.mxu0 }
 0x6e2   : > { %v6775_v42 = vadd.f32 %v14895_v11, %v6774_v2 }
 0x6e4   : > { %v6864_v25 = vadd.f32 %v6863_v60, %v6775_v42 }
 0x6e6   : > { %6906 = vst.msk [vmem:[%s14917_s28 + $0xc8] sm:$0xff] %vm1217_vm14, %v6864_v25 }
 0x6e9   : > { %v6777_v3 = vpop.f32.mrf.mxu0 }
 0x6ea   : > { %v6778_v0 = vadd.f32 %v14895_v11, %v6777_v3 }
 0x6ec   : > { %v6867_v7 = vadd.f32 %v6866_v23, %v6778_v0 }
 0x6ee   : > { %6907 = vst.msk [vmem:[%s14917_s28 + $0xd0] sm:$0xff] %vm1217_vm14, %v6867_v7 }
 0x6f1   : > { %v6779_v18 = vpop.f32.mrf.mxu0 }
 0x6f2   : > { %v6780_v22 = vadd.f32 %v14895_v11, %v6779_v18 }
 0x6f4   : > { %v6869_v48 = vadd.f32 %v6868_v55, %v6780_v22 }
 0x6f6   : > { %6908 = vst.msk [vmem:[%s14917_s28 + $0xd8] sm:$0xff] %vm1217_vm14, %v6869_v48 }
 0x6f9   : > { %v6782_v37 = vpop.f32.mrf.mxu0 }
 0x6fa   : > { %v6783_v50 = vadd.f32 %v14895_v11, %v6782_v37 }
 0x6fc   : > { %v6872_v56 = vadd.f32 %v6871_v17, %v6783_v50 }
 0x6fe   : > { %6909 = vst.msk [vmem:[%s14917_s28 + $0xe0] sm:$0xff] %vm1217_vm14, %v6872_v56 }
 0x701   : > { %v6784_v29 = vpop.f32.mrf.mxu0 }
 0x702   : > { %v6785_v63 = vadd.f32 %v14895_v11, %v6784_v29 }
 0x704   : > { %v6874_v9 = vadd.f32 %v6873_v19, %v6785_v63 }
 0x706   : > { %6910 = vst.msk [vmem:[%s14917_s28 + $0xe8] sm:$0xff] %vm1217_vm14, %v6874_v9 }
 0x709   : > { %v6787_v13 = vpop.f32.mrf.mxu0 }
 0x70a   : > { %v6788_v30 = vadd.f32 %v14895_v11, %v6787_v13 }
 0x70c   : > { %v6877_v49 = vadd.f32 %v6876_v36, %v6788_v30 }
 0x70e   : > { %6911 = vst.msk [vmem:[%s14917_s28 + $0xf0] sm:$0xff] %vm1217_vm14, %v6877_v49 }
 0x711   : > { %v6789_v33 = vpop.f32.mrf.mxu0 }
 0x712   : > { %v6790_v51 = vadd.f32 %v14895_v11, %v6789_v33 }
 0x714   : > { %v6879_v61 = vadd.f32 %v6878_v31, %v6790_v51 }
 0x716   : > { %6912 = vst.msk [vmem:[%s14917_s28 + $0xf8] sm:$0xff] %vm1217_vm14, %v6879_v61 }
 0x717 PF: > { %s22_s21 = sadd.s32 1, %s8264_s21  }
 0x718   : > { %p19_p4 = scmp.ge.s32.totalorder %s22_s21, 4  }
 0x71a   :  { %21 = sbr.rel (!%p19_p4) target bundleno = 1 (0x1), region = 101 }

</bundles_post_ra>
